<compile_context>
chip_gen: v7x
topology: tpu7x:2x2x1
jax: 0.10.0
libtpu: 0.0.40
codegen_flags: <defaults>
</compile_context>

<pallas_src>
import functools

import jax
import jax.numpy as jnp
from jax import lax
from jax import image as jax_image
from jax.experimental import pallas as pl
from jax.experimental.pallas import tpu as pltpu

_VMEM_LIMIT = 64 * 1024 * 1024


def _round_up(v, m):
    return ((v + m - 1) // m) * m


# ----------------------------------------------------------------------------
# Pallas kernel 1: 3x3 stride-2 pad-1 conv + LeakyReLU on a space-to-depth
# input.  The s2d image lives in a bf16 margin buffer; the 4 neighbouring s2d
# blocks are shifted slices of it, concatenated into one (Mo, 16*Cin) slab and
# reduced with a single MXU dot against a zero-padded weight.
# ----------------------------------------------------------------------------
def _conv_s2d_kernel(xs_ref, w_ref, b_ref, out_ref, buf_ref, *, Wo, Mo, M0, slope):
    Cs = xs_ref.shape[-1]                      # = 4 * Cin (s2d channels)

    # zero only the top margin (all tap offsets are <= 0)
    buf_ref[pl.ds(0, M0), :] = jnp.zeros((M0, Cs), jnp.bfloat16)
    buf_ref[pl.ds(M0, Mo), :] = xs_ref[...]

    col = lax.broadcasted_iota(jnp.int32, (Mo, 1), 0) % Wo
    m_left = (col > 0).astype(jnp.bfloat16)    # kills the wrapped reads at wo == 0

    t00 = buf_ref[pl.ds(M0, Mo), :]                      # s2d block (ho,   wo  )
    t01 = buf_ref[pl.ds(M0 - 1, Mo), :] * m_left         # s2d block (ho,   wo-1)
    t10 = buf_ref[pl.ds(M0 - Wo, Mo), :]                 # s2d block (ho-1, wo  ) (margin at ho==0)
    t11 = buf_ref[pl.ds(M0 - Wo - 1, Mo), :] * m_left    # s2d block (ho-1, wo-1)
    slab = jnp.concatenate([t00, t01, t10, t11], axis=-1)            # (Mo, 16*Cin)

    acc = jnp.dot(slab, w_ref[...], preferred_element_type=jnp.float32) + b_ref[...]
    acc = jnp.where(acc >= 0.0, acc, slope * acc)
    out_ref[...] = acc.astype(out_ref.dtype)


def _prep_s2d_conv_weight(w_oihw):
    """Conv2d weight (Cout, Cin, 3, 3) -> zero-padded (16*Cin, Cout) bf16 matrix
    matching the [block (ay,ax)][ry][rx][cin] slab layout of _conv_s2d_kernel."""
    Cout, Cin = w_oihw.shape[0], w_oihw.shape[1]
    dy_of = {(0, 0): 1, (0, 1): 2, (-1, 1): 0}   # (block offset, s2d sub-row) -> kernel tap
    blocks = []
    for (ay, ax) in ((0, 0), (0, -1), (-1, 0), (-1, -1)):
        sub = []
        for ry in (0, 1):
            for rx in (0, 1):
                dy = dy_of.get((ay, ry))
                dx = dy_of.get((ax, rx))
                if dy is None or dx is None:
                    sub.append(jnp.zeros((Cin, Cout), jnp.float32))
                else:
                    sub.append(jnp.transpose(w_oihw[:, :, dy, dx]))   # (Cin, Cout)
        blocks.append(jnp.concatenate(sub, axis=0))
    return jnp.concatenate(blocks, axis=0).astype(jnp.bfloat16)       # (16*Cin, Cout)


def conv_stride2_pallas(x_nhwc, w_oihw, bias, slope=0.2):
    """3x3 / stride 2 / pad 1 conv + LeakyReLU.  NHWC in, NHWC (bf16) out."""
    N, H, W, Cin = x_nhwc.shape
    He, We = H + (H % 2), W + (W % 2)
    if (He, We) != (H, W):        # zero-pad to even = the conv's own zero padding
        x_nhwc = jnp.pad(x_nhwc, ((0, 0), (0, He - H), (0, We - W), (0, 0)))
    Ho, Wo = He // 2, We // 2
    Mo = Ho * Wo
    # space-to-depth (pure relayout, no read amplification)
    # TODO(synk): do this relayout inside the kernel (strided ref reads) to
    # avoid one permuted HBM copy of the activation.
    xs = x_nhwc.reshape(N, Ho, 2, Wo, 2, Cin)
    xs = jnp.transpose(xs, (0, 1, 3, 2, 4, 5)).reshape(N, Mo, 4 * Cin)

    w_big = _prep_s2d_conv_weight(w_oihw)                # (16*Cin, Cout) bf16
    Cout = w_oihw.shape[0]
    M0 = _round_up(Wo + 1, 8)

    out = pl.pallas_call(
        functools.partial(_conv_s2d_kernel, Wo=Wo, Mo=Mo, M0=M0, slope=slope),
        out_shape=jax.ShapeDtypeStruct((N, Mo, Cout), jnp.bfloat16),
        grid=(N,),
        in_specs=[
            pl.BlockSpec((None, Mo, 4 * Cin), lambda n: (n, 0, 0)),
            pl.BlockSpec((16 * Cin, Cout), lambda n: (0, 0)),
            pl.BlockSpec((1, Cout), lambda n: (0, 0)),
        ],
        out_specs=pl.BlockSpec((None, Mo, Cout), lambda n: (n, 0, 0)),
        scratch_shapes=[pltpu.VMEM((Mo + M0, 4 * Cin), jnp.bfloat16)],
        compiler_params=pltpu.CompilerParams(
            dimension_semantics=("parallel",), vmem_limit_bytes=_VMEM_LIMIT),
    )(xs.astype(jnp.bfloat16), w_big, bias.reshape(1, Cout).astype(jnp.float32))
    return out.reshape(N, Ho, Wo, Cout)


# ----------------------------------------------------------------------------
# Pallas kernel 2: fused 8-layer ResConv chain + lastconv.
# The activation stays resident in VMEM (f32 residual); every layer is ONE
# K = 9*C MXU dot over a pre-masked 9-tap slab built from a bf16 margin
# buffer.  The ConvTranspose2d is the 9th "layer": a zero-padded (9C, 4*52)
# dot producing one lane-dense (M, 208) f32 store (4-phase sub-pixel deconv).
# ----------------------------------------------------------------------------
def _chain_kernel(feat_ref, w_ref, bb_ref, wlast_ref, blast_ref, out_ref, buf_ref,
                  *, n_layers, Wf, M, M0):
    C = feat_ref.shape[-1]

    # zero only the top/bottom margins (interior is overwritten every layer)
    buf_ref[pl.ds(0, M0), :] = jnp.zeros((M0, C), jnp.bfloat16)
    buf_ref[pl.ds(M0 + M, M0), :] = jnp.zeros((M0, C), jnp.bfloat16)

    col = lax.broadcasted_iota(jnp.int32, (M, 1), 0) % Wf
    m_left = (col > 0).astype(jnp.bfloat16)       # kernel column 0 invalid at x == 0
    m_right = (col < Wf - 1).astype(jnp.bfloat16)  # kernel column 2 invalid at x == Wf-1

    def tap_slab(xb):
        """Build the (M, 9C) bf16 slab of the 3x3 neighbourhood; boundary taps
        are masked BEFORE the dot, vertical out-of-range hits the zero margin."""
        buf_ref[pl.ds(M0, M), :] = xb
        taps = []
        for dy in range(3):
            for dx in range(3):
                t = buf_ref[pl.ds(M0 + (dy - 1) * Wf + (dx - 1), M), :]
                if dx == 0:
                    t = t * m_left
                elif dx == 2:
                    t = t * m_right
                taps.append(t)
        return jnp.concatenate(taps, axis=-1)

    x = feat_ref[...].astype(jnp.float32)          # live residual, f32
    for layer in range(n_layers):
        slab = tap_slab(x.astype(jnp.bfloat16))
        acc = jnp.dot(slab, w_ref[layer], preferred_element_type=jnp.float32)
        y = acc + bb_ref[layer] + x                # beta already folded into w / bb
        x = jnp.where(y >= 0.0, y, 0.2 * y)

    # fused lastconv: 4-phase sub-pixel ConvTranspose2d as one zero-padded dot
    slab = tap_slab(x.astype(jnp.bfloat16))
    out = jnp.dot(slab, wlast_ref[...], preferred_element_type=jnp.float32)
    out_ref[...] = (out + blast_ref[...]).astype(out_ref.dtype)


def _prep_resconv_stack(params, n_layers=8):
    """Stack the 8 ResConv weights as (8, 9C, C) bf16 with beta folded in,
    and the 8 biases as (8, 1, C) f32 (already multiplied by beta)."""
    ws, bs = [], []
    for i in range(n_layers):
        w = params[f"res{i}_w"]                            # (C, C, 3, 3)
        beta = params[f"res{i}_beta"].reshape(-1)          # (C,)
        b = params[f"res{i}_b"]                            # (C,)
        wt = jnp.transpose(w, (2, 3, 1, 0)) * beta.reshape(1, 1, 1, -1)  # (ky,kx,ci,co)
        ws.append(wt.reshape(9 * w.shape[1], w.shape[0]))
        bs.append((b * beta).reshape(1, -1))
    w_stack = jnp.stack(ws, 0).astype(jnp.bfloat16)        # (8, 9C, C)
    b_stack = jnp.stack(bs, 0).astype(jnp.float32)         # (8, 1, C)
    return w_stack, b_stack


def _prep_lastconv_weight(w_iohw, bias):
    """ConvTranspose2d weight (C, 52, 4, 4) -> zero-padded (9C, 4*52) bf16 matrix
    over the same 9-offset slab layout (phase-major output channels)."""
    C, Cout = w_iohw.shape[0], w_iohw.shape[1]
    w_big = jnp.zeros((9 * C, 4 * Cout), jnp.float32)
    for py in (0, 1):
        for px in (0, 1):
            q = py * 2 + px
            for roff in (py - 1, py):
                for coff in (px - 1, px):
                    ky = py + 1 - 2 * roff
                    kx = px + 1 - 2 * coff
                    t = (roff + 1) * 3 + (coff + 1)
                    w_big = w_big.at[t * C:(t + 1) * C,
                                     q * Cout:(q + 1) * Cout].set(w_iohw[:, :, ky, kx])
    b_big = jnp.tile(bias.reshape(-1), 4).reshape(1, 4 * Cout).astype(jnp.float32)
    return w_big.astype(jnp.bfloat16), b_big


def convblock_lastconv_pallas(feat_nhwc, w_stack, b_stack, w_last, b_last):
    """feat (N,Hf,Wf,C) bf16 -> (N, Hf*Wf, 4*52) f32 phase-concatenated deconv."""
    N, Hf, Wf, C = feat_nhwc.shape
    M = Hf * Wf
    M0 = _round_up(Wf + 1, 8)
    n_layers = w_stack.shape[0]
    Co = w_last.shape[1]
    # TODO(synk): add row tiling with an 8-row halo (manual DMA) for
    # resolutions where the per-image feature map + 9C slab exceed VMEM
    # (mandatory on v7x's 64 MiB at 1080p-scale inputs).
    kernel = functools.partial(_chain_kernel, n_layers=n_layers, Wf=Wf, M=M, M0=M0)
    out = pl.pallas_call(
        kernel,
        out_shape=jax.ShapeDtypeStruct((N, M, Co), jnp.float32),
        grid=(N,),
        in_specs=[
            pl.BlockSpec((None, M, C), lambda n: (n, 0, 0)),
            pl.BlockSpec((n_layers, 9 * C, C), lambda n: (0, 0, 0)),
            pl.BlockSpec((n_layers, 1, C), lambda n: (0, 0, 0)),
            pl.BlockSpec((9 * C, Co), lambda n: (0, 0)),
            pl.BlockSpec((1, Co), lambda n: (0, 0)),
        ],
        out_specs=pl.BlockSpec((None, M, Co), lambda n: (n, 0, 0)),
        scratch_shapes=[pltpu.VMEM((M + 2 * M0, C), jnp.bfloat16)],
        compiler_params=pltpu.CompilerParams(
            dimension_semantics=("parallel",), vmem_limit_bytes=_VMEM_LIMIT),
    )(feat_nhwc.reshape(N, M, C), w_stack, b_stack, w_last, b_last)
    return out


# ----------------------------------------------------------------------------
# Plain-JAX glue (pure data movement)
# ----------------------------------------------------------------------------
def _assemble_output(phases_flat, Hf, Wf):
    """(N, Hf*Wf, 4*52) phase-major channels -> (N, 4Hf, 4Wf, 13):
    sub-pixel phase interleave + PixelShuffle(2)."""
    N = phases_flat.shape[0]
    per_phase = phases_flat.shape[-1] // 4
    c13 = per_phase // 4
    t = phases_flat.reshape(N, Hf, Wf, 2, 2, c13, 2, 2)   # (n,Yo,Xo,py,px,c13,ry,rx)
    t = jnp.transpose(t, (0, 1, 3, 6, 2, 4, 7, 5))        # (n,Yo,py,ry,Xo,px,rx,c13)
    return t.reshape(N, 4 * Hf, 4 * Wf, c13)


def bilinear_resize_nchw(x, scale):
    if scale == 1.0:
        return x
    N, C, H, W = x.shape
    new_shape = (N, C, int(H * scale), int(W * scale))
    return jax_image.resize(x, new_shape, method="bilinear", antialias=False)


# ----------------------------------------------------------------------------
# IFBlock forward
# ----------------------------------------------------------------------------
def ifblock_forward(params, x_nchw, flow_nchw=None, scale=1):
    x = bilinear_resize_nchw(x_nchw, 1.0 / scale)
    if flow_nchw is not None:
        fl = bilinear_resize_nchw(flow_nchw, 1.0 / scale) * (1.0 / scale)
        x = jnp.concatenate([x, fl], axis=1)

    x = jnp.transpose(x, (0, 2, 3, 1)).astype(jnp.bfloat16)        # NCHW -> NHWC bf16

    # conv0: two stride-2 3x3 convs + LeakyReLU(0.2) (space-to-depth Pallas)
    f = conv_stride2_pallas(x, params["conv0_0_w"], params["conv0_0_b"])
    f = conv_stride2_pallas(f, params["conv0_1_w"], params["conv0_1_b"])

    # convblock (8 x ResConv) + lastconv deconv fused in a single Pallas kernel
    w_stack, b_stack = _prep_resconv_stack(params)
    w_last, b_last = _prep_lastconv_weight(params["last_w"], params["last_b"])
    N, Hf, Wf, _ = f.shape
    phases = convblock_lastconv_pallas(f, w_stack, b_stack, w_last, b_last)

    tmp = _assemble_output(phases, Hf, Wf)                          # (N,4Hf,4Wf,13)
    tmp = jnp.transpose(tmp, (0, 3, 1, 2))                          # NHWC -> NCHW
    tmp = bilinear_resize_nchw(tmp, float(scale))

    flow = tmp[:, :4] * scale
    mask = tmp[:, 4:5]
    feat_out = tmp[:, 5:]
    return flow, mask, feat_out


# ----------------------------------------------------------------------------
# Plain-JAX/XLA reference with matched bf16 rounding points (for validation)
# ----------------------------------------------------------------------------
def _lrelu(x):
    return jnp.where(x >= 0.0, x, 0.2 * x)


def ref_forward(params, x_nchw, scale=1):
    def conv_nchw(xb16, w, b, stride, pad):
        y = lax.conv_general_dilated(
            xb16, w.astype(jnp.bfloat16),
            window_strides=(stride, stride), padding=((pad, pad), (pad, pad)),
            dimension_numbers=("NCHW", "OIHW", "NCHW"),
            preferred_element_type=jnp.float32)
        return y + b.reshape(1, -1, 1, 1).astype(jnp.float32)

    xb = x_nchw.astype(jnp.bfloat16)
    f = _lrelu(conv_nchw(xb, params["conv0_0_w"], params["conv0_0_b"], 2, 1))
    f = _lrelu(conv_nchw(f.astype(jnp.bfloat16),
                         params["conv0_1_w"], params["conv0_1_b"], 2, 1))
    xf = f.astype(jnp.bfloat16).astype(jnp.float32)
    for i in range(8):
        beta = params[f"res{i}_beta"].reshape(1, -1, 1, 1)
        y = conv_nchw(xf.astype(jnp.bfloat16), params[f"res{i}_w"],
                      params[f"res{i}_b"], 1, 1)
        xf = _lrelu(y * beta + xf)                       # literal PyTorch ordering

    # ConvTranspose2d(c, 52, 4, 2, 1) as lhs-dilated conv with flipped kernel
    wl = params["last_w"]
    w_conv = jnp.transpose(wl[:, :, ::-1, ::-1], (1, 0, 2, 3)).astype(jnp.bfloat16)
    t = lax.conv_general_dilated(
        xf.astype(jnp.bfloat16), w_conv,
        window_strides=(1, 1), padding=((2, 2), (2, 2)), lhs_dilation=(2, 2),
        dimension_numbers=("NCHW", "OIHW", "NCHW"),
        preferred_element_type=jnp.float32)
    t = t + params["last_b"].reshape(1, -1, 1, 1).astype(jnp.float32)

    # PixelShuffle(2)
    Nb, Ct, Ht, Wt = t.shape
    c13 = Ct // 4
    t = t.reshape(Nb, c13, 2, 2, Ht, Wt)
    t = jnp.transpose(t, (0, 1, 4, 2, 5, 3)).reshape(Nb, c13, Ht * 2, Wt * 2)

    return t[:, :4] * scale, t[:, 4:5], t[:, 5:]


# ----------------------------------------------------------------------------
# Deterministic parameter construction (shapes from IFBlock.__init__)
# ----------------------------------------------------------------------------
def make_params(key, in_planes, c):
    def nrm(k, shape, s):
        return s * jax.random.normal(k, shape, dtype=jnp.float32)

    keys = jax.random.split(key, 30)
    p = {}
    p["conv0_0_w"] = nrm(keys[0], (c // 2, in_planes, 3, 3), 0.1)
    p["conv0_0_b"] = nrm(keys[1], (c // 2,), 0.1)
    p["conv0_1_w"] = nrm(keys[2], (c, c // 2, 3, 3), 0.1)
    p["conv0_1_b"] = nrm(keys[3], (c,), 0.1)
    for i in range(8):
        p[f"res{i}_w"] = nrm(keys[4 + 3 * i], (c, c, 3, 3), 0.04)
        p[f"res{i}_b"] = nrm(keys[5 + 3 * i], (c,), 0.1)
        # power-of-two betas: the weight fold (w*beta) is then exact in bf16,
        # so the validation stays tight while still exercising the fold path.
        expo = jax.random.randint(keys[6 + 3 * i], (1, c, 1, 1), -1, 2)
        p[f"res{i}_beta"] = jnp.exp2(expo.astype(jnp.float32))
    p["last_w"] = nrm(keys[28], (c, 4 * 13, 4, 4), 0.1)   # ConvTranspose2d (Cin,Cout,kh,kw)
    p["last_b"] = nrm(keys[29], (4 * 13,), 0.1)
    return p


if __name__ == "__main__":
    in_planes, c = 7, 32
    N, H, W = 2, 32, 32

    key = jax.random.PRNGKey(0)
    kp, kx = jax.random.split(key)
    params = make_params(kp, in_planes, c)
    x = jax.random.normal(kx, (N, in_planes, H, W), dtype=jnp.float32)

    fwd = jax.jit(lambda p, xx: ifblock_forward(p, xx, flow_nchw=None, scale=1))
    flow, mask, feat = fwd(params, x)
    jax.block_until_ready((flow, mask, feat))

    assert flow.shape == (N, 4, H, W), flow.shape
    assert mask.shape == (N, 1, H, W), mask.shape
    assert feat.shape == (N, 8, H, W), feat.shape
    for arr in (flow, mask, feat):
        assert bool(jnp.all(jnp.isfinite(arr)))

    # numerical sanity check vs an XLA reference with matched bf16 rounding;
    # relative tolerance (bf16 accumulation-order divergence scales with |ref|)
    rflow, rmask, rfeat = jax.jit(lambda p, xx: ref_forward(p, xx, scale=1))(params, x)
    for name, got, ref in (("flow", flow, rflow), ("mask", mask, rmask),
                           ("feat", feat, rfeat)):
        err = float(jnp.max(jnp.abs(got - ref)))
        mag = float(jnp.max(jnp.abs(ref)))
        assert err <= 0.05 * (mag + 1.0), (name, err, mag)

    print("KERNEL_OK")
</pallas_src>

<mosaic_0001>
module attributes {stable_mosaic.version = 11 : i64} {
  func.func @_conv_s2d_kernel(%arg0: i32, %arg1: memref<1x256x28xbf16, #tpu.memory_space<vmem>>, %arg2: memref<112x16xbf16, #tpu.memory_space<vmem>>, %arg3: memref<1x16xf32, #tpu.memory_space<vmem>>, %arg4: memref<1x256x16xbf16, #tpu.memory_space<vmem>>, %arg5: memref<280x28xbf16, #tpu.memory_space<vmem>>) attributes {dimension_semantics = [#tpu.dimension_semantics<parallel>], iteration_bounds = array<i64: 2>, scalar_prefetch = 0 : i64, scratch_operands = 1 : i64, tpu.core_type = #tpu.core_type<tc>, window_params = [{transform_indices = @transform_0, window_bounds = array<i64: 1, 256, 28>}, {pipeline_mode = #tpu.pipeline_mode<synchronous>, transform_indices = @transform_1, window_bounds = array<i64: 112, 16>}, {pipeline_mode = #tpu.pipeline_mode<synchronous>, transform_indices = @transform_2, window_bounds = array<i64: 1, 16>}, {transform_indices = @transform_3, window_bounds = array<i64: 1, 256, 16>}]} {
    %cst = arith.constant 0.000000e+00 : bf16
    %0 = vector.broadcast %cst : bf16 to vector<24x28xbf16>
    %c0 = arith.constant 0 : index
    %c0_0 = arith.constant 0 : index
    %1 = vector.load %arg5[%c0, %c0_0] : memref<280x28xbf16, #tpu.memory_space<vmem>>, vector<24x28xbf16>
    tpu.vector_store %arg5[%c0, %c0_0], %0 {strides = array<i32>} : memref<280x28xbf16, #tpu.memory_space<vmem>>, vector<24x28xbf16>,
    %c0_1 = arith.constant 0 : index
    %c0_2 = arith.constant 0 : index
    %c0_3 = arith.constant 0 : index
    %2 = vector.load %arg1[%c0_1, %c0_2, %c0_3] : memref<1x256x28xbf16, #tpu.memory_space<vmem>>, vector<1x256x28xbf16>
    %3 = vector.shape_cast %2 : vector<1x256x28xbf16> to vector<256x28xbf16>
    %c24 = arith.constant 24 : index
    %c0_4 = arith.constant 0 : index
    %4 = vector.load %arg5[%c24, %c0_4] : memref<280x28xbf16, #tpu.memory_space<vmem>>, vector<256x28xbf16>
    tpu.vector_store %arg5[%c24, %c0_4], %3 {strides = array<i32>} : memref<280x28xbf16, #tpu.memory_space<vmem>>, vector<256x28xbf16>,
    %5 = tpu.iota {dimensions = array<i32: 0>} : vector<256x1xi32>
    %c16_i32 = arith.constant 16 : i32
    %c0_i32 = arith.constant 0 : i32
    %6 = arith.cmpi eq, %c16_i32, %c0_i32 : i32
    %c1_i32 = arith.constant 1 : i32
    %7 = arith.select %6, %c1_i32, %c16_i32 : i32
    %8 = vector.broadcast %7 : i32 to vector<256x1xi32>
    %9 = arith.remsi %5, %8 : vector<256x1xi32>
    %c0_i32_5 = arith.constant 0 : i32
    %10 = vector.broadcast %c0_i32_5 : i32 to vector<256x1xi32>
    %11 = arith.cmpi ne, %9, %10 : vector<256x1xi32>
    %c0_i32_6 = arith.constant 0 : i32
    %12 = vector.broadcast %c0_i32_6 : i32 to vector<256x1xi32>
    %13 = arith.cmpi slt, %9, %12 : vector<256x1xi32>
    %c0_i32_7 = arith.constant 0 : i32
    %14 = arith.cmpi slt, %7, %c0_i32_7 : i32
    %15 = vector.broadcast %14 : i1 to vector<256x1xi1>
    %16 = vector.broadcast %15 : vector<256x1xi1> to vector<256x1xi1>
    %17 = arith.xori %13, %16 : vector<256x1xi1>
    %18 = arith.andi %17, %11 : vector<256x1xi1>
    %19 = vector.broadcast %7 : i32 to vector<256x1xi32>
    %20 = arith.addi %9, %19 : vector<256x1xi32>
    %21 = arith.select %18, %20, %9 : vector<256x1xi1>, vector<256x1xi32>
    %c0_i32_8 = arith.constant 0 : i32
    %22 = vector.broadcast %c0_i32_8 : i32 to vector<256x1xi32>
    %23 = arith.cmpi sgt, %21, %22 : vector<256x1xi32>
    %24 = arith.extui %23 : vector<256x1xi1> to vector<256x1xi32>
    %25 = arith.sitofp %24 : vector<256x1xi32> to vector<256x1xf32>
    %26 = arith.truncf %25 : vector<256x1xf32> to vector<256x1xbf16>
    %c24_9 = arith.constant 24 : index
    %c0_10 = arith.constant 0 : index
    %27 = vector.load %arg5[%c24_9, %c0_10] : memref<280x28xbf16, #tpu.memory_space<vmem>>, vector<256x28xbf16>
    %c23 = arith.constant 23 : index
    %c0_11 = arith.constant 0 : index
    %28 = vector.load %arg5[%c23, %c0_11] : memref<280x28xbf16, #tpu.memory_space<vmem>>, vector<256x28xbf16>
    %29 = vector.broadcast %26 : vector<256x1xbf16> to vector<256x28xbf16>
    %30 = arith.mulf %28, %29 : vector<256x28xbf16>
    %c8 = arith.constant 8 : index
    %c0_12 = arith.constant 0 : index
    %31 = vector.load %arg5[%c8, %c0_12] : memref<280x28xbf16, #tpu.memory_space<vmem>>, vector<256x28xbf16>
    %c7 = arith.constant 7 : index
    %c0_13 = arith.constant 0 : index
    %32 = vector.load %arg5[%c7, %c0_13] : memref<280x28xbf16, #tpu.memory_space<vmem>>, vector<256x28xbf16>
    %33 = vector.broadcast %26 : vector<256x1xbf16> to vector<256x28xbf16>
    %34 = arith.mulf %32, %33 : vector<256x28xbf16>
    %35 = tpu.concatenate %27, %30, %31, %34 in 1 : vector<256x28xbf16>, vector<256x28xbf16>, vector<256x28xbf16>, vector<256x28xbf16> -> vector<256x112xbf16>
    %c0_14 = arith.constant 0 : index
    %c0_15 = arith.constant 0 : index
    %36 = vector.load %arg2[%c0_14, %c0_15] : memref<112x16xbf16, #tpu.memory_space<vmem>>, vector<112x16xbf16>
    %cst_16 = arith.constant dense<0.000000e+00> : vector<256x16xf32>
    %37 = tpu.matmul %35, %36, %cst_16 {dimension_numbers = #tpu.dot_dimension_numbers<[1], [0], [0], [1], [0, 0, 1, 1], [], []>} : vector<256x112xbf16>, vector<112x16xbf16>, vector<256x16xf32> -> vector<256x16xf32>
    %c0_17 = arith.constant 0 : index
    %c0_18 = arith.constant 0 : index
    %38 = vector.load %arg3[%c0_17, %c0_18] : memref<1x16xf32, #tpu.memory_space<vmem>>, vector<1x16xf32>
    %39 = vector.broadcast %38 : vector<1x16xf32> to vector<256x16xf32>
    %40 = arith.addf %37, %39 : vector<256x16xf32>
    %cst_19 = arith.constant 0.000000e+00 : f32
    %41 = vector.broadcast %cst_19 : f32 to vector<256x16xf32>
    %42 = arith.cmpf oge, %40, %41 : vector<256x16xf32>
    %cst_20 = arith.constant 2.000000e-01 : f32
    %43 = vector.broadcast %cst_20 : f32 to vector<256x16xf32>
    %44 = arith.mulf %43, %40 : vector<256x16xf32>
    %45 = arith.select %42, %40, %44 : vector<256x16xi1>, vector<256x16xf32>
    %46 = arith.truncf %45 : vector<256x16xf32> to vector<256x16xbf16>
    %c0_21 = arith.constant 0 : index
    %c0_22 = arith.constant 0 : index
    %c0_23 = arith.constant 0 : index
    %47 = vector.load %arg4[%c0_21, %c0_22, %c0_23] : memref<1x256x16xbf16, #tpu.memory_space<vmem>>, vector<1x256x16xbf16>
    %48 = vector.shape_cast %47 : vector<1x256x16xbf16> to vector<256x16xbf16>
    %49 = vector.shape_cast %46 : vector<256x16xbf16> to vector<1x256x16xbf16>
    tpu.vector_store %arg4[%c0_21, %c0_22, %c0_23], %49 {strides = array<i32>} : memref<1x256x16xbf16, #tpu.memory_space<vmem>>, vector<1x256x16xbf16>,
    return
  }
  func.func @transform_0(%arg0: i32) -> (i32, i32, i32) {
    %c0_i32 = arith.constant 0 : i32
    %c0_i32_0 = arith.constant 0 : i32
    %c0_i32_1 = arith.constant 0 : i32
    return %arg0, %c0_i32, %c0_i32_0 : i32, i32, i32
  }
  func.func @transform_1(%arg0: i32) -> (i32, i32) {
    %c0_i32 = arith.constant 0 : i32
    %c0_i32_0 = arith.constant 0 : i32
    %c0_i32_1 = arith.constant 0 : i32
    return %c0_i32, %c0_i32_0 : i32, i32
  }
  func.func @transform_2(%arg0: i32) -> (i32, i32) {
    %c0_i32 = arith.constant 0 : i32
    %c0_i32_0 = arith.constant 0 : i32
    %c0_i32_1 = arith.constant 0 : i32
    return %c0_i32, %c0_i32_0 : i32, i32
  }
  func.func @transform_3(%arg0: i32) -> (i32, i32, i32) {
    %c0_i32 = arith.constant 0 : i32
    %c0_i32_0 = arith.constant 0 : i32
    %c0_i32_1 = arith.constant 0 : i32
    return %arg0, %c0_i32, %c0_i32_0 : i32, i32, i32
  }
}

module attributes {stable_mosaic.version = 11 : i64} {
  func.func @_conv_s2d_kernel(%arg0: i32, %arg1: memref<1x64x64xbf16, #tpu.memory_space<vmem>>, %arg2: memref<256x32xbf16, #tpu.memory_space<vmem>>, %arg3: memref<1x32xf32, #tpu.memory_space<vmem>>, %arg4: memref<1x64x32xbf16, #tpu.memory_space<vmem>>, %arg5: memref<80x64xbf16, #tpu.memory_space<vmem>>) attributes {dimension_semantics = [#tpu.dimension_semantics<parallel>], iteration_bounds = array<i64: 2>, scalar_prefetch = 0 : i64, scratch_operands = 1 : i64, tpu.core_type = #tpu.core_type<tc>, window_params = [{transform_indices = @transform_0, window_bounds = array<i64: 1, 64, 64>}, {pipeline_mode = #tpu.pipeline_mode<synchronous>, transform_indices = @transform_1, window_bounds = array<i64: 256, 32>}, {pipeline_mode = #tpu.pipeline_mode<synchronous>, transform_indices = @transform_2, window_bounds = array<i64: 1, 32>}, {transform_indices = @transform_3, window_bounds = array<i64: 1, 64, 32>}]} {
    %cst = arith.constant 0.000000e+00 : bf16
    %0 = vector.broadcast %cst : bf16 to vector<16x64xbf16>
    %c0 = arith.constant 0 : index
    %c0_0 = arith.constant 0 : index
    %1 = vector.load %arg5[%c0, %c0_0] : memref<80x64xbf16, #tpu.memory_space<vmem>>, vector<16x64xbf16>
    tpu.vector_store %arg5[%c0, %c0_0], %0 {strides = array<i32>} : memref<80x64xbf16, #tpu.memory_space<vmem>>, vector<16x64xbf16>,
    %c0_1 = arith.constant 0 : index
    %c0_2 = arith.constant 0 : index
    %c0_3 = arith.constant 0 : index
    %2 = vector.load %arg1[%c0_1, %c0_2, %c0_3] : memref<1x64x64xbf16, #tpu.memory_space<vmem>>, vector<1x64x64xbf16>
    %3 = vector.shape_cast %2 : vector<1x64x64xbf16> to vector<64x64xbf16>
    %c16 = arith.constant 16 : index
    %c0_4 = arith.constant 0 : index
    %4 = vector.load %arg5[%c16, %c0_4] : memref<80x64xbf16, #tpu.memory_space<vmem>>, vector<64x64xbf16>
    tpu.vector_store %arg5[%c16, %c0_4], %3 {strides = array<i32>} : memref<80x64xbf16, #tpu.memory_space<vmem>>, vector<64x64xbf16>,
    %5 = tpu.iota {dimensions = array<i32: 0>} : vector<64x1xi32>
    %c8_i32 = arith.constant 8 : i32
    %c0_i32 = arith.constant 0 : i32
    %6 = arith.cmpi eq, %c8_i32, %c0_i32 : i32
    %c1_i32 = arith.constant 1 : i32
    %7 = arith.select %6, %c1_i32, %c8_i32 : i32
    %8 = vector.broadcast %7 : i32 to vector<64x1xi32>
    %9 = arith.remsi %5, %8 : vector<64x1xi32>
    %c0_i32_5 = arith.constant 0 : i32
    %10 = vector.broadcast %c0_i32_5 : i32 to vector<64x1xi32>
    %11 = arith.cmpi ne, %9, %10 : vector<64x1xi32>
    %c0_i32_6 = arith.constant 0 : i32
    %12 = vector.broadcast %c0_i32_6 : i32 to vector<64x1xi32>
    %13 = arith.cmpi slt, %9, %12 : vector<64x1xi32>
    %c0_i32_7 = arith.constant 0 : i32
    %14 = arith.cmpi slt, %7, %c0_i32_7 : i32
    %15 = vector.broadcast %14 : i1 to vector<64x1xi1>
    %16 = vector.broadcast %15 : vector<64x1xi1> to vector<64x1xi1>
    %17 = arith.xori %13, %16 : vector<64x1xi1>
    %18 = arith.andi %17, %11 : vector<64x1xi1>
    %19 = vector.broadcast %7 : i32 to vector<64x1xi32>
    %20 = arith.addi %9, %19 : vector<64x1xi32>
    %21 = arith.select %18, %20, %9 : vector<64x1xi1>, vector<64x1xi32>
    %c0_i32_8 = arith.constant 0 : i32
    %22 = vector.broadcast %c0_i32_8 : i32 to vector<64x1xi32>
    %23 = arith.cmpi sgt, %21, %22 : vector<64x1xi32>
    %24 = arith.extui %23 : vector<64x1xi1> to vector<64x1xi32>
    %25 = arith.sitofp %24 : vector<64x1xi32> to vector<64x1xf32>
    %26 = arith.truncf %25 : vector<64x1xf32> to vector<64x1xbf16>
    %c16_9 = arith.constant 16 : index
    %c0_10 = arith.constant 0 : index
    %27 = vector.load %arg5[%c16_9, %c0_10] : memref<80x64xbf16, #tpu.memory_space<vmem>>, vector<64x64xbf16>
    %c15 = arith.constant 15 : index
    %c0_11 = arith.constant 0 : index
    %28 = vector.load %arg5[%c15, %c0_11] : memref<80x64xbf16, #tpu.memory_space<vmem>>, vector<64x64xbf16>
    %29 = vector.broadcast %26 : vector<64x1xbf16> to vector<64x64xbf16>
    %30 = arith.mulf %28, %29 : vector<64x64xbf16>
    %c8 = arith.constant 8 : index
    %c0_12 = arith.constant 0 : index
    %31 = vector.load %arg5[%c8, %c0_12] : memref<80x64xbf16, #tpu.memory_space<vmem>>, vector<64x64xbf16>
    %c7 = arith.constant 7 : index
    %c0_13 = arith.constant 0 : index
    %32 = vector.load %arg5[%c7, %c0_13] : memref<80x64xbf16, #tpu.memory_space<vmem>>, vector<64x64xbf16>
    %33 = vector.broadcast %26 : vector<64x1xbf16> to vector<64x64xbf16>
    %34 = arith.mulf %32, %33 : vector<64x64xbf16>
    %35 = tpu.concatenate %27, %30, %31, %34 in 1 : vector<64x64xbf16>, vector<64x64xbf16>, vector<64x64xbf16>, vector<64x64xbf16> -> vector<64x256xbf16>
    %c0_14 = arith.constant 0 : index
    %c0_15 = arith.constant 0 : index
    %36 = vector.load %arg2[%c0_14, %c0_15] : memref<256x32xbf16, #tpu.memory_space<vmem>>, vector<256x32xbf16>
    %cst_16 = arith.constant dense<0.000000e+00> : vector<64x32xf32>
    %37 = tpu.matmul %35, %36, %cst_16 {dimension_numbers = #tpu.dot_dimension_numbers<[1], [0], [0], [1], [0, 0, 1, 1], [], []>} : vector<64x256xbf16>, vector<256x32xbf16>, vector<64x32xf32> -> vector<64x32xf32>
    %c0_17 = arith.constant 0 : index
    %c0_18 = arith.constant 0 : index
    %38 = vector.load %arg3[%c0_17, %c0_18] : memref<1x32xf32, #tpu.memory_space<vmem>>, vector<1x32xf32>
    %39 = vector.broadcast %38 : vector<1x32xf32> to vector<64x32xf32>
    %40 = arith.addf %37, %39 : vector<64x32xf32>
    %cst_19 = arith.constant 0.000000e+00 : f32
    %41 = vector.broadcast %cst_19 : f32 to vector<64x32xf32>
    %42 = arith.cmpf oge, %40, %41 : vector<64x32xf32>
    %cst_20 = arith.constant 2.000000e-01 : f32
    %43 = vector.broadcast %cst_20 : f32 to vector<64x32xf32>
    %44 = arith.mulf %43, %40 : vector<64x32xf32>
    %45 = arith.select %42, %40, %44 : vector<64x32xi1>, vector<64x32xf32>
    %46 = arith.truncf %45 : vector<64x32xf32> to vector<64x32xbf16>
    %c0_21 = arith.constant 0 : index
    %c0_22 = arith.constant 0 : index
    %c0_23 = arith.constant 0 : index
    %47 = vector.load %arg4[%c0_21, %c0_22, %c0_23] : memref<1x64x32xbf16, #tpu.memory_space<vmem>>, vector<1x64x32xbf16>
    %48 = vector.shape_cast %47 : vector<1x64x32xbf16> to vector<64x32xbf16>
    %49 = vector.shape_cast %46 : vector<64x32xbf16> to vector<1x64x32xbf16>
    tpu.vector_store %arg4[%c0_21, %c0_22, %c0_23], %49 {strides = array<i32>} : memref<1x64x32xbf16, #tpu.memory_space<vmem>>, vector<1x64x32xbf16>,
    return
  }
  func.func @transform_0(%arg0: i32) -> (i32, i32, i32) {
    %c0_i32 = arith.constant 0 : i32
    %c0_i32_0 = arith.constant 0 : i32
    %c0_i32_1 = arith.constant 0 : i32
    return %arg0, %c0_i32, %c0_i32_0 : i32, i32, i32
  }
  func.func @transform_1(%arg0: i32) -> (i32, i32) {
    %c0_i32 = arith.constant 0 : i32
    %c0_i32_0 = arith.constant 0 : i32
    %c0_i32_1 = arith.constant 0 : i32
    return %c0_i32, %c0_i32_0 : i32, i32
  }
  func.func @transform_2(%arg0: i32) -> (i32, i32) {
    %c0_i32 = arith.constant 0 : i32
    %c0_i32_0 = arith.constant 0 : i32
    %c0_i32_1 = arith.constant 0 : i32
    return %c0_i32, %c0_i32_0 : i32, i32
  }
  func.func @transform_3(%arg0: i32) -> (i32, i32, i32) {
    %c0_i32 = arith.constant 0 : i32
    %c0_i32_0 = arith.constant 0 : i32
    %c0_i32_1 = arith.constant 0 : i32
    return %arg0, %c0_i32, %c0_i32_0 : i32, i32, i32
  }
}

module attributes {stable_mosaic.version = 11 : i64} {
  func.func @_chain_kernel(%arg0: i32, %arg1: memref<1x64x32xbf16, #tpu.memory_space<vmem>>, %arg2: memref<8x288x32xbf16, #tpu.memory_space<vmem>>, %arg3: memref<8x1x32xf32, #tpu.memory_space<vmem>>, %arg4: memref<288x208xbf16, #tpu.memory_space<vmem>>, %arg5: memref<1x208xf32, #tpu.memory_space<vmem>>, %arg6: memref<1x64x208xf32, #tpu.memory_space<vmem>>, %arg7: memref<96x32xbf16, #tpu.memory_space<vmem>>) attributes {dimension_semantics = [#tpu.dimension_semantics<parallel>], iteration_bounds = array<i64: 2>, scalar_prefetch = 0 : i64, scratch_operands = 1 : i64, tpu.core_type = #tpu.core_type<tc>, window_params = [{transform_indices = @transform_0, window_bounds = array<i64: 1, 64, 32>}, {pipeline_mode = #tpu.pipeline_mode<synchronous>, transform_indices = @transform_1, window_bounds = array<i64: 8, 288, 32>}, {pipeline_mode = #tpu.pipeline_mode<synchronous>, transform_indices = @transform_2, window_bounds = array<i64: 8, 1, 32>}, {pipeline_mode = #tpu.pipeline_mode<synchronous>, transform_indices = @transform_3, window_bounds = array<i64: 288, 208>}, {pipeline_mode = #tpu.pipeline_mode<synchronous>, transform_indices = @transform_4, window_bounds = array<i64: 1, 208>}, {transform_indices = @transform_5, window_bounds = array<i64: 1, 64, 208>}]} {
    %cst = arith.constant 0.000000e+00 : bf16
    %0 = vector.broadcast %cst : bf16 to vector<16x32xbf16>
    %c0 = arith.constant 0 : index
    %c0_0 = arith.constant 0 : index
    %1 = vector.load %arg7[%c0, %c0_0] : memref<96x32xbf16, #tpu.memory_space<vmem>>, vector<16x32xbf16>
    tpu.vector_store %arg7[%c0, %c0_0], %0 {strides = array<i32>} : memref<96x32xbf16, #tpu.memory_space<vmem>>, vector<16x32xbf16>,
    %cst_1 = arith.constant 0.000000e+00 : bf16
    %2 = vector.broadcast %cst_1 : bf16 to vector<16x32xbf16>
    %c80 = arith.constant 80 : index
    %c0_2 = arith.constant 0 : index
    %3 = vector.load %arg7[%c80, %c0_2] : memref<96x32xbf16, #tpu.memory_space<vmem>>, vector<16x32xbf16>
    tpu.vector_store %arg7[%c80, %c0_2], %2 {strides = array<i32>} : memref<96x32xbf16, #tpu.memory_space<vmem>>, vector<16x32xbf16>,
    %4 = tpu.iota {dimensions = array<i32: 0>} : vector<64x1xi32>
    %c8_i32 = arith.constant 8 : i32
    %c0_i32 = arith.constant 0 : i32
    %5 = arith.cmpi eq, %c8_i32, %c0_i32 : i32
    %c1_i32 = arith.constant 1 : i32
    %6 = arith.select %5, %c1_i32, %c8_i32 : i32
    %7 = vector.broadcast %6 : i32 to vector<64x1xi32>
    %8 = arith.remsi %4, %7 : vector<64x1xi32>
    %c0_i32_3 = arith.constant 0 : i32
    %9 = vector.broadcast %c0_i32_3 : i32 to vector<64x1xi32>
    %10 = arith.cmpi ne, %8, %9 : vector<64x1xi32>
    %c0_i32_4 = arith.constant 0 : i32
    %11 = vector.broadcast %c0_i32_4 : i32 to vector<64x1xi32>
    %12 = arith.cmpi slt, %8, %11 : vector<64x1xi32>
    %c0_i32_5 = arith.constant 0 : i32
    %13 = arith.cmpi slt, %6, %c0_i32_5 : i32
    %14 = vector.broadcast %13 : i1 to vector<64x1xi1>
    %15 = vector.broadcast %14 : vector<64x1xi1> to vector<64x1xi1>
    %16 = arith.xori %12, %15 : vector<64x1xi1>
    %17 = arith.andi %16, %10 : vector<64x1xi1>
    %18 = vector.broadcast %6 : i32 to vector<64x1xi32>
    %19 = arith.addi %8, %18 : vector<64x1xi32>
    %20 = arith.select %17, %19, %8 : vector<64x1xi1>, vector<64x1xi32>
    %c0_i32_6 = arith.constant 0 : i32
    %21 = vector.broadcast %c0_i32_6 : i32 to vector<64x1xi32>
    %22 = arith.cmpi sgt, %20, %21 : vector<64x1xi32>
    %23 = arith.extui %22 : vector<64x1xi1> to vector<64x1xi32>
    %24 = arith.sitofp %23 : vector<64x1xi32> to vector<64x1xf32>
    %25 = arith.truncf %24 : vector<64x1xf32> to vector<64x1xbf16>
    %c7_i32 = arith.constant 7 : i32
    %26 = vector.broadcast %c7_i32 : i32 to vector<64x1xi32>
    %27 = arith.cmpi slt, %20, %26 : vector<64x1xi32>
    %28 = arith.extui %27 : vector<64x1xi1> to vector<64x1xi32>
    %29 = arith.sitofp %28 : vector<64x1xi32> to vector<64x1xf32>
    %30 = arith.truncf %29 : vector<64x1xf32> to vector<64x1xbf16>
    %c0_7 = arith.constant 0 : index
    %c0_8 = arith.constant 0 : index
    %c0_9 = arith.constant 0 : index
    %31 = vector.load %arg1[%c0_7, %c0_8, %c0_9] : memref<1x64x32xbf16, #tpu.memory_space<vmem>>, vector<1x64x32xbf16>
    %32 = vector.shape_cast %31 : vector<1x64x32xbf16> to vector<64x32xbf16>
    %33 = arith.extf %32 : vector<64x32xbf16> to vector<64x32xf32>
    %34 = arith.truncf %33 : vector<64x32xf32> to vector<64x32xbf16>
    %c16 = arith.constant 16 : index
    %c0_10 = arith.constant 0 : index
    %35 = vector.load %arg7[%c16, %c0_10] : memref<96x32xbf16, #tpu.memory_space<vmem>>, vector<64x32xbf16>
    tpu.vector_store %arg7[%c16, %c0_10], %34 {strides = array<i32>} : memref<96x32xbf16, #tpu.memory_space<vmem>>, vector<64x32xbf16>,
    %c7 = arith.constant 7 : index
    %c0_11 = arith.constant 0 : index
    %36 = vector.load %arg7[%c7, %c0_11] : memref<96x32xbf16, #tpu.memory_space<vmem>>, vector<64x32xbf16>
    %37 = vector.broadcast %25 : vector<64x1xbf16> to vector<64x32xbf16>
    %38 = arith.mulf %36, %37 : vector<64x32xbf16>
    %c8 = arith.constant 8 : index
    %c0_12 = arith.constant 0 : index
    %39 = vector.load %arg7[%c8, %c0_12] : memref<96x32xbf16, #tpu.memory_space<vmem>>, vector<64x32xbf16>
    %c9 = arith.constant 9 : index
    %c0_13 = arith.constant 0 : index
    %40 = vector.load %arg7[%c9, %c0_13] : memref<96x32xbf16, #tpu.memory_space<vmem>>, vector<64x32xbf16>
    %41 = vector.broadcast %30 : vector<64x1xbf16> to vector<64x32xbf16>
    %42 = arith.mulf %40, %41 : vector<64x32xbf16>
    %c15 = arith.constant 15 : index
    %c0_14 = arith.constant 0 : index
    %43 = vector.load %arg7[%c15, %c0_14] : memref<96x32xbf16, #tpu.memory_space<vmem>>, vector<64x32xbf16>
    %44 = vector.broadcast %25 : vector<64x1xbf16> to vector<64x32xbf16>
    %45 = arith.mulf %43, %44 : vector<64x32xbf16>
    %c16_15 = arith.constant 16 : index
    %c0_16 = arith.constant 0 : index
    %46 = vector.load %arg7[%c16_15, %c0_16] : memref<96x32xbf16, #tpu.memory_space<vmem>>, vector<64x32xbf16>
    %c17 = arith.constant 17 : index
    %c0_17 = arith.constant 0 : index
    %47 = vector.load %arg7[%c17, %c0_17] : memref<96x32xbf16, #tpu.memory_space<vmem>>, vector<64x32xbf16>
    %48 = vector.broadcast %30 : vector<64x1xbf16> to vector<64x32xbf16>
    %49 = arith.mulf %47, %48 : vector<64x32xbf16>
    %c23 = arith.constant 23 : index
    %c0_18 = arith.constant 0 : index
    %50 = vector.load %arg7[%c23, %c0_18] : memref<96x32xbf16, #tpu.memory_space<vmem>>, vector<64x32xbf16>
    %51 = vector.broadcast %25 : vector<64x1xbf16> to vector<64x32xbf16>
    %52 = arith.mulf %50, %51 : vector<64x32xbf16>
    %c24 = arith.constant 24 : index
    %c0_19 = arith.constant 0 : index
    %53 = vector.load %arg7[%c24, %c0_19] : memref<96x32xbf16, #tpu.memory_space<vmem>>, vector<64x32xbf16>
    %c25 = arith.constant 25 : index
    %c0_20 = arith.constant 0 : index
    %54 = vector.load %arg7[%c25, %c0_20] : memref<96x32xbf16, #tpu.memory_space<vmem>>, vector<64x32xbf16>
    %55 = vector.broadcast %30 : vector<64x1xbf16> to vector<64x32xbf16>
    %56 = arith.mulf %54, %55 : vector<64x32xbf16>
    %57 = tpu.concatenate %38, %39, %42, %45, %46, %49, %52, %53, %56 in 1 : vector<64x32xbf16>, vector<64x32xbf16>, vector<64x32xbf16>, vector<64x32xbf16>, vector<64x32xbf16>, vector<64x32xbf16>, vector<64x32xbf16>, vector<64x32xbf16>, vector<64x32xbf16> -> vector<64x288xbf16>
    %c0_21 = arith.constant 0 : index
    %c0_22 = arith.constant 0 : index
    %c0_23 = arith.constant 0 : index
    %58 = vector.load %arg2[%c0_21, %c0_22, %c0_23] : memref<8x288x32xbf16, #tpu.memory_space<vmem>>, vector<1x288x32xbf16>
    %59 = vector.shape_cast %58 : vector<1x288x32xbf16> to vector<288x32xbf16>
    %cst_24 = arith.constant dense<0.000000e+00> : vector<64x32xf32>
    %60 = tpu.matmul %57, %59, %cst_24 {dimension_numbers = #tpu.dot_dimension_numbers<[1], [0], [0], [1], [0, 0, 1, 1], [], []>} : vector<64x288xbf16>, vector<288x32xbf16>, vector<64x32xf32> -> vector<64x32xf32>
    %c0_25 = arith.constant 0 : index
    %c0_26 = arith.constant 0 : index
    %c0_27 = arith.constant 0 : index
    %61 = vector.load %arg3[%c0_25, %c0_26, %c0_27] : memref<8x1x32xf32, #tpu.memory_space<vmem>>, vector<1x1x32xf32>
    %62 = vector.shape_cast %61 : vector<1x1x32xf32> to vector<1x32xf32>
    %63 = vector.broadcast %62 : vector<1x32xf32> to vector<64x32xf32>
    %64 = arith.addf %60, %63 : vector<64x32xf32>
    %65 = arith.addf %64, %33 : vector<64x32xf32>
    %cst_28 = arith.constant 0.000000e+00 : f32
    %66 = vector.broadcast %cst_28 : f32 to vector<64x32xf32>
    %67 = arith.cmpf oge, %65, %66 : vector<64x32xf32>
    %cst_29 = arith.constant 2.000000e-01 : f32
    %68 = vector.broadcast %cst_29 : f32 to vector<64x32xf32>
    %69 = arith.mulf %68, %65 : vector<64x32xf32>
    %70 = arith.select %67, %65, %69 : vector<64x32xi1>, vector<64x32xf32>
    %71 = arith.truncf %70 : vector<64x32xf32> to vector<64x32xbf16>
    %c16_30 = arith.constant 16 : index
    %c0_31 = arith.constant 0 : index
    %72 = vector.load %arg7[%c16_30, %c0_31] : memref<96x32xbf16, #tpu.memory_space<vmem>>, vector<64x32xbf16>
    tpu.vector_store %arg7[%c16_30, %c0_31], %71 {strides = array<i32>} : memref<96x32xbf16, #tpu.memory_space<vmem>>, vector<64x32xbf16>,
    %c7_32 = arith.constant 7 : index
    %c0_33 = arith.constant 0 : index
    %73 = vector.load %arg7[%c7_32, %c0_33] : memref<96x32xbf16, #tpu.memory_space<vmem>>, vector<64x32xbf16>
    %74 = vector.broadcast %25 : vector<64x1xbf16> to vector<64x32xbf16>
    %75 = arith.mulf %73, %74 : vector<64x32xbf16>
    %c8_34 = arith.constant 8 : index
    %c0_35 = arith.constant 0 : index
    %76 = vector.load %arg7[%c8_34, %c0_35] : memref<96x32xbf16, #tpu.memory_space<vmem>>, vector<64x32xbf16>
    %c9_36 = arith.constant 9 : index
    %c0_37 = arith.constant 0 : index
    %77 = vector.load %arg7[%c9_36, %c0_37] : memref<96x32xbf16, #tpu.memory_space<vmem>>, vector<64x32xbf16>
    %78 = vector.broadcast %30 : vector<64x1xbf16> to vector<64x32xbf16>
    %79 = arith.mulf %77, %78 : vector<64x32xbf16>
    %c15_38 = arith.constant 15 : index
    %c0_39 = arith.constant 0 : index
    %80 = vector.load %arg7[%c15_38, %c0_39] : memref<96x32xbf16, #tpu.memory_space<vmem>>, vector<64x32xbf16>
    %81 = vector.broadcast %25 : vector<64x1xbf16> to vector<64x32xbf16>
    %82 = arith.mulf %80, %81 : vector<64x32xbf16>
    %c16_40 = arith.constant 16 : index
    %c0_41 = arith.constant 0 : index
    %83 = vector.load %arg7[%c16_40, %c0_41] : memref<96x32xbf16, #tpu.memory_space<vmem>>, vector<64x32xbf16>
    %c17_42 = arith.constant 17 : index
    %c0_43 = arith.constant 0 : index
    %84 = vector.load %arg7[%c17_42, %c0_43] : memref<96x32xbf16, #tpu.memory_space<vmem>>, vector<64x32xbf16>
    %85 = vector.broadcast %30 : vector<64x1xbf16> to vector<64x32xbf16>
    %86 = arith.mulf %84, %85 : vector<64x32xbf16>
    %c23_44 = arith.constant 23 : index
    %c0_45 = arith.constant 0 : index
    %87 = vector.load %arg7[%c23_44, %c0_45] : memref<96x32xbf16, #tpu.memory_space<vmem>>, vector<64x32xbf16>
    %88 = vector.broadcast %25 : vector<64x1xbf16> to vector<64x32xbf16>
    %89 = arith.mulf %87, %88 : vector<64x32xbf16>
    %c24_46 = arith.constant 24 : index
    %c0_47 = arith.constant 0 : index
    %90 = vector.load %arg7[%c24_46, %c0_47] : memref<96x32xbf16, #tpu.memory_space<vmem>>, vector<64x32xbf16>
    %c25_48 = arith.constant 25 : index
    %c0_49 = arith.constant 0 : index
    %91 = vector.load %arg7[%c25_48, %c0_49] : memref<96x32xbf16, #tpu.memory_space<vmem>>, vector<64x32xbf16>
    %92 = vector.broadcast %30 : vector<64x1xbf16> to vector<64x32xbf16>
    %93 = arith.mulf %91, %92 : vector<64x32xbf16>
    %94 = tpu.concatenate %75, %76, %79, %82, %83, %86, %89, %90, %93 in 1 : vector<64x32xbf16>, vector<64x32xbf16>, vector<64x32xbf16>, vector<64x32xbf16>, vector<64x32xbf16>, vector<64x32xbf16>, vector<64x32xbf16>, vector<64x32xbf16>, vector<64x32xbf16> -> vector<64x288xbf16>
    %c1 = arith.constant 1 : index
    %c0_50 = arith.constant 0 : index
    %c0_51 = arith.constant 0 : index
    %95 = vector.load %arg2[%c1, %c0_50, %c0_51] : memref<8x288x32xbf16, #tpu.memory_space<vmem>>, vector<1x288x32xbf16>
    %96 = vector.shape_cast %95 : vector<1x288x32xbf16> to vector<288x32xbf16>
    %cst_52 = arith.constant dense<0.000000e+00> : vector<64x32xf32>
    %97 = tpu.matmul %94, %96, %cst_52 {dimension_numbers = #tpu.dot_dimension_numbers<[1], [0], [0], [1], [0, 0, 1, 1], [], []>} : vector<64x288xbf16>, vector<288x32xbf16>, vector<64x32xf32> -> vector<64x32xf32>
    %c1_53 = arith.constant 1 : index
    %c0_54 = arith.constant 0 : index
    %c0_55 = arith.constant 0 : index
    %98 = vector.load %arg3[%c1_53, %c0_54, %c0_55] : memref<8x1x32xf32, #tpu.memory_space<vmem>>, vector<1x1x32xf32>
    %99 = vector.shape_cast %98 : vector<1x1x32xf32> to vector<1x32xf32>
    %100 = vector.broadcast %99 : vector<1x32xf32> to vector<64x32xf32>
    %101 = arith.addf %97, %100 : vector<64x32xf32>
    %102 = arith.addf %101, %70 : vector<64x32xf32>
    %cst_56 = arith.constant 0.000000e+00 : f32
    %103 = vector.broadcast %cst_56 : f32 to vector<64x32xf32>
    %104 = arith.cmpf oge, %102, %103 : vector<64x32xf32>
    %cst_57 = arith.constant 2.000000e-01 : f32
    %105 = vector.broadcast %cst_57 : f32 to vector<64x32xf32>
    %106 = arith.mulf %105, %102 : vector<64x32xf32>
    %107 = arith.select %104, %102, %106 : vector<64x32xi1>, vector<64x32xf32>
    %108 = arith.truncf %107 : vector<64x32xf32> to vector<64x32xbf16>
    %c16_58 = arith.constant 16 : index
    %c0_59 = arith.constant 0 : index
    %109 = vector.load %arg7[%c16_58, %c0_59] : memref<96x32xbf16, #tpu.memory_space<vmem>>, vector<64x32xbf16>
    tpu.vector_store %arg7[%c16_58, %c0_59], %108 {strides = array<i32>} : memref<96x32xbf16, #tpu.memory_space<vmem>>, vector<64x32xbf16>,
    %c7_60 = arith.constant 7 : index
    %c0_61 = arith.constant 0 : index
    %110 = vector.load %arg7[%c7_60, %c0_61] : memref<96x32xbf16, #tpu.memory_space<vmem>>, vector<64x32xbf16>
    %111 = vector.broadcast %25 : vector<64x1xbf16> to vector<64x32xbf16>
    %112 = arith.mulf %110, %111 : vector<64x32xbf16>
    %c8_62 = arith.constant 8 : index
    %c0_63 = arith.constant 0 : index
    %113 = vector.load %arg7[%c8_62, %c0_63] : memref<96x32xbf16, #tpu.memory_space<vmem>>, vector<64x32xbf16>
    %c9_64 = arith.constant 9 : index
    %c0_65 = arith.constant 0 : index
    %114 = vector.load %arg7[%c9_64, %c0_65] : memref<96x32xbf16, #tpu.memory_space<vmem>>, vector<64x32xbf16>
    %115 = vector.broadcast %30 : vector<64x1xbf16> to vector<64x32xbf16>
    %116 = arith.mulf %114, %115 : vector<64x32xbf16>
    %c15_66 = arith.constant 15 : index
    %c0_67 = arith.constant 0 : index
    %117 = vector.load %arg7[%c15_66, %c0_67] : memref<96x32xbf16, #tpu.memory_space<vmem>>, vector<64x32xbf16>
    %118 = vector.broadcast %25 : vector<64x1xbf16> to vector<64x32xbf16>
    %119 = arith.mulf %117, %118 : vector<64x32xbf16>
    %c16_68 = arith.constant 16 : index
    %c0_69 = arith.constant 0 : index
    %120 = vector.load %arg7[%c16_68, %c0_69] : memref<96x32xbf16, #tpu.memory_space<vmem>>, vector<64x32xbf16>
    %c17_70 = arith.constant 17 : index
    %c0_71 = arith.constant 0 : index
    %121 = vector.load %arg7[%c17_70, %c0_71] : memref<96x32xbf16, #tpu.memory_space<vmem>>, vector<64x32xbf16>
    %122 = vector.broadcast %30 : vector<64x1xbf16> to vector<64x32xbf16>
    %123 = arith.mulf %121, %122 : vector<64x32xbf16>
    %c23_72 = arith.constant 23 : index
    %c0_73 = arith.constant 0 : index
    %124 = vector.load %arg7[%c23_72, %c0_73] : memref<96x32xbf16, #tpu.memory_space<vmem>>, vector<64x32xbf16>
    %125 = vector.broadcast %25 : vector<64x1xbf16> to vector<64x32xbf16>
    %126 = arith.mulf %124, %125 : vector<64x32xbf16>
    %c24_74 = arith.constant 24 : index
    %c0_75 = arith.constant 0 : index
    %127 = vector.load %arg7[%c24_74, %c0_75] : memref<96x32xbf16, #tpu.memory_space<vmem>>, vector<64x32xbf16>
    %c25_76 = arith.constant 25 : index
    %c0_77 = arith.constant 0 : index
    %128 = vector.load %arg7[%c25_76, %c0_77] : memref<96x32xbf16, #tpu.memory_space<vmem>>, vector<64x32xbf16>
    %129 = vector.broadcast %30 : vector<64x1xbf16> to vector<64x32xbf16>
    %130 = arith.mulf %128, %129 : vector<64x32xbf16>
    %131 = tpu.concatenate %112, %113, %116, %119, %120, %123, %126, %127, %130 in 1 : vector<64x32xbf16>, vector<64x32xbf16>, vector<64x32xbf16>, vector<64x32xbf16>, vector<64x32xbf16>, vector<64x32xbf16>, vector<64x32xbf16>, vector<64x32xbf16>, vector<64x32xbf16> -> vector<64x288xbf16>
    %c2 = arith.constant 2 : index
    %c0_78 = arith.constant 0 : index
    %c0_79 = arith.constant 0 : index
    %132 = vector.load %arg2[%c2, %c0_78, %c0_79] : memref<8x288x32xbf16, #tpu.memory_space<vmem>>, vector<1x288x32xbf16>
    %133 = vector.shape_cast %132 : vector<1x288x32xbf16> to vector<288x32xbf16>
    %cst_80 = arith.constant dense<0.000000e+00> : vector<64x32xf32>
    %134 = tpu.matmul %131, %133, %cst_80 {dimension_numbers = #tpu.dot_dimension_numbers<[1], [0], [0], [1], [0, 0, 1, 1], [], []>} : vector<64x288xbf16>, vector<288x32xbf16>, vector<64x32xf32> -> vector<64x32xf32>
    %c2_81 = arith.constant 2 : index
    %c0_82 = arith.constant 0 : index
    %c0_83 = arith.constant 0 : index
    %135 = vector.load %arg3[%c2_81, %c0_82, %c0_83] : memref<8x1x32xf32, #tpu.memory_space<vmem>>, vector<1x1x32xf32>
    %136 = vector.shape_cast %135 : vector<1x1x32xf32> to vector<1x32xf32>
    %137 = vector.broadcast %136 : vector<1x32xf32> to vector<64x32xf32>
    %138 = arith.addf %134, %137 : vector<64x32xf32>
    %139 = arith.addf %138, %107 : vector<64x32xf32>
    %cst_84 = arith.constant 0.000000e+00 : f32
    %140 = vector.broadcast %cst_84 : f32 to vector<64x32xf32>
    %141 = arith.cmpf oge, %139, %140 : vector<64x32xf32>
    %cst_85 = arith.constant 2.000000e-01 : f32
    %142 = vector.broadcast %cst_85 : f32 to vector<64x32xf32>
    %143 = arith.mulf %142, %139 : vector<64x32xf32>
    %144 = arith.select %141, %139, %143 : vector<64x32xi1>, vector<64x32xf32>
    %145 = arith.truncf %144 : vector<64x32xf32> to vector<64x32xbf16>
    %c16_86 = arith.constant 16 : index
    %c0_87 = arith.constant 0 : index
    %146 = vector.load %arg7[%c16_86, %c0_87] : memref<96x32xbf16, #tpu.memory_space<vmem>>, vector<64x32xbf16>
    tpu.vector_store %arg7[%c16_86, %c0_87], %145 {strides = array<i32>} : memref<96x32xbf16, #tpu.memory_space<vmem>>, vector<64x32xbf16>,
    %c7_88 = arith.constant 7 : index
    %c0_89 = arith.constant 0 : index
    %147 = vector.load %arg7[%c7_88, %c0_89] : memref<96x32xbf16, #tpu.memory_space<vmem>>, vector<64x32xbf16>
    %148 = vector.broadcast %25 : vector<64x1xbf16> to vector<64x32xbf16>
    %149 = arith.mulf %147, %148 : vector<64x32xbf16>
    %c8_90 = arith.constant 8 : index
    %c0_91 = arith.constant 0 : index
    %150 = vector.load %arg7[%c8_90, %c0_91] : memref<96x32xbf16, #tpu.memory_space<vmem>>, vector<64x32xbf16>
    %c9_92 = arith.constant 9 : index
    %c0_93 = arith.constant 0 : index
    %151 = vector.load %arg7[%c9_92, %c0_93] : memref<96x32xbf16, #tpu.memory_space<vmem>>, vector<64x32xbf16>
    %152 = vector.broadcast %30 : vector<64x1xbf16> to vector<64x32xbf16>
    %153 = arith.mulf %151, %152 : vector<64x32xbf16>
    %c15_94 = arith.constant 15 : index
    %c0_95 = arith.constant 0 : index
    %154 = vector.load %arg7[%c15_94, %c0_95] : memref<96x32xbf16, #tpu.memory_space<vmem>>, vector<64x32xbf16>
    %155 = vector.broadcast %25 : vector<64x1xbf16> to vector<64x32xbf16>
    %156 = arith.mulf %154, %155 : vector<64x32xbf16>
    %c16_96 = arith.constant 16 : index
    %c0_97 = arith.constant 0 : index
    %157 = vector.load %arg7[%c16_96, %c0_97] : memref<96x32xbf16, #tpu.memory_space<vmem>>, vector<64x32xbf16>
    %c17_98 = arith.constant 17 : index
    %c0_99 = arith.constant 0 : index
    %158 = vector.load %arg7[%c17_98, %c0_99] : memref<96x32xbf16, #tpu.memory_space<vmem>>, vector<64x32xbf16>
    %159 = vector.broadcast %30 : vector<64x1xbf16> to vector<64x32xbf16>
    %160 = arith.mulf %158, %159 : vector<64x32xbf16>
    %c23_100 = arith.constant 23 : index
    %c0_101 = arith.constant 0 : index
    %161 = vector.load %arg7[%c23_100, %c0_101] : memref<96x32xbf16, #tpu.memory_space<vmem>>, vector<64x32xbf16>
    %162 = vector.broadcast %25 : vector<64x1xbf16> to vector<64x32xbf16>
    %163 = arith.mulf %161, %162 : vector<64x32xbf16>
    %c24_102 = arith.constant 24 : index
    %c0_103 = arith.constant 0 : index
    %164 = vector.load %arg7[%c24_102, %c0_103] : memref<96x32xbf16, #tpu.memory_space<vmem>>, vector<64x32xbf16>
    %c25_104 = arith.constant 25 : index
    %c0_105 = arith.constant 0 : index
    %165 = vector.load %arg7[%c25_104, %c0_105] : memref<96x32xbf16, #tpu.memory_space<vmem>>, vector<64x32xbf16>
    %166 = vector.broadcast %30 : vector<64x1xbf16> to vector<64x32xbf16>
    %167 = arith.mulf %165, %166 : vector<64x32xbf16>
    %168 = tpu.concatenate %149, %150, %153, %156, %157, %160, %163, %164, %167 in 1 : vector<64x32xbf16>, vector<64x32xbf16>, vector<64x32xbf16>, vector<64x32xbf16>, vector<64x32xbf16>, vector<64x32xbf16>, vector<64x32xbf16>, vector<64x32xbf16>, vector<64x32xbf16> -> vector<64x288xbf16>
    %c3 = arith.constant 3 : index
    %c0_106 = arith.constant 0 : index
    %c0_107 = arith.constant 0 : index
    %169 = vector.load %arg2[%c3, %c0_106, %c0_107] : memref<8x288x32xbf16, #tpu.memory_space<vmem>>, vector<1x288x32xbf16>
    %170 = vector.shape_cast %169 : vector<1x288x32xbf16> to vector<288x32xbf16>
    %cst_108 = arith.constant dense<0.000000e+00> : vector<64x32xf32>
    %171 = tpu.matmul %168, %170, %cst_108 {dimension_numbers = #tpu.dot_dimension_numbers<[1], [0], [0], [1], [0, 0, 1, 1], [], []>} : vector<64x288xbf16>, vector<288x32xbf16>, vector<64x32xf32> -> vector<64x32xf32>
    %c3_109 = arith.constant 3 : index
    %c0_110 = arith.constant 0 : index
    %c0_111 = arith.constant 0 : index
    %172 = vector.load %arg3[%c3_109, %c0_110, %c0_111] : memref<8x1x32xf32, #tpu.memory_space<vmem>>, vector<1x1x32xf32>
    %173 = vector.shape_cast %172 : vector<1x1x32xf32> to vector<1x32xf32>
    %174 = vector.broadcast %173 : vector<1x32xf32> to vector<64x32xf32>
    %175 = arith.addf %171, %174 : vector<64x32xf32>
    %176 = arith.addf %175, %144 : vector<64x32xf32>
    %cst_112 = arith.constant 0.000000e+00 : f32
    %177 = vector.broadcast %cst_112 : f32 to vector<64x32xf32>
    %178 = arith.cmpf oge, %176, %177 : vector<64x32xf32>
    %cst_113 = arith.constant 2.000000e-01 : f32
    %179 = vector.broadcast %cst_113 : f32 to vector<64x32xf32>
    %180 = arith.mulf %179, %176 : vector<64x32xf32>
    %181 = arith.select %178, %176, %180 : vector<64x32xi1>, vector<64x32xf32>
    %182 = arith.truncf %181 : vector<64x32xf32> to vector<64x32xbf16>
    %c16_114 = arith.constant 16 : index
    %c0_115 = arith.constant 0 : index
    %183 = vector.load %arg7[%c16_114, %c0_115] : memref<96x32xbf16, #tpu.memory_space<vmem>>, vector<64x32xbf16>
    tpu.vector_store %arg7[%c16_114, %c0_115], %182 {strides = array<i32>} : memref<96x32xbf16, #tpu.memory_space<vmem>>, vector<64x32xbf16>,
    %c7_116 = arith.constant 7 : index
    %c0_117 = arith.constant 0 : index
    %184 = vector.load %arg7[%c7_116, %c0_117] : memref<96x32xbf16, #tpu.memory_space<vmem>>, vector<64x32xbf16>
    %185 = vector.broadcast %25 : vector<64x1xbf16> to vector<64x32xbf16>
    %186 = arith.mulf %184, %185 : vector<64x32xbf16>
    %c8_118 = arith.constant 8 : index
    %c0_119 = arith.constant 0 : index
    %187 = vector.load %arg7[%c8_118, %c0_119] : memref<96x32xbf16, #tpu.memory_space<vmem>>, vector<64x32xbf16>
    %c9_120 = arith.constant 9 : index
    %c0_121 = arith.constant 0 : index
    %188 = vector.load %arg7[%c9_120, %c0_121] : memref<96x32xbf16, #tpu.memory_space<vmem>>, vector<64x32xbf16>
    %189 = vector.broadcast %30 : vector<64x1xbf16> to vector<64x32xbf16>
    %190 = arith.mulf %188, %189 : vector<64x32xbf16>
    %c15_122 = arith.constant 15 : index
    %c0_123 = arith.constant 0 : index
    %191 = vector.load %arg7[%c15_122, %c0_123] : memref<96x32xbf16, #tpu.memory_space<vmem>>, vector<64x32xbf16>
    %192 = vector.broadcast %25 : vector<64x1xbf16> to vector<64x32xbf16>
    %193 = arith.mulf %191, %192 : vector<64x32xbf16>
    %c16_124 = arith.constant 16 : index
    %c0_125 = arith.constant 0 : index
    %194 = vector.load %arg7[%c16_124, %c0_125] : memref<96x32xbf16, #tpu.memory_space<vmem>>, vector<64x32xbf16>
    %c17_126 = arith.constant 17 : index
    %c0_127 = arith.constant 0 : index
    %195 = vector.load %arg7[%c17_126, %c0_127] : memref<96x32xbf16, #tpu.memory_space<vmem>>, vector<64x32xbf16>
    %196 = vector.broadcast %30 : vector<64x1xbf16> to vector<64x32xbf16>
    %197 = arith.mulf %195, %196 : vector<64x32xbf16>
    %c23_128 = arith.constant 23 : index
    %c0_129 = arith.constant 0 : index
    %198 = vector.load %arg7[%c23_128, %c0_129] : memref<96x32xbf16, #tpu.memory_space<vmem>>, vector<64x32xbf16>
    %199 = vector.broadcast %25 : vector<64x1xbf16> to vector<64x32xbf16>
    %200 = arith.mulf %198, %199 : vector<64x32xbf16>
    %c24_130 = arith.constant 24 : index
    %c0_131 = arith.constant 0 : index
    %201 = vector.load %arg7[%c24_130, %c0_131] : memref<96x32xbf16, #tpu.memory_space<vmem>>, vector<64x32xbf16>
    %c25_132 = arith.constant 25 : index
    %c0_133 = arith.constant 0 : index
    %202 = vector.load %arg7[%c25_132, %c0_133] : memref<96x32xbf16, #tpu.memory_space<vmem>>, vector<64x32xbf16>
    %203 = vector.broadcast %30 : vector<64x1xbf16> to vector<64x32xbf16>
    %204 = arith.mulf %202, %203 : vector<64x32xbf16>
    %205 = tpu.concatenate %186, %187, %190, %193, %194, %197, %200, %201, %204 in 1 : vector<64x32xbf16>, vector<64x32xbf16>, vector<64x32xbf16>, vector<64x32xbf16>, vector<64x32xbf16>, vector<64x32xbf16>, vector<64x32xbf16>, vector<64x32xbf16>, vector<64x32xbf16> -> vector<64x288xbf16>
    %c4 = arith.constant 4 : index
    %c0_134 = arith.constant 0 : index
    %c0_135 = arith.constant 0 : index
    %206 = vector.load %arg2[%c4, %c0_134, %c0_135] : memref<8x288x32xbf16, #tpu.memory_space<vmem>>, vector<1x288x32xbf16>
    %207 = vector.shape_cast %206 : vector<1x288x32xbf16> to vector<288x32xbf16>
    %cst_136 = arith.constant dense<0.000000e+00> : vector<64x32xf32>
    %208 = tpu.matmul %205, %207, %cst_136 {dimension_numbers = #tpu.dot_dimension_numbers<[1], [0], [0], [1], [0, 0, 1, 1], [], []>} : vector<64x288xbf16>, vector<288x32xbf16>, vector<64x32xf32> -> vector<64x32xf32>
    %c4_137 = arith.constant 4 : index
    %c0_138 = arith.constant 0 : index
    %c0_139 = arith.constant 0 : index
    %209 = vector.load %arg3[%c4_137, %c0_138, %c0_139] : memref<8x1x32xf32, #tpu.memory_space<vmem>>, vector<1x1x32xf32>
    %210 = vector.shape_cast %209 : vector<1x1x32xf32> to vector<1x32xf32>
    %211 = vector.broadcast %210 : vector<1x32xf32> to vector<64x32xf32>
    %212 = arith.addf %208, %211 : vector<64x32xf32>
    %213 = arith.addf %212, %181 : vector<64x32xf32>
    %cst_140 = arith.constant 0.000000e+00 : f32
    %214 = vector.broadcast %cst_140 : f32 to vector<64x32xf32>
    %215 = arith.cmpf oge, %213, %214 : vector<64x32xf32>
    %cst_141 = arith.constant 2.000000e-01 : f32
    %216 = vector.broadcast %cst_141 : f32 to vector<64x32xf32>
    %217 = arith.mulf %216, %213 : vector<64x32xf32>
    %218 = arith.select %215, %213, %217 : vector<64x32xi1>, vector<64x32xf32>
    %219 = arith.truncf %218 : vector<64x32xf32> to vector<64x32xbf16>
    %c16_142 = arith.constant 16 : index
    %c0_143 = arith.constant 0 : index
    %220 = vector.load %arg7[%c16_142, %c0_143] : memref<96x32xbf16, #tpu.memory_space<vmem>>, vector<64x32xbf16>
    tpu.vector_store %arg7[%c16_142, %c0_143], %219 {strides = array<i32>} : memref<96x32xbf16, #tpu.memory_space<vmem>>, vector<64x32xbf16>,
    %c7_144 = arith.constant 7 : index
    %c0_145 = arith.constant 0 : index
    %221 = vector.load %arg7[%c7_144, %c0_145] : memref<96x32xbf16, #tpu.memory_space<vmem>>, vector<64x32xbf16>
    %222 = vector.broadcast %25 : vector<64x1xbf16> to vector<64x32xbf16>
    %223 = arith.mulf %221, %222 : vector<64x32xbf16>
    %c8_146 = arith.constant 8 : index
    %c0_147 = arith.constant 0 : index
    %224 = vector.load %arg7[%c8_146, %c0_147] : memref<96x32xbf16, #tpu.memory_space<vmem>>, vector<64x32xbf16>
    %c9_148 = arith.constant 9 : index
    %c0_149 = arith.constant 0 : index
    %225 = vector.load %arg7[%c9_148, %c0_149] : memref<96x32xbf16, #tpu.memory_space<vmem>>, vector<64x32xbf16>
    %226 = vector.broadcast %30 : vector<64x1xbf16> to vector<64x32xbf16>
    %227 = arith.mulf %225, %226 : vector<64x32xbf16>
    %c15_150 = arith.constant 15 : index
    %c0_151 = arith.constant 0 : index
    %228 = vector.load %arg7[%c15_150, %c0_151] : memref<96x32xbf16, #tpu.memory_space<vmem>>, vector<64x32xbf16>
    %229 = vector.broadcast %25 : vector<64x1xbf16> to vector<64x32xbf16>
    %230 = arith.mulf %228, %229 : vector<64x32xbf16>
    %c16_152 = arith.constant 16 : index
    %c0_153 = arith.constant 0 : index
    %231 = vector.load %arg7[%c16_152, %c0_153] : memref<96x32xbf16, #tpu.memory_space<vmem>>, vector<64x32xbf16>
    %c17_154 = arith.constant 17 : index
    %c0_155 = arith.constant 0 : index
    %232 = vector.load %arg7[%c17_154, %c0_155] : memref<96x32xbf16, #tpu.memory_space<vmem>>, vector<64x32xbf16>
    %233 = vector.broadcast %30 : vector<64x1xbf16> to vector<64x32xbf16>
    %234 = arith.mulf %232, %233 : vector<64x32xbf16>
    %c23_156 = arith.constant 23 : index
    %c0_157 = arith.constant 0 : index
    %235 = vector.load %arg7[%c23_156, %c0_157] : memref<96x32xbf16, #tpu.memory_space<vmem>>, vector<64x32xbf16>
    %236 = vector.broadcast %25 : vector<64x1xbf16> to vector<64x32xbf16>
    %237 = arith.mulf %235, %236 : vector<64x32xbf16>
    %c24_158 = arith.constant 24 : index
    %c0_159 = arith.constant 0 : index
    %238 = vector.load %arg7[%c24_158, %c0_159] : memref<96x32xbf16, #tpu.memory_space<vmem>>, vector<64x32xbf16>
    %c25_160 = arith.constant 25 : index
    %c0_161 = arith.constant 0 : index
    %239 = vector.load %arg7[%c25_160, %c0_161] : memref<96x32xbf16, #tpu.memory_space<vmem>>, vector<64x32xbf16>
    %240 = vector.broadcast %30 : vector<64x1xbf16> to vector<64x32xbf16>
    %241 = arith.mulf %239, %240 : vector<64x32xbf16>
    %242 = tpu.concatenate %223, %224, %227, %230, %231, %234, %237, %238, %241 in 1 : vector<64x32xbf16>, vector<64x32xbf16>, vector<64x32xbf16>, vector<64x32xbf16>, vector<64x32xbf16>, vector<64x32xbf16>, vector<64x32xbf16>, vector<64x32xbf16>, vector<64x32xbf16> -> vector<64x288xbf16>
    %c5 = arith.constant 5 : index
    %c0_162 = arith.constant 0 : index
    %c0_163 = arith.constant 0 : index
    %243 = vector.load %arg2[%c5, %c0_162, %c0_163] : memref<8x288x32xbf16, #tpu.memory_space<vmem>>, vector<1x288x32xbf16>
    %244 = vector.shape_cast %243 : vector<1x288x32xbf16> to vector<288x32xbf16>
    %cst_164 = arith.constant dense<0.000000e+00> : vector<64x32xf32>
    %245 = tpu.matmul %242, %244, %cst_164 {dimension_numbers = #tpu.dot_dimension_numbers<[1], [0], [0], [1], [0, 0, 1, 1], [], []>} : vector<64x288xbf16>, vector<288x32xbf16>, vector<64x32xf32> -> vector<64x32xf32>
    %c5_165 = arith.constant 5 : index
    %c0_166 = arith.constant 0 : index
    %c0_167 = arith.constant 0 : index
    %246 = vector.load %arg3[%c5_165, %c0_166, %c0_167] : memref<8x1x32xf32, #tpu.memory_space<vmem>>, vector<1x1x32xf32>
    %247 = vector.shape_cast %246 : vector<1x1x32xf32> to vector<1x32xf32>
    %248 = vector.broadcast %247 : vector<1x32xf32> to vector<64x32xf32>
    %249 = arith.addf %245, %248 : vector<64x32xf32>
    %250 = arith.addf %249, %218 : vector<64x32xf32>
    %cst_168 = arith.constant 0.000000e+00 : f32
    %251 = vector.broadcast %cst_168 : f32 to vector<64x32xf32>
    %252 = arith.cmpf oge, %250, %251 : vector<64x32xf32>
    %cst_169 = arith.constant 2.000000e-01 : f32
    %253 = vector.broadcast %cst_169 : f32 to vector<64x32xf32>
    %254 = arith.mulf %253, %250 : vector<64x32xf32>
    %255 = arith.select %252, %250, %254 : vector<64x32xi1>, vector<64x32xf32>
    %256 = arith.truncf %255 : vector<64x32xf32> to vector<64x32xbf16>
    %c16_170 = arith.constant 16 : index
    %c0_171 = arith.constant 0 : index
    %257 = vector.load %arg7[%c16_170, %c0_171] : memref<96x32xbf16, #tpu.memory_space<vmem>>, vector<64x32xbf16>
    tpu.vector_store %arg7[%c16_170, %c0_171], %256 {strides = array<i32>} : memref<96x32xbf16, #tpu.memory_space<vmem>>, vector<64x32xbf16>,
    %c7_172 = arith.constant 7 : index
    %c0_173 = arith.constant 0 : index
    %258 = vector.load %arg7[%c7_172, %c0_173] : memref<96x32xbf16, #tpu.memory_space<vmem>>, vector<64x32xbf16>
    %259 = vector.broadcast %25 : vector<64x1xbf16> to vector<64x32xbf16>
    %260 = arith.mulf %258, %259 : vector<64x32xbf16>
    %c8_174 = arith.constant 8 : index
    %c0_175 = arith.constant 0 : index
    %261 = vector.load %arg7[%c8_174, %c0_175] : memref<96x32xbf16, #tpu.memory_space<vmem>>, vector<64x32xbf16>
    %c9_176 = arith.constant 9 : index
    %c0_177 = arith.constant 0 : index
    %262 = vector.load %arg7[%c9_176, %c0_177] : memref<96x32xbf16, #tpu.memory_space<vmem>>, vector<64x32xbf16>
    %263 = vector.broadcast %30 : vector<64x1xbf16> to vector<64x32xbf16>
    %264 = arith.mulf %262, %263 : vector<64x32xbf16>
    %c15_178 = arith.constant 15 : index
    %c0_179 = arith.constant 0 : index
    %265 = vector.load %arg7[%c15_178, %c0_179] : memref<96x32xbf16, #tpu.memory_space<vmem>>, vector<64x32xbf16>
    %266 = vector.broadcast %25 : vector<64x1xbf16> to vector<64x32xbf16>
    %267 = arith.mulf %265, %266 : vector<64x32xbf16>
    %c16_180 = arith.constant 16 : index
    %c0_181 = arith.constant 0 : index
    %268 = vector.load %arg7[%c16_180, %c0_181] : memref<96x32xbf16, #tpu.memory_space<vmem>>, vector<64x32xbf16>
    %c17_182 = arith.constant 17 : index
    %c0_183 = arith.constant 0 : index
    %269 = vector.load %arg7[%c17_182, %c0_183] : memref<96x32xbf16, #tpu.memory_space<vmem>>, vector<64x32xbf16>
    %270 = vector.broadcast %30 : vector<64x1xbf16> to vector<64x32xbf16>
    %271 = arith.mulf %269, %270 : vector<64x32xbf16>
    %c23_184 = arith.constant 23 : index
    %c0_185 = arith.constant 0 : index
    %272 = vector.load %arg7[%c23_184, %c0_185] : memref<96x32xbf16, #tpu.memory_space<vmem>>, vector<64x32xbf16>
    %273 = vector.broadcast %25 : vector<64x1xbf16> to vector<64x32xbf16>
    %274 = arith.mulf %272, %273 : vector<64x32xbf16>
    %c24_186 = arith.constant 24 : index
    %c0_187 = arith.constant 0 : index
    %275 = vector.load %arg7[%c24_186, %c0_187] : memref<96x32xbf16, #tpu.memory_space<vmem>>, vector<64x32xbf16>
    %c25_188 = arith.constant 25 : index
    %c0_189 = arith.constant 0 : index
    %276 = vector.load %arg7[%c25_188, %c0_189] : memref<96x32xbf16, #tpu.memory_space<vmem>>, vector<64x32xbf16>
    %277 = vector.broadcast %30 : vector<64x1xbf16> to vector<64x32xbf16>
    %278 = arith.mulf %276, %277 : vector<64x32xbf16>
    %279 = tpu.concatenate %260, %261, %264, %267, %268, %271, %274, %275, %278 in 1 : vector<64x32xbf16>, vector<64x32xbf16>, vector<64x32xbf16>, vector<64x32xbf16>, vector<64x32xbf16>, vector<64x32xbf16>, vector<64x32xbf16>, vector<64x32xbf16>, vector<64x32xbf16> -> vector<64x288xbf16>
    %c6 = arith.constant 6 : index
    %c0_190 = arith.constant 0 : index
    %c0_191 = arith.constant 0 : index
    %280 = vector.load %arg2[%c6, %c0_190, %c0_191] : memref<8x288x32xbf16, #tpu.memory_space<vmem>>, vector<1x288x32xbf16>
    %281 = vector.shape_cast %280 : vector<1x288x32xbf16> to vector<288x32xbf16>
    %cst_192 = arith.constant dense<0.000000e+00> : vector<64x32xf32>
    %282 = tpu.matmul %279, %281, %cst_192 {dimension_numbers = #tpu.dot_dimension_numbers<[1], [0], [0], [1], [0, 0, 1, 1], [], []>} : vector<64x288xbf16>, vector<288x32xbf16>, vector<64x32xf32> -> vector<64x32xf32>
    %c6_193 = arith.constant 6 : index
    %c0_194 = arith.constant 0 : index
    %c0_195 = arith.constant 0 : index
    %283 = vector.load %arg3[%c6_193, %c0_194, %c0_195] : memref<8x1x32xf32, #tpu.memory_space<vmem>>, vector<1x1x32xf32>
    %284 = vector.shape_cast %283 : vector<1x1x32xf32> to vector<1x32xf32>
    %285 = vector.broadcast %284 : vector<1x32xf32> to vector<64x32xf32>
    %286 = arith.addf %282, %285 : vector<64x32xf32>
    %287 = arith.addf %286, %255 : vector<64x32xf32>
    %cst_196 = arith.constant 0.000000e+00 : f32
    %288 = vector.broadcast %cst_196 : f32 to vector<64x32xf32>
    %289 = arith.cmpf oge, %287, %288 : vector<64x32xf32>
    %cst_197 = arith.constant 2.000000e-01 : f32
    %290 = vector.broadcast %cst_197 : f32 to vector<64x32xf32>
    %291 = arith.mulf %290, %287 : vector<64x32xf32>
    %292 = arith.select %289, %287, %291 : vector<64x32xi1>, vector<64x32xf32>
    %293 = arith.truncf %292 : vector<64x32xf32> to vector<64x32xbf16>
    %c16_198 = arith.constant 16 : index
    %c0_199 = arith.constant 0 : index
    %294 = vector.load %arg7[%c16_198, %c0_199] : memref<96x32xbf16, #tpu.memory_space<vmem>>, vector<64x32xbf16>
    tpu.vector_store %arg7[%c16_198, %c0_199], %293 {strides = array<i32>} : memref<96x32xbf16, #tpu.memory_space<vmem>>, vector<64x32xbf16>,
    %c7_200 = arith.constant 7 : index
    %c0_201 = arith.constant 0 : index
    %295 = vector.load %arg7[%c7_200, %c0_201] : memref<96x32xbf16, #tpu.memory_space<vmem>>, vector<64x32xbf16>
    %296 = vector.broadcast %25 : vector<64x1xbf16> to vector<64x32xbf16>
    %297 = arith.mulf %295, %296 : vector<64x32xbf16>
    %c8_202 = arith.constant 8 : index
    %c0_203 = arith.constant 0 : index
    %298 = vector.load %arg7[%c8_202, %c0_203] : memref<96x32xbf16, #tpu.memory_space<vmem>>, vector<64x32xbf16>
    %c9_204 = arith.constant 9 : index
    %c0_205 = arith.constant 0 : index
    %299 = vector.load %arg7[%c9_204, %c0_205] : memref<96x32xbf16, #tpu.memory_space<vmem>>, vector<64x32xbf16>
    %300 = vector.broadcast %30 : vector<64x1xbf16> to vector<64x32xbf16>
    %301 = arith.mulf %299, %300 : vector<64x32xbf16>
    %c15_206 = arith.constant 15 : index
    %c0_207 = arith.constant 0 : index
    %302 = vector.load %arg7[%c15_206, %c0_207] : memref<96x32xbf16, #tpu.memory_space<vmem>>, vector<64x32xbf16>
    %303 = vector.broadcast %25 : vector<64x1xbf16> to vector<64x32xbf16>
    %304 = arith.mulf %302, %303 : vector<64x32xbf16>
    %c16_208 = arith.constant 16 : index
    %c0_209 = arith.constant 0 : index
    %305 = vector.load %arg7[%c16_208, %c0_209] : memref<96x32xbf16, #tpu.memory_space<vmem>>, vector<64x32xbf16>
    %c17_210 = arith.constant 17 : index
    %c0_211 = arith.constant 0 : index
    %306 = vector.load %arg7[%c17_210, %c0_211] : memref<96x32xbf16, #tpu.memory_space<vmem>>, vector<64x32xbf16>
    %307 = vector.broadcast %30 : vector<64x1xbf16> to vector<64x32xbf16>
    %308 = arith.mulf %306, %307 : vector<64x32xbf16>
    %c23_212 = arith.constant 23 : index
    %c0_213 = arith.constant 0 : index
    %309 = vector.load %arg7[%c23_212, %c0_213] : memref<96x32xbf16, #tpu.memory_space<vmem>>, vector<64x32xbf16>
    %310 = vector.broadcast %25 : vector<64x1xbf16> to vector<64x32xbf16>
    %311 = arith.mulf %309, %310 : vector<64x32xbf16>
    %c24_214 = arith.constant 24 : index
    %c0_215 = arith.constant 0 : index
    %312 = vector.load %arg7[%c24_214, %c0_215] : memref<96x32xbf16, #tpu.memory_space<vmem>>, vector<64x32xbf16>
    %c25_216 = arith.constant 25 : index
    %c0_217 = arith.constant 0 : index
    %313 = vector.load %arg7[%c25_216, %c0_217] : memref<96x32xbf16, #tpu.memory_space<vmem>>, vector<64x32xbf16>
    %314 = vector.broadcast %30 : vector<64x1xbf16> to vector<64x32xbf16>
    %315 = arith.mulf %313, %314 : vector<64x32xbf16>
    %316 = tpu.concatenate %297, %298, %301, %304, %305, %308, %311, %312, %315 in 1 : vector<64x32xbf16>, vector<64x32xbf16>, vector<64x32xbf16>, vector<64x32xbf16>, vector<64x32xbf16>, vector<64x32xbf16>, vector<64x32xbf16>, vector<64x32xbf16>, vector<64x32xbf16> -> vector<64x288xbf16>
    %c7_218 = arith.constant 7 : index
    %c0_219 = arith.constant 0 : index
    %c0_220 = arith.constant 0 : index
    %317 = vector.load %arg2[%c7_218, %c0_219, %c0_220] : memref<8x288x32xbf16, #tpu.memory_space<vmem>>, vector<1x288x32xbf16>
    %318 = vector.shape_cast %317 : vector<1x288x32xbf16> to vector<288x32xbf16>
    %cst_221 = arith.constant dense<0.000000e+00> : vector<64x32xf32>
    %319 = tpu.matmul %316, %318, %cst_221 {dimension_numbers = #tpu.dot_dimension_numbers<[1], [0], [0], [1], [0, 0, 1, 1], [], []>} : vector<64x288xbf16>, vector<288x32xbf16>, vector<64x32xf32> -> vector<64x32xf32>
    %c7_222 = arith.constant 7 : index
    %c0_223 = arith.constant 0 : index
    %c0_224 = arith.constant 0 : index
    %320 = vector.load %arg3[%c7_222, %c0_223, %c0_224] : memref<8x1x32xf32, #tpu.memory_space<vmem>>, vector<1x1x32xf32>
    %321 = vector.shape_cast %320 : vector<1x1x32xf32> to vector<1x32xf32>
    %322 = vector.broadcast %321 : vector<1x32xf32> to vector<64x32xf32>
    %323 = arith.addf %319, %322 : vector<64x32xf32>
    %324 = arith.addf %323, %292 : vector<64x32xf32>
    %cst_225 = arith.constant 0.000000e+00 : f32
    %325 = vector.broadcast %cst_225 : f32 to vector<64x32xf32>
    %326 = arith.cmpf oge, %324, %325 : vector<64x32xf32>
    %cst_226 = arith.constant 2.000000e-01 : f32
    %327 = vector.broadcast %cst_226 : f32 to vector<64x32xf32>
    %328 = arith.mulf %327, %324 : vector<64x32xf32>
    %329 = arith.select %326, %324, %328 : vector<64x32xi1>, vector<64x32xf32>
    %330 = arith.truncf %329 : vector<64x32xf32> to vector<64x32xbf16>
    %c16_227 = arith.constant 16 : index
    %c0_228 = arith.constant 0 : index
    %331 = vector.load %arg7[%c16_227, %c0_228] : memref<96x32xbf16, #tpu.memory_space<vmem>>, vector<64x32xbf16>
    tpu.vector_store %arg7[%c16_227, %c0_228], %330 {strides = array<i32>} : memref<96x32xbf16, #tpu.memory_space<vmem>>, vector<64x32xbf16>,
    %c7_229 = arith.constant 7 : index
    %c0_230 = arith.constant 0 : index
    %332 = vector.load %arg7[%c7_229, %c0_230] : memref<96x32xbf16, #tpu.memory_space<vmem>>, vector<64x32xbf16>
    %333 = vector.broadcast %25 : vector<64x1xbf16> to vector<64x32xbf16>
    %334 = arith.mulf %332, %333 : vector<64x32xbf16>
    %c8_231 = arith.constant 8 : index
    %c0_232 = arith.constant 0 : index
    %335 = vector.load %arg7[%c8_231, %c0_232] : memref<96x32xbf16, #tpu.memory_space<vmem>>, vector<64x32xbf16>
    %c9_233 = arith.constant 9 : index
    %c0_234 = arith.constant 0 : index
    %336 = vector.load %arg7[%c9_233, %c0_234] : memref<96x32xbf16, #tpu.memory_space<vmem>>, vector<64x32xbf16>
    %337 = vector.broadcast %30 : vector<64x1xbf16> to vector<64x32xbf16>
    %338 = arith.mulf %336, %337 : vector<64x32xbf16>
    %c15_235 = arith.constant 15 : index
    %c0_236 = arith.constant 0 : index
    %339 = vector.load %arg7[%c15_235, %c0_236] : memref<96x32xbf16, #tpu.memory_space<vmem>>, vector<64x32xbf16>
    %340 = vector.broadcast %25 : vector<64x1xbf16> to vector<64x32xbf16>
    %341 = arith.mulf %339, %340 : vector<64x32xbf16>
    %c16_237 = arith.constant 16 : index
    %c0_238 = arith.constant 0 : index
    %342 = vector.load %arg7[%c16_237, %c0_238] : memref<96x32xbf16, #tpu.memory_space<vmem>>, vector<64x32xbf16>
    %c17_239 = arith.constant 17 : index
    %c0_240 = arith.constant 0 : index
    %343 = vector.load %arg7[%c17_239, %c0_240] : memref<96x32xbf16, #tpu.memory_space<vmem>>, vector<64x32xbf16>
    %344 = vector.broadcast %30 : vector<64x1xbf16> to vector<64x32xbf16>
    %345 = arith.mulf %343, %344 : vector<64x32xbf16>
    %c23_241 = arith.constant 23 : index
    %c0_242 = arith.constant 0 : index
    %346 = vector.load %arg7[%c23_241, %c0_242] : memref<96x32xbf16, #tpu.memory_space<vmem>>, vector<64x32xbf16>
    %347 = vector.broadcast %25 : vector<64x1xbf16> to vector<64x32xbf16>
    %348 = arith.mulf %346, %347 : vector<64x32xbf16>
    %c24_243 = arith.constant 24 : index
    %c0_244 = arith.constant 0 : index
    %349 = vector.load %arg7[%c24_243, %c0_244] : memref<96x32xbf16, #tpu.memory_space<vmem>>, vector<64x32xbf16>
    %c25_245 = arith.constant 25 : index
    %c0_246 = arith.constant 0 : index
    %350 = vector.load %arg7[%c25_245, %c0_246] : memref<96x32xbf16, #tpu.memory_space<vmem>>, vector<64x32xbf16>
    %351 = vector.broadcast %30 : vector<64x1xbf16> to vector<64x32xbf16>
    %352 = arith.mulf %350, %351 : vector<64x32xbf16>
    %353 = tpu.concatenate %334, %335, %338, %341, %342, %345, %348, %349, %352 in 1 : vector<64x32xbf16>, vector<64x32xbf16>, vector<64x32xbf16>, vector<64x32xbf16>, vector<64x32xbf16>, vector<64x32xbf16>, vector<64x32xbf16>, vector<64x32xbf16>, vector<64x32xbf16> -> vector<64x288xbf16>
    %c0_247 = arith.constant 0 : index
    %c0_248 = arith.constant 0 : index
    %354 = vector.load %arg4[%c0_247, %c0_248] : memref<288x208xbf16, #tpu.memory_space<vmem>>, vector<288x208xbf16>
    %cst_249 = arith.constant dense<0.000000e+00> : vector<64x208xf32>
    %355 = tpu.matmul %353, %354, %cst_249 {dimension_numbers = #tpu.dot_dimension_numbers<[1], [0], [0], [1], [0, 0, 1, 1], [], []>} : vector<64x288xbf16>, vector<288x208xbf16>, vector<64x208xf32> -> vector<64x208xf32>
    %c0_250 = arith.constant 0 : index
    %c0_251 = arith.constant 0 : index
    %356 = vector.load %arg5[%c0_250, %c0_251] : memref<1x208xf32, #tpu.memory_space<vmem>>, vector<1x208xf32>
    %357 = vector.broadcast %356 : vector<1x208xf32> to vector<64x208xf32>
    %358 = arith.addf %355, %357 : vector<64x208xf32>
    %c0_252 = arith.constant 0 : index
    %c0_253 = arith.constant 0 : index
    %c0_254 = arith.constant 0 : index
    %359 = vector.load %arg6[%c0_252, %c0_253, %c0_254] : memref<1x64x208xf32, #tpu.memory_space<vmem>>, vector<1x64x208xf32>
    %360 = vector.shape_cast %359 : vector<1x64x208xf32> to vector<64x208xf32>
    %361 = vector.shape_cast %358 : vector<64x208xf32> to vector<1x64x208xf32>
    tpu.vector_store %arg6[%c0_252, %c0_253, %c0_254], %361 {strides = array<i32>} : memref<1x64x208xf32, #tpu.memory_space<vmem>>, vector<1x64x208xf32>,
    return
  }
  func.func @transform_0(%arg0: i32) -> (i32, i32, i32) {
    %c0_i32 = arith.constant 0 : i32
    %c0_i32_0 = arith.constant 0 : i32
    %c0_i32_1 = arith.constant 0 : i32
    return %arg0, %c0_i32, %c0_i32_0 : i32, i32, i32
  }
  func.func @transform_1(%arg0: i32) -> (i32, i32, i32) {
    %c0_i32 = arith.constant 0 : i32
    %c0_i32_0 = arith.constant 0 : i32
    %c0_i32_1 = arith.constant 0 : i32
    %c0_i32_2 = arith.constant 0 : i32
    return %c0_i32, %c0_i32_0, %c0_i32_1 : i32, i32, i32
  }
  func.func @transform_2(%arg0: i32) -> (i32, i32, i32) {
    %c0_i32 = arith.constant 0 : i32
    %c0_i32_0 = arith.constant 0 : i32
    %c0_i32_1 = arith.constant 0 : i32
    %c0_i32_2 = arith.constant 0 : i32
    return %c0_i32, %c0_i32_0, %c0_i32_1 : i32, i32, i32
  }
  func.func @transform_3(%arg0: i32) -> (i32, i32) {
    %c0_i32 = arith.constant 0 : i32
    %c0_i32_0 = arith.constant 0 : i32
    %c0_i32_1 = arith.constant 0 : i32
    return %c0_i32, %c0_i32_0 : i32, i32
  }
  func.func @transform_4(%arg0: i32) -> (i32, i32) {
    %c0_i32 = arith.constant 0 : i32
    %c0_i32_0 = arith.constant 0 : i32
    %c0_i32_1 = arith.constant 0 : i32
    return %c0_i32, %c0_i32_0 : i32, i32
  }
  func.func @transform_5(%arg0: i32) -> (i32, i32, i32) {
    %c0_i32 = arith.constant 0 : i32
    %c0_i32_0 = arith.constant 0 : i32
    %c0_i32_1 = arith.constant 0 : i32
    return %arg0, %c0_i32, %c0_i32_0 : i32, i32, i32
  }
}

</mosaic_0001>

<bundles_post_ra>
// kernel: tile.8
= control target key start
LH: loop header
LB: loop body
LE: loop exit
PB: predicated region body
PF: predicated region fallthrough
CT: control target
= control target key end

     0   :  { %2 = vsyncpa [#allocation1], 0  ;;  %s44_s6 = smov [#allocation0]   ;;  %s70_s0 = inlined_call_operand.hbm [shape: f32[52], index: 0, kind: input, shape index: {}]   ;;  %s71_s1 = inlined_call_operand.vmem [shape: f32[4,52], index: 1, kind: output, shape index: {}]  }
   0x1   :  { %s9_s7 = sshll.u32 %s44_s6, 4  ;;  %s20_s10 = scalar_lea.hbm %s70_s0, 16  ;;  %s10_s7 = int_to_ptr.vmem [resolvable:$true] %s9_s7 }
   0x2   :  { %p21_p0 = scmp.ne.s32.totalorder %s70_s0, %s20_s10  ;;  %p24_p1 = scmp.lt.u32.totalorder %s20_s10, %s70_s0 }
   0x4   :  { %p26_p2 = pnand %p24_p1, %p21_p0 }
   0x6   :  { %29 = shalt.err (!%p26_p2)
}
   0x7   :  { %s30_s15 = scalar_lea.vmem %s10_s7, 16  ;;  %s34_s16 = scalar_lea.vmem %s10_s7, 32 }
   0x8   :  { %p31_p3 = scmp.ne.s32.totalorder %s10_s7, %s30_s15  ;;  %p35_p4 = scmp.lt.s32.totalorder %s10_s7, %s10_s7 }
   0x9   :  { %p36_p5 = scmp.lt.s32.totalorder %s34_s16, %s30_s15 }
   0xb   :  { %p37_p6 = por %p36_p5, %p35_p4 }
   0xd   :  { %p38_p7 = pnand %p37_p6, %p31_p3 }
   0xf   :  { %41 = shalt.err (!%p38_p7)
}
  0x10   :  { %12 = dma.hbm_to_vmem [thread:$0]  %s70_s0, 16, %s10_s7, [#allocation1]  }
  0x11   :  { %42 = dma.done.wait [#allocation1], 16  }
  0x12   :  { %43 = vsyncadd [#allocation1], 4294967280  ;;  %v16_v0 = vld [vmem:[#allocation0] ss:$0 sm:$0xff] }
  0x13   :  { %17 = vst [vmem:[%s71_s1] sm:$0xf] %v16_v0 }
  0x14   :  { %18 = vsyncpa [#allocation1], 1 }

// kernel: tile.9
= control target key start
LH: loop header
LB: loop body
LE: loop exit
PB: predicated region body
PF: predicated region fallthrough
CT: control target
= control target key end

     0   :  { %s114_s0 = inlined_call_operand.vmem [shape: f32[4,52], index: 0, kind: input, shape index: {}]   ;;  %s115_s1 = inlined_call_operand.hbm [shape: f32[1,208], index: 1, kind: output, shape index: {}]  }
   0x1   :  { %v5_v0 = vld [vmem:[%s114_s0] sm:$0xf] }
   0x2   :  { %6 = vst [vmem:[#allocation3] sm:$0xf] %v5_v0 }
   0x3   :  { %2 = vsyncpa [#allocation1], 0  ;;  %vm14_vm0 = vcmask 195584   ;;  %vm8_vm1 = vcmask 424960   ;;  %s85_s0 = smov 28   ;;  %s86_s8 = smov 104  }
   0x4   :  { %s87_s9 = smov 52   ;;  %vm18_vm2 = vcmask 228352   ;;  %vm21_vm3 = vcmask 1048384   ;;  %vm33_vm4 = vcmask 654560   ;;  %vm27_vm5 = vcmask 851360   ;;  %s88_s10 = smov [#allocation0]  }
   0x5   :  { %s51_s11 = sshll.u32 %s88_s10, 4  ;;  %s52_s11 = int_to_ptr.vmem [resolvable:$true] %s51_s11 }
   0x6   :  { %s61_s12 = scalar_lea.vmem %s52_s11, 32  ;;  %p66_p1 = scmp.lt.s32.totalorder %s52_s11, %s52_s11 }
   0x7   :  { %p62_p0 = scmp.ne.s32.totalorder %s52_s11, %s61_s12  ;;  %p67_p2 = scmp.lt.s32.totalorder %s61_s12, %s61_s12 }
   0x9   :  { %v11_v1 = vld [vmem:[#allocation3 + $0x2] sm:$0x1]   ;;  %v30_v3 = vld [vmem:[#allocation3 + $0x3] sm:$0x1]   ;;  %v7_v5 = vld [vmem:[#allocation3] sm:$0x1]   ;;  %p68_p3 = por %p67_p2, %p66_p1 }
   0xa   :  { %v13_v2 = vld [vmem:[#allocation3 + $0x2] sm:$0x1]   ;;  %31 = vrot.lane.b32.xlu1 %v30_v3, %s85_s0  ;;  %9 = vst.msk [vmem:[#allocation2] sm:$0x1] %vm8_vm1, %v7_v5   ;;  %v24_v6 = vld [vmem:[#allocation3 + $0x1] sm:$0x1]  }
   0xb   :  { %v15_v4 = vsel %vm14_vm0, %v13_v2, %v11_v1  ;;  %p69_p4 = pnand %p68_p3, %p62_p0 }
   0xc   :  { %16 = vrot.lane.b32.xlu0 %v15_v4, %s86_s8 }
  0x10   :  { %25 = vrot.lane.b32.xlu0 %v24_v6, %s87_s9 }
  0x7c   :  { %v32_v7 = vpop.permute.xlu1 %31  }
  0x7e   :  { %v17_v8 = vpop.permute.xlu0 %16  }
  0x7f   :  { %20 = vst.msk [vmem:[#allocation2 + $0x8] sm:$0x1] %vm18_vm2, %v17_v8  }
  0x80   :  { %22 = vst.msk [vmem:[#allocation2] sm:$0x1] %vm21_vm3, %v17_v8  }
  0x81   :  { %35 = vst.msk [vmem:[#allocation2 + $0x8] sm:$0x1] %vm33_vm4, %v32_v7  }
  0x82   :  { %v26_v9 = vpop.permute.xlu0 %25  }
  0x83   :  { %28 = vst.msk [vmem:[#allocation2] sm:$0x1] %vm27_vm5, %v26_v9  }
  0x88   :  { %v43_v10 = vld [vmem:[#allocation2 + $0x8] sm:$0x1] }
  0x89   :  { %46 = vst [vmem:[#allocation0 + $0x1] sm:$0x1] %v43_v10 }
  0x8a   :  { %v39_v11 = vld [vmem:[#allocation2] sm:$0x1] }
  0x8b   :  { %41 = vst [vmem:[#allocation0] sm:$0x1] %v39_v11 }
  0x8c   :  { %72 = shalt.err (!%p69_p4)
}
  0x8d   :  { %s73_s15 = scalar_lea.hbm %s115_s1, 32 }
  0x8e   :  { %p74_p5 = scmp.ne.s32.totalorder %s115_s1, %s73_s15  ;;  %p77_p6 = scmp.lt.u32.totalorder %s73_s15, %s115_s1 }
  0x90   :  { %p79_p7 = pnand %p77_p6, %p74_p5 }
  0x92   :  { %82 = shalt.err (!%p79_p7)
}
  0x93   :  { %54 = dma.vmem_to_hbm [thread:$0]  %s52_s11, 32, %s115_s1, [#allocation1]  }
  0x94   :  { %83 = dma.done.wait [#allocation1], 32  }
  0x95   :  { %84 = vsyncadd [#allocation1], 4294967264 }
  0x96   :  { %56 = vsyncpa [#allocation1], 1 }

// kernel: _lambda_.3
= control target key start
LH: loop header
LB: loop body
LE: loop exit
PB: predicated region body
PF: predicated region fallthrough
CT: control target
= control target key end

     0   :  { %8 = vsyncpa [#allocation4], 0  ;;  %s4681_s0 = inlined_call_operand.hbm [shape: bf16[2,256,28], index: 0, kind: input, shape index: {}]   ;;  %s4682_s1 = inlined_call_operand.hbm [shape: bf16[112,16], index: 1, kind: input, shape index: {}]   ;;  %s4683_s2 = inlined_call_operand.hbm [shape: f32[1,16], index: 2, kind: input, shape index: {}]   ;;  %s4684_s3 = inlined_call_operand.hbm [shape: bf16[2,256,16], index: 3, kind: output, shape index: {}]  }
   0x1   :  { %10 = vsyncpa [#allocation4 + $0x1], 0 }
   0x2   :  { %11 = vsyncpa [#allocation7], 0 }
   0x3   :  { %12 = vsyncpa [#allocation5], 0 }
   0x4   :  { %14 = vsyncpa [#allocation5 + $0x1], 0  ;;  %s3444_s12 = smov 0   ;;  %s3446_s13 = smov 0  }
   0x5   :  { %s3448_s14 = smov 0   ;;  %s3450_s15 = smov 0  }
   0x6 LB: > { %s3465_s16 = sadd.s32 4294967295, %s3406_s15   ;;  %s2898_s17 = sadd.s32 4294967294, %s3406_s15   ;;  %s3406_s15 = sphi %s3450_s15, %s4726_s15   ;;  %s3402_s14 = sphi %s3448_s14, %s4725_s14   ;;  %s3398_s13 = sphi %s3446_s13, %s4724_s13   ;;  %s3394_s12 = sphi %s3444_s12, %s4723_s12  }
   0x7   : > { %p40_p0 = scmp.ne.s32.totalorder %s3398_s13, %s3394_s12  ;;  %p4685_p1 = scmp.eq.s32.totalorder %s3465_s16, 0 }
   0x8   : > { %p112_p3 = scmp.eq.s32.totalorder %s2898_s17, 1  ;;  %p2899_p5 = scmp.ge.s32.totalorder %s3406_s15, 1 }
   0x9   : > { %p3474_p4 = por %p4685_p1, %p40_p0  ;;  %p119_p7 = scmp.lt.s32.totalorder %s3406_s15, 3 }
   0xa   : > { %p3479_p6 = por %p112_p3, %p40_p0  ;;  %s3408_s21 = smov [#allocation6]  }
   0xb   : > { %s4694_s18 = scalar_select %p3474_p4, 1, 0 }
   0xc   : > { %s4695_s19 = scalar_select %p3479_p6, 1, 0 }
   0xd   : > { %p3484_p8 = pnand %p2899_p5, %p119_p7  ;;  %s131_s22 = sshll.u32 %s3408_s21, 4  ;;  %s3488_s22 = int_to_ptr.vmem [resolvable:$true] %s131_s22 }
   0xe   : > { %s3409_s24 = smov [#allocation8]   ;;  %s3250_s28 = scalar_lea.hbm %s4682_s1, 896 }
   0xf   : > { %p3168_p9 = pneg %p3484_p8  ;;  %s145_s25 = sshll.u32 %s3409_s24, 4  ;;  %s3499_s25 = int_to_ptr.vmem [resolvable:$true] %s145_s25 }
  0x10   : > { %p3251_p12 = scmp.ne.s32.totalorder %s4682_s1, %s3250_s28  ;;  %p3257_p5 = scmp.lt.u32.totalorder %s3250_s28, %s4682_s1 }
  0x11   : > { %p3495_p11 = pnand %p3168_p9, %p4685_p1 }
  0x13   : > { %p3252_p13 = pneg %p3495_p11 }
  0x15   : > { %p3253_p0 = pnand %p3252_p13, %p3251_p12 }
  0x17   : > { %p3254_p3 = pneg %p3253_p0 }
  0x19   : > { %p3259_p7 = pnand %p3257_p5, %p3254_p3 }
  0x1b   : > { %3262 = shalt.err (!%p3259_p7)
}
  0x1c   : > { %s3263_s6 = scalar_lea.vmem %s3488_s22, 896  ;;  %p3271_p2 = scmp.lt.s32.totalorder %s3488_s22, %s3488_s22 }
  0x1d   : > { %p3264_p9 = scmp.ne.s32.totalorder %s3488_s22, %s3263_s6  ;;  %p3272_p12 = scmp.lt.s32.totalorder %s3263_s6, %s3263_s6 }
  0x1f   : > { %p3266_p10 = pnand %p3264_p9, %p3252_p13  ;;  %p3273_p0 = por %p3272_p12, %p3271_p2 }
  0x21   : > { %p3267_p1 = pneg %p3266_p10 }
  0x23   : > { %p3274_p6 = pnand %p3273_p0, %p3267_p1 }
  0x25   : > { %3277 = shalt.err (!%p3274_p6)
}
  0x26   : > { %s3410_s7 = smov 64   ;;  %s3411_s8 = smov 4  }
  0x27   : > { %3171 = dma.hbm_to_vmem [thread:$0]  (!%p3495_p11), %s4682_s1, 896, %s3488_s22, [#allocation7], %s3410_s7, %s3410_s7, %s3411_s8  }
  0x28   : > { %s3278_s21 = scalar_lea.hbm %s4683_s2, 16 }
  0x29   : > { %p3279_p1 = scmp.ne.s32.totalorder %s4683_s2, %s3278_s21  ;;  %p3285_p10 = scmp.lt.u32.totalorder %s3278_s21, %s4683_s2 }
  0x2b   : > { %p3281_p2 = pnand %p3279_p1, %p3252_p13 }
  0x2d   : > { %p3282_p6 = pneg %p3281_p2 }
  0x2f   : > { %p3287_p3 = pnand %p3285_p10, %p3282_p6 }
  0x31   : > { %3290 = shalt.err (!%p3287_p3)
}
  0x32   : > { %s3291_s22 = scalar_lea.vmem %s3499_s25, 16  ;;  %s3298_s29 = scalar_lea.vmem %s3499_s25, 32 }
  0x33   : > { %p3292_p5 = scmp.ne.s32.totalorder %s3499_s25, %s3291_s22  ;;  %p3299_p12 = scmp.lt.s32.totalorder %s3499_s25, %s3499_s25 }
  0x34   : > { %p3300_p0 = scmp.lt.s32.totalorder %s3298_s29, %s3291_s22 }
  0x35   : > { %p3294_p7 = pnand %p3292_p5, %p3252_p13 }
  0x36   : > { %p3301_p1 = por %p3300_p0, %p3299_p12 }
  0x37   : > { %p3295_p9 = pneg %p3294_p7 }
  0x39   : > { %p3302_p2 = pnand %p3301_p1, %p3295_p9 }
  0x3b   : > { %3305 = shalt.err (!%p3302_p2)
}
  0x3c   : > { %3174 = dma.hbm_to_vmem [thread:$0]  (!%p3495_p11), %s4683_s2, 16, %s3499_s25, [#allocation7]  }
  0x3d   : > { %s3558_s5 = sadd.s32 1, %s3406_s15   ;;  %s27_s23 = sadd.s32 1, %s3402_s14 }
  0x3e   : > { %s24_s6 = ssub.s32 %s3406_s15, %s3558_s5  ;;  %p34_p13 = scmp.ne.s32.totalorder %s3402_s14, %s3398_s13 }
  0x3f   : > { %p25_p6 = scmp.eq.s32.totalorder %s24_s6, 0  ;;  %p35_p10 = scmp.eq.s32.totalorder %s3406_s15, 0 }
  0x40   : > { %p4698_p3 = scmp.eq.s32.totalorder %s3465_s16, 1  ;;  %p3185_p7 = scmp.lt.s32.totalorder %s3406_s15, 2 }
  0x41   : > { %s3574_s10 = scalar_select %p25_p6, %s3402_s14, %s27_s23  }
  0x42   : > { %p3568_p5 = por %p4698_p3, %p34_p13  ;;  %p36_p9 = por %p35_p10, %p34_p13 }
  0x43   : > { %s156_s11 = sand.u32 1, %s3402_s14   ;;  %s3039_s25 = sshll.u32 %s3406_s15, 11 }
  0x44   : > { %s4699_s9 = scalar_select %p3568_p5, 1, 0 }
  0x45   : > { %s2903_s17 = sshll.u32 %s156_s11, 7  ;;  %s3581_s26 = scalar_lea.hbm %s4681_s0, %s3039_s25 }
  0x46   : > { %s160_s27 = scalar_lea.vmem [#allocation3], %s2903_s17  ;;  %p3585_p11 = pnand %p3185_p7, %p36_p9 }
  0x47   : > { %s167_s28 = sshll.u32 %s160_s27, 4  ;;  %s3589_s29 = scalar_lea.sflag [#allocation4], %s156_s11  ;;  %s3583_s28 = int_to_ptr.vmem [resolvable:$true] %s167_s28 }
  0x48   : > { %s3306_s30 = scalar_lea.hbm %s3581_s26, 2048  ;;  %p3308_p0 = pneg %p3585_p11 }
  0x49   : > { %p3307_p12 = scmp.ne.s32.totalorder %s3581_s26, %s3306_s30  ;;  %s3311_s6 = scalar_lea.hbm %s4681_s0, 4096 }
  0x4a   : > { %p3312_p13 = scmp.lt.u32.totalorder %s3581_s26, %s4681_s0  ;;  %p3313_p6 = scmp.lt.u32.totalorder %s3311_s6, %s3306_s30 }
  0x4b   : > { %p3309_p1 = pnand %p3308_p0, %p3307_p12  ;;  %p3315_p3 = scmp.lt.u32.totalorder %s3306_s30, %s3581_s26 }
  0x4c   : > { %p3314_p10 = por %p3313_p6, %p3312_p13 }
  0x4d   : > { %p3310_p2 = pneg %p3309_p1 }
  0x4e   : > { %p3316_p7 = por %p3315_p3, %p3314_p10 }
  0x50   : > { %p3317_p9 = pnand %p3316_p7, %p3310_p2 }
  0x52   : > { %3320 = shalt.err (!%p3317_p9)
}
  0x53   : > { %s3321_s11 = scalar_lea.vmem %s3583_s28, 2048  ;;  %s3412_s21 = smov [#allocation3]  }
  0x54   : > { %p3322_p12 = scmp.ne.s32.totalorder %s3583_s28, %s3321_s11  ;;  %s3326_s24 = sshll.u32 %s3412_s21, 4  ;;  %s3327_s24 = int_to_ptr.vmem [resolvable:$false] %s3326_s24 }
  0x55   : > { %s3328_s27 = scalar_lea.vmem %s3327_s24, 4096  ;;  %p3329_p4 = scmp.lt.s32.totalorder %s3583_s28, %s3327_s24 }
  0x56   : > { %p3324_p1 = pnand %p3322_p12, %p3308_p0  ;;  %p3330_p13 = scmp.lt.s32.totalorder %s3328_s27, %s3321_s11 }
  0x58   : > { %p3325_p5 = pneg %p3324_p1  ;;  %p3331_p6 = por %p3330_p13, %p3329_p4 }
  0x5a   : > { %p3332_p10 = pnand %p3331_p6, %p3325_p5 }
  0x5c   : > { %3335 = shalt.err (!%p3332_p10)
}
  0x5d   : > { %3178 = dma.hbm_to_vmem [thread:$0]  (!%p3585_p11), %s3581_s26, 2048, %s3583_s28, %s3589_s29, %s3410_s7, %s3410_s7, %s3411_s8  }
  0x5e   : > { %179 = sbr.rel (%p3484_p8) target bundleno = 660 (0x294), region = 32 }
  0x65   : > { %s3623_s30 = sand.u32 1, %s3398_s13   ;;  %p4701_p4 = scmp.ne.s32.totalorder %s4694_s18, 0 }
  0x66   : > { %s2907_s4 = sshll.u32 %s3623_s30, 7  ;;  %s182_s23 = scalar_lea.sflag [#allocation4], %s3623_s30 }
  0x67   : > { %s3629_s22 = scalar_lea.vmem [#allocation3], %s2907_s4 }
  0x68   : > { %3381 = dma.done.wait (%p4701_p4), %s182_s23, 2048  }
  0x69   : > { %3383 = vsyncadd (%p4701_p4), %s182_s23, 4294965248  ;;  %p4702_p5 = scmp.eq.s32.totalorder %s3465_s16, 0 }
  0x6b   : > { %3385 = dma.done.wait (%p4702_p5), [#allocation7], 912   ;;  %p4703_p8 = pmov %p4702_p5 }
  0x6c   : > { %v285_v0 = vlaneseq  ;;  %vm217_vm0 = vcmask 224256   ;;  %v3413_v2 = vmov 839922192   ;;  %v3414_v4 = vmov 1985246804   ;;  %s3418_s18 = smov 56  }
  0x6d   : > { %3387 = vsyncadd (%p4703_p8), [#allocation7], 4294966384  ;;  %v864_v3 = vunpack.c.l.s4 %v3413_v2  ;;  %v871_v5 = vunpack.c.l.s4 %v3414_v4  ;;  %v3415_v10 = vmov 0   ;;  %v235_v18 = vld [vmem:[%s3629_s22 + $0x38] sm:$0xf]  ;;  %v4690_v23 = vmov 0.0  }
  0x6e   : > { %v3639_v1 = vshrl.u32 %v285_v0, 7  ;;  %219 = vst.msk [vmem:[#allocation2 + $0x4] sm:$0xf] %vm217_vm0, %v3415_v10  ;;  %220 = vst.msk [vmem:[#allocation2 + $0x8] sm:$0xf] %vm217_vm0, %v3415_v10  ;;  %v4688_v29 = vmov 1.0  }
  0x6f   : > { %218 = vst.msk [vmem:[#allocation2] sm:$0xf] %vm217_vm0, %v3415_v10  ;;  %v865_v11 = vunpack.c.0.s8 %v864_v3  ;;  %v872_v12 = vunpack.c.0.s8 %v871_v5  ;;  %v236_v19 = vld [vmem:[%s3629_s22 + $0x3c] sm:$0xf]  ;;  %v232_v21 = vld [vmem:[%s3629_s22 + $0x2c] sm:$0xf] }
  0x70   : > { %v298_v6 = vadd.s32 96, %v3639_v1  ;;  %v300_v7 = vadd.s32 112, %v3639_v1  ;;  %v302_v8 = vadd.s32 128, %v3639_v1  ;;  %v304_v9 = vadd.s32 144, %v3639_v1  ;;  %267 = vst.msk [vmem:[#allocation2 + $0x44] sm:$0xf] %vm217_vm0, %v235_v18 }
  0x71   : > { %v3649_v13 = vadd.s32 16, %v3639_v1  ;;  %v3654_v20 = vsub.s32 %v865_v11, %v3639_v1  ;;  %268 = vst.msk [vmem:[#allocation2 + $0x48] sm:$0xf] %vm217_vm0, %v236_v19  ;;  %v233_v22 = vld [vmem:[%s3629_s22 + $0x30] sm:$0xf]  ;;  %v3671_v33 = vsub.s32 %v872_v12, %v3639_v1  ;;  %v322_v44 = vand.u32 15, %v3639_v1 }
  0x72   : > { %v406_v14 = vand.u32 15, %v298_v6  ;;  %v420_v15 = vand.u32 15, %v300_v7  ;;  %v434_v16 = vand.u32 15, %v302_v8  ;;  %v448_v17 = vand.u32 15, %v304_v9  ;;  %264 = vst.msk [vmem:[#allocation2 + $0x38] sm:$0xf] %vm217_vm0, %v232_v21 }
  0x73   : > { %v234_v28 = vld [vmem:[%s3629_s22 + $0x34] sm:$0xf]  ;;  %265 = vst.msk [vmem:[#allocation2 + $0x3c] sm:$0xf] %vm217_vm0, %v233_v22  ;;  %v221_v34 = vld [vmem:[%s3629_s22] sm:$0xf] }
  0x74   : > { %vm714_vm1 = vcmp.gt.s32.totalorder %v406_v14, 0  ;;  %vm716_vm2 = vcmp.gt.s32.totalorder %v420_v15, 0  ;;  %vm718_vm3 = vcmp.gt.s32.totalorder %v434_v16, 0  ;;  %vm720_vm4 = vcmp.gt.s32.totalorder %v448_v17, 0  ;;  %266 = vst.msk [vmem:[#allocation2 + $0x40] sm:$0xf] %vm217_vm0, %v234_v28 }
  0x75   : > { %v2917_v24 = vsel %vm714_vm1, 1.0, %v4690_v23  ;;  %v2918_v25 = vsel %vm716_vm2, 1.0, %v4690_v23  ;;  %v2919_v26 = vsel %vm718_vm3, 1.0, %v4690_v23  ;;  %v2920_v27 = vsel %vm720_vm4, 1.0, %v4690_v23  ;;  %v222_v35 = vld [vmem:[%s3629_s22 + $0x4] sm:$0xf] }
  0x76   : > { %v804_v30 = vpack.c.bf16 %v4688_v29, %v2917_v24  ;;  %v805_v31 = vpack.c.bf16 %v4688_v29, %v2918_v25  ;;  %v806_v32 = vpack.c.bf16 %v4688_v29, %v2919_v26  ;;  %v237_v36 = vld [vmem:[%s3629_s22 + $0x40] sm:$0xf]  ;;  %vm1087_vm5 = vsmask.f32 3328  ;;  %253 = vst.msk [vmem:[#allocation2 + $0xc] sm:$0xf] %vm217_vm0, %v221_v34 }
  0x77   : > { %vm1088_vm6 = vsmask.f32 7440  ;;  %254 = vst.msk [vmem:[#allocation2 + $0x10] sm:$0xf] %vm217_vm0, %v222_v35  ;;  %269 = vst.msk [vmem:[#allocation2 + $0x4c] sm:$0xf] %vm217_vm0, %v237_v36  ;;  %v3681_v37 = vpack.c.bf16 %v4688_v29, %v2920_v27 }
  0x78   : > { %v960_v38 = vrot.slane %v804_v30, %v3671_v33  ;;  %v967_v39 = vrot.slane %v805_v31, %v3654_v20  ;;  %v3685_v40 = vld [vmem:[#allocation2 + $0x4] sm:$0xf]  ;;  %v3687_v41 = vld [vmem:[#allocation2 + $0x8] sm:$0xf]  ;;  %v238_v42 = vld [vmem:[%s3629_s22 + $0x44] sm:$0xf]  ;;  %v974_v43 = vrot.slane %v805_v31, %v3671_v33  ;;  %v981_v47 = vrot.slane %v806_v32, %v3654_v20 }
  0x79   : > { %270 = vst.msk [vmem:[#allocation2 + $0x50] sm:$0xf] %vm217_vm0, %v238_v42  ;;  %v239_v45 = vld [vmem:[%s3629_s22 + $0x48] sm:$0xf]  ;;  %v240_v46 = vld [vmem:[%s3629_s22 + $0x4c] sm:$0xf]  ;;  %v988_v52 = vrot.slane %v806_v32, %v3671_v33  ;;  %v2960_v55 = vcombine.low %v3685_v40, %v3687_v41  ;;  %v3705_v56 = vrot.slane %v804_v30, %v3654_v20  ;;  %v995_v57 = vrot.slane %v3681_v37, %v3654_v20  ;;  %vm3728_vm9 = vmor %vm1087_vm5, %vm1088_vm6 }
  0x7a   : > { %v1220_v48 = vshll.u32 %v960_v38, 16  ;;  %v1224_v49 = vshrl.u32 %v960_v38, 16  ;;  %v336_v50 = vand.u32 15, %v3649_v13  ;;  %v241_v51 = vld [vmem:[%s3629_s22 + $0x50] sm:$0xf]  ;;  %v1230_v53 = vshll.u32 %v967_v39, 16 }
  0x7b   : > { %271 = vst.msk [vmem:[#allocation2 + $0x54] sm:$0xf] %vm217_vm0, %v239_v45  ;;  %272 = vst.msk [vmem:[#allocation2 + $0x58] sm:$0xf] %vm217_vm0, %v240_v46  ;;  %v1234_v54 = vshrl.u32 %v967_v39, 16  ;;  %v1240_v62 = vshll.u32 %v974_v43, 16  ;;  %1864 = vrot.lane.b32.xlu0 %v2960_v55, %s3418_s18 }
  0x7c   : > { %273 = vst.msk [vmem:[#allocation2 + $0x5c] sm:$0xf] %vm217_vm0, %v241_v51  ;;  %v3709_v58 = vrot.slane %v1220_v48, 5  ;;  %v1226_v59 = vrot.slane %v1224_v49, 4  ;;  %v1232_v60 = vrot.slane %v1230_v53, 5  ;;  %v1244_v63 = vshrl.u32 %v974_v43, 16 }
  0x7d   : > { %v1236_v61 = vrot.slane %v1234_v54, 4  ;;  %vm3711_vm7 = vcmp.gt.s32.totalorder %v322_v44, 0  ;;  %v1250_v3 = vshll.u32 %v981_v47, 16  ;;  %v1254_v4 = vshrl.u32 %v981_v47, 16  ;;  %v3721_v10 = vld [vmem:[#allocation2 + $0x44] sm:$0xf] }
  0x7e   : > { %v1227_v2 = vor.u32 %v1226_v59, %v3709_v58  ;;  %vm3717_vm8 = vcmp.gt.s32.totalorder %v336_v50, 0  ;;  %v1242_v7 = vrot.slane %v1240_v62, 5  ;;  %v1246_v8 = vrot.slane %v1244_v63, 4  ;;  %v3724_v15 = vld [vmem:[#allocation2 + $0x48] sm:$0xf]  ;;  %s3419_s20 = smov 28  }
  0x7f   : > { %v1237_v6 = vor.u32 %v1236_v61, %v1232_v60  ;;  %v1260_v9 = vshll.u32 %v988_v52, 16  ;;  %v1210_v11 = vshll.u32 %v3705_v56, 16  ;;  %v1252_v13 = vrot.slane %v1250_v3, 5  ;;  %v242_v27 = vld [vmem:[%s3629_s22 + $0x54] sm:$0xf]  ;;  %s3420_s7 = smov 84  }
  0x80   : > { %v1228_v12 = vrot.slane %v1227_v2, 4  ;;  %v1256_v14 = vrot.slane %v1254_v4, 4  ;;  %v1247_v18 = vor.u32 %v1246_v8, %v1242_v7  ;;  %v1264_v21 = vshrl.u32 %v988_v52, 16  ;;  %v825_v34 = vld [vmem:[#allocation2 + $0x38] sm:$0xf]  ;;  %s4537_s8 = scalar_lea.vmem [#allocation9], %s2907_s4 }
  0x81   : > { %v1238_v17 = vrot.slane %v1237_v6, 4  ;;  %v1262_v19 = vrot.slane %v1260_v9, 5  ;;  %v1214_v22 = vshrl.u32 %v3705_v56, 16  ;;  %v1270_v26 = vshll.u32 %v995_v57, 16  ;;  %274 = vst.msk [vmem:[#allocation2 + $0x60] sm:$0xf] %vm217_vm0, %v242_v27 }
  0x82   : > { %v1233_v24 = vsel %vm3728_vm9, %v1228_v12, %v1232_v60  ;;  %v1257_v25 = vor.u32 %v1256_v14, %v1252_v13  ;;  %v1248_v30 = vrot.slane %v1247_v18, 4  ;;  %v1266_v31 = vrot.slane %v1264_v21, 4  ;;  %v826_v39 = vld [vmem:[#allocation2 + $0x3c] sm:$0xf]  ;;  %v3745_v42 = vld [vmem:[#allocation2 + $0x40] sm:$0xf] }
  0x83   : > { %v1243_v28 = vsel %vm3728_vm9, %v1238_v17, %v1242_v7  ;;  %v1274_v32 = vshrl.u32 %v995_v57, 16  ;;  %v3739_v35 = vrot.slane %v1210_v11, 5  ;;  %v3743_v38 = vcombine.low %v3721_v10, %v3724_v15  ;;  %v223_v43 = vld [vmem:[%s3629_s22 + $0x8] sm:$0xf]  ;;  %v224_v48 = vld [vmem:[%s3629_s22 + $0xc] sm:$0xf] }
  0x84   : > { %v1258_v36 = vrot.slane %v1257_v25, 4  ;;  %v1267_v44 = vor.u32 %v1266_v31, %v1262_v19  ;;  %v3748_v45 = vrot.slane %v1270_v26, 5  ;;  %v1456_v47 = vmul.bf16 %v1233_v24, %v3745_v42  ;;  %v225_v49 = vld [vmem:[%s3629_s22 + $0x10] sm:$0xf]  ;;  %255 = vst.msk [vmem:[#allocation2 + $0x14] sm:$0xf] %vm217_vm0, %v223_v43 }
  0x85   : > { %4710 = vst [vmem:[#allocation13_spill] sm:$0xff] %v3743_v38  ;;  %v3750_v46 = vrot.slane %v1274_v32, 4  ;;  %v3758_v50 = vsel %vm3728_vm9, %v1248_v30, %v1252_v13  ;;  %1880 = vrot.lane.b32.xlu1 %v3743_v38, %s3418_s18  ;;  %v1457_v51 = vmul.bf16 %v1243_v28, %v3721_v10  ;;  %v1492_v52 = vmul.bf16 %v1233_v24, %v825_v34  ;;  %v226_v53 = vld [vmem:[%s3629_s22 + $0x14] sm:$0xf]  ;;  %v243_v54 = vld [vmem:[%s3629_s22 + $0x58] sm:$0xf] }
  0x86   : > { %256 = vst.msk [vmem:[#allocation2 + $0x18] sm:$0xf] %vm217_vm0, %v224_v48  ;;  %257 = vst.msk [vmem:[#allocation2 + $0x1c] sm:$0xf] %vm217_vm0, %v225_v49  ;;  %v227_v55 = vld [vmem:[%s3629_s22 + $0x18] sm:$0xf]  ;;  %v1493_v59 = vmul.bf16 %v1243_v28, %v826_v39  ;;  %v3772_v60 = vrot.slane %v3681_v37, %v3671_v33  ;;  %v3781_v63 = vsel %vm3728_vm9, %v1258_v36, %v1262_v19 }
  0x87   : > { %v3768_v56 = vrot.slane %v1214_v22, 4  ;;  %v1268_v57 = vrot.slane %v1267_v44, 4  ;;  %258 = vst.msk [vmem:[#allocation2 + $0x20] sm:$0xf] %vm217_vm0, %v226_v53  ;;  %275 = vst.msk [vmem:[#allocation2 + $0x64] sm:$0xf] %vm217_vm0, %v243_v54  ;;  %v3783_v2 = vcombine.low %v1456_v47, %v1457_v51  ;;  %v1458_v7 = vmul.bf16 %v3758_v50, %v3724_v15 }
  0x88   : > { %259 = vst.msk [vmem:[#allocation2 + $0x24] sm:$0xf] %vm217_vm0, %v227_v55  ;;  %v244_v61 = vld [vmem:[%s3629_s22 + $0x5c] sm:$0xf]  ;;  %v245_v62 = vld [vmem:[%s3629_s22 + $0x60] sm:$0xf]  ;;  %v3797_v8 = vcombine.low %v1492_v52, %v1493_v59  ;;  %v1277_v13 = vor.u32 %v3750_v46, %v3748_v45  ;;  %v1494_v14 = vmul.bf16 %v3758_v50, %v3745_v42  ;;  %v1495_v17 = vmul.bf16 %v3781_v63, %v3721_v10 }
  0x89   : > { %v2911_v37 = vsel %vm3711_vm7, 1.0, %v4690_v23  ;;  %v2912_v3 = vsel %vm3717_vm8, 1.0, %v4690_v23  ;;  %276 = vst.msk [vmem:[#allocation2 + $0x68] sm:$0xf] %vm217_vm0, %v244_v61  ;;  %277 = vst.msk [vmem:[#allocation2 + $0x6c] sm:$0xf] %vm217_vm0, %v245_v62  ;;  %v3820_v21 = vsel %vm3728_vm9, %v1268_v57, %v3748_v45 }
  0x8a   : > { %v228_v4 = vld [vmem:[%s3629_s22 + $0x1c] sm:$0xf]  ;;  %v229_v6 = vld [vmem:[%s3629_s22 + $0x20] sm:$0xf]  ;;  %v798_v9 = vpack.c.bf16 %v4688_v29, %v2911_v37  ;;  %v799_v0 = vpack.c.bf16 %v4688_v29, %v2912_v3  ;;  %v246_v5 = vld [vmem:[%s3629_s22 + $0x64] sm:$0xf]  ;;  %v1496_v28 = vmul.bf16 %v3820_v21, %v3724_v15  ;;  %v3847_v59 = vcombine.low %v1494_v14, %v1495_v17 }
  0x8b   : > { %260 = vst.msk [vmem:[#allocation2 + $0x28] sm:$0xf] %vm217_vm0, %v228_v4  ;;  %261 = vst.msk [vmem:[#allocation2 + $0x2c] sm:$0xf] %vm217_vm0, %v229_v6  ;;  %v247_v11 = vld [vmem:[%s3629_s22 + $0x68] sm:$0xf] }
  0x8c   : > { %v230_v12 = vld [vmem:[%s3629_s22 + $0x24] sm:$0xf]  ;;  %v306_v18 = vadd.s32 160, %v3639_v1  ;;  %278 = vst.msk [vmem:[#allocation2 + $0x70] sm:$0xf] %vm217_vm0, %v246_v5  ;;  %v869_v22 = vrot.slane %v798_v9, %v3654_v20  ;;  %v876_v24 = vrot.slane %v798_v9, %v3671_v33  ;;  %v883_v10 = vrot.slane %v799_v0, %v3654_v20  ;;  %s3072_s26 = sshll.u32 %s3465_s16, 11 }
  0x8d   : > { %279 = vst.msk [vmem:[#allocation2 + $0x74] sm:$0xf] %vm217_vm0, %v247_v11  ;;  %v231_v19 = vld [vmem:[%s3629_s22 + $0x28] sm:$0xf]  ;;  %262 = vst.msk [vmem:[#allocation2 + $0x30] sm:$0xf] %vm217_vm0, %v230_v12  ;;  %v3832_v30 = vrot.slane %v799_v0, %v3671_v33  ;;  %s4629_s16 = scalar_lea.hbm %s4684_s3, %s3072_s26 }
  0x8e   : > { %263 = vst.msk [vmem:[#allocation2 + $0x34] sm:$0xf] %vm217_vm0, %v231_v19  ;;  %v248_v25 = vld [vmem:[%s3629_s22 + $0x6c] sm:$0xf]  ;;  %v249_v26 = vld [vmem:[%s3629_s22 + $0x70] sm:$0xf] }
  0x8f   : > { %v250_v27 = vld [vmem:[%s3629_s22 + $0x74] sm:$0xf]  ;;  %v462_v31 = vand.u32 15, %v306_v18  ;;  %v1280_v32 = vshll.u32 %v3772_v60, 16  ;;  %280 = vst.msk [vmem:[#allocation2 + $0x78] sm:$0xf] %vm217_vm0, %v248_v25 }
  0x90   : > { %281 = vst.msk [vmem:[#allocation2 + $0x7c] sm:$0xf] %vm217_vm0, %v249_v26  ;;  %282 = vst.msk [vmem:[#allocation2 + $0x80] sm:$0xf] %vm217_vm0, %v250_v27  ;;  %v1091_v34 = vshll.u32 %v869_v22, 16  ;;  %v1094_v36 = vshrl.u32 %v869_v22, 16 }
  0x91   : > { %v1100_v39 = vshll.u32 %v876_v24, 16  ;;  %v1104_v42 = vshrl.u32 %v876_v24, 16  ;;  %v1110_v43 = vshll.u32 %v883_v10, 16  ;;  %v1114_v44 = vshrl.u32 %v883_v10, 16  ;;  %v3841_v51 = vld [vmem:[#allocation2 + $0x4c] sm:$0xf] }
  0x92   : > { %vm722_vm10 = vcmp.gt.s32.totalorder %v462_v31, 0  ;;  %v1284_v45 = vshrl.u32 %v3772_v60, 16  ;;  %v3839_v46 = vrot.slane %v1091_v34, 5  ;;  %v1096_v47 = vrot.slane %v1094_v36, 4  ;;  %v3845_v57 = vld [vmem:[#allocation2 + $0x50] sm:$0xf] }
  0x93   : > { %v1102_v48 = vrot.slane %v1100_v39, 5  ;;  %v1106_v49 = vrot.slane %v1104_v42, 4  ;;  %v1112_v52 = vrot.slane %v1110_v43, 5  ;;  %v1116_v53 = vrot.slane %v1114_v44, 4  ;;  %v846_v61 = vld [vmem:[#allocation2 + $0x8] sm:$0x8] }
  0x94   : > { %v1120_v54 = vshll.u32 %v3832_v30, 16  ;;  %v2921_v55 = vsel %vm722_vm10, 1.0, %v4690_v23  ;;  %v1097_v60 = vor.u32 %v1096_v47, %v3839_v46  ;;  %v1278_v37 = vrot.slane %v1277_v13, 4  ;;  %v1477_v4 = vld [vmem:[#allocation2] sm:$0x8]  ;;  %s2806_s28 = sshll.u32 %s4537_s8, 4  ;;  %s4631_s28 = int_to_ptr.vmem [resolvable:$true] %s2806_s28 }
  0x95   : > { %v1107_v62 = vor.u32 %v1106_v49, %v1102_v48  ;;  %v1117_v3 = vor.u32 %v1116_v53, %v1112_v52  ;;  %v808_v6 = vpack.c.bf16 %v4688_v29, %v2921_v55  ;;  %v1282_v9 = vrot.slane %v1280_v32, 5  ;;  %v814_v17 = vld [vmem:[#allocation2 + $0xc] sm:$0xf]  ;;  %v3861_v24 = vld [vmem:[#allocation2 + $0x10] sm:$0xf]  ;;  %s2793_s17 = scalar_lea.sflag [#allocation5], %s3623_s30 }
  0x96   : > { %v1286_v0 = vrot.slane %v1284_v45, 4  ;;  %v1098_v5 = vrot.slane %v1097_v60, 4  ;;  %v1459_v12 = vmul.bf16 %v3781_v63, %v3841_v51  ;;  %v3855_v14 = vcombine.low %v3841_v51, %v3845_v57  ;;  %v3874_v27 = vld [vmem:[#allocation2 + $0x54] sm:$0xf]  ;;  %v251_v31 = vld [vmem:[%s3629_s22 + $0x78] sm:$0xf] }
  0x97   : > { %v1108_v11 = vrot.slane %v1107_v62, 4  ;;  %v1118_v18 = vrot.slane %v1117_v3, 4  ;;  %v3857_v19 = vrot.slane %v1120_v54, 5  ;;  %v1442_v13 = vmul.bf16 %v3839_v46, %v846_v61  ;;  %v3888_v42 = vld [vmem:[#allocation2 + $0x58] sm:$0xf]  ;;  %s3336_s25 = scalar_lea.vmem %s4631_s28, 2048 }
  0x98   : > { %v1009_v22 = vrot.slane %v808_v6, %v3654_v20  ;;  %v1103_v10 = vsel %vm3728_vm9, %v1098_v5, %v1102_v48  ;;  %v1478_v25 = vmul.bf16 %v1477_v4, %v3839_v46  ;;  %v1460_v26 = vmul.bf16 %v3820_v21, %v3845_v57  ;;  %1882 = vrot.lane.b32.xlu1 %v3855_v14, %s3418_s18  ;;  %v252_v43 = vld [vmem:[%s3629_s22 + $0x7c] sm:$0xf]  ;;  %p3337_p11 = scmp.ne.s32.totalorder %s4631_s28, %s3336_s25  ;;  %p4720_p0 = scmp.ne.s32.totalorder %s4699_s9, 0 }
  0x99   : > { %v3867_v63 = vsel %vm3728_vm9, %v1108_v11, %v1112_v52  ;;  %v3880_v32 = vsel %vm3728_vm9, %v1118_v18, %v3857_v19  ;;  %v3886_v36 = vsel %vm3728_vm9, %v1278_v37, %v1282_v9  ;;  %v1287_v39 = vor.u32 %v1286_v0, %v1282_v9  ;;  %283 = vst.msk [vmem:[#allocation2 + $0x84] sm:$0xf] %vm217_vm0, %v251_v31  ;;  %s3421_s11 = smov [#allocation9]  }
  0x9a   : > { %v1480_v34 = vmul.bf16 %v3687_v41, %v3867_v63  ;;  %v1481_v44 = vmul.bf16 %v3880_v32, %v814_v17  ;;  %v1479_v45 = vmul.bf16 %v3685_v40, %v1103_v10  ;;  %v1290_v46 = vshll.u32 %v1009_v22, 16  ;;  %284 = vst.msk [vmem:[#allocation2 + $0x88] sm:$0xf] %vm217_vm0, %v252_v43  ;;  %p3338_p2 = pnand %p3337_p11, %p4720_p0  ;;  %s3340_s21 = sshll.u32 %s3421_s11, 4  ;;  %s3341_s21 = int_to_ptr.vmem [resolvable:$false] %s3340_s21 }
  0x9b   : > { %v1497_v47 = vmul.bf16 %v3886_v36, %v3841_v51  ;;  %v1443_v41 = vmul.bf16 %v1103_v10, %v814_v17  ;;  %v3900_v48 = vcombine.low %v1458_v7, %v1459_v12  ;;  %v3903_v49 = vcombine.low %v814_v17, %v3861_v24  ;;  %s3342_s24 = scalar_lea.vmem %s3341_s21, 4096  ;;  %p3343_p7 = scmp.lt.s32.totalorder %s4631_s28, %s3341_s21 }
  0x9c   : > { %v308_v52 = vadd.s32 176, %v3639_v1  ;;  %v2962_v53 = vcombine.low %v1480_v34, %v1481_v44  ;;  %v2961_v54 = vcombine.low %v1478_v25, %v1479_v45  ;;  %v1292_v40 = vrot.slane %v1290_v46, 5  ;;  %v3941_v44 = vld [vmem:[#allocation2 + $0x5c] sm:$0xf]  ;;  %p3339_p3 = pneg %p3338_p2  ;;  %p3344_p9 = scmp.lt.s32.totalorder %s3342_s24, %s3336_s25 }
  0x9d   : > { %v1016_v55 = vrot.slane %v808_v6, %v3671_v33  ;;  %v1444_v51 = vmul.bf16 %v3867_v63, %v3861_v24  ;;  %1866 = vrot.lane.b32.xlu0 %v3903_v49, %s3418_s18  ;;  %v1294_v50 = vshrl.u32 %v1009_v22, 16  ;;  %v3913_v7 = vcombine.low %v3874_v27, %v3888_v42 }
  0x9e   : > { %v476_v61 = vand.u32 15, %v308_v52  ;;  %v1988_v60 = vshrl.u32 %v2962_v53, 16  ;;  %v1991_v62 = vshll.u32 %v2962_v53, 16  ;;  %v1980_v37 = vshrl.u32 %v2961_v54, 16  ;;  %p3345_p12 = por %p3344_p9, %p3343_p7 }
  0x9f   : > { %v1288_v3 = vrot.slane %v1287_v39, 4  ;;  %v3915_v4 = vcombine.low %v1442_v13, %v1443_v41  ;;  %v1296_v6 = vrot.slane %v1294_v50, 4  ;;  %v1300_v9 = vshll.u32 %v1016_v55, 16  ;;  %1884 = vrot.lane.b32.xlu1 %v3913_v7, %s3418_s18 }
  0xa0   : > { %vm724_vm11 = vcmp.gt.s32.totalorder %v476_v61, 0  ;;  %v3919_v0 = vrot.slane %v1988_v60, 3  ;;  %v1983_v5 = vshll.u32 %v2961_v54, 16  ;;  %v3924_v11 = vcombine.low %v1496_v28, %v1497_v47  ;;  %p3346_p1 = pnand %p3345_p12, %p3339_p3 }
  0xa1   : > { %v1461_v12 = vmul.bf16 %v3886_v36, %v3874_v27  ;;  %v3928_v17 = vrot.slane %v1991_v62, 4  ;;  %v2922_v18 = vsel %vm724_vm11, 1.0, %v4690_v23  ;;  %v1297_v13 = vor.u32 %v1296_v6, %v1292_v40  ;;  %v3952_v62 = vld [vmem:[#allocation2 + $0x14] sm:$0xf] }
  0xa2   : > { %v1302_v22 = vrot.slane %v1300_v9, 5  ;;  %v3931_v10 = vrot.slane %v1980_v37, 3  ;;  %v1293_v25 = vsel %vm3728_vm9, %v1288_v3, %v1292_v40  ;;  %v809_v31 = vpack.c.bf16 %v4688_v29, %v2922_v18 }
  0xa3   : > { %v1304_v34 = vshrl.u32 %v1016_v55, 16  ;;  %v1298_v15 = vrot.slane %v1297_v13, 4  ;;  %v290_v28 = vadd.s32 32, %v3639_v1  ;;  %v292_v39 = vadd.s32 48, %v3639_v1 }
  0xa4   : > { %v1124_v36 = vshrl.u32 %v3832_v30, 16  ;;  %v3939_v43 = vrot.slane %v1983_v5, 4  ;;  %v1023_v45 = vrot.slane %v809_v31, %v3654_v20  ;;  %v3945_v46 = vrot.slane %v809_v31, %v3671_v33 }
  0xa5   : > { %v1306_v47 = vrot.slane %v1304_v34, 4  ;;  %v1303_v41 = vsel %vm3728_vm9, %v1298_v15, %v1302_v22  ;;  %v1462_v52 = vmul.bf16 %v1293_v25, %v3888_v42  ;;  %v350_v53 = vand.u32 15, %v290_v28 }
  0xa6   : > { %v364_v54 = vand.u32 15, %v292_v39  ;;  %v1310_v55 = vshll.u32 %v1023_v45, 16  ;;  %v1314_v30 = vshrl.u32 %v1023_v45, 16  ;;  %v1126_v61 = vrot.slane %v1124_v36, 4 }
  0xa7   : > { %v1307_v40 = vor.u32 %v1306_v47, %v1302_v22  ;;  %v1320_v50 = vshll.u32 %v3945_v46, 16  ;;  %v1463_v60 = vmul.bf16 %v1303_v41, %v3941_v44  ;;  %vm706_vm12 = vcmp.gt.s32.totalorder %v350_v53, 0 }
  0xa8   : > { %vm708_vm13 = vcmp.gt.s32.totalorder %v364_v54, 0  ;;  %v1498_v37 = vmul.bf16 %v1293_v25, %v3845_v57  ;;  %v1312_v6 = vrot.slane %v1310_v55, 5  ;;  %v1316_v9 = vrot.slane %v1314_v30, 4  ;;  %v3965_v25 = vld [vmem:[#allocation2 + $0x18] sm:$0xf] }
  0xa9   : > { %v1308_v3 = vrot.slane %v1307_v40, 4  ;;  %v1499_v5 = vmul.bf16 %v1303_v41, %v3874_v27  ;;  %v3959_v18 = vcombine.low %v1460_v26, %v1461_v12  ;;  %v2913_v13 = vsel %vm706_vm12, 1.0, %v4690_v23  ;;  %v3978_v26 = vld [vmem:[#allocation2 + $0x60] sm:$0xf] }
  0xaa   : > { %v2914_v22 = vsel %vm708_vm13, 1.0, %v4690_v23  ;;  %v1317_v31 = vor.u32 %v1316_v9, %v1312_v6  ;;  %v800_v34 = vpack.c.bf16 %v4688_v29, %v2913_v13  ;;  %v1445_v28 = vmul.bf16 %v3880_v32, %v3952_v62  ;;  %v3243_v23 = vld [vmem:[#allocation6 + $0x18] sm:$0xff]  }
  0xab   : > { %v801_v15 = vpack.c.bf16 %v4688_v29, %v2914_v22  ;;  %v3969_v27 = vrot.slane %v1320_v50, 5  ;;  %v3971_v39 = vcombine.low %v1462_v52, %v1463_v60  ;;  %v1127_v21 = vor.u32 %v1126_v61, %v3857_v19 }
  0xac   : > { %v3976_v57 = vcombine.low %v3952_v62, %v3965_v25  ;;  %v3982_v12 = vsel %vm3728_vm9, %v1308_v3, %v1312_v6  ;;  %v897_v36 = vrot.slane %v800_v34, %v3654_v20  ;;  %v904_v32 = vrot.slane %v800_v34, %v3671_v33 }
  0xad   : > { %v911_v45 = vrot.slane %v801_v15, %v3654_v20  ;;  %v1318_v47 = vrot.slane %v1317_v31, 4  ;;  %v3987_v41 = vcombine.low %v1498_v37, %v1499_v5  ;;  %v3990_v19 = vrot.slane %v801_v15, %v3671_v33 }
  0xae   : > { %v1128_v52 = vrot.slane %v1127_v21, 4  ;;  %1868 = vrot.lane.b32.xlu0 %v3976_v57, %s3418_s18  ;;  %v1130_v53 = vshll.u32 %v897_v36, 16  ;;  %v1134_v54 = vshrl.u32 %v897_v36, 16  ;;  %v1140_v40 = vshll.u32 %v904_v32, 16  ;;  %v3241_v21 = vld [vmem:[#allocation6 + $0x8] sm:$0xff]  }
  0xaf   : > { %v2944_v55 = vcombine.low %v1444_v51, %v1445_v28  ;;  %v1144_v61 = vshrl.u32 %v904_v32, 16  ;;  %v1150_v50 = vshll.u32 %v911_v45, 16  ;;  %v1154_v60 = vshrl.u32 %v911_v45, 16  ;;  %v3240_v28 = vld [vmem:[#allocation6] sm:$0xff]  }
  0xb0   : > { %v1132_v37 = vrot.slane %v1130_v53, 5  ;;  %v1136_v3 = vrot.slane %v1134_v54, 4  ;;  %v1160_v6 = vshll.u32 %v3990_v19, 16  ;;  %v1676_v9 = vshrl.u32 %v3915_v4, 16  ;;  %v4011_v54 = vld [vmem:[#allocation2 + $0x1c] sm:$0xf]  ;;  %3096 = vmatprep.subr.bf16.mxu0 %v3240_v28  ;;  %3142 = vmatprep.subr.bf16.mxu1 %v3240_v28 }
  0xb1   : > { %v1142_v5 = vrot.slane %v1140_v40, 5  ;;  %v1146_v13 = vrot.slane %v1144_v61, 4  ;;  %v1152_v22 = vrot.slane %v1150_v50, 5  ;;  %v1156_v31 = vrot.slane %v1154_v60, 4  ;;  %3097 = vmatpush3.bf16.msra.mxu0 %v3240_v28  ;;  %3149 = vmatpush3.bf16.msra.mxu1 %v3240_v28 }
  0xb2   : > { %v4004_v63 = vsel %vm3728_vm9, %v1318_v47, %v3969_v27  ;;  %v1133_v51 = vsel %vm3728_vm9, %v1128_v52, %v1132_v37  ;;  %v1137_v34 = vor.u32 %v1136_v3, %v1132_v37  ;;  %vm1674_vm14 = vsmask.f32 4352  ;;  %v4014_v52 = vld [vmem:[#allocation2 + $0x20] sm:$0xf]  ;;  %3098 = vmatprep.subr.bf16.mxu0 %v3241_v21  ;;  %3143 = vmatprep.subr.bf16.mxu1 %v3241_v21 }
  0xb3   : > { %v1684_v15 = vshrl.u32 %v2944_v55, 16  ;;  %v1147_v36 = vor.u32 %v1146_v13, %v1142_v5  ;;  %v1157_v32 = vor.u32 %v1156_v31, %v1152_v22  ;;  %v4008_v45 = vrot.slane %v1160_v6, 5 }
  0xb4   : > { %v1446_v53 = vmul.bf16 %v1133_v51, %v3965_v25  ;;  %v1138_v40 = vrot.slane %v1137_v34, 4  ;;  %v1482_v47 = vmul.bf16 %v1133_v51, %v3861_v24  ;;  %v1687_v50 = vshll.u32 %v2944_v55, 16  ;;  %v3242_v51 = vld [vmem:[#allocation6 + $0x10] sm:$0xff]  }
  0xb5   : > { %v1686_v61 = vrot.slane %v1684_v15, 3  ;;  %v1148_v60 = vrot.slane %v1147_v36, 4  ;;  %v1158_v37 = vrot.slane %v1157_v32, 4  ;;  %v1679_v3 = vshll.u32 %v3915_v4, 16  ;;  %3099 = vmatpush3.bf16.msra.mxu0 %v3241_v21  ;;  %3150 = vmatpush3.bf16.msra.mxu1 %v3241_v21 }
  0xb6   : > { %v1756_v6 = vshrl.u32 %v3959_v18, 16  ;;  %v1143_v13 = vsel %vm3728_vm9, %v1138_v40, %v1142_v5  ;;  %v1689_v31 = vrot.slane %v1687_v50, 4  ;;  %v1759_v24 = vshll.u32 %v3959_v18, 16  ;;  %3100 = vmatprep.subr.bf16.mxu0 %v3242_v51  ;;  %3144 = vmatprep.subr.bf16.mxu1 %v3242_v51 }
  0xb7   : > { %v1765_v55 = vshrl.u32 %v3971_v39, 16  ;;  %v4024_v34 = vsel %vm3728_vm9, %v1148_v60, %v1152_v22  ;;  %v1447_v4 = vmul.bf16 %v1143_v13, %v4011_v54  ;;  %v1483_v15 = vmul.bf16 %v1143_v13, %v3952_v62 }
  0xb8   : > { %v1678_v28 = vrot.slane %v1676_v9, 3  ;;  %v1501_v18 = vmul.bf16 %v4004_v63, %v3941_v44  ;;  %v4035_v36 = vsel %vm3728_vm9, %v1158_v37, %v4008_v45  ;;  %v1690_v40 = vor.u32 %v1689_v31, %v1686_v61 }
  0xb9   : > { %v2945_v32 = vcombine.low %v1446_v53, %v1447_v4  ;;  %v1681_v50 = vrot.slane %v1679_v3, 4  ;;  %v1758_v60 = vrot.slane %v1756_v6, 3  ;;  %v4039_v62 = vcombine.low %v1482_v47, %v1483_v15  ;;  %3101 = vmatpush3.bf16.msra.mxu0 %v3242_v51  ;;  %3151 = vmatpush3.bf16.msra.mxu1 %v3242_v51 }
  0xba   : > { %v1761_v9 = vrot.slane %v1759_v24, 4  ;;  %v1767_v13 = vrot.slane %v1765_v55, 3  ;;  %v1768_v29 = vshll.u32 %v3971_v39, 16  ;;  %v1747_v22 = vshrl.u32 %v3900_v48, 16  ;;  %3102 = vmatprep.subr.bf16.mxu0 %v3243_v23  ;;  %3145 = vmatprep.subr.bf16.mxu1 %v3243_v23 }
  0xbb   : > { %v1693_v37 = vshrl.u32 %v2945_v32, 16  ;;  %v1696_v30 = vshll.u32 %v2945_v32, 16  ;;  %v1682_v5 = vor.u32 %v1681_v50, %v1678_v28  ;;  %v1750_v3 = vshll.u32 %v3900_v48, 16  ;;  %v3244_v48 = vld [vmem:[#allocation6 + $0x20] sm:$0xff]   ;;  %v4062_v50 = vld [vmem:[#allocation2 + $0x64] sm:$0xf] }
  0xbc   : > { %v1762_v53 = vor.u32 %v1761_v9, %v1758_v60  ;;  %v1770_v61 = vrot.slane %v1768_v29, 4  ;;  %v2051_v21 = vshrl.u32 %v3847_v59, 16  ;;  %v1749_v24 = vrot.slane %v1747_v22, 3 }
  0xbd   : > { %v1695_v47 = vrot.slane %v1693_v37, 3  ;;  %v1698_v6 = vrot.slane %v1696_v30, 4  ;;  %v1691_v31 = vsel %vm1674_vm14, %v1682_v5, %v1690_v40  ;;  %v1752_v55 = vrot.slane %v1750_v3, 4  ;;  %3103 = vmatpush3.bf16.msra.mxu0 %v3243_v23  ;;  %3152 = vmatpush3.bf16.msra.mxu1 %v3243_v23 }
  0xbe   : > { %1827 = vrot.lane.b32.xlu0 %v1691_v31, %s3419_s20  ;;  %v4047_v39 = vor.u32 %v1770_v61, %v1767_v13  ;;  %v2053_v4 = vrot.slane %v2051_v21, 3  ;;  %v2054_v29 = vshll.u32 %v3847_v59, 16  ;;  %v2060_v30 = vshrl.u32 %v3924_v11, 16  ;;  %3104 = vmatprep.subr.bf16.mxu0 %v3244_v48 }
  0xbf   : > { %v4050_v15 = vor.u32 %v1698_v6, %v1695_v47  ;;  %v2063_v28 = vshll.u32 %v3924_v11, 16  ;;  %v1986_v51 = vor.u32 %v3939_v43, %v3931_v10  ;;  %v4058_v22 = vor.u32 %v1752_v55, %v1749_v24  ;;  %v4067_v10 = vld [vmem:[#allocation2 + $0x24] sm:$0xf]  ;;  %3146 = vmatprep.subr.bf16.mxu1 %v3244_v48 }
  0xc0   : > { %v1772_v5 = vsel %vm1674_vm14, %v1762_v53, %v4047_v39  ;;  %v2056_v32 = vrot.slane %v2054_v29, 4  ;;  %v1994_v59 = vor.u32 %v3928_v17, %v3919_v0  ;;  %v2062_v9 = vrot.slane %v2060_v30, 3 }
  0xc1   : > { %v1700_v60 = vsel %vm1674_vm14, %v1690_v40, %v4050_v15  ;;  %v2065_v11 = vrot.slane %v2063_v28, 4  ;;  %v2069_v13 = vshrl.u32 %v3987_v41, 16  ;;  %v1763_v43 = vsel %vm1674_vm14, %v4058_v22, %v1762_v53  ;;  %v3245_v40 = vld [vmem:[#allocation6 + $0x28] sm:$0xff]   ;;  %3105 = vmatpush3.bf16.msra.mxu0 %v3244_v48  ;;  %3153 = vmatpush3.bf16.msra.mxu1 %v3244_v48 }
  0xc2   : > { %1829 = vrot.lane.b32.xlu1 %v1700_v60, %s3419_s20  ;;  %v4072_v37 = vor.u32 %v2056_v32, %v2053_v4  ;;  %v1995_v0 = vsel %vm1674_vm14, %v1986_v51, %v1994_v59  ;;  %v2072_v17 = vshll.u32 %v3987_v41, 16  ;;  %1843 = vrot.lane.b32.xlu0 %v1763_v43, %s3419_s20  ;;  %v1997_v21 = vshrl.u32 %v4039_v62, 16  ;;  %v3246_v51 = vld [vmem:[#allocation6 + $0x30] sm:$0xff]  }
  0xc3   : > { %v2066_v61 = vor.u32 %v2065_v11, %v2062_v9  ;;  %v2071_v3 = vrot.slane %v2069_v13, 3  ;;  %v2000_v23 = vshll.u32 %v4039_v62, 16  ;;  %v1465_v53 = vmul.bf16 %v4004_v63, %v4062_v50  ;;  %3106 = vmatprep.subr.bf16.mxu0 %v3245_v40  ;;  %3147 = vmatprep.subr.bf16.mxu1 %v3245_v40 }
  0xc4   : > { %v2074_v47 = vrot.slane %v2072_v17, 4  ;;  %v1449_v6 = vmul.bf16 %v4035_v36, %v4067_v10  ;;  %v310_v41 = vadd.s32 192, %v3639_v1  ;;  %v4711_v31 = vmul.bf16 %v3982_v12, %v3888_v42 }
  0xc5   : > { %v1999_v55 = vrot.slane %v1997_v21, 3  ;;  %v2002_v62 = vrot.slane %v2000_v23, 4  ;;  %v1324_v4 = vshrl.u32 %v3945_v46, 16  ;;  %v2067_v29 = vsel %vm1674_vm14, %v4072_v37, %v2066_v61  ;;  %3107 = vmatpush3.bf16.msra.mxu0 %v3245_v40  ;;  %3154 = vmatpush3.bf16.msra.mxu1 %v3245_v40 }
  0xc6   : > { %v4090_v24 = vcombine.low %v4711_v31, %v1501_v18  ;;  %1845 = vrot.lane.b32.xlu1 %v1772_v5, %s3419_s20  ;;  %v4712_v30 = vmul.bf16 %v3982_v12, %v3978_v26  ;;  %v4713_v42 = vmul.bf16 %v4024_v34, %v4014_v52  ;;  %v490_v28 = vand.u32 15, %v310_v41  ;;  %2131 = vrot.lane.b32.xlu0 %v1995_v0, %s3420_s7 }
  0xc7   : > { %v4103_v46 = vor.u32 %v2074_v47, %v2071_v3  ;;  %v4105_v48 = vor.u32 %v2002_v62, %v1999_v55  ;;  %v1326_v5 = vrot.slane %v1324_v4, 4  ;;  %v294_v32 = vadd.s32 64, %v3639_v1  ;;  %3108 = vmatprep.subr.bf16.mxu0 %v3246_v51  ;;  %3148 = vmatprep.subr.bf16.mxu1 %v3246_v51 }
  0xc8   : > { %v2954_v63 = vcombine.low %v4712_v30, %v1465_v53  ;;  %v2946_v18 = vcombine.low %v4713_v42, %v1449_v6  ;;  %v1164_v11 = vshrl.u32 %v3990_v19, 16  ;;  %vm726_vm15 = vcmp.gt.s32.totalorder %v490_v28, 0 }
  0xc9   : > { %v2004_v13 = vsel %vm1674_vm14, %v1994_v59, %v4105_v48  ;;  %v1327_v0 = vor.u32 %v1326_v5, %v3969_v27  ;;  %v4714_v23 = vmov 0.0   ;;  %v2076_v19 = vsel %vm1674_vm14, %v2066_v61, %v4103_v46  ;;  %3109 = vmatpush3.bf16.msra.mxu0 %v3246_v51  ;;  %3155 = vmatpush3.bf16.msra.mxu1 %v3246_v51 }
  0xca   : > { %v1774_v12 = vshrl.u32 %v2954_v63, 16  ;;  %v1777_v60 = vshll.u32 %v2954_v63, 16  ;;  %v1702_v9 = vshrl.u32 %v2946_v18, 16  ;;  %v1705_v43 = vshll.u32 %v2946_v18, 16  ;;  %2147 = vrot.lane.b32.xlu1 %v2067_v29, %s3420_s7  ;;  %2133 = vrot.lane.b32.xlu0 %v2004_v13, %s3420_s7 }
  0xcb   : > { %v2923_v47 = vsel %vm726_vm15, 1.0, %v4714_v23  ;;  %v4715_v53 = vmov 1.0   ;;  %v378_v41 = vand.u32 15, %v294_v32  ;;  %v1484_v27 = vmul.bf16 %v4024_v34, %v3965_v25 }
  0xcc   : > { %v1776_v17 = vrot.slane %v1774_v12, 3  ;;  %v1779_v3 = vrot.slane %v1777_v60, 4  ;;  %v1704_v21 = vrot.slane %v1702_v9, 3  ;;  %v1707_v59 = vrot.slane %v1705_v43, 4  ;;  %v4154_v60 = vld [vmem:[#allocation2 + $0x68] sm:$0xf] }
  0xcd   : > { %v810_v6 = vpack.c.bf16 %v4715_v53, %v2923_v47  ;;  %v1485_v40 = vmul.bf16 %v4035_v36, %v4011_v54  ;;  %v1166_v55 = vrot.slane %v1164_v11, 4  ;;  %vm710_vm0 = vcmp.gt.s32.totalorder %v378_v41, 0 }
  0xce   : > { %v4122_v31 = vor.u32 %v1779_v3, %v1776_v17  ;;  %v4124_v62 = vor.u32 %v1707_v59, %v1704_v21  ;;  %2149 = vrot.lane.b32.xlu1 %v2076_v19, %s3420_s7  ;;  %v1328_v34 = vrot.slane %v1327_v0, 4  ;;  %v2915_v36 = vsel %vm710_vm0, 1.0, %v4714_v23  ;;  %v4169_v59 = vld [vmem:[#allocation2 + $0x6c] sm:$0xf] }
  0xcf   : > { %v1037_v61 = vrot.slane %v810_v6, %v3654_v20  ;;  %v4128_v4 = vrot.slane %v810_v6, %v3671_v33  ;;  %v1167_v29 = vor.u32 %v1166_v55, %v4008_v45  ;;  %v2964_v51 = vcombine.low %v1484_v27, %v1485_v40  ;;  %v4172_v40 = vld [vmem:[#allocation2 + $0x28] sm:$0xf] }
  0xd0   : > { %v1781_v25 = vsel %vm1674_vm14, %v4047_v39, %v4122_v31  ;;  %v1709_v30 = vsel %vm1674_vm14, %v4050_v15, %v4124_v62  ;;  %v802_v39 = vpack.c.bf16 %v4715_v53, %v2915_v36  ;;  %v2078_v5 = vshrl.u32 %v4090_v24, 16 }
  0xd1   : > { %v1330_v63 = vshll.u32 %v1037_v61, 16  ;;  %v1334_v42 = vshrl.u32 %v1037_v61, 16  ;;  %v1340_v18 = vshll.u32 %v4128_v4, 16  ;;  %1831 = vrot.lane.b32.xlu0 %v1709_v30, %s3419_s20  ;;  %v4147_v12 = vcombine.low %v3941_v44, %v3978_v26 }
  0xd2   : > { %v4151_v15 = vcombine.low %v4011_v54, %v4014_v52  ;;  %1847 = vrot.lane.b32.xlu1 %v1781_v25, %s3419_s20  ;;  %v925_v9 = vrot.slane %v802_v39, %v3654_v20  ;;  %v4158_v11 = vrot.slane %v802_v39, %v3671_v33  ;;  %v1168_v13 = vrot.slane %v1167_v29, 4 }
  0xd3   : > { %v1332_v32 = vrot.slane %v1330_v63, 5  ;;  %v1336_v45 = vrot.slane %v1334_v42, 4  ;;  %v2081_v43 = vshll.u32 %v4090_v24, 16  ;;  %v4163_v17 = vrot.slane %v1340_v18, 5 }
  0xd4   : > { %4716 = vst [vmem:[#allocation14_spill] sm:$0xff] %v4151_v15  ;;  %v312_v54 = vadd.s32 208, %v3639_v1  ;;  %v1170_v3 = vshll.u32 %v925_v9, 16  ;;  %v1174_v21 = vshrl.u32 %v925_v9, 16  ;;  %v1180_v47 = vshll.u32 %v4158_v11, 16 }
  0xd5   : > { %v1333_v44 = vsel %vm3728_vm9, %v1328_v34, %v1332_v32  ;;  %v1337_v0 = vor.u32 %v1336_v45, %v1332_v32  ;;  %v4167_v19 = vrot.slane %v2078_v5, 3  ;;  %v2006_v24 = vshrl.u32 %v2964_v51, 16  ;;  %v4186_v9 = vld [vmem:[#allocation2 + $0x2c] sm:$0xf] }
  0xd6   : > { %v1466_v41 = vmul.bf16 %v1333_v44, %v4154_v60  ;;  %v2009_v27 = vshll.u32 %v2964_v51, 16  ;;  %v1172_v55 = vrot.slane %v1170_v3, 5  ;;  %v1176_v61 = vrot.slane %v1174_v21, 4 }
  0xd7   : > { %v1338_v6 = vrot.slane %v1337_v0, 4  ;;  %v1502_v25 = vmul.bf16 %v1333_v44, %v3978_v26  ;;  %v504_v34 = vand.u32 15, %v312_v54  ;;  %v4178_v29 = vrot.slane %v1180_v47, 5 }
  0xd8   : > { %v2083_v30 = vrot.slane %v2081_v43, 4  ;;  %v1344_v63 = vshrl.u32 %v4128_v4, 16  ;;  %v1173_v18 = vsel %vm3728_vm9, %v1168_v13, %v1172_v55  ;;  %v1177_v51 = vor.u32 %v1176_v61, %v1172_v55 }
  0xd9   : > { %v1343_v36 = vsel %vm3728_vm9, %v1338_v6, %v4163_v17  ;;  %v1450_v26 = vmul.bf16 %v1173_v18, %v4172_v40  ;;  %v2008_v5 = vrot.slane %v2006_v24, 3  ;;  %v2011_v32 = vrot.slane %v2009_v27, 4 }
  0xda   : > { %v1467_v42 = vmul.bf16 %v1343_v36, %v4169_v59  ;;  %v1503_v39 = vmul.bf16 %v1343_v36, %v4062_v50  ;;  %vm728_vm1 = vcmp.gt.s32.totalorder %v504_v34, 0  ;;  %v1178_v44 = vrot.slane %v1177_v51, 4 }
  0xdb   : > { %v2924_v4 = vsel %vm728_vm1, 1.0, %v4714_v23  ;;  %v1486_v0 = vmul.bf16 %v1173_v18, %v4014_v52  ;;  %v1346_v13 = vrot.slane %v1344_v63, 4  ;;  %v296_v3 = vadd.s32 80, %v3639_v1 }
  0xdc   : > { %v2955_v45 = vcombine.low %v1466_v41, %v1467_v42  ;;  %v2973_v43 = vcombine.low %v1502_v25, %v1503_v39  ;;  %v811_v54 = vpack.c.bf16 %v4715_v53, %v2924_v4  ;;  %v1183_v6 = vsel %vm3728_vm9, %v1178_v44, %v4178_v29 }
  0xdd   : > { %v1451_v24 = vmul.bf16 %v1183_v6, %v4186_v9  ;;  %v1487_v55 = vmul.bf16 %v1183_v6, %v4067_v10  ;;  %v1184_v36 = vshrl.u32 %v4158_v11, 16  ;;  %v1347_v51 = vor.u32 %v1346_v13, %v4163_v17 }
  0xde   : > { %v1783_v21 = vshrl.u32 %v2955_v45, 16  ;;  %v1786_v47 = vshll.u32 %v2955_v45, 16  ;;  %v2087_v41 = vshrl.u32 %v2973_v43, 16  ;;  %v2090_v27 = vshll.u32 %v2973_v43, 16 }
  0xdf   : > { %v1051_v61 = vrot.slane %v811_v54, %v3654_v20  ;;  %v1058_v34 = vrot.slane %v811_v54, %v3671_v33  ;;  %v2947_v63 = vcombine.low %v1450_v26, %v1451_v24  ;;  %v2965_v18 = vcombine.low %v1486_v0, %v1487_v55 }
  0xe0   : > { %v1785_v52 = vrot.slane %v1783_v21, 3  ;;  %v1788_v25 = vrot.slane %v1786_v47, 4  ;;  %v2089_v42 = vrot.slane %v2087_v41, 3  ;;  %v2092_v45 = vrot.slane %v2090_v27, 4 }
  0xe1   : > { %v1350_v44 = vshll.u32 %v1051_v61, 16  ;;  %v1354_v43 = vshrl.u32 %v1051_v61, 16  ;;  %v1711_v4 = vshrl.u32 %v2947_v63, 16  ;;  %v1714_v6 = vshll.u32 %v2947_v63, 16  ;;  %v4216_v63 = vld [vmem:[#allocation2 + $0x70] sm:$0xf] }
  0xe2   : > { %v4201_v39 = vor.u32 %v1788_v25, %v1785_v52  ;;  %v2015_v28 = vshrl.u32 %v2965_v18, 16  ;;  %v1360_v38 = vshll.u32 %v1058_v34, 16  ;;  %v2018_v21 = vshll.u32 %v2965_v18, 16 }
  0xe3   : > { %v1348_v11 = vrot.slane %v1347_v51, 4  ;;  %v1352_v26 = vrot.slane %v1350_v44, 5  ;;  %v1713_v0 = vrot.slane %v1711_v4, 3  ;;  %v1716_v17 = vrot.slane %v1714_v6, 4 }
  0xe4   : > { %v1790_v54 = vsel %vm1674_vm14, %v4122_v31, %v4201_v39  ;;  %v2084_v13 = vor.u32 %v2083_v30, %v4167_v19  ;;  %v2017_v47 = vrot.slane %v2015_v28, 3  ;;  %v2012_v41 = vor.u32 %v2011_v32, %v2008_v5 }
  0xe5   : > { %1849 = vrot.lane.b32.xlu1 %v1790_v54, %s3419_s20  ;;  %v4208_v24 = vor.u32 %v2092_v45, %v2089_v42  ;;  %v2020_v27 = vrot.slane %v2018_v21, 4  ;;  %v1356_v55 = vrot.slane %v1354_v43, 4  ;;  %v4210_v61 = vor.u32 %v1716_v17, %v1713_v0 }
  0xe6   : > { %v4214_v31 = vsel %vm3728_vm9, %v1348_v11, %v1352_v26  ;;  %v392_v52 = vand.u32 15, %v296_v3  ;;  %v1186_v25 = vrot.slane %v1184_v36, 4  ;;  %v1362_v51 = vrot.slane %v1360_v38, 5  ;;  %v4229_v3 = vld [vmem:[#allocation2 + $0x74] sm:$0xf] }
  0xe7   : > { %v1357_v18 = vor.u32 %v1356_v55, %v1352_v26  ;;  %v314_v19 = vadd.s32 224, %v3639_v1  ;;  %v1364_v28 = vshrl.u32 %v1058_v34, 16  ;;  %v1718_v30 = vsel %vm1674_vm14, %v4124_v62, %v4210_v61 }
  0xe8   : > { %v2085_v5 = vsel %vm1674_vm14, %v4103_v46, %v2084_v13  ;;  %v4226_v32 = vor.u32 %v2020_v27, %v2017_v47  ;;  %vm712_vm2 = vcmp.gt.s32.totalorder %v392_v52, 0  ;;  %1833 = vrot.lane.b32.xlu0 %v1718_v30, %s3419_s20  ;;  %v1187_v36 = vor.u32 %v1186_v25, %v4178_v29 }
  0xe9   : > { %1886 = vrot.lane.b32.xlu1 %v4147_v12, %s3418_s18  ;;  %v1358_v38 = vrot.slane %v1357_v18, 4  ;;  %v2916_v34 = vsel %vm712_vm2, 1.0, %v4714_v23  ;;  %v518_v42 = vand.u32 15, %v314_v19  ;;  %v4717_v62 = vor.u32 %v3768_v56, %v3739_v35 }
  0xea   : > { %v1468_v46 = vmul.bf16 %v4214_v31, %v4216_v63  ;;  %v803_v44 = vpack.c.bf16 %v4715_v53, %v2916_v34  ;;  %v1366_v43 = vrot.slane %v1364_v28, 4  ;;  %v2013_v4 = vsel %vm1674_vm14, %v4105_v48, %v2012_v41 }
  0xeb   : > { %v1218_v45 = vrot.slane %v4717_v62, 4  ;;  %v2094_v6 = vsel %vm1674_vm14, %v2084_v13, %v4208_v24  ;;  %v4245_v29 = vsel %vm3728_vm9, %v1358_v38, %v1362_v51  ;;  %vm730_vm3 = vcmp.gt.s32.totalorder %v518_v42, 0 }
  0xec   : > { %v1469_v56 = vmul.bf16 %v4245_v29, %v4229_v3  ;;  %v939_v54 = vrot.slane %v803_v44, %v3654_v20  ;;  %v946_v21 = vrot.slane %v803_v44, %v3671_v33  ;;  %v2925_v11 = vsel %vm730_vm3, 1.0, %v4714_v23  ;;  %1870 = vrot.lane.b32.xlu0 %v4151_v15, %s3418_s18 }
  0xed   : > { %2151 = vrot.lane.b32.xlu1 %v2085_v5, %s3420_s7  ;;  %v2022_v48 = vsel %vm1674_vm14, %v2012_v41, %v4226_v32  ;;  %v1188_v26 = vrot.slane %v1187_v36, 4  ;;  %v812_v0 = vpack.c.bf16 %v4715_v53, %v2925_v11  ;;  %v1367_v17 = vor.u32 %v1366_v43, %v1362_v51 }
  0xee   : > { %v2956_v13 = vcombine.low %v1468_v46, %v1469_v56  ;;  %v1190_v47 = vshll.u32 %v939_v54, 16  ;;  %v1194_v27 = vshrl.u32 %v939_v54, 16  ;;  %v1200_v55 = vshll.u32 %v946_v21, 16  ;;  %v4265_v46 = vld [vmem:[#allocation2 + $0x30] sm:$0xf] }
  0xef   : > { %v1065_v52 = vrot.slane %v812_v0, %v3654_v20  ;;  %v4260_v25 = vrot.slane %v812_v0, %v3671_v33  ;;  %v1368_v18 = vrot.slane %v1367_v17, 4  ;;  %v1204_v19 = vshrl.u32 %v946_v21, 16 }
  0xf0   : > { %v1792_v28 = vshrl.u32 %v2956_v13, 16  ;;  %v1795_v30 = vshll.u32 %v2956_v13, 16  ;;  %v1192_v41 = vrot.slane %v1190_v47, 5  ;;  %v1196_v5 = vrot.slane %v1194_v27, 4  ;;  %2135 = vrot.lane.b32.xlu0 %v2013_v4, %s3420_s7  ;;  %v4273_v4 = vld [vmem:[#allocation2 + $0x34] sm:$0xf] }
  0xf1   : > { %2153 = vrot.lane.b32.xlu1 %v2094_v6, %s3420_s7  ;;  %v1202_v51 = vrot.slane %v1200_v55, 5  ;;  %v1370_v38 = vshll.u32 %v1065_v52, 16  ;;  %v1374_v34 = vshrl.u32 %v1065_v52, 16  ;;  %v1380_v36 = vshll.u32 %v4260_v25, 16 }
  0xf2   : > { %v1794_v42 = vrot.slane %v1792_v28, 3  ;;  %v1797_v62 = vrot.slane %v1795_v30, 4  ;;  %v1193_v44 = vsel %vm3728_vm9, %v1188_v26, %v1192_v41  ;;  %v1197_v43 = vor.u32 %v1196_v5, %v1192_v41  ;;  %v4279_v26 = vld [vmem:[#allocation2 + $0x78] sm:$0xf]  ;;  %v4300_v5 = vld [vmem:[#allocation2 + $0x3c] sm:$0xf] }
  0xf3   : > { %v1372_v6 = vrot.slane %v1370_v38, 5  ;;  %v1376_v56 = vrot.slane %v1374_v34, 4  ;;  %v1504_v54 = vmul.bf16 %v4214_v31, %v4154_v60  ;;  %v1206_v0 = vrot.slane %v1204_v19, 4 }
  0xf4   : > { %v4271_v21 = vor.u32 %v1797_v62, %v1794_v42  ;;  %v1198_v11 = vrot.slane %v1197_v43, 4  ;;  %v1505_v17 = vmul.bf16 %v4245_v29, %v4169_v59  ;;  %2137 = vrot.lane.b32.xlu0 %v2022_v48, %s3420_s7  ;;  %v1452_v13 = vmul.bf16 %v1193_v44, %v4265_v46  ;;  %v4310_v43 = vld [vmem:[#allocation2 + $0x38] sm:$0xf] }
  0xf5   : > { %v1373_v47 = vsel %vm3728_vm9, %v1368_v18, %v1372_v6  ;;  %v1377_v27 = vor.u32 %v1376_v56, %v1372_v6  ;;  %v4283_v31 = vrot.slane %v1380_v36, 5  ;;  %v1223_v55 = vsel %vm3728_vm9, %v1218_v45, %v3709_v58  ;;  %v4295_v18 = vld [vmem:[#allocation2 + $0x7c] sm:$0xf] }
  0xf6   : > { %v1799_v29 = vsel %vm1674_vm14, %v4201_v39, %v4271_v21  ;;  %v1203_v48 = vsel %vm3728_vm9, %v1198_v11, %v1202_v51  ;;  %v1207_v52 = vor.u32 %v1206_v0, %v1202_v51  ;;  %v1488_v30 = vmul.bf16 %v1193_v44, %v4172_v40 }
  0xf7   : > { %1851 = vrot.lane.b32.xlu1 %v1799_v29, %s3419_s20  ;;  %v1453_v19 = vmul.bf16 %v1203_v48, %v4273_v4  ;;  %v1378_v28 = vrot.slane %v1377_v27, 4  ;;  %v1470_v41 = vmul.bf16 %v1373_v47, %v4279_v26  ;;  %v1489_v45 = vmul.bf16 %v1203_v48, %v4186_v9 }
  0xf8   : > { %v1208_v58 = vrot.slane %v1207_v52, 4  ;;  %v1455_v39 = vmul.bf16 %v4300_v5, %v1223_v55  ;;  %v2974_v34 = vcombine.low %v1504_v54, %v1505_v17  ;;  %v1506_v0 = vmul.bf16 %v1373_v47, %v4216_v63 }
  0xf9   : > { %v2948_v38 = vcombine.low %v1452_v13, %v1453_v19  ;;  %v1383_v51 = vsel %vm3728_vm9, %v1378_v28, %v4283_v31  ;;  %v2966_v56 = vcombine.low %v1488_v30, %v1489_v45  ;;  %v1491_v54 = vmul.bf16 %v1223_v55, %v4273_v4 }
  0xfa   : > { %v1471_v36 = vmul.bf16 %v1383_v51, %v4295_v18  ;;  %v1213_v42 = vsel %vm3728_vm9, %v1208_v58, %v3739_v35  ;;  %v1507_v13 = vmul.bf16 %v1383_v51, %v4229_v3  ;;  %v2096_v48 = vshrl.u32 %v2974_v34, 16 }
  0xfb   : > { %v1720_v62 = vshrl.u32 %v2948_v38, 16  ;;  %v1723_v44 = vshll.u32 %v2948_v38, 16  ;;  %v1454_v6 = vmul.bf16 %v4310_v43, %v1213_v42  ;;  %v2099_v19 = vshll.u32 %v2974_v34, 16 }
  0xfc   : > { %v2957_v11 = vcombine.low %v1470_v41, %v1471_v36  ;;  %v316_v28 = vadd.s32 240, %v3639_v1  ;;  %v2024_v30 = vshrl.u32 %v2966_v56, 16  ;;  %v2027_v47 = vshll.u32 %v2966_v56, 16 }
  0xfd   : > { %v1722_v17 = vrot.slane %v1720_v62, 3  ;;  %v1725_v27 = vrot.slane %v1723_v44, 4  ;;  %v2949_v29 = vcombine.low %v1454_v6, %v1455_v39  ;;  %v2975_v36 = vcombine.low %v1506_v0, %v1507_v13 }
  0xfe   : > { %v1801_v52 = vshrl.u32 %v2957_v11, 16  ;;  %v1804_v35 = vshll.u32 %v2957_v11, 16  ;;  %v4321_v39 = vcombine.low %v4062_v50, %v4154_v60  ;;  %v2098_v34 = vrot.slane %v2096_v48, 3 }
  0xff   : > { %v1726_v58 = vor.u32 %v1725_v27, %v1722_v17  ;;  %v1729_v38 = vshrl.u32 %v2949_v29, 16  ;;  %v1732_v15 = vshll.u32 %v2949_v29, 16  ;;  %v2101_v44 = vrot.slane %v2099_v19, 4 }
 0x100   : > { %v1803_v41 = vrot.slane %v1801_v52, 3  ;;  %v1806_v45 = vrot.slane %v1804_v35, 4  ;;  %v1490_v6 = vmul.bf16 %v1213_v42, %v4265_v46  ;;  %v2026_v56 = vrot.slane %v2024_v30, 3 }
 0x101   : > { %v1727_v55 = vsel %vm1674_vm14, %v4210_v61, %v1726_v58  ;;  %v1731_v51 = vrot.slane %v1729_v38, 3  ;;  %v1734_v62 = vrot.slane %v1732_v15, 4  ;;  %v532_v0 = vand.u32 15, %v316_v28 }
 0x102   : > { %1835 = vrot.lane.b32.xlu0 %v1727_v55, %s3419_s20  ;;  %v4324_v1 = vor.u32 %v1806_v45, %v1803_v41  ;;  %v1384_v61 = vshrl.u32 %v4260_v25, 16  ;;  %v2029_v50 = vrot.slane %v2027_v47, 4  ;;  %v2105_v60 = vshrl.u32 %v2975_v36, 16 }
 0x103   : > { %v4327_v11 = vor.u32 %v1734_v62, %v1731_v51  ;;  %v2967_v13 = vcombine.low %v1490_v6, %v1491_v54  ;;  %v2108_v27 = vshll.u32 %v2975_v36, 16  ;;  %vm732_vm4 = vcmp.gt.s32.totalorder %v532_v0, 0 }
 0x104   : > { %v1808_v15 = vsel %vm1674_vm14, %v4271_v21, %v4324_v1  ;;  %v1386_v42 = vrot.slane %v1384_v61, 4  ;;  %v4339_v25 = vcombine.low %v4067_v10, %v4172_v40  ;;  %v2926_v21 = vsel %vm732_vm4, 1.0, %v4714_v23  ;;  %v4377_v61 = vld [vmem:[#allocation2 + $0x84] sm:$0xf] }
 0x105   : > { %1853 = vrot.lane.b32.xlu1 %v1808_v15, %s3419_s20  ;;  %v1736_v17 = vsel %vm1674_vm14, %v1726_v58, %v4327_v11  ;;  %v2033_v29 = vshrl.u32 %v2967_v13, 16  ;;  %v2036_v48 = vshll.u32 %v2967_v13, 16  ;;  %v813_v54 = vpack.c.bf16 %v4715_v53, %v2926_v21 }
 0x106   : > { %1837 = vrot.lane.b32.xlu0 %v1736_v17, %s3419_s20  ;;  %v1387_v52 = vor.u32 %v1386_v42, %v4283_v31  ;;  %v4346_v35 = vcombine.low %v4169_v59, %v4216_v63  ;;  %v4350_v19 = vcombine.low %v4186_v9, %v4265_v46  ;;  %v2102_v28 = vor.u32 %v2101_v44, %v2098_v34  ;;  %v4372_v44 = vld [vmem:[#allocation2 + $0x80] sm:$0xf] }
 0x107   : > { %v2030_v58 = vor.u32 %v2029_v50, %v2026_v56  ;;  %v2107_v10 = vrot.slane %v2105_v60, 3  ;;  %v2110_v40 = vrot.slane %v2108_v27, 4  ;;  %v1079_v23 = vrot.slane %v813_v54, %v3654_v20 }
 0x108   : > { %v1086_v53 = vrot.slane %v813_v54, %v3671_v33  ;;  %v2035_v59 = vrot.slane %v2033_v29, 3  ;;  %v2038_v63 = vrot.slane %v2036_v48, 4  ;;  %v1738_v31 = vshrl.u32 %v3783_v2, 16 }
 0x109   : > { %1888 = vrot.lane.b32.xlu1 %v4321_v39, %s3418_s18  ;;  %v1741_v9 = vshll.u32 %v3783_v2, 16  ;;  %v1388_v46 = vrot.slane %v1387_v52, 4  ;;  %v1390_v38 = vshll.u32 %v1079_v23, 16  ;;  %v1394_v30 = vshrl.u32 %v1079_v23, 16 }
 0x10a   : > { %1872 = vrot.lane.b32.xlu0 %v4339_v25, %s3418_s18  ;;  %v1400_v41 = vshll.u32 %v1086_v53, 16  ;;  %v1404_v45 = vshrl.u32 %v1086_v53, 16  ;;  %v2103_v20 = vsel %vm1674_vm14, %v4208_v24, %v2102_v28  ;;  %v2031_v2 = vsel %vm1674_vm14, %v4226_v32, %v2030_v58  ;;  %v4379_v32 = vld [vmem:[#allocation2 + $0x88] sm:$0xf] }
 0x10b   : > { %v1392_v33 = vrot.slane %v1390_v38, 5  ;;  %v1396_v47 = vrot.slane %v1394_v30, 4  ;;  %v4368_v55 = vor.u32 %v2110_v40, %v2107_v10  ;;  %v1740_v51 = vrot.slane %v1738_v31, 3 }
 0x10c   : > { %v1402_v36 = vrot.slane %v1400_v41, 5  ;;  %v1406_v62 = vrot.slane %v1404_v45, 4  ;;  %v4370_v34 = vor.u32 %v2038_v63, %v2035_v59  ;;  %v1743_v56 = vrot.slane %v1741_v9, 4 }
 0x10d   : > { %1890 = vrot.lane.b32.xlu1 %v4346_v35, %s3418_s18  ;;  %v1393_v24 = vsel %vm3728_vm9, %v1388_v46, %v1392_v33  ;;  %v1397_v6 = vor.u32 %v1396_v47, %v1392_v33  ;;  %v2112_v50 = vsel %vm1674_vm14, %v2102_v28, %v4368_v55  ;;  %v2942_v17 = vcombine.low %v4377_v61, %v4379_v32 }
 0x10e   : > { %1874 = vrot.lane.b32.xlu0 %v4350_v19, %s3418_s18  ;;  %v1407_v0 = vor.u32 %v1406_v62, %v1402_v36  ;;  %v1472_v60 = vmul.bf16 %v1393_v24, %v4372_v44  ;;  %v2040_v27 = vsel %vm1674_vm14, %v2030_v58, %v4370_v34  ;;  %v1744_v29 = vor.u32 %v1743_v56, %v1740_v51  ;;  %v1881_v56 = vpop.permute.xlu1 %1880 }
 0x10f   : > { %v1398_v15 = vrot.slane %v1397_v6, 4  ;;  %v1508_v10 = vmul.bf16 %v1393_v24, %v4279_v26  ;;  %v2042_v38 = vshrl.u32 %v3797_v8, 16  ;;  %v4410_v47 = vcombine.low %v4273_v4, %v4310_v43 }
 0x110   : > { %v1408_v13 = vrot.slane %v1407_v0, 4  ;;  %v1745_v28 = vsel %vm1674_vm14, %v4327_v11, %v1744_v29  ;;  %v1754_v46 = vsel %vm1674_vm14, %v1744_v29, %v4058_v22  ;;  %v2045_v11 = vshll.u32 %v3797_v8, 16 }
 0x111   : > { %2155 = vrot.lane.b32.xlu1 %v2103_v20, %s3420_s7  ;;  %v1403_v42 = vsel %vm3728_vm9, %v1398_v15, %v1402_v36  ;;  %v2044_v22 = vrot.slane %v2042_v38, 3  ;;  %v4422_v4 = vcombine.low %v4229_v3, %v4279_v26  ;;  %vm2163_vm5 = vcmask 228352  }
 0x112   : > { %2139 = vrot.lane.b32.xlu0 %v2031_v2, %s3420_s7  ;;  %v1473_v48 = vmul.bf16 %v1403_v42, %v4377_v61  ;;  %v1474_v21 = vmul.bf16 %v1408_v13, %v4379_v32  ;;  %v1509_v58 = vmul.bf16 %v1403_v42, %v4295_v18  ;;  %v1510_v20 = vmul.bf16 %v1408_v13, %v4372_v44  ;;  %v1865_v2 = vpop.permute.xlu0 %1864  ;;  %v1883_v29 = vpop.permute.xlu1 %1882 }
 0x113   : > { %v2047_v36 = vrot.slane %v2045_v11, 4  ;;  %vm2212_vm6 = vcmask 457728   ;;  %vm2245_vm7 = vcmask 687104   ;;  %vm2341_vm8 = vcmask 916480  }
 0x114   : > { %v2958_v54 = vcombine.low %v1472_v60, %v1473_v48  ;;  %v2959_v52 = vcombine.low %v1474_v21, %v1474_v21  ;;  %v2976_v45 = vcombine.low %v1508_v10, %v1509_v58  ;;  %v2977_v24 = vcombine.low %v1510_v20, %v1510_v20 }
 0x115   : > { %2157 = vrot.lane.b32.xlu1 %v2112_v50, %s3420_s7  ;;  %v2048_v43 = vor.u32 %v2047_v36, %v2044_v22  ;;  %vm2759_vm10 = vcmask 125952  }
 0x116   : > { %2141 = vrot.lane.b32.xlu0 %v2040_v27, %s3420_s7  ;;  %v1810_v16 = vshrl.u32 %v2958_v54, 16  ;;  %v1813_v40 = vshll.u32 %v2958_v54, 16  ;;  %v1819_v23 = vshrl.u32 %v2959_v52, 16  ;;  %v1822_v53 = vshll.u32 %v2959_v52, 16  ;;  %v1867_v13 = vpop.permute.xlu0 %1866 }
 0x117   : > { %v2114_v51 = vshrl.u32 %v2976_v45, 16  ;;  %v2117_v62 = vshll.u32 %v2976_v45, 16  ;;  %v2123_v50 = vshrl.u32 %v2977_v24, 16  ;;  %v2126_v60 = vshll.u32 %v2977_v24, 16 }
 0x118   : > { %v1812_v59 = vrot.slane %v1810_v16, 3  ;;  %v1815_v63 = vrot.slane %v1813_v40, 4  ;;  %v1821_v31 = vrot.slane %v1819_v23, 3  ;;  %v1824_v9 = vrot.slane %v1822_v53, 4 }
 0x119   : > { %v2116_v0 = vrot.slane %v2114_v51, 3  ;;  %v2119_v15 = vrot.slane %v2117_v62, 4  ;;  %v2049_v3 = vsel %vm1674_vm14, %v4370_v34, %v2048_v43  ;;  %v2125_v27 = vrot.slane %v2123_v50, 3  ;;  %v1885_v34 = vpop.permute.xlu1 %1884  ;;  %v4718_v51 = vld [vmem:[#allocation14_spill] sm:$0xff] }
 0x11a   : > { %1839 = vrot.lane.b32.xlu0 %v1745_v28, %s3419_s20  ;;  %v1816_v30 = vor.u32 %v1815_v63, %v1812_v59  ;;  %v1825_v41 = vor.u32 %v1824_v9, %v1821_v31  ;;  %v2128_v42 = vrot.slane %v2126_v60, 4  ;;  %v2058_v48 = vsel %vm1674_vm14, %v2048_v43, %v4072_v37 }
 0x11b   : > { %v2120_v26 = vor.u32 %v2119_v15, %v2116_v0 }
 0x11c   : > { %v1817_v33 = vsel %vm1674_vm14, %v4324_v1, %v1816_v30  ;;  %v1826_v8 = vsel %vm1674_vm14, %v1816_v30, %v1825_v41  ;;  %v3249_v1 = vld [vmem:[#allocation2 + $0x40] sm:$0xf] }
 0x11d   : > { %1855 = vrot.lane.b32.xlu1 %v1817_v33, %s3419_s20  ;;  %v4417_v6 = vcombine.low %v4300_v5, %v3249_v1  ;;  %v4430_v5 = vcombine.low %v4295_v18, %v4372_v44  ;;  %v2121_v18 = vsel %vm1674_vm14, %v4368_v55, %v2120_v26  ;;  %v2129_v44 = vor.u32 %v2128_v42, %v2125_v27 }
 0x11e   : > { %1841 = vrot.lane.b32.xlu0 %v1754_v46, %s3419_s20 }
 0x11f   : > { %v2130_v54 = vsel %vm1674_vm14, %v2120_v26, %v2129_v44 }
 0x120   : > { %v1869_v21 = vpop.permute.xlu0 %1868 }
 0x121   : > { %1857 = vrot.lane.b32.xlu1 %v1826_v8, %s3419_s20 }
 0x122   : > { %1876 = vrot.lane.b32.xlu0 %v4410_v47, %s3418_s18 }
 0x125   : > { %1892 = vrot.lane.b32.xlu1 %v4422_v4, %s3418_s18 }
 0x126   : > { %1878 = vrot.lane.b32.xlu0 %v4417_v6, %s3418_s18 }
 0x129   : > { %1894 = vrot.lane.b32.xlu1 %v4430_v5, %s3418_s18 }
 0x12a   : > { %2143 = vrot.lane.b32.xlu0 %v2049_v3, %s3420_s7 }
 0x12d   : > { %2159 = vrot.lane.b32.xlu1 %v2121_v18, %s3420_s7 }
 0x12e   : > { %2145 = vrot.lane.b32.xlu0 %v2058_v48, %s3420_s7 }
 0x130   : > { %v1828_v52 = vpop.permute.xlu0 %1827 }
 0x131   : > { %2161 = vrot.lane.b32.xlu1 %v2130_v54, %s3420_s7  ;;  %v2166_v37 = vsel %vm2163_vm5, %v3903_v49, %v1828_v52 }
 0x132   : > { %v2214_v40 = vsel %vm2212_vm6, %v2166_v37, %v1865_v2 }
 0x134   : > { %v1830_v28 = vpop.permute.xlu1 %1829  ;;  %v1844_v10 = vpop.permute.xlu0 %1843 }
 0x135   : > { %v2190_v58 = vsel %vm2163_vm5, %v3855_v14, %v1844_v10  ;;  %v2169_v23 = vsel %vm2163_vm5, %v3976_v57, %v1830_v28 }
 0x136   : > { %v2230_v49 = vsel %vm2212_vm6, %v2190_v58, %v1881_v56  ;;  %v2216_v14 = vsel %vm2212_vm6, %v2169_v23, %v1867_v13 }
 0x138   : > { %v1846_v55 = vpop.permute.xlu1 %1845  ;;  %v2132_v16 = vpop.permute.xlu0 %2131 }
 0x139   : > { %v2247_v53 = vsel %vm2245_vm7, %v2214_v40, %v2132_v16  ;;  %v2193_v63 = vsel %vm2163_vm5, %v3913_v7, %v1846_v55 }
 0x13a   : > { %3110 = vmatprep.mubr.msk.bf16.mxu0 %vm2341_vm8, %v2247_v53  ;;  %v2232_v57 = vsel %vm2212_vm6, %v2193_v63, %v1883_v29 }
 0x13c   : > { %v2148_v59 = vpop.permute.xlu1 %2147  ;;  %v2134_v9 = vpop.permute.xlu0 %2133 }
 0x13d   : > { %v2263_v31 = vsel %vm2245_vm7, %v2230_v49, %v2148_v59  ;;  %v2249_v46 = vsel %vm2245_vm7, %v2216_v14, %v2134_v9 }
 0x13e   : > { %3126 = vmatprep.mubr.msk.bf16.mxu1 %vm2341_vm8, %v2263_v31  ;;  %3111 = vmatmul.mubr.msk.bf16.vlgmr.msra.gmra.mrb[0].mxu0 %vm2341_vm8, %v2249_v46 }
 0x140   : > { %v2150_v38 = vpop.permute.xlu1 %2149 }
 0x141   : > { %v2265_v11 = vsel %vm2245_vm7, %v2232_v57, %v2150_v38 }
 0x142   : > { %3127 = vmatmul.mubr.msk.bf16.vlgmr.msra.gmra.mrb[0].mxu1 %vm2341_vm8, %v2265_v11 }
 0x143   : > { %v1832_v7 = vpop.permute.xlu0 %1831 }
 0x144   : > { %v1848_v30 = vpop.permute.xlu1 %1847  ;;  %v2172_v62 = vsel %vm2163_vm5, %v4718_v51, %v1832_v7 }
 0x145   : > { %v2196_v20 = vsel %vm2163_vm5, %v4147_v12, %v1848_v30  ;;  %v2218_v12 = vsel %vm2212_vm6, %v2172_v62, %v1869_v21  ;;  %v4719_v30 = vld [vmem:[#allocation13_spill] sm:$0xff]  ;;  %v4527_v62 = vld [vmem:[#allocation8] ss:$0 sm:$0xff] }
 0x146   : > { %v2234_v22 = vsel %vm2212_vm6, %v2196_v20, %v1885_v34 }
 0x157   : > { %v1850_v41 = vpop.permute.xlu1 %1849 }
 0x158   : > { %v2199_v24 = vsel %vm2163_vm5, %v4321_v39, %v1850_v41 }
 0x15a   : > { %v1834_v33 = vpop.permute.xlu0 %1833 }
 0x15b   : > { %v1887_v45 = vpop.permute.xlu1 %1886  ;;  %v2175_v50 = vsel %vm2163_vm5, %v4339_v25, %v1834_v33 }
 0x15c   : > { %v2236_v1 = vsel %vm2212_vm6, %v2199_v24, %v1887_v45 }
 0x15e   : > { %v1871_v2 = vpop.permute.xlu0 %1870 }
 0x15f   : > { %v2152_v36 = vpop.permute.xlu1 %2151  ;;  %v2220_v60 = vsel %vm2212_vm6, %v2175_v50, %v1871_v2 }
 0x160   : > { %v2267_v8 = vsel %vm2245_vm7, %v2234_v22, %v2152_v36 }
 0x161   : > { %3130 = vmatprep.mubr.msk.bf16.mxu1 %vm2341_vm8, %v2267_v8 }
 0x162   : > { %v2136_v56 = vpop.permute.xlu0 %2135 }
 0x163   : > { %v2154_v43 = vpop.permute.xlu1 %2153  ;;  %v2251_v15 = vsel %vm2245_vm7, %v2218_v12, %v2136_v56 }
 0x164   : > { %v2269_v0 = vsel %vm2245_vm7, %v2236_v1, %v2154_v43  ;;  %3114 = vmatprep.mubr.msk.bf16.mxu0 %vm2341_vm8, %v2251_v15 }
 0x165   : > { %3131 = vmatmul.mubr.msk.bf16.gmra.mrb[4].mxu1 %vm2341_vm8, %v2269_v0 }
 0x166   : > { %v2138_v39 = vpop.permute.xlu0 %2137 }
 0x167   : > { %v2253_v13 = vsel %vm2245_vm7, %v2220_v60, %v2138_v39 }
 0x168   : > { %3115 = vmatmul.mubr.msk.bf16.gmra.mrb[4].mxu0 %vm2341_vm8, %v2253_v13 }
 0x169   : > { %v1852_v3 = vpop.permute.xlu1 %1851 }
 0x16a   : > { %v2202_v44 = vsel %vm2163_vm5, %v4346_v35, %v1852_v3 }
 0x174   : > { %v1836_v26 = vpop.permute.xlu0 %1835 }
 0x175   : > { %v2178_v25 = vsel %vm2163_vm5, %v4350_v19, %v1836_v26 }
 0x177   : > { %v1854_v27 = vpop.permute.xlu1 %1853 }
 0x178   : > { %v1838_v42 = vpop.permute.xlu0 %1837  ;;  %v2205_v55 = vsel %vm2163_vm5, %v4422_v4, %v1854_v27 }
 0x179   : > { %v2181_v35 = vsel %vm2163_vm5, %v4410_v47, %v1838_v42 }
 0x17b   : > { %v1889_v29 = vpop.permute.xlu1 %1888 }
 0x17c   : > { %v1873_v48 = vpop.permute.xlu0 %1872  ;;  %v2238_v34 = vsel %vm2212_vm6, %v2202_v44, %v1889_v29 }
 0x17d   : > { %v2222_v52 = vsel %vm2212_vm6, %v2178_v25, %v1873_v48 }
 0x17f   : > { %v1891_v21 = vpop.permute.xlu1 %1890 }
 0x180   : > { %v1875_v18 = vpop.permute.xlu0 %1874  ;;  %v2240_v19 = vsel %vm2212_vm6, %v2205_v55, %v1891_v21 }
 0x181   : > { %v2224_v16 = vsel %vm2212_vm6, %v2181_v35, %v1875_v18 }
 0x183   : > { %v2156_v54 = vpop.permute.xlu1 %2155 }
 0x184   : > { %v2271_v28 = vsel %vm2245_vm7, %v2238_v34, %v2156_v54  ;;  %v2140_v10 = vpop.permute.xlu0 %2139 }
 0x185   : > { %v2255_v37 = vsel %vm2245_vm7, %v2222_v52, %v2140_v10  ;;  %3134 = vmatprep.mubr.msk.bf16.mxu1 %vm2341_vm8, %v2271_v28 }
 0x186   : > { %3118 = vmatprep.mubr.msk.bf16.mxu0 %vm2341_vm8, %v2255_v37 }
 0x187   : > { %v2158_v58 = vpop.permute.xlu1 %2157 }
 0x188   : > { %v2273_v40 = vsel %vm2245_vm7, %v2240_v19, %v2158_v58  ;;  %v2142_v23 = vpop.permute.xlu0 %2141 }
 0x189   : > { %v2257_v53 = vsel %vm2245_vm7, %v2224_v16, %v2142_v23  ;;  %3135 = vmatmul.mubr.msk.bf16.gmra.mrb[8].mxu1 %vm2341_vm8, %v2273_v40 }
 0x18a   : > { %3119 = vmatmul.mubr.msk.bf16.gmra.mrb[8].mxu0 %vm2341_vm8, %v2257_v53 }
 0x18c   : > { %v1840_v4 = vpop.permute.xlu0 %1839 }
 0x18d   : > { %v2184_v9 = vsel %vm2163_vm5, %v4417_v6, %v1840_v4 }
 0x18f   : > { %v1856_v49 = vpop.permute.xlu1 %1855 }
 0x190   : > { %v1842_v59 = vpop.permute.xlu0 %1841  ;;  %v2208_v41 = vsel %vm2163_vm5, %v4430_v5, %v1856_v49 }
 0x191   : > { %v2187_v7 = vsel %vm2163_vm5, %v4719_v30, %v1842_v59 }
 0x193   : > { %v1858_v31 = vpop.permute.xlu1 %1857 }
 0x194   : > { %v1877_v63 = vpop.permute.xlu0 %1876  ;;  %v2211_v2 = vsel %vm2163_vm5, %v2942_v17, %v1858_v31 }
 0x195   : > { %v2226_v46 = vsel %vm2212_vm6, %v2184_v9, %v1877_v63 }
 0x197   : > { %v1893_v14 = vpop.permute.xlu1 %1892 }
 0x198   : > { %v1879_v47 = vpop.permute.xlu0 %1878  ;;  %v2242_v33 = vsel %vm2212_vm6, %v2208_v41, %v1893_v14 }
 0x199   : > { %v2228_v45 = vsel %vm2212_vm6, %v2187_v7, %v1879_v47 }
 0x19b   : > { %v1895_v38 = vpop.permute.xlu1 %1894 }
 0x19c   : > { %v2144_v57 = vpop.permute.xlu0 %2143  ;;  %v2244_v5 = vsel %vm2212_vm6, %v2211_v2, %v1895_v38 }
 0x19d   : > { %v2259_v11 = vsel %vm2245_vm7, %v2226_v46, %v2144_v57 }
 0x19e   : > { %3122 = vmatprep.mubr.msk.bf16.mxu0 %vm2341_vm8, %v2259_v11 }
 0x19f   : > { %v2160_v6 = vpop.permute.xlu1 %2159 }
 0x1a0   : > { %v2146_v20 = vpop.permute.xlu0 %2145  ;;  %v2275_v36 = vsel %vm2245_vm7, %v2242_v33, %v2160_v6 }
 0x1a1   : > { %v2261_v22 = vsel %vm2245_vm7, %v2228_v45, %v2146_v20  ;;  %3138 = vmatprep.mubr.msk.bf16.mxu1 %vm2341_vm8, %v2275_v36 }
 0x1a2   : > { %3123 = vmatmul.mubr.msk.bf16.gmra.mrb[12].mxu0 %vm2341_vm8, %v2261_v22 }
 0x1a3   : > { %v2162_v8 = vpop.permute.xlu1 %2161 }
 0x1a4   : > { %v2277_v51 = vsel %vm2245_vm7, %v2244_v5, %v2162_v8 }
 0x1a5   : > { %3139 = vmatmul.mubr.msk.bf16.gmra.mrb[12].mxu1 %vm2341_vm8, %v2277_v51 }
 0x211   : > { %v3112_v24 = vpop.f32.mrb[0].mxu0 }
 0x212   : > { %v2417_v1 = vadd.f32 %v3112_v24, %v4527_v62  ;;  %v2408_v43 = vpop.f32.mrb[1].mxu0 }
 0x213   : > { %v2409_v12 = vadd.f32 %v4527_v62, %v2408_v43  ;;  %v3113_v56 = vpop.f32.mrb[2].mxu0 }
 0x214   : > { %vm2537_vm9 = vcmp.ge.f32.partialorder %v2417_v1, 0.0  ;;  %v2569_v61 = vmul.f32 0.2, %v2417_v1  ;;  %v2420_v17 = vadd.f32 %v3113_v56, %v4527_v62  ;;  %v2411_v0 = vpop.f32.mrb[3].mxu0 }
 0x215   : > { %v3128_v32 = vpop.f32.mrb[0].mxu1  ;;  %vm2535_vm11 = vcmp.ge.f32.partialorder %v2409_v12, 0.0  ;;  %v2567_v50 = vmul.f32 0.2, %v2409_v12  ;;  %v2412_v39 = vadd.f32 %v4527_v62, %v2411_v0 }
 0x216   : > { %v2481_v15 = vadd.f32 %v3128_v32, %v4527_v62  ;;  %v2472_v60 = vpop.f32.mrb[1].mxu1  ;;  %v2601_v13 = vsel %vm2537_vm9, %v2417_v1, %v2569_v61  ;;  %vm2538_vm12 = vcmp.ge.f32.partialorder %v2420_v17, 0.0  ;;  %v2570_v26 = vmul.f32 0.2, %v2420_v17 }
 0x217   : > { %v2473_v3 = vadd.f32 %v4527_v62, %v2472_v60  ;;  %v3129_v27 = vpop.f32.mrb[2].mxu1  ;;  %v3042_v42 = vpack.c.bf16 %v2601_v13, %v2601_v13  ;;  %v2599_v48 = vsel %vm2535_vm11, %v2409_v12, %v2567_v50  ;;  %vm2536_vm15 = vcmp.ge.f32.partialorder %v2412_v39, 0.0 }
 0x218   : > { %vm2553_vm13 = vcmp.ge.f32.partialorder %v2481_v15, 0.0  ;;  %v2585_v29 = vmul.f32 0.2, %v2481_v15  ;;  %v2475_v21 = vpop.f32.mrb[3].mxu1  ;;  %v3040_v18 = vpack.c.bf16 %v2599_v48, %v2599_v48  ;;  %v2602_v25 = vsel %vm2538_vm12, %v2420_v17, %v2570_v26 }
 0x219   : > { %vm2551_vm14 = vcmp.ge.f32.partialorder %v2473_v3, 0.0  ;;  %v2583_v44 = vmul.f32 0.2, %v2473_v3  ;;  %2762 = vst.msk [vmem:[%s4537_s8 + $0x8] sm:$0xf] %vm2759_vm10, %v3042_v42  ;;  %v3043_v54 = vpack.c.bf16 %v2602_v25, %v2602_v25  ;;  %v2484_v52 = vadd.f32 %v3129_v27, %v4527_v62 }
 0x21a   : > { %v2617_v34 = vsel %vm2553_vm13, %v2481_v15, %v2585_v29  ;;  %2760 = vst.msk [vmem:[%s4537_s8] sm:$0xf] %vm2759_vm10, %v3040_v18  ;;  %v2568_v37 = vmul.f32 0.2, %v2412_v39  ;;  %v2476_v55 = vadd.f32 %v4527_v62, %v2475_v21 }
 0x21b   : > { %v3058_v28 = vpack.c.bf16 %v2617_v34, %v2617_v34  ;;  %v2615_v10 = vsel %vm2551_vm14, %v2473_v3, %v2583_v44  ;;  %2763 = vst.msk [vmem:[%s4537_s8 + $0xc] sm:$0xf] %vm2759_vm10, %v3043_v54  ;;  %vm2554_vm0 = vcmp.ge.f32.partialorder %v2484_v52, 0.0  ;;  %v2586_v19 = vmul.f32 0.2, %v2484_v52 }
 0x21c   : > { %v3056_v35 = vpack.c.bf16 %v2615_v10, %v2615_v10  ;;  %v2600_v58 = vsel %vm2536_vm15, %v2412_v39, %v2568_v37  ;;  %vm2552_vm1 = vcmp.ge.f32.partialorder %v2476_v55, 0.0  ;;  %v2584_v16 = vmul.f32 0.2, %v2476_v55 }
 0x21d   : > { %2778 = vst.msk [vmem:[%s4537_s8 + $0x48] sm:$0xf] %vm2759_vm10, %v3058_v28  ;;  %v2618_v40 = vsel %vm2554_vm0, %v2484_v52, %v2586_v19  ;;  %v3041_v23 = vpack.c.bf16 %v2600_v58, %v2600_v58 }
 0x21e   : > { %2776 = vst.msk [vmem:[%s4537_s8 + $0x40] sm:$0xf] %vm2759_vm10, %v3056_v35  ;;  %v3059_v53 = vpack.c.bf16 %v2618_v40, %v2618_v40  ;;  %v2616_v4 = vsel %vm2552_vm1, %v2476_v55, %v2584_v16 }
 0x21f   : > { %2761 = vst.msk [vmem:[%s4537_s8 + $0x4] sm:$0xf] %vm2759_vm10, %v3041_v23  ;;  %v3057_v59 = vpack.c.bf16 %v2616_v4, %v2616_v4 }
 0x220   : > { %2779 = vst.msk [vmem:[%s4537_s8 + $0x4c] sm:$0xf] %vm2759_vm10, %v3059_v53 }
 0x221   : > { %2777 = vst.msk [vmem:[%s4537_s8 + $0x44] sm:$0xf] %vm2759_vm10, %v3057_v59 }
 0x238   : > { %v3132_v49 = vpop.f32.mrb[4].mxu1 }
 0x239   : > { %v2497_v63 = vadd.f32 %v3132_v49, %v4527_v62  ;;  %v2488_v31 = vpop.f32.mrb[5].mxu1 }
 0x23a   : > { %v2489_v47 = vadd.f32 %v4527_v62, %v2488_v31  ;;  %v3133_v14 = vpop.f32.mrb[6].mxu1 }
 0x23b   : > { %vm2557_vm2 = vcmp.ge.f32.partialorder %v2497_v63, 0.0  ;;  %v2589_v9 = vmul.f32 0.2, %v2497_v63  ;;  %v2500_v46 = vadd.f32 %v3133_v14, %v4527_v62  ;;  %v2491_v57 = vpop.f32.mrb[7].mxu1  ;;  %v3116_v30 = vpop.f32.mrb[4].mxu0 }
 0x23c   : > { %vm2555_vm3 = vcmp.ge.f32.partialorder %v2489_v47, 0.0  ;;  %v2587_v38 = vmul.f32 0.2, %v2489_v47  ;;  %v2492_v11 = vadd.f32 %v4527_v62, %v2491_v57  ;;  %v2433_v45 = vadd.f32 %v3116_v30, %v4527_v62  ;;  %v2424_v33 = vpop.f32.mrb[5].mxu0 }
 0x23d   : > { %v2621_v7 = vsel %vm2557_vm2, %v2497_v63, %v2589_v9  ;;  %vm2558_vm4 = vcmp.ge.f32.partialorder %v2500_v46, 0.0  ;;  %v2590_v41 = vmul.f32 0.2, %v2500_v46  ;;  %v2425_v22 = vadd.f32 %v4527_v62, %v2424_v33  ;;  %v3117_v2 = vpop.f32.mrb[6].mxu0 }
 0x23e   : > { %v3062_v20 = vpack.c.bf16 %v2621_v7, %v2621_v7  ;;  %v2619_v6 = vsel %vm2555_vm3, %v2489_v47, %v2587_v38  ;;  %vm2556_vm5 = vcmp.ge.f32.partialorder %v2492_v11, 0.0  ;;  %v2588_v8 = vmul.f32 0.2, %v2492_v11  ;;  %v2427_v43 = vpop.f32.mrb[7].mxu0 }
 0x23f   : > { %v3060_v36 = vpack.c.bf16 %v2619_v6, %v2619_v6  ;;  %v2622_v5 = vsel %vm2558_vm4, %v2500_v46, %v2590_v41  ;;  %vm2541_vm6 = vcmp.ge.f32.partialorder %v2433_v45, 0.0  ;;  %v2573_v51 = vmul.f32 0.2, %v2433_v45 }
 0x240   : > { %2782 = vst.msk [vmem:[%s4537_s8 + $0x58] sm:$0xf] %vm2759_vm10, %v3062_v20  ;;  %v2436_v24 = vadd.f32 %v3117_v2, %v4527_v62  ;;  %v3063_v1 = vpack.c.bf16 %v2622_v5, %v2622_v5  ;;  %vm2539_vm7 = vcmp.ge.f32.partialorder %v2425_v22, 0.0  ;;  %v2571_v12 = vmul.f32 0.2, %v2425_v22 }
 0x241   : > { %2780 = vst.msk [vmem:[%s4537_s8 + $0x50] sm:$0xf] %vm2759_vm10, %v3060_v36  ;;  %v2428_v56 = vadd.f32 %v4527_v62, %v2427_v43  ;;  %v2620_v61 = vsel %vm2556_vm5, %v2492_v11, %v2588_v8  ;;  %v2605_v32 = vsel %vm2541_vm6, %v2433_v45, %v2573_v51 }
 0x242   : > { %vm2542_vm8 = vcmp.ge.f32.partialorder %v2436_v24, 0.0  ;;  %v2574_v17 = vmul.f32 0.2, %v2436_v24  ;;  %2783 = vst.msk [vmem:[%s4537_s8 + $0x5c] sm:$0xf] %vm2759_vm10, %v3063_v1  ;;  %v3061_v0 = vpack.c.bf16 %v2620_v61, %v2620_v61  ;;  %v3046_v15 = vpack.c.bf16 %v2605_v32, %v2605_v32 }
 0x243   : > { %v2603_v50 = vsel %vm2539_vm7, %v2425_v22, %v2571_v12  ;;  %vm2540_vm9 = vcmp.ge.f32.partialorder %v2428_v56, 0.0  ;;  %v2572_v60 = vmul.f32 0.2, %v2428_v56 }
 0x244   : > { %v3044_v39 = vpack.c.bf16 %v2603_v50, %v2603_v50  ;;  %v2606_v13 = vsel %vm2542_vm8, %v2436_v24, %v2574_v17  ;;  %2781 = vst.msk [vmem:[%s4537_s8 + $0x54] sm:$0xf] %vm2759_vm10, %v3061_v0  ;;  %2766 = vst.msk [vmem:[%s4537_s8 + $0x18] sm:$0xf] %vm2759_vm10, %v3046_v15 }
 0x245   : > { %v3047_v3 = vpack.c.bf16 %v2606_v13, %v2606_v13  ;;  %v2604_v26 = vsel %vm2540_vm9, %v2428_v56, %v2572_v60 }
 0x246   : > { %2764 = vst.msk [vmem:[%s4537_s8 + $0x10] sm:$0xf] %vm2759_vm10, %v3044_v39  ;;  %v3045_v27 = vpack.c.bf16 %v2604_v26, %v2604_v26 }
 0x247   : > { %2767 = vst.msk [vmem:[%s4537_s8 + $0x1c] sm:$0xf] %vm2759_vm10, %v3047_v3 }
 0x248   : > { %2765 = vst.msk [vmem:[%s4537_s8 + $0x14] sm:$0xf] %vm2759_vm10, %v3045_v27 }
 0x25c   : > { %v3136_v42 = vpop.f32.mrb[8].mxu1 }
 0x25d   : > { %v3120_v29 = vpop.f32.mrb[8].mxu0  ;;  %v2513_v48 = vadd.f32 %v3136_v42, %v4527_v62  ;;  %v2504_v21 = vpop.f32.mrb[9].mxu1 }
 0x25e   : > { %v2449_v18 = vadd.f32 %v3120_v29, %v4527_v62  ;;  %v2440_v44 = vpop.f32.mrb[9].mxu0  ;;  %v2505_v25 = vadd.f32 %v4527_v62, %v2504_v21  ;;  %v3137_v34 = vpop.f32.mrb[10].mxu1 }
 0x25f   : > { %vm2561_vm11 = vcmp.ge.f32.partialorder %v2513_v48, 0.0  ;;  %v2593_v54 = vmul.f32 0.2, %v2513_v48  ;;  %v2441_v52 = vadd.f32 %v4527_v62, %v2440_v44  ;;  %v3121_v28 = vpop.f32.mrb[10].mxu0  ;;  %v2516_v10 = vadd.f32 %v3137_v34, %v4527_v62  ;;  %v2507_v37 = vpop.f32.mrb[11].mxu1 }
 0x260   : > { %vm2545_vm12 = vcmp.ge.f32.partialorder %v2449_v18, 0.0  ;;  %v2577_v55 = vmul.f32 0.2, %v2449_v18  ;;  %vm2559_vm13 = vcmp.ge.f32.partialorder %v2505_v25, 0.0  ;;  %v2591_v35 = vmul.f32 0.2, %v2505_v25 }
 0x261   : > { %v2625_v19 = vsel %vm2561_vm11, %v2513_v48, %v2593_v54  ;;  %vm2543_vm14 = vcmp.ge.f32.partialorder %v2441_v52, 0.0  ;;  %v2575_v58 = vmul.f32 0.2, %v2441_v52  ;;  %v2452_v16 = vadd.f32 %v3121_v28, %v4527_v62  ;;  %v2443_v40 = vpop.f32.mrb[11].mxu0 }
 0x262   : > { %v2609_v23 = vsel %vm2545_vm12, %v2449_v18, %v2577_v55  ;;  %v3066_v53 = vpack.c.bf16 %v2625_v19, %v2625_v19  ;;  %v2623_v4 = vsel %vm2559_vm13, %v2505_v25, %v2591_v35  ;;  %vm2562_vm15 = vcmp.ge.f32.partialorder %v2516_v10, 0.0 }
 0x263   : > { %v3050_v59 = vpack.c.bf16 %v2609_v23, %v2609_v23  ;;  %v2607_v49 = vsel %vm2543_vm14, %v2441_v52, %v2575_v58  ;;  %v3064_v63 = vpack.c.bf16 %v2623_v4, %v2623_v4  ;;  %vm2546_vm0 = vcmp.ge.f32.partialorder %v2452_v16, 0.0 }
 0x264   : > { %2786 = vst.msk [vmem:[%s4537_s8 + $0x68] sm:$0xf] %vm2759_vm10, %v3066_v53  ;;  %v3048_v31 = vpack.c.bf16 %v2607_v49, %v2607_v49  ;;  %v2578_v47 = vmul.f32 0.2, %v2452_v16  ;;  %v2594_v14 = vmul.f32 0.2, %v2516_v10  ;;  %v2444_v9 = vadd.f32 %v4527_v62, %v2443_v40 }
 0x265   : > { %2770 = vst.msk [vmem:[%s4537_s8 + $0x28] sm:$0xf] %vm2759_vm10, %v3050_v59  ;;  %2784 = vst.msk [vmem:[%s4537_s8 + $0x60] sm:$0xf] %vm2759_vm10, %v3064_v63  ;;  %v2508_v46 = vadd.f32 %v4527_v62, %v2507_v37 }
 0x266   : > { %2768 = vst.msk [vmem:[%s4537_s8 + $0x20] sm:$0xf] %vm2759_vm10, %v3048_v31  ;;  %v2610_v57 = vsel %vm2546_vm0, %v2452_v16, %v2578_v47  ;;  %v2626_v38 = vsel %vm2562_vm15, %v2516_v10, %v2594_v14  ;;  %vm2544_vm1 = vcmp.ge.f32.partialorder %v2444_v9, 0.0  ;;  %v2576_v11 = vmul.f32 0.2, %v2444_v9 }
 0x267   : > { %v3051_v30 = vpack.c.bf16 %v2610_v57, %v2610_v57  ;;  %v3067_v7 = vpack.c.bf16 %v2626_v38, %v2626_v38  ;;  %vm2560_vm2 = vcmp.ge.f32.partialorder %v2508_v46, 0.0  ;;  %v2592_v41 = vmul.f32 0.2, %v2508_v46 }
 0x268   : > { %v2608_v45 = vsel %vm2544_vm1, %v2444_v9, %v2576_v11 }
 0x269   : > { %2771 = vst.msk [vmem:[%s4537_s8 + $0x2c] sm:$0xf] %vm2759_vm10, %v3051_v30  ;;  %2787 = vst.msk [vmem:[%s4537_s8 + $0x6c] sm:$0xf] %vm2759_vm10, %v3067_v7  ;;  %v3049_v20 = vpack.c.bf16 %v2608_v45, %v2608_v45  ;;  %v2624_v33 = vsel %vm2560_vm2, %v2508_v46, %v2592_v41 }
 0x26a   : > { %v3065_v6 = vpack.c.bf16 %v2624_v33, %v2624_v33 }
 0x26b   : > { %2769 = vst.msk [vmem:[%s4537_s8 + $0x24] sm:$0xf] %vm2759_vm10, %v3049_v20 }
 0x26c   : > { %2785 = vst.msk [vmem:[%s4537_s8 + $0x64] sm:$0xf] %vm2759_vm10, %v3065_v6 }
 0x275   : > { %v3124_v22 = vpop.f32.mrb[12].mxu0 }
 0x276   : > { %v2465_v36 = vadd.f32 %v3124_v22, %v4527_v62  ;;  %v2456_v2 = vpop.f32.mrb[13].mxu0 }
 0x277   : > { %v2457_v5 = vadd.f32 %v4527_v62, %v2456_v2  ;;  %v3125_v8 = vpop.f32.mrb[14].mxu0 }
 0x278   : > { %vm2549_vm3 = vcmp.ge.f32.partialorder %v2465_v36, 0.0  ;;  %v2581_v51 = vmul.f32 0.2, %v2465_v36  ;;  %v2468_v24 = vadd.f32 %v3125_v8, %v4527_v62  ;;  %v2459_v1 = vpop.f32.mrb[15].mxu0  ;;  %v3140_v61 = vpop.f32.mrb[12].mxu1 }
 0x279   : > { %vm2547_vm4 = vcmp.ge.f32.partialorder %v2457_v5, 0.0  ;;  %v2579_v43 = vmul.f32 0.2, %v2457_v5  ;;  %v2460_v12 = vadd.f32 %v4527_v62, %v2459_v1  ;;  %v2529_v0 = vadd.f32 %v3140_v61, %v4527_v62  ;;  %v2520_v50 = vpop.f32.mrb[13].mxu1 }
 0x27a   : > { %v2613_v56 = vsel %vm2549_vm3, %v2465_v36, %v2581_v51  ;;  %vm2550_vm5 = vcmp.ge.f32.partialorder %v2468_v24, 0.0  ;;  %v2582_v32 = vmul.f32 0.2, %v2468_v24  ;;  %v2521_v39 = vadd.f32 %v4527_v62, %v2520_v50  ;;  %v3141_v3 = vpop.f32.mrb[14].mxu1 }
 0x27b   : > { %v3054_v17 = vpack.c.bf16 %v2613_v56, %v2613_v56  ;;  %v2611_v15 = vsel %vm2547_vm4, %v2457_v5, %v2579_v43  ;;  %vm2548_vm6 = vcmp.ge.f32.partialorder %v2460_v12, 0.0  ;;  %v2580_v26 = vmul.f32 0.2, %v2460_v12  ;;  %v2523_v48 = vpop.f32.mrb[15].mxu1 }
 0x27c   : > { %v3052_v60 = vpack.c.bf16 %v2611_v15, %v2611_v15  ;;  %v2614_v13 = vsel %vm2550_vm5, %v2468_v24, %v2582_v32  ;;  %vm2565_vm7 = vcmp.ge.f32.partialorder %v2529_v0, 0.0  ;;  %v2597_v27 = vmul.f32 0.2, %v2529_v0 }
 0x27d   : > { %2774 = vst.msk [vmem:[%s4537_s8 + $0x38] sm:$0xf] %vm2759_vm10, %v3054_v17  ;;  %v3055_v42 = vpack.c.bf16 %v2614_v13, %v2614_v13  ;;  %v2532_v29 = vadd.f32 %v3141_v3, %v4527_v62  ;;  %vm2563_vm8 = vcmp.ge.f32.partialorder %v2521_v39, 0.0  ;;  %v2595_v21 = vmul.f32 0.2, %v2521_v39 }
 0x27e   : > { %2772 = vst.msk [vmem:[%s4537_s8 + $0x30] sm:$0xf] %vm2759_vm10, %v3052_v60  ;;  %v2612_v18 = vsel %vm2548_vm6, %v2460_v12, %v2580_v26  ;;  %v2524_v44 = vadd.f32 %v4527_v62, %v2523_v48  ;;  %v2629_v25 = vsel %vm2565_vm7, %v2529_v0, %v2597_v27 }
 0x27f   : > { %2775 = vst.msk [vmem:[%s4537_s8 + $0x3c] sm:$0xf] %vm2759_vm10, %v3055_v42  ;;  %vm2566_vm9 = vcmp.ge.f32.partialorder %v2532_v29, 0.0  ;;  %v2598_v34 = vmul.f32 0.2, %v2532_v29  ;;  %v3053_v54 = vpack.c.bf16 %v2612_v18, %v2612_v18  ;;  %v3070_v52 = vpack.c.bf16 %v2629_v25, %v2629_v25 }
 0x280   : > { %v2627_v28 = vsel %vm2563_vm8, %v2521_v39, %v2595_v21  ;;  %vm2564_vm11 = vcmp.ge.f32.partialorder %v2524_v44, 0.0  ;;  %v2596_v10 = vmul.f32 0.2, %v2524_v44 }
 0x281   : > { %v3068_v37 = vpack.c.bf16 %v2627_v28, %v2627_v28  ;;  %v2630_v55 = vsel %vm2566_vm9, %v2532_v29, %v2598_v34  ;;  %2773 = vst.msk [vmem:[%s4537_s8 + $0x34] sm:$0xf] %vm2759_vm10, %v3053_v54  ;;  %2790 = vst.msk [vmem:[%s4537_s8 + $0x78] sm:$0xf] %vm2759_vm10, %v3070_v52 }
 0x282   : > { %v3071_v62 = vpack.c.bf16 %v2630_v55, %v2630_v55  ;;  %v2628_v35 = vsel %vm2564_vm11, %v2524_v44, %v2596_v10 }
 0x283   : > { %2788 = vst.msk [vmem:[%s4537_s8 + $0x70] sm:$0xf] %vm2759_vm10, %v3068_v37  ;;  %v3069_v19 = vpack.c.bf16 %v2628_v35, %v2628_v35 }
 0x284   : > { %2791 = vst.msk [vmem:[%s4537_s8 + $0x7c] sm:$0xf] %vm2759_vm10, %v3071_v62 }
 0x285   : > { %2789 = vst.msk [vmem:[%s4537_s8 + $0x74] sm:$0xf] %vm2759_vm10, %v3069_v19 }
 0x286   : > { %3349 = shalt.err (!%p3346_p1)
}
 0x287   : > { %s3350_s27 = scalar_lea.hbm %s4629_s16, 2048  ;;  %s3354_s22 = scalar_lea.hbm %s4684_s3, 4096 }
 0x288   : > { %p3351_p13 = scmp.ne.s32.totalorder %s4629_s16, %s3350_s27  ;;  %p3355_p4 = scmp.lt.u32.totalorder %s4629_s16, %s4684_s3 }
 0x289   : > { %p3356_p5 = scmp.lt.u32.totalorder %s3354_s22, %s3350_s27  ;;  %p3358_p11 = scmp.lt.u32.totalorder %s3350_s27, %s4629_s16 }
 0x28a   : > { %p3352_p6 = pnand %p3351_p13, %p4720_p0 }
 0x28b   : > { %p3357_p8 = por %p3356_p5, %p3355_p4 }
 0x28c   : > { %p3353_p10 = pneg %p3352_p6 }
 0x28d   : > { %p3359_p2 = por %p3358_p11, %p3357_p8 }
 0x28f   : > { %p3360_p3 = pnand %p3359_p2, %p3353_p10 }
 0x291   : > { %3363 = shalt.err (!%p3360_p3)
}
 0x292   : > { %s3422_s7 = smov 64   ;;  %s3423_s8 = smov 4  }
 0x293   : > { %3166 = dma.vmem_to_hbm [thread:$0]  (%p4720_p0), %s4631_s28, 2048, %s4629_s16, %s2793_s17, %s3422_s7, %s3422_s7, %s3423_s8  }
 0x294 PF: > { %s2821_s26 = sand.u32 1, %s3394_s12   ;;  %p4721_p7 = scmp.ne.s32.totalorder %s4695_s19, 0 }
 0x295   : > { %p4722_p9 = scmp.ge.s32.totalorder %s3406_s15, 2  ;;  %s2822_s29 = scalar_lea.sflag [#allocation5], %s2821_s26 }
 0x297   : > { %p3180_p12 = pnand %p4722_p9, %p4721_p7 }
 0x299   : > { %3389 = dma.done.wait (!%p3180_p12), %s2822_s29, 2048  }
 0x29a   : > { %3391 = vsyncadd (!%p3180_p12), %s2822_s29, 4294965248  ;;  %p17_p1 = scmp.ge.s32.totalorder %s3558_s5, 4   ;;  %s4723_s12 = smov %s3398_s13 }
 0x29b   : > { %s4724_s13 = smov %s3402_s14  ;;  %s4725_s14 = smov %s3574_s10 }
 0x29c   : > { %s4726_s15 = smov %s3558_s5  ;;  %19 = sbr.rel (!%p17_p1) target bundleno = 6 (0x6), region = 85 }
 0x2a3   :  { %2827 = vsyncpa [#allocation4], 1 }
 0x2a4   :  { %2829 = vsyncpa [#allocation4 + $0x1], 1 }
 0x2a5   :  { %2830 = vsyncpa [#allocation7], 1 }
 0x2a6   :  { %2831 = vsyncpa [#allocation5], 1 }
 0x2a7   :  { %2833 = vsyncpa [#allocation5 + $0x1], 1 }

// kernel: _lambda_.4
= control target key start
LH: loop header
LB: loop body
LE: loop exit
PB: predicated region body
PF: predicated region fallthrough
CT: control target
= control target key end

     0   :  { %8 = vsyncpa [#allocation4], 0  ;;  %s1747_s0 = inlined_call_operand.hbm [shape: bf16[2,64,64], index: 0, kind: input, shape index: {}]   ;;  %s1748_s1 = inlined_call_operand.hbm [shape: bf16[256,32], index: 1, kind: input, shape index: {}]   ;;  %s1749_s2 = inlined_call_operand.hbm [shape: f32[1,32], index: 2, kind: input, shape index: {}]   ;;  %s1750_s3 = inlined_call_operand.hbm [shape: bf16[2,64,32], index: 3, kind: output, shape index: {}]  }
   0x1   :  { %10 = vsyncpa [#allocation4 + $0x1], 0 }
   0x2   :  { %11 = vsyncpa [#allocation7], 0 }
   0x3   :  { %12 = vsyncpa [#allocation5], 0 }
   0x4   :  { %14 = vsyncpa [#allocation5 + $0x1], 0  ;;  %s1382_s12 = smov 0   ;;  %s1384_s13 = smov 0  }
   0x5   :  { %s1386_s14 = smov 0   ;;  %s1388_s15 = smov 0  }
   0x6 LB: > { %s1403_s16 = sadd.s32 4294967295, %s1350_s15   ;;  %s980_s17 = sadd.s32 4294967294, %s1350_s15   ;;  %s1350_s15 = sphi %s1388_s15, %s1774_s15   ;;  %s1346_s14 = sphi %s1386_s14, %s1773_s14   ;;  %s1342_s13 = sphi %s1384_s13, %s1772_s13   ;;  %s1338_s12 = sphi %s1382_s12, %s1771_s12  }
   0x7   : > { %p40_p0 = scmp.ne.s32.totalorder %s1342_s13, %s1338_s12  ;;  %p1751_p1 = scmp.eq.s32.totalorder %s1403_s16, 0 }
   0x8   : > { %p112_p3 = scmp.eq.s32.totalorder %s980_s17, 1  ;;  %p981_p5 = scmp.ge.s32.totalorder %s1350_s15, 1 }
   0x9   : > { %p1412_p4 = por %p1751_p1, %p40_p0  ;;  %p119_p7 = scmp.lt.s32.totalorder %s1350_s15, 3 }
   0xa   : > { %p1417_p6 = por %p112_p3, %p40_p0  ;;  %s1352_s21 = smov [#allocation6]  }
   0xb   : > { %s1754_s18 = scalar_select %p1412_p4, 1, 0 }
   0xc   : > { %s1755_s19 = scalar_select %p1417_p6, 1, 0 }
   0xd   : > { %p1422_p8 = pnand %p981_p5, %p119_p7  ;;  %s131_s22 = sshll.u32 %s1352_s21, 4  ;;  %s1426_s22 = int_to_ptr.vmem [resolvable:$true] %s131_s22 }
   0xe   : > { %s1353_s24 = smov [#allocation8]   ;;  %s1194_s28 = scalar_lea.hbm %s1748_s1, 2048 }
   0xf   : > { %p1113_p9 = pneg %p1422_p8  ;;  %s145_s25 = sshll.u32 %s1353_s24, 4  ;;  %s1437_s25 = int_to_ptr.vmem [resolvable:$true] %s145_s25 }
  0x10   : > { %p1195_p12 = scmp.ne.s32.totalorder %s1748_s1, %s1194_s28  ;;  %p1201_p5 = scmp.lt.u32.totalorder %s1194_s28, %s1748_s1 }
  0x11   : > { %p1433_p11 = pnand %p1113_p9, %p1751_p1 }
  0x13   : > { %p1196_p13 = pneg %p1433_p11 }
  0x15   : > { %p1197_p0 = pnand %p1196_p13, %p1195_p12 }
  0x17   : > { %p1198_p3 = pneg %p1197_p0 }
  0x19   : > { %p1203_p7 = pnand %p1201_p5, %p1198_p3 }
  0x1b   : > { %1206 = shalt.err (!%p1203_p7)
}
  0x1c   : > { %s1207_s6 = scalar_lea.vmem %s1426_s22, 2048  ;;  %p1215_p2 = scmp.lt.s32.totalorder %s1426_s22, %s1426_s22 }
  0x1d   : > { %p1208_p9 = scmp.ne.s32.totalorder %s1426_s22, %s1207_s6  ;;  %p1216_p12 = scmp.lt.s32.totalorder %s1207_s6, %s1207_s6 }
  0x1f   : > { %p1210_p10 = pnand %p1208_p9, %p1196_p13  ;;  %p1217_p0 = por %p1216_p12, %p1215_p2 }
  0x21   : > { %p1211_p1 = pneg %p1210_p10 }
  0x23   : > { %p1218_p6 = pnand %p1217_p0, %p1211_p1 }
  0x25   : > { %1221 = shalt.err (!%p1218_p6)
}
  0x26   : > { %s1354_s7 = smov 64   ;;  %s1355_s8 = smov 4  }
  0x27   : > { %1116 = dma.hbm_to_vmem [thread:$0]  (!%p1433_p11), %s1748_s1, 2048, %s1426_s22, [#allocation7], %s1354_s7, %s1354_s7, %s1355_s8  }
  0x28   : > { %s1222_s21 = scalar_lea.hbm %s1749_s2, 16 }
  0x29   : > { %p1223_p1 = scmp.ne.s32.totalorder %s1749_s2, %s1222_s21  ;;  %p1229_p10 = scmp.lt.u32.totalorder %s1222_s21, %s1749_s2 }
  0x2b   : > { %p1225_p2 = pnand %p1223_p1, %p1196_p13 }
  0x2d   : > { %p1226_p6 = pneg %p1225_p2 }
  0x2f   : > { %p1231_p3 = pnand %p1229_p10, %p1226_p6 }
  0x31   : > { %1234 = shalt.err (!%p1231_p3)
}
  0x32   : > { %s1235_s22 = scalar_lea.vmem %s1437_s25, 16  ;;  %s1242_s29 = scalar_lea.vmem %s1437_s25, 32 }
  0x33   : > { %p1236_p5 = scmp.ne.s32.totalorder %s1437_s25, %s1235_s22  ;;  %p1243_p12 = scmp.lt.s32.totalorder %s1437_s25, %s1437_s25 }
  0x34   : > { %p1244_p0 = scmp.lt.s32.totalorder %s1242_s29, %s1235_s22 }
  0x35   : > { %p1238_p7 = pnand %p1236_p5, %p1196_p13 }
  0x36   : > { %p1245_p1 = por %p1244_p0, %p1243_p12 }
  0x37   : > { %p1239_p9 = pneg %p1238_p7 }
  0x39   : > { %p1246_p2 = pnand %p1245_p1, %p1239_p9 }
  0x3b   : > { %1249 = shalt.err (!%p1246_p2)
}
  0x3c   : > { %1119 = dma.hbm_to_vmem [thread:$0]  (!%p1433_p11), %s1749_s2, 16, %s1437_s25, [#allocation7]  }
  0x3d   : > { %s1496_s5 = sadd.s32 1, %s1350_s15   ;;  %s27_s23 = sadd.s32 1, %s1346_s14 }
  0x3e   : > { %s24_s6 = ssub.s32 %s1350_s15, %s1496_s5  ;;  %p34_p13 = scmp.ne.s32.totalorder %s1346_s14, %s1342_s13 }
  0x3f   : > { %p25_p6 = scmp.eq.s32.totalorder %s24_s6, 0  ;;  %p35_p10 = scmp.eq.s32.totalorder %s1350_s15, 0 }
  0x40   : > { %p1758_p3 = scmp.eq.s32.totalorder %s1403_s16, 1  ;;  %p1130_p7 = scmp.lt.s32.totalorder %s1350_s15, 2 }
  0x41   : > { %s1512_s10 = scalar_select %p25_p6, %s1346_s14, %s27_s23  }
  0x42   : > { %p1506_p5 = por %p1758_p3, %p34_p13  ;;  %p36_p9 = por %p35_p10, %p34_p13 }
  0x43   : > { %s156_s11 = sand.u32 1, %s1346_s14   ;;  %s1035_s25 = sshll.u32 %s1350_s15, 9 }
  0x44   : > { %s1759_s9 = scalar_select %p1506_p5, 1, 0 }
  0x45   : > { %s985_s17 = sshll.u32 %s156_s11, 5  ;;  %s1519_s26 = scalar_lea.hbm %s1747_s0, %s1035_s25 }
  0x46   : > { %s160_s27 = scalar_lea.vmem [#allocation3], %s985_s17  ;;  %p1523_p11 = pnand %p1130_p7, %p36_p9 }
  0x47   : > { %s167_s28 = sshll.u32 %s160_s27, 4  ;;  %s1527_s29 = scalar_lea.sflag [#allocation4], %s156_s11  ;;  %s1521_s28 = int_to_ptr.vmem [resolvable:$true] %s167_s28 }
  0x48   : > { %s1250_s30 = scalar_lea.hbm %s1519_s26, 512  ;;  %p1252_p0 = pneg %p1523_p11 }
  0x49   : > { %p1251_p12 = scmp.ne.s32.totalorder %s1519_s26, %s1250_s30  ;;  %s1255_s6 = scalar_lea.hbm %s1747_s0, 1024 }
  0x4a   : > { %p1256_p13 = scmp.lt.u32.totalorder %s1519_s26, %s1747_s0  ;;  %p1257_p6 = scmp.lt.u32.totalorder %s1255_s6, %s1250_s30 }
  0x4b   : > { %p1253_p1 = pnand %p1252_p0, %p1251_p12  ;;  %p1259_p3 = scmp.lt.u32.totalorder %s1250_s30, %s1519_s26 }
  0x4c   : > { %p1258_p10 = por %p1257_p6, %p1256_p13 }
  0x4d   : > { %p1254_p2 = pneg %p1253_p1 }
  0x4e   : > { %p1260_p7 = por %p1259_p3, %p1258_p10 }
  0x50   : > { %p1261_p9 = pnand %p1260_p7, %p1254_p2 }
  0x52   : > { %1264 = shalt.err (!%p1261_p9)
}
  0x53   : > { %s1265_s11 = scalar_lea.vmem %s1521_s28, 512  ;;  %s1356_s21 = smov [#allocation3]  }
  0x54   : > { %p1266_p12 = scmp.ne.s32.totalorder %s1521_s28, %s1265_s11  ;;  %s1270_s24 = sshll.u32 %s1356_s21, 4  ;;  %s1271_s24 = int_to_ptr.vmem [resolvable:$false] %s1270_s24 }
  0x55   : > { %s1272_s27 = scalar_lea.vmem %s1271_s24, 1024  ;;  %p1273_p4 = scmp.lt.s32.totalorder %s1521_s28, %s1271_s24 }
  0x56   : > { %p1268_p1 = pnand %p1266_p12, %p1252_p0  ;;  %p1274_p13 = scmp.lt.s32.totalorder %s1272_s27, %s1265_s11 }
  0x58   : > { %p1269_p5 = pneg %p1268_p1  ;;  %p1275_p6 = por %p1274_p13, %p1273_p4 }
  0x5a   : > { %p1276_p10 = pnand %p1275_p6, %p1269_p5 }
  0x5c   : > { %1279 = shalt.err (!%p1276_p10)
}
  0x5d   : > { %1123 = dma.hbm_to_vmem [thread:$0]  (!%p1523_p11), %s1519_s26, 512, %s1521_s28, %s1527_s29, %s1354_s7, %s1354_s7, %s1355_s8  }
  0x5e   : > { %179 = sbr.rel (%p1422_p8) target bundleno = 506 (0x1fa), region = 32  ;;  %s1561_s30 = sand.u32 (!%p1422_p8), 1, %s1342_s13  }
  0x5f   : > { %s989_s4 = sshll.u32 (!%p1422_p8), %s1561_s30, 5  ;;  %s182_s23 = scalar_lea.sflag (!%p1422_p8), [#allocation4], %s1561_s30 }
  0x60   : > { %s1567_s22 = scalar_lea.vmem (!%p1422_p8), [#allocation3], %s989_s4  ;;  %p1761_p4 = scmp.ne.s32.totalorder (!%p1422_p8), %s1754_s18, 0 }
  0x65   : > { %1325 = dma.done.wait (%p1761_p4), %s182_s23, 512  }
  0x66   : > { %1327 = vsyncadd (%p1761_p4), %s182_s23, 4294966784  ;;  %p1762_p5 = scmp.eq.s32.totalorder %s1403_s16, 0 }
  0x68   : > { %1329 = dma.done.wait (%p1762_p5), [#allocation7], 2064   ;;  %p1763_p8 = pmov %p1762_p5 }
  0x69   : > { %vm217_vm0 = vcmask 523264   ;;  %v255_v0 = vlaneseq  ;;  %v1357_v1 = vmov 0   ;;  %v1174_v14 = vld [vmem:[%s1567_s22] sm:$0xff]   ;;  %v1358_v15 = vmov 0.0   ;;  %v1175_v17 = vld [vmem:[%s1567_s22 + $0x8] sm:$0xff]   ;;  %v1176_v21 = vld [vmem:[%s1567_s22 + $0x10] sm:$0xff]  }
  0x6a   : > { %1331 = vsyncadd (%p1763_p8), [#allocation7], 4294965232  ;;  %218 = vst.msk [vmem:[#allocation2] sm:$0xff] %vm217_vm0, %v1357_v1  ;;  %vm438_vm5 = vsmask.f32 3328  ;;  %v1177_v40 = vld [vmem:[%s1567_s22 + $0x18] sm:$0xff]  }
  0x6b   : > { %v256_v2 = vshrl.u32 %v255_v0, 7  ;;  %251 = vst.msk [vmem:[#allocation2 + $0x8] sm:$0xff] %vm217_vm0, %v1174_v14  ;;  %vm393_vm6 = vsmask.f32 7424  ;;  %252 = vst.msk [vmem:[#allocation2 + $0x10] sm:$0xff] %vm217_vm0, %v1175_v17  ;;  %v1178_v41 = vld [vmem:[#allocation6 + $0x40] sm:$0xff]  }
  0x6c   : > { %253 = vst.msk [vmem:[#allocation2 + $0x18] sm:$0xff] %vm217_vm0, %v1176_v21  ;;  %vm524_vm11 = vsmask.f32 4352  ;;  %254 = vst.msk [vmem:[#allocation2 + $0x20] sm:$0xff] %vm217_vm0, %v1177_v40  ;;  %1045 = vmatprep.subr.bf16.mxu0 %v1178_v41  ;;  %v1179_v51 = vld [vmem:[#allocation6] sm:$0xff]   ;;  %1085 = vmatprep.subr.bf16.mxu1 %v1178_v41  ;;  %v1180_v63 = vld [vmem:[#allocation6 + $0x48] sm:$0xff]  }
  0x6d   : > { %v257_v3 = vadd.s32 8, %v256_v2  ;;  %v258_v4 = vadd.s32 16, %v256_v2  ;;  %v259_v5 = vadd.s32 24, %v256_v2  ;;  %v268_v6 = vand.u32 7, %v256_v2  ;;  %1046 = vmatpush3.bf16.msra.mxu0 %v1179_v51  ;;  %1093 = vmatpush3.bf16.msra.mxu1 %v1179_v51  ;;  %v1181_v0 = vld [vmem:[#allocation6 + $0x8] sm:$0xff]   ;;  %s1359_s18 = smov 64  }
  0x6e   : > { %v260_v7 = vadd.s32 32, %v256_v2  ;;  %v261_v8 = vadd.s32 40, %v256_v2  ;;  %v262_v9 = vadd.s32 48, %v256_v2  ;;  %v263_v10 = vadd.s32 56, %v256_v2  ;;  %1047 = vmatprep.subr.bf16.mxu0 %v1180_v63  ;;  %1086 = vmatprep.subr.bf16.mxu1 %v1180_v63  ;;  %v1186_v41 = vld [vmem:[#allocation6 + $0x60] sm:$0xff]   ;;  %s1676_s20 = scalar_lea.vmem [#allocation9], %s989_s4 }
  0x6f   : > { %v275_v11 = vand.u32 7, %v257_v3  ;;  %v282_v12 = vand.u32 7, %v258_v4  ;;  %v289_v13 = vand.u32 7, %v259_v5  ;;  %vm360_vm1 = vcmp.gt.s32.totalorder %v268_v6, 0  ;;  %v1182_v5 = vld [vmem:[#allocation6 + $0x50] sm:$0xff]   ;;  %s1044_s7 = sshll.u32 %s1403_s16, 9 }
  0x70   : > { %v997_v16 = vsel %vm360_vm1, 1.0, %v1358_v15  ;;  %v296_v24 = vand.u32 7, %v260_v7  ;;  %v303_v25 = vand.u32 7, %v261_v8  ;;  %v310_v26 = vand.u32 7, %v262_v9  ;;  %s888_s8 = sshll.u32 %s1676_s20, 4  ;;  %s1693_s29 = scalar_lea.hbm %s1750_s3, %s1044_s7  ;;  %s1697_s8 = int_to_ptr.vmem [resolvable:$true] %s888_s8 }
  0x71   : > { %vm361_vm2 = vcmp.gt.s32.totalorder %v275_v11, 0  ;;  %vm362_vm3 = vcmp.gt.s32.totalorder %v282_v12, 0  ;;  %vm363_vm4 = vcmp.gt.s32.totalorder %v289_v13, 0  ;;  %v317_v27 = vand.u32 7, %v263_v10  ;;  %v392_v32 = vld [vmem:[#allocation2] sm:$0x80]  ;;  %1048 = vmatpush3.bf16.msra.mxu0 %v1181_v0  ;;  %1094 = vmatpush3.bf16.msra.mxu1 %v1181_v0 }
  0x72   : > { %v998_v18 = vsel %vm361_vm2, 1.0, %v1358_v15  ;;  %v999_v19 = vsel %vm362_vm3, 1.0, %v1358_v15  ;;  %v1000_v20 = vsel %vm363_vm4, 1.0, %v1358_v15  ;;  %v437_v33 = vld [vmem:[#allocation2] sm:$0xf8]  ;;  %vm364_vm7 = vcmp.gt.s32.totalorder %v296_v24, 0  ;;  %1049 = vmatprep.subr.bf16.mxu0 %v1182_v5  ;;  %1087 = vmatprep.subr.bf16.mxu1 %v1182_v5 }
  0x73   : > { %v384_v22 = vpack.c.bf16 %v998_v18, %v997_v16  ;;  %v385_v23 = vpack.c.bf16 %v1000_v20, %v999_v19  ;;  %vm365_vm8 = vcmp.gt.s32.totalorder %v303_v25, 0  ;;  %vm1584_vm9 = vcmp.gt.s32.totalorder %v310_v26, 0  ;;  %v1593_v46 = vld [vmem:[#allocation2 + $0x8] sm:$0xff]  ;;  %v1613_v20 = vld [vmem:[#allocation2 + $0x10] sm:$0xff]  ;;  %v1619_v25 = vld [vmem:[#allocation2 + $0x18] sm:$0xff]  ;;  %s875_s16 = scalar_lea.sflag [#allocation5], %s1561_s30 }
  0x74   : > { %vm1588_vm10 = vcmp.gt.s32.totalorder %v317_v27, 0  ;;  %v1001_v44 = vsel %vm364_vm7, 1.0, %v1358_v15  ;;  %v1002_v45 = vsel %vm365_vm8, 1.0, %v1358_v15  ;;  %v1003_v49 = vsel %vm1584_vm9, 1.0, %v1358_v15  ;;  %v1637_v51 = vld [vmem:[#allocation2 + $0x20] sm:$0xff]  ;;  %s1280_s6 = scalar_lea.vmem %s1697_s8, 512 }
  0x75   : > { %v395_v28 = vshll.u32 %v384_v22, 16  ;;  %v398_v29 = vshrl.u32 %v384_v22, 16  ;;  %v402_v30 = vshll.u32 %v385_v23, 16  ;;  %v406_v31 = vshrl.u32 %v385_v23, 16  ;;  %v1615_v23 = vld [vmem:[#allocation2 + $0x20] sm:$0xf]  ;;  %p1281_p11 = scmp.ne.s32.totalorder %s1697_s8, %s1280_s6 }
  0x76   : > { %v1004_v50 = vsel %vm1588_vm10, 1.0, %v1358_v15  ;;  %v386_v54 = vpack.c.bf16 %v1002_v45, %v1001_v44  ;;  %vm464_vm12 = vsmask.f32 256  ;;  %vm514_vm13 = vcmask 1043456   ;;  %p1768_p0 = scmp.ne.s32.totalorder %s1759_s9, 0  ;;  %s1360_s17 = smov [#allocation9]  }
  0x77   : > { %v439_v36 = vrot.slane %v398_v29, 4  ;;  %v440_v37 = vrot.slane %v395_v28, 5  ;;  %v442_v38 = vrot.slane %v406_v31, 4  ;;  %v443_v39 = vrot.slane %v402_v30, 5  ;;  %s1284_s25 = sshll.u32 %s1360_s17, 4  ;;  %s1285_s25 = int_to_ptr.vmem [resolvable:$false] %s1284_s25 }
  0x78   : > { %v397_v42 = vrot.slane %v395_v28, 1  ;;  %v404_v43 = vrot.slane %v402_v30, 1  ;;  %v1602_v55 = vpack.c.bf16 %v1004_v50, %v1003_v49  ;;  %v410_v62 = vshll.u32 %v386_v54, 16  ;;  %p1282_p2 = pnand %p1281_p11, %p1768_p0  ;;  %s1286_s11 = scalar_lea.vmem %s1285_s25, 1024 }
  0x79   : > { %v441_v47 = vor.u32 %v440_v37, %v439_v36  ;;  %v1595_v48 = vor.u32 %v443_v39, %v442_v38  ;;  %v414_v4 = vshrl.u32 %v386_v54, 16  ;;  %v1185_v37 = vld [vmem:[#allocation6 + $0x18] sm:$0xff]   ;;  %vm865_vm15 = vcmask 257024   ;;  %p1287_p7 = scmp.lt.s32.totalorder %s1697_s8, %s1285_s25  ;;  %p1288_p9 = scmp.lt.s32.totalorder %s1286_s11, %s1280_s6 }
  0x7a   : > { %v400_v52 = vor.u32 %v398_v29, %v397_v42  ;;  %v430_v53 = vmul.bf16 %v397_v42, %v392_v32  ;;  %v408_v58 = vor.u32 %v406_v31, %v404_v43  ;;  %v418_v9 = vshll.u32 %v1602_v55, 16  ;;  %v1183_v29 = vld [vmem:[#allocation6 + $0x10] sm:$0xff]   ;;  %v1184_v32 = vld [vmem:[#allocation6 + $0x58] sm:$0xff]   ;;  %p1283_p3 = pneg %p1282_p2 }
  0x7b   : > { %v445_v56 = vsel %vm438_vm5, %v441_v47, %v1595_v48  ;;  %v459_v57 = vmul.bf16 %v441_v47, %v437_v33  ;;  %v422_v16 = vshrl.u32 %v1602_v55, 16  ;;  %v446_v17 = vrot.slane %v414_v4, 4  ;;  %1050 = vmatpush3.bf16.msra.mxu0 %v1183_v29  ;;  %1095 = vmatpush3.bf16.msra.mxu1 %v1183_v29  ;;  %v1192_v29 = vld [vmem:[#allocation6 + $0x78] sm:$0xff]   ;;  %p1289_p12 = por %p1288_p9, %p1287_p7 }
  0x7c   : > { %v460_v59 = vmul.bf16 %v445_v56, %v1593_v46  ;;  %v405_v60 = vsel %vm393_vm6, %v400_v52, %v404_v43  ;;  %v466_v61 = vshrl.u32 %v430_v53, 16  ;;  %v447_v21 = vrot.slane %v410_v62, 5  ;;  %1051 = vmatprep.subr.bf16.mxu0 %v1184_v32  ;;  %1088 = vmatprep.subr.bf16.mxu1 %v1184_v32  ;;  %v1187_v56 = vld [vmem:[#allocation6 + $0x20] sm:$0xff]   ;;  %v435_v32 = vld [vmem:[#allocation2] sm:$0xf0] }
  0x7d   : > { %v526_v1 = vshrl.u32 %v459_v57, 16  ;;  %v529_v2 = vshll.u32 %v459_v57, 16  ;;  %v431_v3 = vmul.bf16 %v405_v60, %v1593_v46  ;;  %v451_v22 = vrot.slane %v418_v9, 5  ;;  %v1188_v57 = vld [vmem:[#allocation6 + $0x68] sm:$0xff]   ;;  %p1290_p1 = pnand %p1289_p12, %p1283_p3 }
  0x7e   : > { %v534_v6 = vshrl.u32 %v460_v59, 16  ;;  %v537_v7 = vshll.u32 %v460_v59, 16  ;;  %v468_v8 = vrot.slane %v466_v61, 7  ;;  %v450_v26 = vrot.slane %v422_v16, 4 }
  0x7f   : > { %v528_v10 = vrot.slane %v526_v1, 3  ;;  %v531_v11 = vrot.slane %v529_v2, 4  ;;  %v470_v12 = vshrl.u32 %v431_v3, 16  ;;  %v473_v13 = vshll.u32 %v431_v3, 16  ;;  %1052 = vmatpush3.bf16.msra.mxu0 %v1185_v37  ;;  %1096 = vmatpush3.bf16.msra.mxu1 %v1185_v37 }
  0x80   : > { %v536_v14 = vrot.slane %v534_v6, 3  ;;  %v539_v15 = vrot.slane %v537_v7, 4  ;;  %v412_v27 = vrot.slane %v410_v62, 1  ;;  %v420_v28 = vrot.slane %v418_v9, 1  ;;  %1053 = vmatprep.subr.bf16.mxu0 %v1186_v41  ;;  %1089 = vmatprep.subr.bf16.mxu1 %v1186_v41 }
  0x81   : > { %v532_v18 = vor.u32 %v531_v11, %v528_v10  ;;  %v1611_v19 = vrot.slane %v470_v12, 7  ;;  %v448_v31 = vor.u32 %v447_v21, %v446_v17  ;;  %v452_v34 = vor.u32 %v451_v22, %v450_v26  ;;  %v1189_v12 = vld [vmem:[#allocation6 + $0x28] sm:$0xff]  }
  0x82   : > { %v1617_v24 = vor.u32 %v539_v15, %v536_v14  ;;  %v413_v35 = vsel %vm393_vm6, %v408_v58, %v412_v27  ;;  %v416_v36 = vor.u32 %v414_v4, %v412_v27  ;;  %v1190_v15 = vld [vmem:[#allocation6 + $0x70] sm:$0xff]  }
  0x83   : > { %v475_v30 = vor.u32 %v473_v13, %v1611_v19  ;;  %v449_v39 = vsel %vm438_vm5, %v1595_v48, %v448_v31  ;;  %v432_v40 = vmul.bf16 %v413_v35, %v1613_v20  ;;  %v453_v42 = vsel %vm438_vm5, %v448_v31, %v452_v34  ;;  %1054 = vmatpush3.bf16.msra.mxu0 %v1187_v56  ;;  %v1191_v27 = vld [vmem:[#allocation6 + $0x30] sm:$0xff]  }
  0x84   : > { %v541_v33 = vsel %vm524_vm11, %v532_v18, %v1617_v24  ;;  %v461_v43 = vmul.bf16 %v449_v39, %v1613_v20  ;;  %v421_v44 = vsel %vm393_vm6, %v416_v36, %v420_v28  ;;  %v463_v45 = vmul.bf16 %v452_v34, %v1615_v23  ;;  %1055 = vmatprep.subr.bf16.mxu0 %v1188_v57 }
  0x85   : > { %569 = vrot.lane.b32.xlu0 %v541_v33, %s1359_s18  ;;  %v476_v38 = vsel %vm464_vm12, %v468_v8, %v475_v30  ;;  %v462_v47 = vmul.bf16 %v453_v42, %v1619_v25  ;;  %v433_v49 = vmul.bf16 %v421_v44, %v1619_v25  ;;  %v478_v50 = vshrl.u32 %v432_v40, 16  ;;  %1097 = vmatpush3.bf16.msra.mxu1 %v1187_v56 }
  0x86   : > { %501 = vrot.lane.b32.xlu1 %v476_v38, %s1359_s18  ;;  %v424_v48 = vor.u32 %v422_v16, %v420_v28  ;;  %v543_v52 = vshrl.u32 %v461_v43, 16  ;;  %v546_v53 = vshll.u32 %v461_v43, 16  ;;  %v561_v54 = vshrl.u32 %v463_v45, 16  ;;  %1090 = vmatprep.subr.bf16.mxu1 %v1188_v57  ;;  %v1005_v57 = vld [vmem:[#allocation8] ss:$0 sm:$0xff] }
  0x87   : > { %v564_v55 = vshll.u32 %v463_v45, 16  ;;  %v552_v58 = vshrl.u32 %v462_v47, 16  ;;  %v555_v59 = vshll.u32 %v462_v47, 16  ;;  %v480_v60 = vrot.slane %v478_v50, 7  ;;  %1056 = vmatpush3.bf16.msra.mxu0 %v1189_v12 }
  0x88   : > { %v486_v61 = vshrl.u32 %v433_v49, 16  ;;  %v545_v62 = vrot.slane %v543_v52, 3  ;;  %v548_v63 = vrot.slane %v546_v53, 4  ;;  %v489_v0 = vshll.u32 %v433_v49, 16  ;;  %1057 = vmatprep.subr.bf16.mxu0 %v1190_v15 }
  0x89   : > { %v563_v1 = vrot.slane %v561_v54, 3  ;;  %v554_v2 = vrot.slane %v552_v58, 3  ;;  %v557_v3 = vrot.slane %v555_v59, 4  ;;  %v566_v5 = vrot.slane %v564_v55, 4  ;;  %1098 = vmatpush3.bf16.msra.mxu1 %v1189_v12 }
  0x8a   : > { %v488_v4 = vrot.slane %v486_v61, 7  ;;  %v549_v6 = vor.u32 %v548_v63, %v545_v62  ;;  %v434_v7 = vmul.bf16 %v424_v48, %v1637_v51  ;;  %v481_v11 = vshll.u32 %v432_v40, 16  ;;  %1091 = vmatprep.subr.bf16.mxu1 %v1190_v15 }
  0x8b   : > { %v558_v8 = vor.u32 %v557_v3, %v554_v2  ;;  %v567_v10 = vor.u32 %v566_v5, %v563_v1  ;;  %1058 = vmatpush3.bf16.msra.mxu0 %v1191_v27  ;;  %v515_v33 = vrot.slane %v435_v32, 4  ;;  %v516_v34 = vrot.slane %v1593_v46, 4 }
  0x8c   : > { %v491_v9 = vor.u32 %v489_v0, %v488_v4  ;;  %v494_v13 = vshrl.u32 %v434_v7, 16  ;;  %v497_v14 = vshll.u32 %v434_v7, 16  ;;  %v550_v21 = vsel %vm524_vm11, %v1617_v24, %v549_v6  ;;  %v1193_v24 = vld [vmem:[#allocation6 + $0x38] sm:$0xff]   ;;  %1059 = vmatprep.subr.bf16.mxu0 %v1192_v29 }
  0x8d   : > { %v559_v16 = vsel %vm524_vm11, %v549_v6, %v558_v8  ;;  %v568_v22 = vsel %vm524_vm11, %v558_v8, %v567_v10  ;;  %v483_v26 = vor.u32 %v481_v11, %v480_v60  ;;  %1099 = vmatpush3.bf16.msra.mxu1 %v1191_v27  ;;  %v518_v39 = vrot.slane %v1613_v20, 4 }
  0x8e   : > { %v492_v17 = vsel %vm464_vm12, %v480_v60, %v491_v9  ;;  %573 = vrot.lane.b32.xlu0 %v559_v16, %s1359_s18  ;;  %v496_v18 = vrot.slane %v494_v13, 7  ;;  %1092 = vmatprep.subr.bf16.mxu1 %v1192_v29  ;;  %v520_v40 = vrot.slane %v1619_v25, 4  ;;  %v522_v42 = vrot.slane %v1615_v23, 4 }
  0x8f   : > { %505 = vrot.lane.b32.xlu1 %v492_v17, %s1359_s18  ;;  %v484_v30 = vsel %vm464_vm12, %v1611_v19, %v483_v26  ;;  %1060 = vmatpush3.bf16.msra.mxu0 %v1193_v24  ;;  %v517_v19 = vsel %vm514_vm13, %v515_v33, %v516_v34  ;;  %v519_v49 = vsel %vm514_vm13, %v516_v34, %v518_v39 }
  0x90   : > { %v499_v28 = vor.u32 %v497_v14, %v496_v18  ;;  %v521_v41 = vsel %vm514_vm13, %v518_v39, %v520_v40 }
  0x91   : > { %1100 = vmatpush3.bf16.msra.mxu1 %v1193_v24 }
  0x92   : > { %571 = vrot.lane.b32.xlu0 %v550_v21, %s1359_s18  ;;  %v500_v31 = vsel %vm464_vm12, %v488_v4, %v499_v28 }
  0x93   : > { %575 = vrot.lane.b32.xlu1 %v568_v22, %s1359_s18 }
  0x96   : > { %503 = vrot.lane.b32.xlu0 %v484_v30, %s1359_s18 }
  0x97   : > { %507 = vrot.lane.b32.xlu1 %v500_v31, %s1359_s18 }
  0xf7   : > { %v570_v35 = vpop.permute.xlu0 %569 }
  0xf8   : > { %v502_v36 = vpop.permute.xlu1 %501  ;;  %v595_v37 = vsel %vm217_vm0, %v517_v19, %v570_v35 }
  0xf9   : > { %776 = vmatprep.mubr.bf16.mxu0 %v595_v37  ;;  %v579_v38 = vsel %vm217_vm0, %v1593_v46, %v502_v36  ;;  %v523_v46 = vsel %vm514_vm13, %v520_v40, %v522_v42 }
  0xfa   : > { %777 = vmatmul.mubr.bf16.vlgmr.msra.gmra.mrb[0].mxu0 %v579_v38 }
 0x100   : > { %v574_v43 = vpop.permute.xlu0 %573 }
 0x101   : > { %v506_v44 = vpop.permute.xlu1 %505  ;;  %v603_v45 = vsel %vm217_vm0, %v521_v41, %v574_v43 }
 0x102   : > { %v587_v47 = vsel %vm217_vm0, %v1619_v25, %v506_v44  ;;  %792 = vmatprep.mubr.bf16.mxu1 %v603_v45 }
 0x103   : > { %793 = vmatmul.mubr.bf16.vlgmr.msra.gmra.mrb[0].mxu1 %v587_v47 }
 0x104   : > { %v572_v50 = vpop.permute.xlu0 %571 }
 0x105   : > { %v576_v48 = vpop.permute.xlu1 %575  ;;  %v599_v52 = vsel %vm217_vm0, %v519_v49, %v572_v50 }
 0x106   : > { %v607_v53 = vsel %vm217_vm0, %v523_v46, %v576_v48  ;;  %784 = vmatprep.mubr.bf16.mxu0 %v599_v52 }
 0x107   : > { %800 = vmatprep.mubr.bf16.mxu1 %v607_v53 }
 0x108   : > { %v504_v23 = vpop.permute.xlu0 %503 }
 0x109   : > { %v508_v54 = vpop.permute.xlu1 %507  ;;  %v583_v55 = vsel %vm217_vm0, %v1613_v20, %v504_v23 }
 0x10a   : > { %v591_v25 = vsel %vm217_vm0, %v1637_v51, %v508_v54  ;;  %785 = vmatmul.mubr.bf16.gmra.mrb[4].mxu0 %v583_v55 }
 0x10b   : > { %801 = vmatmul.mubr.bf16.gmra.mrb[4].mxu1 %v591_v25 }
 0x1cd   : > { %v1061_v56 = vpop.f32.mrb[0].mxu0 }
 0x1ce   : > { %v1062_v58 = vpop.f32.mrb[1].mxu0 }
 0x1cf   : > { %v1063_v59 = vadd.f32 %v1062_v58, %v1061_v56  ;;  %v1064_v60 = vpop.f32.mrb[2].mxu0 }
 0x1d0   : > { %v1065_v61 = vpop.f32.mrb[3].mxu0 }
 0x1d1   : > { %v779_v62 = vadd.f32 %v1063_v59, %v1005_v57  ;;  %v1066_v63 = vadd.f32 %v1065_v61, %v1064_v60 }
 0x1d3   : > { %vm809_vm14 = vcmp.ge.f32.partialorder %v779_v62, 0.0  ;;  %v817_v0 = vmul.f32 0.2, %v779_v62  ;;  %v782_v1 = vadd.f32 %v1066_v63, %v1005_v57 }
 0x1d5   : > { %v825_v2 = vsel %vm809_vm14, %v779_v62, %v817_v0  ;;  %vm810_vm1 = vcmp.ge.f32.partialorder %v782_v1, 0.0  ;;  %v818_v20 = vmul.f32 0.2, %v782_v1 }
 0x1d6   : > { %v1036_v3 = vpack.c.bf16 %v825_v2, %v825_v2  ;;  %v1073_v5 = vpop.f32.mrb[0].mxu1 }
 0x1d7   : > { %v826_v51 = vsel %vm810_vm1, %v782_v1, %v818_v20  ;;  %v1074_v6 = vpop.f32.mrb[1].mxu1 }
 0x1d8   : > { %866 = vst.msk [vmem:[%s1676_s20] sm:$0xf] %vm865_vm15, %v1036_v3  ;;  %v1037_v4 = vpack.c.bf16 %v826_v51, %v826_v51  ;;  %v1075_v7 = vadd.f32 %v1074_v6, %v1073_v5  ;;  %v1076_v8 = vpop.f32.mrb[2].mxu1 }
 0x1d9   : > { %v1077_v9 = vpop.f32.mrb[3].mxu1 }
 0x1da   : > { %867 = vst.msk [vmem:[%s1676_s20 + $0x4] sm:$0xf] %vm865_vm15, %v1037_v4  ;;  %v795_v10 = vadd.f32 %v1075_v7, %v1005_v57  ;;  %v1078_v11 = vadd.f32 %v1077_v9, %v1076_v8 }
 0x1dc   : > { %vm813_vm0 = vcmp.ge.f32.partialorder %v795_v10, 0.0  ;;  %v821_v12 = vmul.f32 0.2, %v795_v10  ;;  %v798_v13 = vadd.f32 %v1078_v11, %v1005_v57 }
 0x1dd   : > { %v1067_v14 = vpop.f32.mrb[4].mxu0 }
 0x1de   : > { %v829_v15 = vsel %vm813_vm0, %v795_v10, %v821_v12  ;;  %vm814_vm2 = vcmp.ge.f32.partialorder %v798_v13, 0.0  ;;  %v822_v16 = vmul.f32 0.2, %v798_v13  ;;  %v1068_v17 = vpop.f32.mrb[5].mxu0  ;;  %v1079_v18 = vpop.f32.mrb[4].mxu1 }
 0x1df   : > { %v1040_v21 = vpack.c.bf16 %v829_v15, %v829_v15  ;;  %v1069_v22 = vadd.f32 %v1068_v17, %v1067_v14  ;;  %v1070_v26 = vpop.f32.mrb[6].mxu0  ;;  %v1080_v27 = vpop.f32.mrb[5].mxu1 }
 0x1e0   : > { %v830_v28 = vsel %vm814_vm2, %v798_v13, %v822_v16  ;;  %v1081_v29 = vadd.f32 %v1080_v27, %v1079_v18  ;;  %v1071_v30 = vpop.f32.mrb[7].mxu0  ;;  %v1082_v31 = vpop.f32.mrb[6].mxu1 }
 0x1e1   : > { %870 = vst.msk [vmem:[%s1676_s20 + $0x10] sm:$0xf] %vm865_vm15, %v1040_v21  ;;  %v1041_v24 = vpack.c.bf16 %v830_v28, %v830_v28  ;;  %v787_v32 = vadd.f32 %v1069_v22, %v1005_v57  ;;  %v1072_v33 = vadd.f32 %v1071_v30, %v1070_v26  ;;  %v1083_v34 = vpop.f32.mrb[7].mxu1 }
 0x1e2   : > { %v803_v19 = vadd.f32 %v1081_v29, %v1005_v57  ;;  %v1084_v35 = vadd.f32 %v1083_v34, %v1082_v31 }
 0x1e3   : > { %871 = vst.msk [vmem:[%s1676_s20 + $0x14] sm:$0xf] %vm865_vm15, %v1041_v24  ;;  %vm811_vm3 = vcmp.ge.f32.partialorder %v787_v32, 0.0  ;;  %v819_v36 = vmul.f32 0.2, %v787_v32  ;;  %v790_v37 = vadd.f32 %v1072_v33, %v1005_v57 }
 0x1e4   : > { %vm815_vm4 = vcmp.ge.f32.partialorder %v803_v19, 0.0  ;;  %v823_v38 = vmul.f32 0.2, %v803_v19  ;;  %v806_v39 = vadd.f32 %v1084_v35, %v1005_v57 }
 0x1e5   : > { %v827_v40 = vsel %vm811_vm3, %v787_v32, %v819_v36  ;;  %vm812_vm5 = vcmp.ge.f32.partialorder %v790_v37, 0.0  ;;  %v820_v41 = vmul.f32 0.2, %v790_v37 }
 0x1e6   : > { %v1038_v42 = vpack.c.bf16 %v827_v40, %v827_v40  ;;  %v831_v43 = vsel %vm815_vm4, %v803_v19, %v823_v38  ;;  %vm816_vm6 = vcmp.ge.f32.partialorder %v806_v39, 0.0  ;;  %v824_v44 = vmul.f32 0.2, %v806_v39 }
 0x1e7   : > { %v1042_v45 = vpack.c.bf16 %v831_v43, %v831_v43  ;;  %v828_v47 = vsel %vm812_vm5, %v790_v37, %v820_v41 }
 0x1e8   : > { %868 = vst.msk [vmem:[%s1676_s20 + $0x8] sm:$0xf] %vm865_vm15, %v1038_v42  ;;  %v1039_v49 = vpack.c.bf16 %v828_v47, %v828_v47  ;;  %v832_v46 = vsel %vm816_vm6, %v806_v39, %v824_v44 }
 0x1e9   : > { %872 = vst.msk [vmem:[%s1676_s20 + $0x18] sm:$0xf] %vm865_vm15, %v1042_v45  ;;  %v1043_v50 = vpack.c.bf16 %v832_v46, %v832_v46 }
 0x1ea   : > { %869 = vst.msk [vmem:[%s1676_s20 + $0xc] sm:$0xf] %vm865_vm15, %v1039_v49 }
 0x1eb   : > { %873 = vst.msk [vmem:[%s1676_s20 + $0x1c] sm:$0xf] %vm865_vm15, %v1043_v50 }
 0x1ec   : > { %1293 = shalt.err (!%p1290_p1)
}
 0x1ed   : > { %s1294_s21 = scalar_lea.hbm %s1693_s29, 512  ;;  %s1298_s4 = scalar_lea.hbm %s1750_s3, 1024 }
 0x1ee   : > { %p1295_p13 = scmp.ne.s32.totalorder %s1693_s29, %s1294_s21  ;;  %p1299_p4 = scmp.lt.u32.totalorder %s1693_s29, %s1750_s3 }
 0x1ef   : > { %p1300_p5 = scmp.lt.u32.totalorder %s1298_s4, %s1294_s21  ;;  %p1302_p11 = scmp.lt.u32.totalorder %s1294_s21, %s1693_s29 }
 0x1f0   : > { %p1296_p6 = pnand %p1295_p13, %p1768_p0 }
 0x1f1   : > { %p1301_p8 = por %p1300_p5, %p1299_p4 }
 0x1f2   : > { %p1297_p10 = pneg %p1296_p6 }
 0x1f3   : > { %p1303_p2 = por %p1302_p11, %p1301_p8 }
 0x1f5   : > { %p1304_p3 = pnand %p1303_p2, %p1297_p10 }
 0x1f7   : > { %1307 = shalt.err (!%p1304_p3)
}
 0x1f8   : > { %s1361_s20 = smov 4  }
 0x1f9   : > { %1111 = dma.vmem_to_hbm [thread:$0]  (%p1768_p0), %s1697_s8, 512, %s1693_s29, %s875_s16, %s1359_s18, %s1359_s18, %s1361_s20  }
 0x1fa PF: > { %s903_s7 = sand.u32 1, %s1338_s12   ;;  %p1769_p7 = scmp.ne.s32.totalorder %s1755_s19, 0 }
 0x1fb   : > { %p1770_p9 = scmp.ge.s32.totalorder %s1350_s15, 2  ;;  %s904_s26 = scalar_lea.sflag [#allocation5], %s903_s7 }
 0x1fd   : > { %p1125_p12 = pnand %p1770_p9, %p1769_p7 }
 0x1ff   : > { %1333 = dma.done.wait (!%p1125_p12), %s904_s26, 512  }
 0x200   : > { %1335 = vsyncadd (!%p1125_p12), %s904_s26, 4294966784  ;;  %p17_p1 = scmp.ge.s32.totalorder %s1496_s5, 4   ;;  %s1771_s12 = smov %s1342_s13 }
 0x201   : > { %s1772_s13 = smov %s1346_s14  ;;  %s1773_s14 = smov %s1512_s10 }
 0x202   : > { %s1774_s15 = smov %s1496_s5  ;;  %19 = sbr.rel (!%p17_p1) target bundleno = 6 (0x6), region = 85 }
 0x209   :  { %909 = vsyncpa [#allocation4], 1 }
 0x20a   :  { %911 = vsyncpa [#allocation4 + $0x1], 1 }
 0x20b   :  { %912 = vsyncpa [#allocation7], 1 }
 0x20c   :  { %913 = vsyncpa [#allocation5], 1 }
 0x20d   :  { %915 = vsyncpa [#allocation5 + $0x1], 1 }

// kernel: _lambda_.5
= control target key start
LH: loop header
LB: loop body
LE: loop exit
PB: predicated region body
PF: predicated region fallthrough
CT: control target
= control target key end

     0   :  { %10 = vsyncpa [#allocation4], 0  ;;  %s12386_s0 = inlined_call_operand.hbm [shape: bf16[2,64,32], index: 0, kind: input, shape index: {}]   ;;  %s12387_s1 = inlined_call_operand.hbm [shape: bf16[8,288,32], index: 1, kind: input, shape index: {}]   ;;  %s12388_s2 = inlined_call_operand.hbm [shape: f32[8,1,32], index: 2, kind: input, shape index: {}]   ;;  %s12389_s3 = inlined_call_operand.hbm [shape: bf16[288,208], index: 3, kind: input, shape index: {}]   ;;  %s12390_s4 = inlined_call_operand.hbm [shape: f32[1,208], index: 4, kind: input, shape index: {}]   ;;  %s12391_s5 = inlined_call_operand.hbm [shape: f32[2,64,208], index: 5, kind: output, shape index: {}]  }
   0x1   :  { %12 = vsyncpa [#allocation4 + $0x1], 0 }
   0x2   :  { %13 = vsyncpa [#allocation7], 0 }
   0x3   :  { %14 = vsyncpa [#allocation10], 0 }
   0x4   :  { %15 = vsyncpa [#allocation5], 0 }
   0x5   :  { %17 = vsyncpa [#allocation5 + $0x1], 0  ;;  %s9166_s18 = smov 0   ;;  %s9168_s19 = smov 0  }
   0x6   :  { %s9170_s20 = smov 0   ;;  %s9172_s21 = smov 0  }
   0x7 LB: > { %s9187_s22 = sadd.s32 4294967295, %s9115_s21   ;;  %s7822_s23 = sadd.s32 4294967294, %s9115_s21   ;;  %s9115_s21 = sphi %s9172_s21, %s12526_s21   ;;  %s9111_s20 = sphi %s9170_s20, %s12525_s20   ;;  %s9107_s19 = sphi %s9168_s19, %s12524_s19   ;;  %s9103_s18 = sphi %s9166_s18, %s12523_s18  }
   0x8   : > { %p43_p0 = scmp.ne.s32.totalorder %s9107_s19, %s9103_s18  ;;  %p12392_p1 = scmp.eq.s32.totalorder %s9187_s22, 0 }
   0x9   : > { %p157_p3 = scmp.eq.s32.totalorder %s7822_s23, 1  ;;  %p7823_p5 = scmp.ge.s32.totalorder %s9115_s21, 1 }
   0xa   : > { %p9196_p4 = por %p12392_p1, %p43_p0  ;;  %p164_p7 = scmp.lt.s32.totalorder %s9115_s21, 3 }
   0xb   : > { %p9201_p6 = por %p157_p3, %p43_p0  ;;  %s9117_s27 = smov [#allocation6]  }
   0xc   : > { %s12432_s24 = scalar_select %p9196_p4, 1, 0 }
   0xd   : > { %s12433_s25 = scalar_select %p9201_p6, 1, 0 }
   0xe   : > { %p9206_p8 = pnand %p7823_p5, %p164_p7  ;;  %s176_s28 = sshll.u32 %s9117_s27, 4  ;;  %s9210_s28 = int_to_ptr.vmem [resolvable:$true] %s176_s28 }
   0xf   : > { %s9118_s30 = smov [#allocation9]   ;;  %s8899_s9 = scalar_lea.hbm %s12387_s1, 18432 }
  0x10   : > { %s12434_s26 = scalar_select %p9206_p8, 1, 0 }
  0x11   : > { %p8606_p9 = pneg %p9206_p8  ;;  %s202_s6 = sshll.u32 %s9118_s30, 4  ;;  %s9221_s6 = int_to_ptr.vmem [resolvable:$true] %s202_s6 }
  0x12   : > { %p8900_p12 = scmp.ne.s32.totalorder %s12387_s1, %s8899_s9  ;;  %p8906_p5 = scmp.lt.u32.totalorder %s8899_s9, %s12387_s1 }
  0x13   : > { %p9217_p11 = pnand %p8606_p9, %p12392_p1 }
  0x15   : > { %p9231_p13 = pneg %p9217_p11 }
  0x17   : > { %p8902_p0 = pnand %p9231_p13, %p8900_p12 }
  0x19   : > { %p8903_p3 = pneg %p8902_p0 }
  0x1b   : > { %p8908_p7 = pnand %p8906_p5, %p8903_p3 }
  0x1d   : > { %8911 = shalt.err (!%p8908_p7)
}
  0x1e   : > { %s8912_s15 = scalar_lea.vmem %s9210_s28, 18432  ;;  %p8920_p2 = scmp.lt.s32.totalorder %s9210_s28, %s9210_s28 }
  0x1f   : > { %p8913_p9 = scmp.ne.s32.totalorder %s9210_s28, %s8912_s15  ;;  %p8921_p6 = scmp.lt.s32.totalorder %s8912_s15, %s8912_s15 }
  0x21   : > { %p8915_p10 = pnand %p8913_p9, %p9231_p13  ;;  %p8922_p12 = por %p8921_p6, %p8920_p2 }
  0x23   : > { %p8916_p1 = pneg %p8915_p10 }
  0x25   : > { %p8923_p0 = pnand %p8922_p12, %p8916_p1 }
  0x27   : > { %8926 = shalt.err (!%p8923_p0)
}
  0x28   : > { %s12393_s16 = smov 64   ;;  %s9120_s17 = smov 4  }
  0x29   : > { %8609 = dma.hbm_to_vmem [thread:$0]  (!%p9217_p11), %s12387_s1, 18432, %s9210_s28, [#allocation7], %s12393_s16, %s12393_s16, %s9120_s17  }
  0x2a   : > { %s8927_s8 = scalar_lea.hbm %s12389_s3, 4608 }
  0x2b   : > { %p8928_p1 = scmp.ne.s32.totalorder %s12389_s3, %s8927_s8  ;;  %p8934_p10 = scmp.lt.u32.totalorder %s8927_s8, %s12389_s3 }
  0x2d   : > { %p8930_p2 = pnand %p8928_p1, %p9231_p13 }
  0x2f   : > { %p8931_p6 = pneg %p8930_p2 }
  0x31   : > { %p8936_p3 = pnand %p8934_p10, %p8931_p6 }
  0x33   : > { %8939 = shalt.err (!%p8936_p3)
}
  0x34   : > { %s8940_s28 = scalar_lea.vmem %s9221_s6, 4608  ;;  %p8948_p12 = scmp.lt.s32.totalorder %s9221_s6, %s9221_s6 }
  0x35   : > { %p8941_p5 = scmp.ne.s32.totalorder %s9221_s6, %s8940_s28  ;;  %p8949_p0 = scmp.lt.s32.totalorder %s8940_s28, %s8940_s28 }
  0x37   : > { %p8943_p7 = pnand %p8941_p5, %p9231_p13  ;;  %p8950_p1 = por %p8949_p0, %p8948_p12 }
  0x39   : > { %p8944_p9 = pneg %p8943_p7 }
  0x3b   : > { %p8951_p2 = pnand %p8950_p1, %p8944_p9 }
  0x3d   : > { %8954 = shalt.err (!%p8951_p2)
}
  0x3e   : > { %s9121_s14 = smov 128   ;;  %s9122_s15 = smov 8  }
  0x3f   : > { %8615 = dma.hbm_to_vmem [thread:$0]  (!%p9217_p11), %s12389_s3, 4608, %s9221_s6, [#allocation10], %s9121_s14, %s9121_s14, %s9122_s15  }
  0x40   : > { %s9123_s30 = smov [#allocation8]   ;;  %s8955_s10 = scalar_lea.hbm %s12388_s2, 128 }
  0x41   : > { %s189_s7 = sshll.u32 %s9123_s30, 4  ;;  %p8956_p6 = scmp.ne.s32.totalorder %s12388_s2, %s8955_s10  ;;  %s190_s7 = int_to_ptr.vmem [resolvable:$true] %s189_s7 }
  0x42   : > { %p8962_p5 = scmp.lt.u32.totalorder %s8955_s10, %s12388_s2 }
  0x43   : > { %p8958_p10 = pnand %p8956_p6, %p9231_p13 }
  0x45   : > { %p8959_p3 = pneg %p8958_p10 }
  0x47   : > { %p8964_p7 = pnand %p8962_p5, %p8959_p3 }
  0x49   : > { %8967 = shalt.err (!%p8964_p7)
}
  0x4a   : > { %s8968_s6 = scalar_lea.vmem %s190_s7, 128  ;;  %p8976_p1 = scmp.lt.s32.totalorder %s190_s7, %s190_s7 }
  0x4b   : > { %p8969_p9 = scmp.ne.s32.totalorder %s190_s7, %s8968_s6  ;;  %p8977_p2 = scmp.lt.s32.totalorder %s8968_s6, %s8968_s6 }
  0x4d   : > { %p8971_p12 = pnand %p8969_p9, %p9231_p13  ;;  %p8978_p4 = por %p8977_p2, %p8976_p1 }
  0x4f   : > { %p8972_p0 = pneg %p8971_p12 }
  0x51   : > { %p8979_p8 = pnand %p8978_p4, %p8972_p0 }
  0x53   : > { %8982 = shalt.err (!%p8979_p8)
}
  0x54   : > { %s9124_s14 = smov 16   ;;  %s9125_s15 = smov 1  }
  0x55   : > { %8612 = dma.hbm_to_vmem [thread:$0]  (!%p9217_p11), %s12388_s2, 128, %s190_s7, [#allocation7], %s9124_s14, %s9124_s14, %s9125_s15  }
  0x56   : > { %s9126_s27 = smov [#allocation11]   ;;  %s8983_s10 = scalar_lea.hbm %s12390_s4, 32 }
  0x57   : > { %s216_s30 = sshll.u32 %s9126_s27, 4  ;;  %p8984_p4 = scmp.ne.s32.totalorder %s12390_s4, %s8983_s10  ;;  %s217_s30 = int_to_ptr.vmem [resolvable:$true] %s216_s30 }
  0x58   : > { %p8990_p10 = scmp.lt.u32.totalorder %s8983_s10, %s12390_s4 }
  0x59   : > { %p8986_p8 = pnand %p8984_p4, %p9231_p13 }
  0x5b   : > { %p8987_p6 = pneg %p8986_p8 }
  0x5d   : > { %p8992_p3 = pnand %p8990_p10, %p8987_p6 }
  0x5f   : > { %8995 = shalt.err (!%p8992_p3)
}
  0x60   : > { %s8996_s7 = scalar_lea.vmem %s217_s30, 32  ;;  %p9004_p12 = scmp.lt.s32.totalorder %s217_s30, %s217_s30 }
  0x61   : > { %p8997_p5 = scmp.ne.s32.totalorder %s217_s30, %s8996_s7  ;;  %p9005_p0 = scmp.lt.s32.totalorder %s8996_s7, %s8996_s7 }
  0x63   : > { %p8999_p7 = pnand %p8997_p5, %p9231_p13  ;;  %p9006_p1 = por %p9005_p0, %p9004_p12 }
  0x65   : > { %p9000_p9 = pneg %p8999_p7 }
  0x67   : > { %p9007_p2 = pnand %p9006_p1, %p9000_p9 }
  0x69   : > { %9010 = shalt.err (!%p9007_p2)
}
  0x6a   : > { %8618 = dma.hbm_to_vmem [thread:$0]  (!%p9217_p11), %s12390_s4, 32, %s217_s30, [#allocation10]  }
  0x6b   : > { %s9315_s12 = sadd.s32 1, %s9115_s21   ;;  %s30_s16 = sadd.s32 1, %s9111_s20 }
  0x6c   : > { %s27_s29 = ssub.s32 %s9115_s21, %s9315_s12  ;;  %p37_p13 = scmp.ne.s32.totalorder %s9111_s20, %s9107_s19 }
  0x6d   : > { %p28_p4 = scmp.eq.s32.totalorder %s27_s29, 0  ;;  %p38_p8 = scmp.eq.s32.totalorder %s9115_s21, 0 }
  0x6e   : > { %p12437_p6 = scmp.eq.s32.totalorder %s9187_s22, 1  ;;  %p8631_p3 = scmp.lt.s32.totalorder %s9115_s21, 2 }
  0x6f   : > { %s9331_s27 = scalar_select %p28_p4, %s9111_s20, %s30_s16  }
  0x70   : > { %p9325_p10 = por %p12437_p6, %p37_p13  ;;  %p39_p5 = por %p38_p8, %p37_p13 }
  0x71   : > { %s227_s8 = sand.u32 1, %s9111_s20   ;;  %s8088_s30 = sshll.u32 %s9115_s21, 9 }
  0x72   : > { %s7829_s9 = sshll.u32 %s227_s8, 5  ;;  %s9338_s13 = scalar_lea.hbm %s12386_s0, %s8088_s30 }
  0x73   : > { %s231_s28 = scalar_lea.vmem [#allocation3], %s7829_s9  ;;  %p9342_p11 = pnand %p8631_p3, %p39_p5 }
  0x74   : > { %s238_s6 = sshll.u32 %s231_s28, 4  ;;  %s9346_s14 = scalar_lea.sflag [#allocation4], %s227_s8  ;;  %s9340_s6 = int_to_ptr.vmem [resolvable:$true] %s238_s6 }
  0x75   : > { %s9011_s15 = scalar_lea.hbm %s9338_s13, 512  ;;  %p9013_p9 = pneg %p9342_p11 }
  0x76   : > { %p9012_p7 = scmp.ne.s32.totalorder %s9338_s13, %s9011_s15  ;;  %s9016_s9 = scalar_lea.hbm %s12386_s0, 1024 }
  0x77   : > { %p9017_p1 = scmp.lt.u32.totalorder %s9338_s13, %s12386_s0  ;;  %p9018_p2 = scmp.lt.u32.totalorder %s9016_s9, %s9011_s15 }
  0x78   : > { %p9014_p12 = pnand %p9013_p9, %p9012_p7  ;;  %p9020_p4 = scmp.lt.u32.totalorder %s9011_s15, %s9338_s13 }
  0x79   : > { %p9019_p13 = por %p9018_p2, %p9017_p1 }
  0x7a   : > { %p9015_p0 = pneg %p9014_p12 }
  0x7b   : > { %p9021_p8 = por %p9020_p4, %p9019_p13 }
  0x7d   : > { %p9022_p6 = pnand %p9021_p8, %p9015_p0 }
  0x7f   : > { %9025 = shalt.err (!%p9022_p6)
}
  0x80   : > { %s9026_s8 = scalar_lea.vmem %s9340_s6, 512  ;;  %s9127_s11 = smov [#allocation3]  }
  0x81   : > { %p9027_p3 = scmp.ne.s32.totalorder %s9340_s6, %s9026_s8  ;;  %s9031_s28 = sshll.u32 %s9127_s11, 4  ;;  %s9032_s28 = int_to_ptr.vmem [resolvable:$false] %s9031_s28 }
  0x82   : > { %s9033_s16 = scalar_lea.vmem %s9032_s28, 1024  ;;  %p9034_p12 = scmp.lt.s32.totalorder %s9340_s6, %s9032_s28 }
  0x83   : > { %p9029_p5 = pnand %p9027_p3, %p9013_p9  ;;  %p9035_p1 = scmp.lt.s32.totalorder %s9033_s16, %s9026_s8 }
  0x85   : > { %p9030_p7 = pneg %p9029_p5  ;;  %p9036_p2 = por %p9035_p1, %p9034_p12 }
  0x87   : > { %p9037_p13 = pnand %p9036_p2, %p9030_p7 }
  0x89   : > { %9040 = shalt.err (!%p9037_p13)
}
  0x8a   : > { %s12440_s15 = smov 64   ;;  %p12441_p9 = scmp.ne.s32.totalorder %s12434_s26, 0 }
  0x8b   : > { %8622 = dma.hbm_to_vmem [thread:$0]  (!%p9342_p11), %s9338_s13, 512, %s9340_s6, %s9346_s14, %s12440_s15, %s12440_s15, %s9120_s17  }
  0x8c   : > { %250 = sbr.rel (%p12441_p9) target bundleno = 3816 (0xee8), region = 40 }
  0x93   : > { %s9380_s29 = sand.u32 1, %s9107_s19   ;;  %p12442_p0 = scmp.ne.s32.totalorder %s12432_s24, 0 }
  0x94   : > { %s7833_s9 = sshll.u32 %s9380_s29, 5  ;;  %s253_s30 = scalar_lea.sflag [#allocation4], %s9380_s29 }
  0x95   : > { %s9384_s10 = scalar_lea.vmem [#allocation3], %s7833_s9 }
  0x96   : > { %9086 = dma.done.wait (%p12442_p0), %s253_s30, 512  }
  0x97   : > { %9088 = vsyncadd (%p12442_p0), %s253_s30, 4294966784  ;;  %p12443_p11 = scmp.eq.s32.totalorder %s9187_s22, 0 }
  0x99   : > { %9090 = dma.done.wait (%p12443_p11), [#allocation7], 18560   ;;  %p12444_p4 = pmov %p12443_p11 }
  0x9b   : > { %9092 = vsyncadd (%p12444_p4), [#allocation7], 4294948736  ;;  %p12445_p8 = pmov %p12444_p4 }
  0x9c   : > { %p12446_p6 = pmov %p12444_p4 }
  0x9d   : > { %9094 = dma.done.wait (%p12445_p8), [#allocation10], 4640  }
  0x9e   : > { %9096 = vsyncadd (%p12446_p6), [#allocation10], 4294962656  ;;  %vm300_vm0 = vcmask 261120   ;;  %v303_v0 = vlaneseq  ;;  %v12396_v2 = vmov 0   ;;  %v9129_v14 = vmov 0.0   ;;  %v464_v16 = vld [vmem:[%s9384_s10] sm:$0xff]  }
  0x9f   : > { %301 = vst.msk [vmem:[#allocation2] sm:$0xff] %vm300_vm0, %v12396_v2  ;;  %302 = vst.msk [vmem:[#allocation2 + $0x28] sm:$0xff] %vm300_vm0, %v12396_v2  ;;  %v466_v17 = vld [vmem:[%s9384_s10 + $0x8] sm:$0xff]   ;;  %vm513_vm2 = vsmask.f32 3328  ;;  %v8690_v21 = vld [vmem:[#allocation6 + $0x40] sm:$0xff]  }
  0xa0   : > { %v9398_v1 = vshrl.u32 %v303_v0, 7  ;;  %v8691_v26 = vld [vmem:[#allocation6] sm:$0xff]   ;;  %504 = vst.msk [vmem:[#allocation2 + $0x8] sm:$0xff] %vm300_vm0, %v464_v16  ;;  %8090 = vmatprep.subr.bf16.mxu1 %v8690_v21  ;;  %505 = vst.msk [vmem:[#allocation2 + $0x10] sm:$0xff] %vm300_vm0, %v466_v17  ;;  %vm609_vm8 = vsmask.f32 7424 }
  0xa1   : > { %8091 = vmatpush3.bf16.msra.mxu1 %v8691_v26  ;;  %v468_v38 = vld [vmem:[%s9384_s10 + $0x10] sm:$0xff]   ;;  %v8692_v43 = vld [vmem:[#allocation6 + $0x48] sm:$0xff]   ;;  %vm561_vm15 = vsmask.f32 4352  ;;  %s9130_s24 = smov 64   ;;  %s9131_s26 = smov 32  }
  0xa2   : > { %12447 = vst [vmem:[#allocation17_spill] sm:$0xff] %v9398_v1  ;;  %v305_v3 = vadd.s32 8, %v9398_v1  ;;  %v316_v4 = vand.u32 7, %v9398_v1  ;;  %v306_v5 = vadd.s32 16, %v9398_v1  ;;  %v307_v6 = vadd.s32 24, %v9398_v1  ;;  %8092 = vmatprep.subr.bf16.mxu1 %v8692_v43  ;;  %v8693_v52 = vld [vmem:[#allocation6 + $0x8] sm:$0xff]  }
  0xa3   : > { %v9409_v7 = vadd.s32 32, %v9398_v1  ;;  %v9412_v8 = vadd.s32 40, %v9398_v1  ;;  %v9415_v9 = vadd.s32 48, %v9398_v1  ;;  %v9418_v10 = vadd.s32 56, %v9398_v1  ;;  %506 = vst.msk [vmem:[#allocation2 + $0x18] sm:$0xff] %vm300_vm0, %v468_v38  ;;  %v8694_v43 = vld [vmem:[#allocation6 + $0x50] sm:$0xff]  }
  0xa4   : > { %v323_v11 = vand.u32 7, %v305_v3  ;;  %vm408_vm1 = vcmp.gt.s32.totalorder %v316_v4, 0  ;;  %v330_v12 = vand.u32 7, %v306_v5  ;;  %v337_v13 = vand.u32 7, %v307_v6  ;;  %s9132_s17 = smov 96   ;;  %s7838_s13 = sshll.u32 %s9380_s29, 7 }
  0xa5   : > { %v7839_v15 = vsel %vm408_vm1, 1.0, %v9129_v14  ;;  %vm9423_vm3 = vcmp.lt.s32.totalorder %v316_v4, 7  ;;  %v344_v19 = vand.u32 7, %v9409_v7  ;;  %v351_v20 = vand.u32 7, %v9412_v8  ;;  %8093 = vmatpush3.bf16.msra.mxu1 %v8693_v52  ;;  %s12309_s6 = scalar_lea.vmem [#allocation12], %s7838_s13  ;;  %s8089_s7 = sshll.u32 %s9187_s22, 11 }
  0xa6   : > { %vm409_vm4 = vcmp.gt.s32.totalorder %v323_v11, 0  ;;  %vm410_vm5 = vcmp.gt.s32.totalorder %v330_v12, 0  ;;  %vm411_vm6 = vcmp.gt.s32.totalorder %v337_v13, 0  ;;  %v9432_v25 = vld [vmem:[#allocation2] sm:$0xf0]  ;;  %vm437_vm7 = vcmp.lt.s32.totalorder %v323_v11, 7  ;;  %8094 = vmatprep.subr.bf16.mxu1 %v8694_v43  ;;  %s12335_s28 = scalar_lea.hbm %s12391_s5, %s8089_s7 }
  0xa7   : > { %v7840_v22 = vsel %vm409_vm4, 1.0, %v9129_v14  ;;  %v7841_v23 = vsel %vm410_vm5, 1.0, %v9129_v14  ;;  %v7842_v24 = vsel %vm411_vm6, 1.0, %v9129_v14  ;;  %v7847_v29 = vsel %vm9423_vm3, 1.0, %v9129_v14  ;;  %v654_v57 = vld [vmem:[#allocation2 + $0x8] sm:$0xf8] }
  0xa8   : > { %v9434_v27 = vpack.c.bf16 %v7840_v22, %v7839_v15  ;;  %v9437_v28 = vpack.c.bf16 %v7842_v24, %v7841_v23  ;;  %v7848_v30 = vsel %vm437_vm7, 1.0, %v9129_v14  ;;  %v669_v31 = vshrl.u32 %v9432_v25, 16  ;;  %v9485_v58 = vld [vmem:[#allocation2 + $0x8] sm:$0xff]  ;;  %v9490_v63 = vld [vmem:[#allocation2 + $0x10] sm:$0xff]  ;;  %s7711_s14 = sshll.u32 %s12309_s6, 4  ;;  %s7698_s22 = scalar_lea.sflag [#allocation5], %s9380_s29  ;;  %s12337_s14 = int_to_ptr.vmem [resolvable:$true] %s7711_s14 }
  0xa9   : > { %v671_v32 = vshll.u32 %v9432_v25, 16  ;;  %v358_v33 = vand.u32 7, %v9415_v9  ;;  %v460_v39 = vpack.c.bf16 %v7848_v30, %v7847_v29  ;;  %v365_v41 = vand.u32 7, %v9418_v10  ;;  %s9041_s16 = scalar_lea.vmem %s12337_s14, 2048  ;;  %s9133_s15 = smov [#allocation12]  }
  0xaa   : > { %v515_v34 = vshrl.u32 %v9434_v27, 16  ;;  %v518_v35 = vshll.u32 %v9434_v27, 16  ;;  %v523_v36 = vshrl.u32 %v9437_v28, 16  ;;  %v526_v37 = vshll.u32 %v9437_v28, 16  ;;  %p9042_p3 = scmp.ne.s32.totalorder %s12337_s14, %s9041_s16  ;;  %s9045_s9 = sshll.u32 %s9133_s15, 4  ;;  %s9046_s9 = int_to_ptr.vmem [resolvable:$false] %s9045_s9 }
  0xab   : > { %v673_v40 = vrot.slane %v671_v32, 1  ;;  %vm9453_vm9 = vcmp.lt.s32.totalorder %v330_v12, 7  ;;  %v563_v48 = vshrl.u32 %v460_v39, 16  ;;  %v566_v49 = vshll.u32 %v460_v39, 16  ;;  %s9047_s30 = scalar_lea.vmem %s9046_s9, 4096  ;;  %p9048_p12 = scmp.lt.s32.totalorder %s12337_s14, %s9046_s9 }
  0xac   : > { %v517_v44 = vrot.slane %v515_v34, 4  ;;  %v520_v45 = vrot.slane %v518_v35, 5  ;;  %v525_v46 = vrot.slane %v523_v36, 4  ;;  %v528_v47 = vrot.slane %v526_v37, 5  ;;  %p9043_p5 = pnand %p9042_p3, %p9325_p10  ;;  %p9049_p1 = scmp.lt.s32.totalorder %s9047_s30, %s9041_s16 }
  0xad   : > { %v674_v50 = vor.u32 %v673_v40, %v669_v31  ;;  %vm9465_vm10 = vcmp.lt.s32.totalorder %v337_v13, 7  ;;  %vm9475_vm11 = vcmp.lt.s32.totalorder %v344_v19, 7  ;;  %vm9481_vm12 = vcmp.lt.s32.totalorder %v351_v20, 7 }
  0xae   : > { %v9469_v53 = vor.u32 %v520_v45, %v517_v44  ;;  %v9471_v54 = vor.u32 %v528_v47, %v525_v46  ;;  %v565_v59 = vrot.slane %v563_v48, 3  ;;  %v568_v60 = vrot.slane %v566_v49, 4  ;;  %v8695_v44 = vld [vmem:[#allocation6 + $0x10] sm:$0xff]   ;;  %p9044_p7 = pneg %p9043_p5  ;;  %p9050_p2 = por %p9049_p1, %p9048_p12 }
  0xaf   : > { %v9487_v61 = vrot.slane %v563_v48, 7  ;;  %v676_v3 = vshll.u32 %v9485_v58, 16  ;;  %vm9500_vm13 = vcmp.lt.s32.totalorder %v358_v33, 7  ;;  %vm443_vm14 = vcmp.lt.s32.totalorder %v365_v41, 7  ;;  %8095 = vmatpush3.bf16.msra.mxu1 %v8695_v44 }
  0xb0   : > { %v656_v62 = vmul.bf16 %v654_v57, %v9469_v53  ;;  %v9495_v0 = vsel %vm513_vm2, %v9469_v53, %v9471_v54  ;;  %v9506_v6 = vor.u32 %v568_v60, %v565_v59  ;;  %v7849_v13 = vsel %vm9453_vm9, 1.0, %v9129_v14  ;;  %p9051_p13 = pnand %p9050_p2, %p9044_p7 }
  0xb1   : > { %v657_v5 = vmul.bf16 %v9495_v0, %v9490_v63  ;;  %v9509_v11 = vor.u32 %v9487_v61, %v566_v49  ;;  %v9517_v12 = vrot.slane %v676_v3, 1  ;;  %v7850_v15 = vsel %vm9465_vm10, 1.0, %v9129_v14 }
  0xb2   : > { %817 = vrot.lane.b32.xlu0 %v656_v62, %s9130_s24  ;;  %v7851_v16 = vsel %vm9475_vm11, 1.0, %v9129_v14  ;;  %vm632_vm1 = vsmask.f32 256  ;;  %v7852_v18 = vsel %vm9481_vm12, 1.0, %v9129_v14  ;;  %v7853_v21 = vsel %vm9500_vm13, 1.0, %v9129_v14 }
  0xb3   : > { %819 = vrot.lane.b32.xlu1 %v657_v5, %s9130_s24  ;;  %v649_v17 = vmul.bf16 %v9509_v11, %v9485_v58  ;;  %v7854_v22 = vsel %vm443_vm14, 1.0, %v9129_v14  ;;  %v679_v23 = vsel %vm609_vm8, %v674_v50, %v9517_v12  ;;  %v461_v24 = vpack.c.bf16 %v7850_v15, %v7849_v13  ;;  %v8696_v5 = vld [vmem:[#allocation6 + $0x58] sm:$0xff]  }
  0xb4   : > { %v9540_v26 = vpack.c.bf16 %v7852_v18, %v7851_v16  ;;  %v9542_v29 = vpack.c.bf16 %v7854_v22, %v7853_v21  ;;  %v602_v31 = vmul.bf16 %v9506_v6, %v9432_v25  ;;  %vm9550_vm3 = vcmp.gt.s32.totalorder %v344_v19, 0  ;;  %v607_v18 = vld [vmem:[#allocation2] sm:$0x80]  ;;  %v8697_v21 = vld [vmem:[#allocation6 + $0x18] sm:$0xff]   ;;  %8096 = vmatprep.subr.bf16.mxu1 %v8696_v5  ;;  %v8698_v25 = vld [vmem:[#allocation6 + $0x60] sm:$0xff]  }
  0xb5   : > { %v9544_v30 = vrot.slane %v649_v17, 5  ;;  %v571_v38 = vshrl.u32 %v461_v24, 16  ;;  %v574_v39 = vshll.u32 %v461_v24, 16  ;;  %vm722_vm4 = vcmask 1046528   ;;  %8097 = vmatpush3.bf16.msra.mxu1 %v8697_v21  ;;  %v8700_v5 = vld [vmem:[#allocation6 + $0x68] sm:$0xff]   ;;  %v470_v21 = vld [vmem:[%s9384_s10 + $0x18] sm:$0xff]  }
  0xb6   : > { %v580_v40 = vshrl.u32 %v9540_v26, 16  ;;  %v583_v42 = vshll.u32 %v9540_v26, 16  ;;  %v589_v7 = vshrl.u32 %v9542_v29, 16  ;;  %v592_v19 = vshll.u32 %v9542_v29, 16  ;;  %8098 = vmatprep.subr.bf16.mxu1 %v8698_v25  ;;  %507 = vst.msk [vmem:[#allocation2 + $0x20] sm:$0xff] %vm300_vm0, %v470_v21 }
  0xb7   : > { %802 = vrot.lane.b32.xlu0 %v9544_v30, %s9131_s26  ;;  %707 = vrot.lane.b32.xlu1 %v679_v23, %s9131_s26  ;;  %vm792_vm5 = vcmask 1042432   ;;  %vm413_vm6 = vcmp.gt.s32.totalorder %v351_v20, 0  ;;  %vm9565_vm7 = vcmp.gt.s32.totalorder %v358_v33, 0  ;;  %v573_v45 = vrot.slane %v571_v38, 3 }
  0xb8   : > { %v576_v46 = vrot.slane %v574_v39, 4  ;;  %v582_v47 = vrot.slane %v580_v40, 3  ;;  %v585_v48 = vrot.slane %v583_v42, 4  ;;  %v591_v49 = vrot.slane %v589_v7, 3 }
  0xb9   : > { %v9575_v8 = vrot.slane %v571_v38, 7  ;;  %v723_v20 = vrot.slane %v602_v31, 1  ;;  %vm415_vm9 = vcmp.gt.s32.totalorder %v365_v41, 0  ;;  %v7843_v50 = vsel %vm9550_vm3, 1.0, %v9129_v14 }
  0xba   : > { %v577_v9 = vor.u32 %v576_v46, %v573_v45  ;;  %v9579_v33 = vor.u32 %v585_v48, %v582_v47  ;;  %v7844_v51 = vsel %vm413_vm6, 1.0, %v9129_v14  ;;  %v7845_v55 = vsel %vm9565_vm7, 1.0, %v9129_v14  ;;  %v9647_v48 = vld [vmem:[#allocation2 + $0x18] sm:$0xff] }
  0xbb   : > { %v636_v52 = vor.u32 %v9575_v8, %v574_v39  ;;  %v7846_v56 = vsel %vm415_vm9, 1.0, %v9129_v14  ;;  %v9598_v57 = vpack.c.bf16 %v7844_v51, %v7843_v50  ;;  %v594_v60 = vrot.slane %v592_v19, 4  ;;  %v9653_v51 = vld [vmem:[#allocation2 + $0x8] sm:$0xf0] }
  0xbc   : > { %v9592_v10 = vsel %vm561_vm15, %v9506_v6, %v577_v9  ;;  %v9596_v41 = vsel %vm561_vm15, %v577_v9, %v9579_v33  ;;  %v9600_v59 = vpack.c.bf16 %v7846_v56, %v7845_v55  ;;  %v9622_v24 = vrot.slane %v518_v35, 1  ;;  %v8699_v9 = vld [vmem:[#allocation6 + $0x20] sm:$0xff]  }
  0xbd   : > { %v9606_v62 = vsel %vm632_vm1, %v9487_v61, %v636_v52  ;;  %v603_v14 = vmul.bf16 %v9592_v10, %v9485_v58  ;;  %v604_v4 = vmul.bf16 %v9596_v41, %v9490_v63  ;;  %v532_v15 = vshrl.u32 %v9598_v57, 16  ;;  %8099 = vmatpush3.bf16.msra.mxu1 %v8699_v9 }
  0xbe   : > { %v650_v13 = vmul.bf16 %v9606_v62, %v9490_v63  ;;  %v535_v16 = vshll.u32 %v9598_v57, 16  ;;  %v541_v17 = vshrl.u32 %v9600_v59, 16  ;;  %v544_v23 = vshll.u32 %v9600_v59, 16  ;;  %8100 = vmatprep.subr.bf16.mxu1 %v8700_v5 }
  0xbf   : > { %v724_v61 = vrot.slane %v603_v14, 1  ;;  %v9617_v22 = vrot.slane %v604_v4, 1  ;;  %v534_v32 = vrot.slane %v532_v15, 4  ;;  %vm747_vm10 = vcmask 1043456  }
  0xc0   : > { %v9624_v31 = vrot.slane %v650_v13, 5  ;;  %v537_v38 = vrot.slane %v535_v16, 5  ;;  %v9630_v39 = vrot.slane %v541_v17, 4  ;;  %v9636_v35 = vrot.slane %v544_v23, 5 }
  0xc1   : > { %v727_v43 = vsel %vm722_vm4, %v724_v61, %v9617_v22  ;;  %v611_v44 = vor.u32 %v9622_v24, %v515_v34  ;;  %v612_v46 = vrot.slane %v526_v37, 1  ;;  %v615_v47 = vrot.slane %v535_v16, 1 }
  0xc2   : > { %v795_v45 = vsel %vm792_vm5, %v9544_v30, %v9624_v31  ;;  %734 = vrot.lane.b32.xlu1 %v727_v43, %s9130_s24  ;;  %v626_v27 = vmul.bf16 %v9622_v24, %v607_v18  ;;  %v680_v34 = vshrl.u32 %v9485_v58, 16  ;;  %v684_v50 = vshll.u32 %v9490_v63, 16 }
  0xc3   : > { %804 = vrot.lane.b32.xlu0 %v795_v45, %s9131_s26  ;;  %v725_v30 = vsel %vm722_vm4, %v723_v20, %v724_v61  ;;  %v9657_v52 = vsel %vm609_vm8, %v611_v44, %v612_v46  ;;  %v614_v37 = vor.u32 %v612_v46, %v523_v36  ;;  %v9663_v55 = vrot.slane %v580_v40, 7  ;;  %v8702_v46 = vld [vmem:[#allocation6 + $0x70] sm:$0xff]  }
  0xc4   : > { %v9665_v56 = vor.u32 %v594_v60, %v591_v49  ;;  %v627_v14 = vmul.bf16 %v9657_v52, %v9485_v58  ;;  %v748_v4 = vrot.slane %v626_v27, 4  ;;  %v682_v20 = vor.u32 %v680_v34, %v9517_v12  ;;  %v8701_v49 = vld [vmem:[#allocation6 + $0x28] sm:$0xff]  }
  0xc5   : > { %v9673_v28 = vsel %vm609_vm8, %v614_v37, %v615_v47  ;;  %v686_v36 = vrot.slane %v684_v50, 1  ;;  %v9675_v13 = vrot.slane %v684_v50, 5  ;;  %v639_v40 = vor.u32 %v9663_v55, %v583_v42  ;;  %8101 = vmatpush3.bf16.msra.mxu1 %v8701_v49  ;;  %v8703_v37 = vld [vmem:[#allocation6 + $0x30] sm:$0xff]  }
  0xc6   : > { %12464 = vst [vmem:[#allocation18_spill] sm:$0xff] %v9673_v28  ;;  %v628_v60 = vmul.bf16 %v9673_v28, %v9490_v63  ;;  %v749_v16 = vrot.slane %v627_v14, 4  ;;  %v688_v12 = vshrl.u32 %v9490_v63, 16  ;;  %v692_v18 = vshll.u32 %v9647_v48, 16  ;;  %8102 = vmatprep.subr.bf16.mxu1 %v8702_v46 }
  0xc7   : > { %732 = vrot.lane.b32.xlu0 %v725_v30, %s9130_s24  ;;  %v9688_v61 = vsel %vm632_vm1, %v9575_v8, %v639_v40  ;;  %v828_v26 = vshrl.u32 %v9653_v51, 16  ;;  %v830_v42 = vshll.u32 %v9653_v51, 16  ;;  %v9695_v43 = vsel %vm561_vm15, %v9579_v33, %v9665_v56  ;;  %v9702_v30 = vld [vmem:[#allocation2 + $0x28] sm:$0xf] }
  0xc8   : > { %12465 = vst [vmem:[#allocation19_spill] sm:$0xff] %v9688_v61  ;;  %12466 = vst [vmem:[#allocation20_spill] sm:$0xff] %v9695_v43  ;;  %v9697_v44 = vrot.slane %v628_v60, 4  ;;  %v750_v25 = vsel %vm747_vm10, %v748_v4, %v749_v16  ;;  %v651_v45 = vmul.bf16 %v9688_v61, %v9647_v48  ;;  %v694_v8 = vrot.slane %v692_v18, 1 }
  0xc9   : > { %v770_v9 = vrot.slane %v688_v12, 4  ;;  %v775_v27 = vrot.slane %v692_v18, 5  ;;  %v832_v50 = vrot.slane %v830_v42, 1  ;;  %v9704_v14 = vor.u32 %v537_v38, %v534_v32  ;;  %v631_v18 = vld [vmem:[#allocation2 + $0x28] sm:$0x1]  ;;  %8103 = vmatpush3.bf16.msra.mxu1 %v8703_v37 }
  0xca   : > { %v752_v33 = vsel %vm747_vm10, %v749_v16, %v9697_v44  ;;  %v687_v4 = vsel %vm609_vm8, %v682_v20, %v686_v36  ;;  %v9710_v5 = vrot.slane %v651_v45, 5  ;;  %v690_v40 = vor.u32 %v688_v12, %v686_v36  ;;  %v8704_v42 = vld [vmem:[#allocation6 + $0x78] sm:$0xff]   ;;  %v8705_v12 = vld [vmem:[#allocation6 + $0x80] sm:$0xff]  }
  0xcb   : > { %757 = vrot.lane.b32.xlu0 %v750_v25, %s9132_s17  ;;  %759 = vrot.lane.b32.xlu1 %v752_v33, %s9132_s17  ;;  %v833_v49 = vor.u32 %v832_v50, %v828_v26  ;;  %v696_v60 = vshrl.u32 %v9647_v48, 16  ;;  %v605_v38 = vmul.bf16 %v9695_v43, %v9647_v48  ;;  %v617_v20 = vor.u32 %v615_v47, %v532_v15  ;;  %v8706_v45 = vld [vmem:[#allocation6 + $0x38] sm:$0xff]  }
  0xcc   : > { %v797_v32 = vsel %vm792_vm5, %v9624_v31, %v9710_v5  ;;  %v618_v16 = vrot.slane %v544_v23, 1  ;;  %v9726_v25 = vrot.slane %v589_v7, 7  ;;  %v9731_v31 = vsel %vm513_vm2, %v9471_v54, %v9704_v14  ;;  %8104 = vmatprep.subr.bf16.mxu1 %v8704_v42  ;;  %8458 = vmatprep.subr.bf16.mxu0 %v8705_v12 }
  0xcd   : > { %v774_v26 = vrot.slane %v696_v60, 4  ;;  %v839_v15 = vshll.u32 %v9702_v30, 16  ;;  %v695_v23 = vsel %vm609_vm8, %v690_v40, %v694_v8  ;;  %v834_v7 = vsel %vm609_vm8, %v833_v49, %v686_v36  ;;  %8105 = vmatpush3.bf16.msra.mxu1 %v8706_v45  ;;  %v8707_v36 = vld [vmem:[#allocation6 + $0x88] sm:$0xff]   ;;  %8459 = vmatpush3.bf16.msra.mxu0 %v8705_v12 }
  0xce   : > { %12467 = vst [vmem:[#allocation21_spill] sm:$0xff] %v9726_v25  ;;  %v9735_v57 = vsel %vm609_vm8, %v617_v20, %v618_v16  ;;  %v642_v54 = vor.u32 %v9726_v25, %v592_v19  ;;  %v9746_v21 = vrot.slane %v605_v38, 1  ;;  %v653_v46 = vmul.bf16 %v9726_v25, %v631_v18  ;;  %8460 = vmatprep.subr.bf16.mxu0 %v8707_v36  ;;  %v608_v18 = vld [vmem:[#allocation2 + $0x20] sm:$0xff] }
  0xcf   : > { %806 = vrot.lane.b32.xlu0 %v797_v32, %s9131_s26  ;;  %12468 = vst [vmem:[#allocation22_spill] sm:$0xff] %v9735_v57  ;;  %709 = vrot.lane.b32.xlu1 %v687_v4, %s9131_s26  ;;  %v629_v47 = vmul.bf16 %v9735_v57, %v9647_v48  ;;  %v767_v50 = vrot.slane %v680_v34, 4  ;;  %v768_v37 = vrot.slane %v676_v3, 5  ;;  %v658_v33 = vmul.bf16 %v9731_v31, %v9647_v48  ;;  %v9780_v32 = vld [vmem:[#allocation2 + $0x20] sm:$0xf] }
  0xd0   : > { %v9757_v29 = vor.u32 %v618_v16, %v541_v17  ;;  %v9759_v19 = vrot.slane %v839_v15, 1  ;;  %v9764_v34 = vsel %vm632_vm1, %v9663_v55, %v642_v54  ;;  %v843_v58 = vshrl.u32 %v9702_v30, 16  ;;  %v560_v38 = vld [vmem:[#allocation2 + $0x20] sm:$0x1f] }
  0xd1   : > { %12469 = vst [vmem:[#allocation23_spill] sm:$0xff] %v9764_v34  ;;  %v9767_v3 = vor.u32 %v768_v37, %v767_v50  ;;  %v772_v4 = vor.u32 %v9675_v13, %v770_v9  ;;  %v9772_v59 = vor.u32 %v9636_v35, %v9630_v39  ;;  %v698_v17 = vor.u32 %v696_v60, %v694_v8 }
  0xd2   : > { %v9775_v40 = vrot.slane %v629_v47, 4  ;;  %v776_v49 = vor.u32 %v775_v27, %v774_v26  ;;  %v729_v55 = vsel %vm722_vm4, %v9617_v22, %v9746_v21  ;;  %v9782_v13 = vrot.slane %v653_v46, 5  ;;  %8461 = vmatpush3.bf16.msra.mxu0 %v8707_v36 }
  0xd3   : > { %846 = vrot.lane.b32.xlu0 %v834_v7, %s9132_s17  ;;  %848 = vrot.lane.b32.xlu1 %v695_v23, %s9132_s17  ;;  %v9786_v39 = vsel %vm513_vm2, %v9767_v3, %v772_v4  ;;  %v663_v35 = vmul.bf16 %v9653_v51, %v9506_v6  ;;  %v782_v8 = vshll.u32 %v608_v18, 16  ;;  %v652_v9 = vmul.bf16 %v9764_v34, %v608_v18 }
  0xd4   : > { %v700_v27 = vshll.u32 %v9780_v32, 16  ;;  %v664_v22 = vmul.bf16 %v9592_v10, %v9490_v63  ;;  %v606_v60 = vmul.bf16 %v9665_v56, %v560_v38  ;;  %v779_v20 = vshrl.u32 %v608_v18, 16  ;;  %v662_v38 = vld [vmem:[#allocation2 + $0x28] sm:$0x1f] }
  0xd5   : > { %v630_v16 = vmul.bf16 %v9757_v29, %v608_v18  ;;  %v704_v42 = vshrl.u32 %v9780_v32, 16  ;;  %v784_v51 = vrot.slane %v782_v8, 5  ;;  %v835_v12 = vrot.slane %v782_v8, 1 }
  0xd6   : > { %v798_v26 = vrot.slane %v652_v9, 5  ;;  %v9799_v45 = vrot.slane %v700_v27, 1  ;;  %v9801_v15 = vrot.slane %v606_v60, 1  ;;  %v781_v7 = vrot.slane %v779_v20, 4 }
  0xd7   : > { %821 = vrot.lane.b32.xlu0 %v658_v33, %s9130_s24  ;;  %711 = vrot.lane.b32.xlu1 %v695_v23, %s9131_s26  ;;  %v9803_v63 = vrot.slane %v630_v16, 4  ;;  %v9806_v47 = vsel %vm513_vm2, %v772_v4, %v776_v49  ;;  %v836_v54 = vsel %vm609_vm8, %v698_v17, %v835_v12  ;;  %v9812_v46 = vsel %vm513_vm2, %v9704_v14, %v9772_v59 }
  0xd8   : > { %v799_v23 = vsel %vm792_vm5, %v9710_v5, %v798_v26  ;;  %v9818_v50 = vor.u32 %v784_v51, %v781_v7  ;;  %v665_v37 = vmul.bf16 %v9596_v41, %v9647_v48  ;;  %v861_v36 = vrot.slane %v663_v35, 1 }
  0xd9   : > { %v754_v33 = vsel %vm747_vm10, %v9697_v44, %v9775_v40  ;;  %v862_v4 = vrot.slane %v664_v22, 1  ;;  %v666_v14 = vmul.bf16 %v608_v18, %v9695_v43  ;;  %v667_v5 = vmul.bf16 %v662_v38, %v9665_v56 }
  0xda   : > { %v864_v8 = vrot.slane %v665_v37, 1  ;;  %v659_v48 = vmul.bf16 %v608_v18, %v9812_v46  ;;  %v837_v35 = vor.u32 %v835_v12, %v779_v20  ;;  %v731_v37 = vsel %vm722_vm4, %v9746_v21, %v9801_v15 }
  0xdb   : > { %850 = vrot.lane.b32.xlu0 %v836_v54, %s9132_s17  ;;  %736 = vrot.lane.b32.xlu1 %v729_v55, %s9130_s24  ;;  %v9828_v55 = vsel %vm513_vm2, %v776_v49, %v9818_v50  ;;  %v863_v9 = vsel %vm722_vm4, %v861_v36, %v862_v4  ;;  %v866_v27 = vrot.slane %v666_v14, 1  ;;  %v868_v16 = vrot.slane %v667_v5, 1 }
  0xdc   : > { %v865_v44 = vsel %vm722_vm4, %v862_v4, %v864_v8  ;;  %v1016_v22 = vshrl.u32 %v863_v9, 16  ;;  %v1019_v60 = vshll.u32 %v863_v9, 16  ;;  %v703_v49 = vsel %vm609_vm8, %v698_v17, %v9799_v45 }
  0xdd   : > { %v1024_v51 = vshrl.u32 %v865_v44, 16  ;;  %v1027_v7 = vshll.u32 %v865_v44, 16  ;;  %v867_v54 = vsel %vm722_vm4, %v864_v8, %v866_v27  ;;  %v869_v4 = vsel %vm722_vm4, %v866_v27, %v868_v16 }
  0xde   : > { %v1021_v18 = vrot.slane %v1019_v60, 4  ;;  %v1049_v20 = vshrl.u32 %v867_v54, 16  ;;  %v1052_v12 = vshll.u32 %v867_v54, 16  ;;  %v842_v17 = vsel %vm609_vm8, %v837_v35, %v9759_v19 }
  0xdf   : > { %808 = vrot.lane.b32.xlu0 %v799_v23, %s9131_s26  ;;  %761 = vrot.lane.b32.xlu1 %v754_v33, %s9132_s17  ;;  %v1018_v23 = vrot.slane %v1016_v22, 3  ;;  %v1026_v36 = vrot.slane %v1024_v51, 3  ;;  %v1029_v33 = vrot.slane %v1027_v7, 4  ;;  %v1074_v9 = vshrl.u32 %v869_v4, 16 }
  0xe0   : > { %v1051_v38 = vrot.slane %v1049_v20, 3  ;;  %v1054_v8 = vrot.slane %v1052_v12, 4  ;;  %v1077_v44 = vshll.u32 %v869_v4, 16  ;;  %v1102_v60 = vshll.u32 %v868_v16, 16 }
  0xe1   : > { %v1022_v14 = vor.u32 %v1021_v18, %v1018_v23  ;;  %v1030_v5 = vor.u32 %v1029_v33, %v1026_v36  ;;  %v1076_v51 = vrot.slane %v1074_v9, 3  ;;  %v801_v35 = vsel %vm792_vm5, %v798_v26, %v9782_v13 }
  0xe2   : > { %v1055_v22 = vor.u32 %v1054_v8, %v1051_v38  ;;  %v1079_v27 = vrot.slane %v1077_v44, 4  ;;  %v1104_v54 = vrot.slane %v1102_v60, 4  ;;  %v660_v20 = vmul.bf16 %v9702_v30, %v9772_v59  ;;  %v508_v30 = vld [vmem:[#allocation2] sm:$0xf8]  ;;  %v8892_v38 = vld [vmem:[#allocation2 + $0x8] sm:$0xff] }
  0xe3   : > { %823 = vrot.lane.b32.xlu0 %v659_v48, %s9130_s24  ;;  %713 = vrot.lane.b32.xlu1 %v703_v49, %s9131_s26  ;;  %v1099_v48 = vshrl.u32 %v868_v16, 16  ;;  %v1031_v21 = vsel %vm561_vm15, %v1022_v14, %v1030_v5  ;;  %v756_v16 = vsel %vm747_vm10, %v9775_v40, %v9803_v63  ;;  %v706_v26 = vor.u32 %v704_v42, %v9799_v45 }
  0xe4   : > { %8462 = vmatprep.mubr.msk.bf16.mxu0 %vm300_vm0, %v1031_v21  ;;  %v1056_v49 = vsel %vm561_vm15, %v1030_v5, %v1055_v22  ;;  %v1080_v23 = vor.u32 %v1079_v27, %v1076_v51  ;;  %v845_v12 = vor.u32 %v843_v58, %v9759_v19  ;;  %v554_v58 = vmul.bf16 %v9469_v53, %v508_v30 }
  0xe5   : > { %v1101_v7 = vrot.slane %v1099_v48, 3  ;;  %8463 = vmatmul.mubr.msk.bf16.vlgmr.msra.gmra.mrb[0].mxu0 %vm300_vm0, %v1056_v49  ;;  %vm896_vm11 = vcmask 785408   ;;  %v555_v8 = vmul.bf16 %v8892_v38, %v9495_v0  ;;  %vm885_vm12 = vcmask 523264  }
  0xe6   : > { %v1081_v13 = vsel %vm561_vm15, %v1055_v22, %v1080_v23 }
  0xe7   : > { %852 = vrot.lane.b32.xlu0 %v842_v17, %s9132_s17  ;;  %738 = vrot.lane.b32.xlu1 %v731_v37, %s9130_s24  ;;  %v1105_v18 = vor.u32 %v1104_v54, %v1101_v7 }
  0xe8   : > { %8466 = vmatprep.mubr.msk.bf16.mxu0 %vm300_vm0, %v1081_v13 }
  0xe9   : > { %v1106_v40 = vsel %vm561_vm15, %v1080_v23, %v1105_v18 }
  0xeb   : > { %810 = vrot.lane.b32.xlu0 %v801_v35, %s9131_s26  ;;  %763 = vrot.lane.b32.xlu1 %v756_v16, %s9132_s17 }
  0xed   : > { %8467 = vmatmul.mubr.msk.bf16.gmra.mrb[4].mxu0 %vm300_vm0, %v1106_v40 }
  0xef   : > { %825 = vrot.lane.b32.xlu0 %v660_v20, %s9130_s24  ;;  %715 = vrot.lane.b32.xlu1 %v706_v26, %s9131_s26 }
  0xf3   : > { %854 = vrot.lane.b32.xlu0 %v845_v12, %s9132_s17  ;;  %740 = vrot.lane.b32.xlu1 %v9801_v15, %s9130_s24 }
  0xf7   : > { %765 = vrot.lane.b32.xlu1 %v9803_v63, %s9132_s17 }
 0x124   : > { %v818_v42 = vpop.permute.xlu0 %817 }
 0x125   : > { %v820_v45 = vpop.permute.xlu1 %819 }
 0x129   : > { %v803_v37 = vpop.permute.xlu0 %802  ;;  %v708_v36 = vpop.permute.xlu1 %707 }
 0x12a   : > { %v872_v15 = vsel %vm300_vm0, %v554_v58, %v708_v36  ;;  %v909_v9 = vsel %vm300_vm0, %v9767_v3, %v803_v37 }
 0x12b   : > { %v923_v35 = vsel %vm885_vm12, %v909_v9, %v818_v42 }
 0x134   : > { %v735_v4 = vpop.permute.xlu1 %734 }
 0x135   : > { %v805_v33 = vpop.permute.xlu0 %804 }
 0x136   : > { %v912_v22 = vsel %vm300_vm0, %v9786_v39, %v805_v33 }
 0x137   : > { %v925_v3 = vsel %vm885_vm12, %v912_v22, %v820_v45 }
 0x139   : > { %v733_v19 = vpop.permute.xlu0 %732 }
 0x13a   : > { %v887_v63 = vsel %vm885_vm12, %v872_v15, %v733_v19 }
 0x13d   : > { %v758_v17 = vpop.permute.xlu0 %757  ;;  %v760_v14 = vpop.permute.xlu1 %759 }
 0x13e   : > { %v898_v44 = vsel %vm896_vm11, %v887_v63, %v758_v17  ;;  %v8893_v63 = vld [vmem:[#allocation2 + $0x10] sm:$0xff] }
 0x13f   : > { %v985_v51 = vshrl.u32 %v898_v44, 16  ;;  %v988_v27 = vshll.u32 %v898_v44, 16  ;;  %v556_v9 = vmul.bf16 %v8893_v63, %v9731_v31 }
 0x141   : > { %v807_v5 = vpop.permute.xlu0 %806  ;;  %v710_v48 = vpop.permute.xlu1 %709  ;;  %v987_v36 = vrot.slane %v985_v51, 3  ;;  %v990_v33 = vrot.slane %v988_v27, 4 }
 0x142   : > { %v875_v60 = vsel %vm300_vm0, %v555_v8, %v710_v48  ;;  %v915_v38 = vsel %vm300_vm0, %v9806_v47, %v807_v5 }
 0x143   : > { %v889_v21 = vsel %vm885_vm12, %v875_v60, %v735_v4  ;;  %v991_v15 = vor.u32 %v990_v33, %v987_v36  ;;  %v8894_v36 = vld [vmem:[#allocation2 + $0x18] sm:$0xff] }
 0x144   : > { %v900_v7 = vsel %vm896_vm11, %v889_v21, %v760_v14  ;;  %v557_v33 = vmul.bf16 %v8894_v36, %v9812_v46 }
 0x145   : > { %v847_v49 = vpop.permute.xlu0 %846  ;;  %v992_v54 = vshrl.u32 %v900_v7, 16  ;;  %v995_v16 = vshll.u32 %v900_v7, 16  ;;  %v849_v23 = vpop.permute.xlu1 %848 }
 0x146   : > { %v933_v18 = vsel %vm896_vm11, %v923_v35, %v847_v49  ;;  %v935_v39 = vsel %vm896_vm11, %v925_v3, %v849_v23 }
 0x147   : > { %v1000_v20 = vshrl.u32 %v933_v18, 16  ;;  %v1003_v13 = vshll.u32 %v933_v18, 16  ;;  %v994_v26 = vrot.slane %v992_v54, 3  ;;  %v997_v40 = vrot.slane %v995_v16, 4 }
 0x148   : > { %v1007_v12 = vshrl.u32 %v935_v39, 16  ;;  %v1010_v37 = vshll.u32 %v935_v39, 16 }
 0x149   : > { %v1002_v4 = vrot.slane %v1000_v20, 3  ;;  %v1005_v42 = vrot.slane %v1003_v13, 4  ;;  %v822_v30 = vpop.permute.xlu0 %821  ;;  %v712_v17 = vpop.permute.xlu1 %711  ;;  %v998_v14 = vor.u32 %v997_v40, %v994_v26 }
 0x14a   : > { %v1009_v19 = vrot.slane %v1007_v12, 3  ;;  %v1012_v58 = vrot.slane %v1010_v37, 4  ;;  %v927_v44 = vsel %vm885_vm12, %v915_v38, %v822_v30  ;;  %v878_v47 = vsel %vm300_vm0, %v556_v9, %v712_v17 }
 0x14b   : > { %v1006_v45 = vor.u32 %v1005_v42, %v1002_v4  ;;  %v999_v7 = vsel %vm561_vm15, %v991_v15, %v998_v14 }
 0x14c   : > { %v1013_v8 = vor.u32 %v1012_v58, %v1009_v19 }
 0x14d   : > { %v851_v48 = vpop.permute.xlu0 %850  ;;  %v737_v22 = vpop.permute.xlu1 %736 }
 0x14e   : > { %v937_v60 = vsel %vm896_vm11, %v927_v44, %v851_v48  ;;  %v1014_v21 = vsel %vm561_vm15, %v1006_v45, %v1013_v8  ;;  %v891_v54 = vsel %vm885_vm12, %v878_v47, %v737_v22 }
 0x14f   : > { %v1040_v51 = vshrl.u32 %v937_v60, 16  ;;  %v1043_v27 = vshll.u32 %v937_v60, 16  ;;  %1267 = vmatprep.mubr.bf16.mxu1 %v1014_v21 }
 0x150   : > { %1268 = vmatmul.mubr.bf16.vlgmr.msra.gmra.mrb[0].mxu1 %v999_v7 }
 0x151   : > { %v1042_v5 = vrot.slane %v1040_v51, 3  ;;  %v1045_v35 = vrot.slane %v1043_v27, 4  ;;  %v809_v49 = vpop.permute.xlu0 %808  ;;  %v762_v16 = vpop.permute.xlu1 %761 }
 0x152   : > { %v902_v23 = vsel %vm896_vm11, %v891_v54, %v762_v16  ;;  %v918_v12 = vsel %vm300_vm0, %v9828_v55, %v809_v49 }
 0x153   : > { %v1046_v3 = vor.u32 %v1045_v35, %v1042_v5  ;;  %v1032_v18 = vshrl.u32 %v902_v23, 16  ;;  %v1035_v39 = vshll.u32 %v902_v23, 16  ;;  %v558_v35 = vmul.bf16 %v9772_v59, %v9780_v32 }
 0x155   : > { %v824_v20 = vpop.permute.xlu0 %823  ;;  %v1047_v13 = vsel %vm561_vm15, %v1013_v8, %v1046_v3  ;;  %v1034_v26 = vrot.slane %v1032_v18, 3  ;;  %v1037_v40 = vrot.slane %v1035_v39, 4  ;;  %v714_v37 = vpop.permute.xlu1 %713 }
 0x156   : > { %1275 = vmatprep.mubr.bf16.mxu1 %v1047_v13  ;;  %v929_v42 = vsel %vm885_vm12, %v918_v12, %v824_v20  ;;  %v881_v45 = vsel %vm300_vm0, %v557_v33, %v714_v37 }
 0x157   : > { %v1038_v4 = vor.u32 %v1037_v40, %v1034_v26 }
 0x159   : > { %v853_v30 = vpop.permute.xlu0 %852  ;;  %v739_v19 = vpop.permute.xlu1 %738  ;;  %v1039_v58 = vsel %vm561_vm15, %v998_v14, %v1038_v4 }
 0x15a   : > { %v939_v17 = vsel %vm896_vm11, %v929_v42, %v853_v30  ;;  %1276 = vmatmul.mubr.bf16.gmra.mrb[4].mxu1 %v1039_v58  ;;  %v893_v9 = vsel %vm885_vm12, %v881_v45, %v739_v19 }
 0x15b   : > { %v1065_v38 = vshrl.u32 %v939_v17, 16  ;;  %v1068_v8 = vshll.u32 %v939_v17, 16 }
 0x15d   : > { %v1067_v55 = vrot.slane %v1065_v38, 3  ;;  %v1070_v15 = vrot.slane %v1068_v8, 4  ;;  %v811_v63 = vpop.permute.xlu0 %810  ;;  %v764_v44 = vpop.permute.xlu1 %763 }
 0x15e   : > { %v904_v22 = vsel %vm896_vm11, %v893_v9, %v764_v44  ;;  %v921_v47 = vsel %vm300_vm0, %v9818_v50, %v811_v63  ;;  %v8708_v44 = vld [vmem:[#allocation6 + $0x110] sm:$0xff]  }
 0x15f   : > { %v1071_v48 = vor.u32 %v1070_v15, %v1067_v55  ;;  %v1057_v60 = vshrl.u32 %v904_v22, 16  ;;  %v1060_v21 = vshll.u32 %v904_v22, 16  ;;  %8470 = vmatprep.subr.bf16.mxu0 %v8708_v44 }
 0x160   : > { %8471 = vmatpush3.bf16.msra.mxu0 %v8708_v44  ;;  %v8711_v44 = vld [vmem:[#allocation6 + $0x90] sm:$0xff]  }
 0x161   : > { %v826_v51 = vpop.permute.xlu0 %825  ;;  %v1072_v14 = vsel %vm561_vm15, %v1046_v3, %v1071_v48  ;;  %v1059_v27 = vrot.slane %v1057_v60, 3  ;;  %v1062_v7 = vrot.slane %v1060_v21, 4  ;;  %v716_v5 = vpop.permute.xlu1 %715  ;;  %v9936_v21 = vld [vmem:[#allocation8] ss:$0 sm:$0xff] }
 0x162   : > { %1283 = vmatprep.mubr.bf16.mxu1 %v1072_v14  ;;  %v931_v54 = vsel %vm885_vm12, %v921_v47, %v826_v51  ;;  %v884_v3 = vsel %vm300_vm0, %v558_v35, %v716_v5  ;;  %v8895_v47 = vld [vmem:[%s9384_s10] sm:$0xff]  }
 0x163   : > { %v1063_v49 = vor.u32 %v1062_v7, %v1059_v27  ;;  %v472_v5 = vunpack.c.l.bf16 %v8895_v47 }
 0x165   : > { %v855_v16 = vpop.permute.xlu0 %854  ;;  %v741_v23 = vpop.permute.xlu1 %740  ;;  %v1064_v18 = vsel %vm561_vm15, %v1038_v4, %v1063_v49 }
 0x166   : > { %v941_v39 = vsel %vm896_vm11, %v931_v54, %v855_v16  ;;  %1284 = vmatmul.mubr.bf16.gmra.mrb[8].mxu1 %v1064_v18  ;;  %v895_v40 = vsel %vm885_vm12, %v884_v3, %v741_v23  ;;  %v473_v54 = vunpack.c.h.bf16 %v8895_v47 }
 0x167   : > { %v1090_v20 = vshrl.u32 %v941_v39, 16  ;;  %v1093_v13 = vshll.u32 %v941_v39, 16 }
 0x169   : > { %v1092_v50 = vrot.slane %v1090_v20, 3  ;;  %v1095_v26 = vrot.slane %v1093_v13, 4  ;;  %v766_v12 = vpop.permute.xlu1 %765 }
 0x16a   : > { %v906_v37 = vsel %vm896_vm11, %v895_v40, %v766_v12 }
 0x16b   : > { %v1096_v32 = vor.u32 %v1095_v26, %v1092_v50  ;;  %v1082_v36 = vshrl.u32 %v906_v37, 16  ;;  %v1085_v33 = vshll.u32 %v906_v37, 16 }
 0x16d   : > { %v1097_v42 = vsel %vm561_vm15, %v1071_v48, %v1096_v32  ;;  %v1084_v4 = vrot.slane %v1082_v36, 3  ;;  %v1087_v30 = vrot.slane %v1085_v33, 4  ;;  %v8709_v48 = vld [vmem:[#allocation6 + $0x118] sm:$0xff]   ;;  %v8896_v33 = vld [vmem:[%s9384_s10 + $0x8] sm:$0xff]  }
 0x16e   : > { %1291 = vmatprep.mubr.bf16.mxu1 %v1097_v42  ;;  %8472 = vmatprep.subr.bf16.mxu0 %v8709_v48  ;;  %v474_v42 = vunpack.c.l.bf16 %v8896_v33 }
 0x16f   : > { %v1088_v19 = vor.u32 %v1087_v30, %v1084_v4  ;;  %8473 = vmatpush3.bf16.msra.mxu0 %v8709_v48 }
 0x171   : > { %v1089_v58 = vsel %vm561_vm15, %v1063_v49, %v1088_v19 }
 0x172   : > { %1292 = vmatmul.mubr.bf16.gmra.mrb[12].mxu1 %v1089_v58  ;;  %v475_v58 = vunpack.c.h.bf16 %v8896_v33  ;;  %v8897_v33 = vld [vmem:[%s9384_s10 + $0x10] sm:$0xff]  }
 0x1b8   : > { %v8464_v17 = vpop.f32.mrb[0].mxu0 }
 0x1b9   : > { %v1334_v45 = vpop.f32.mrb[1].mxu0 }
 0x1ba   : > { %v8465_v38 = vpop.f32.mrb[2].mxu0 }
 0x1bb   : > { %v1337_v8 = vpop.f32.mrb[3].mxu0 }
 0x1c0   : > { %v9928_v55 = vpop.f32.mrb[4].mxu0 }
 0x1c1   : > { %v9930_v15 = vpop.f32.mrb[5].mxu0 }
 0x1c2   : > { %v9932_v63 = vpop.f32.mrb[6].mxu0 }
 0x1c3   : > { %v9934_v9 = vpop.f32.mrb[7].mxu0 }
 0x223   : > { %v8106_v22 = vpop.f32.mrb[0].mxu1 }
 0x224   : > { %v8107_v60 = vpop.f32.mrb[1].mxu1 }
 0x225   : > { %v8108_v51 = vadd.f32 %v8107_v60, %v8106_v22  ;;  %v8109_v14 = vpop.f32.mrb[2].mxu1  ;;  %v1415_v60 = vld [vmem:[#allocation2] sm:$0xf0] }
 0x226   : > { %v8110_v27 = vpop.f32.mrb[3].mxu1 }
 0x227   : > { %v8111_v7 = vadd.f32 %v8110_v27, %v8109_v14  ;;  %v1270_v35 = vadd.f32 %v8108_v51, %v9936_v21  ;;  %v1452_v27 = vshll.u32 %v1415_v60, 16 }
 0x229   : > { %v1335_v49 = vadd.f32 %v1334_v45, %v1270_v35  ;;  %v1273_v16 = vadd.f32 %v8111_v7, %v9936_v21 }
 0x22b   : > { %v1365_v23 = vadd.f32 %v1335_v49, %v472_v5  ;;  %v1338_v18 = vadd.f32 %v1337_v8, %v1273_v16  ;;  %v8710_v8 = vld [vmem:[#allocation6 + $0xd0] sm:$0xff]  }
 0x22c   : > { %8136 = vmatprep.subr.bf16.mxu1 %v8710_v8  ;;  %v477_v8 = vunpack.c.h.bf16 %v8897_v33 }
 0x22d   : > { %v1381_v39 = vmul.f32 0.2, %v1365_v23  ;;  %v1366_v3 = vadd.f32 %v1338_v18, %v473_v54  ;;  %vm1373_vm13 = vcmp.ge.f32.partialorder %v1365_v23, 0.0  ;;  %v8112_v20 = vpop.f32.mrb[4].mxu1  ;;  %8137 = vmatpush3.bf16.msra.mxu1 %v8711_v44 }
 0x22e   : > { %v8113_v50 = vpop.f32.mrb[5].mxu1 }
 0x22f   : > { %vm1374_vm14 = vcmp.ge.f32.partialorder %v1366_v3, 0.0  ;;  %v1382_v13 = vmul.f32 0.2, %v1366_v3  ;;  %v8114_v26 = vadd.f32 %v8113_v50, %v8112_v20  ;;  %v8115_v40 = vpop.f32.mrb[6].mxu1  ;;  %v9941_v12 = vsel %vm1373_vm13, %v1365_v23, %v1381_v39  ;;  %v1422_v39 = vld [vmem:[#allocation2] sm:$0x80] }
 0x230   : > { %v8116_v37 = vpop.f32.mrb[7].mxu1  ;;  %v8713_v20 = vld [vmem:[#allocation6 + $0x98] sm:$0xff]  }
 0x231   : > { %v9943_v32 = vsel %vm1374_vm14, %v1366_v3, %v1382_v13  ;;  %v1278_v4 = vadd.f32 %v8114_v26, %v9936_v21  ;;  %v8117_v30 = vadd.f32 %v8116_v37, %v8115_v40  ;;  %v8712_v3 = vld [vmem:[#allocation6 + $0xd8] sm:$0xff]   ;;  %v1450_v26 = vshrl.u32 %v1415_v60, 16 }
 0x232   : > { %v1397_v36 = vpack.c.bf16 %v9943_v32, %v9941_v12  ;;  %v1454_v40 = vrot.slane %v1452_v27, 1  ;;  %8138 = vmatprep.subr.bf16.mxu1 %v8712_v3 }
 0x233   : > { %v1343_v19 = vadd.f32 %v8464_v17, %v1278_v4  ;;  %v1281_v45 = vadd.f32 %v8117_v30, %v9936_v21  ;;  %v1417_v30 = vmul.bf16 %v1415_v60, %v9506_v6  ;;  %8139 = vmatpush3.bf16.msra.mxu1 %v8713_v20 }
 0x234   : > { %1401 = vst.msk [vmem:[#allocation2 + $0x8] sm:$0xff] %vm300_vm0, %v1397_v36 }
 0x235   : > { %v1367_v48 = vadd.f32 %v1343_v19, %v474_v42  ;;  %v1346_v22 = vadd.f32 %v8465_v38, %v1281_v45  ;;  %v476_v42 = vunpack.c.l.bf16 %v8897_v33 }
 0x237   : > { %vm1375_vm1 = vcmp.ge.f32.partialorder %v1367_v48, 0.0  ;;  %v1383_v51 = vmul.f32 0.2, %v1367_v48  ;;  %v1368_v14 = vadd.f32 %v1346_v22, %v475_v58  ;;  %v1424_v58 = vmul.bf16 %v1422_v39, %v9622_v24  ;;  %v8714_v22 = vld [vmem:[#allocation6 + $0xe0] sm:$0xff]  }
 0x238   : > { %8140 = vmatprep.subr.bf16.mxu1 %v8714_v22 }
 0x239   : > { %vm1376_vm3 = vcmp.ge.f32.partialorder %v1368_v14, 0.0  ;;  %v1384_v7 = vmul.f32 0.2, %v1368_v14  ;;  %v8118_v47 = vpop.f32.mrb[8].mxu1  ;;  %v9951_v5 = vsel %vm1375_vm1, %v1367_v48, %v1383_v51  ;;  %v8715_v51 = vld [vmem:[#allocation6 + $0xa0] sm:$0xff]  }
 0x23a   : > { %v8119_v17 = vpop.f32.mrb[9].mxu1  ;;  %8141 = vmatpush3.bf16.msra.mxu1 %v8715_v51 }
 0x23b   : > { %v1435_v35 = vld [vmem:[#allocation2 + $0x8] sm:$0xf8]  ;;  %v9955_v54 = vsel %vm1376_vm3, %v1368_v14, %v1384_v7  ;;  %v8120_v38 = vadd.f32 %v8119_v17, %v8118_v47  ;;  %v8121_v16 = vpop.f32.mrb[10].mxu1  ;;  %v1455_v14 = vor.u32 %v1454_v40, %v1450_v26  ;;  %v1503_v17 = vrot.slane %v1417_v30, 1 }
 0x23c   : > { %v9953_v49 = vld [vmem:[#allocation2 + $0x8] sm:$0xff]  ;;  %v1437_v23 = vmul.bf16 %v1435_v35, %v9469_v53  ;;  %v1398_v13 = vpack.c.bf16 %v9955_v54, %v9951_v5  ;;  %v8122_v50 = vpop.f32.mrb[11].mxu1 }
 0x23d   : > { %v1430_v18 = vmul.bf16 %v9953_v49, %v9509_v11  ;;  %v1457_v37 = vshll.u32 %v9953_v49, 16  ;;  %v8123_v36 = vadd.f32 %v8122_v50, %v8121_v16  ;;  %v1286_v4 = vadd.f32 %v8120_v38, %v9936_v21  ;;  %v1442_v39 = vld [vmem:[#allocation2 + $0x8] sm:$0xf0] }
 0x23e   : > { %1595 = vrot.lane.b32.xlu0 %v1437_v23, %s9130_s24  ;;  %1402 = vst.msk [vmem:[#allocation2 + $0x10] sm:$0xff] %vm300_vm0, %v1398_v13  ;;  %v1461_v19 = vshrl.u32 %v9953_v49, 16  ;;  %v1418_v7 = vmul.bf16 %v9953_v49, %v9592_v10  ;;  %v1425_v23 = vmul.bf16 %v9953_v49, %v9657_v52  ;;  %v8898_v26 = vld [vmem:[%s9384_s10 + $0x18] sm:$0xff]  }
 0x23f   : > { %v1351_v45 = vadd.f32 %v9930_v15, %v1286_v4  ;;  %v1289_v44 = vadd.f32 %v8123_v36, %v9936_v21  ;;  %v1571_v48 = vrot.slane %v1430_v18, 5  ;;  %v9972_v27 = vrot.slane %v1457_v37, 1  ;;  %v8716_v36 = vld [vmem:[#allocation6 + $0xe8] sm:$0xff]  }
 0x240   : > { %v1546_v15 = vrot.slane %v1461_v19, 4  ;;  %v1547_v35 = vrot.slane %v1457_v37, 5  ;;  %v1527_v18 = vrot.slane %v1424_v58, 4  ;;  %v9984_v3 = vrot.slane %v1418_v7, 1  ;;  %8142 = vmatprep.subr.bf16.mxu1 %v8716_v36 }
 0x241   : > { %v1369_v60 = vadd.f32 %v1351_v45, %v476_v42  ;;  %v1354_v47 = vadd.f32 %v9934_v9, %v1289_v44  ;;  %v1460_v9 = vsel %vm609_vm8, %v1455_v14, %v9972_v27  ;;  %v478_v40 = vunpack.c.l.bf16 %v8898_v26  ;;  %v8717_v45 = vld [vmem:[#allocation6 + $0xa8] sm:$0xff]  }
 0x242   : > { %1580 = vrot.lane.b32.xlu0 %v1571_v48, %s9131_s26  ;;  %v9986_v20 = vor.u32 %v1547_v35, %v1546_v15  ;;  %v1608_v58 = vshll.u32 %v1442_v39, 16  ;;  %v10002_v14 = vrot.slane %v1425_v23, 4  ;;  %v1505_v35 = vsel %vm722_vm4, %v1503_v17, %v9984_v3  ;;  %8143 = vmatpush3.bf16.msra.mxu1 %v8717_v45 }
 0x243   : > { %v1385_v38 = vmul.f32 0.2, %v1369_v60  ;;  %v1370_v16 = vadd.f32 %v1354_v47, %v477_v8  ;;  %vm1377_vm6 = vcmp.ge.f32.partialorder %v1369_v60, 0.0 }
 0x245   : > { %vm1378_vm7 = vcmp.ge.f32.partialorder %v1370_v16, 0.0  ;;  %v1386_v13 = vmul.f32 0.2, %v1370_v16  ;;  %v8124_v50 = vpop.f32.mrb[12].mxu1  ;;  %v9989_v37 = vld [vmem:[#allocation2 + $0x10] sm:$0xff]  ;;  %v9998_v8 = vsel %vm1377_vm6, %v1369_v60, %v1385_v38 }
 0x246   : > { %1488 = vrot.lane.b32.xlu0 %v1460_v9, %s9131_s26  ;;  %v8125_v33 = vpop.f32.mrb[13].mxu1  ;;  %v1438_v42 = vmul.bf16 %v9989_v37, %v9495_v0  ;;  %v1431_v4 = vmul.bf16 %v9989_v37, %v9606_v62  ;;  %v1465_v30 = vshll.u32 %v9989_v37, 16  ;;  %v1469_v60 = vshrl.u32 %v9989_v37, 16 }
 0x247   : > { %v10000_v44 = vsel %vm1378_vm7, %v1370_v16, %v1386_v13  ;;  %v8126_v22 = vadd.f32 %v8125_v33, %v8124_v50  ;;  %v8127_v51 = vpop.f32.mrb[14].mxu1  ;;  %v479_v16 = vunpack.c.h.bf16 %v8898_v26  ;;  %v1419_v9 = vmul.bf16 %v9989_v37, %v9596_v41  ;;  %v8718_v13 = vld [vmem:[#allocation6 + $0xf0] sm:$0xff]  }
 0x248   : > { %v1399_v7 = vpack.c.bf16 %v10000_v44, %v9998_v8  ;;  %v8128_v47 = vpop.f32.mrb[15].mxu1  ;;  %1597 = vrot.lane.b32.xlu1 %v1438_v42, %s9130_s24  ;;  %v10007_v15 = vrot.slane %v1431_v4, 5  ;;  %v8719_v50 = vld [vmem:[#allocation6 + $0xb0] sm:$0xff]   ;;  %v1550_v17 = vrot.slane %v1465_v30, 5  ;;  %v1610_v33 = vrot.slane %v1608_v58, 1  ;;  %8144 = vmatprep.subr.bf16.mxu1 %v8718_v13  ;;  %v8720_v13 = vld [vmem:[#allocation6 + $0xf8] sm:$0xff]  }
 0x249   : > { %v1294_v38 = vadd.f32 %v8126_v22, %v9936_v21  ;;  %v8129_v23 = vadd.f32 %v8128_v47, %v8127_v51  ;;  %v1444_v42 = vmul.bf16 %v1442_v39, %v9506_v6  ;;  %v10022_v45 = vrot.slane %v1465_v30, 1  ;;  %8145 = vmatpush3.bf16.msra.mxu1 %v8719_v50  ;;  %v8721_v50 = vld [vmem:[#allocation6 + $0xb8] sm:$0xff]  }
 0x24a   : > { %1512 = vrot.lane.b32.xlu0 %v1505_v35, %s9130_s24  ;;  %1403 = vst.msk [vmem:[#allocation2 + $0x18] sm:$0xff] %vm300_vm0, %v1399_v7  ;;  %v1573_v36 = vsel %vm792_vm5, %v1571_v48, %v10007_v15  ;;  %v1606_v22 = vshrl.u32 %v1442_v39, 16  ;;  %v1463_v51 = vor.u32 %v1461_v19, %v9972_v27  ;;  %v1529_v48 = vsel %vm747_vm10, %v1527_v18, %v10002_v14 }
 0x24b   : > { %v1359_v4 = vadd.f32 %v9928_v55, %v1294_v38  ;;  %v1297_v26 = vadd.f32 %v8129_v23, %v9936_v21  ;;  %v1549_v58 = vrot.slane %v1469_v60, 4  ;;  %v1445_v55 = vmul.bf16 %v9989_v37, %v9592_v10  ;;  %8146 = vmatprep.subr.bf16.mxu1 %v8720_v13 }
 0x24c   : > { %1582 = vrot.lane.b32.xlu1 %v1573_v36, %s9131_s26  ;;  %v10036_v30 = vrot.slane %v1419_v9, 1  ;;  %v1426_v19 = vmul.bf16 %v9989_v37, %v9673_v28  ;;  %v1611_v27 = vor.u32 %v1610_v33, %v1606_v22  ;;  %v1639_v7 = vrot.slane %v1444_v42, 1 }
 0x24d   : > { %v1371_v21 = vadd.f32 %v1359_v4, %v478_v40  ;;  %v1362_v39 = vadd.f32 %v9932_v63, %v1297_v26  ;;  %v1640_v18 = vrot.slane %v1445_v55, 1  ;;  %v10040_v47 = vor.u32 %v1550_v17, %v1549_v58  ;;  %8147 = vmatpush3.bf16.msra.mxu1 %v8721_v50 }
 0x24e   : > { %1536 = vrot.lane.b32.xlu0 %v1529_v48, %s9132_s17  ;;  %v1468_v40 = vsel %vm609_vm8, %v1463_v51, %v10022_v45  ;;  %v1612_v63 = vsel %vm609_vm8, %v1611_v27, %v10022_v45  ;;  %v10057_v17 = vrot.slane %v1426_v19, 4  ;;  %v8723_v19 = vld [vmem:[#allocation6 + $0xc0] sm:$0xff]   ;;  %v8724_v27 = vld [vmem:[#allocation6 + $0x108] sm:$0xff]  }
 0x24f   : > { %vm1379_vm9 = vcmp.ge.f32.partialorder %v1371_v21, 0.0  ;;  %v1387_v35 = vmul.f32 0.2, %v1371_v21  ;;  %v1372_v38 = vadd.f32 %v1362_v39, %v479_v16  ;;  %v1641_v23 = vsel %vm722_vm4, %v1639_v7, %v1640_v18  ;;  %v8722_v39 = vld [vmem:[#allocation6 + $0x100] sm:$0xff]  }
 0x250   : > { %1490 = vrot.lane.b32.xlu1 %v1468_v40, %s9131_s26  ;;  %v10051_v9 = vsel %vm513_vm2, %v9986_v20, %v10040_v47  ;;  %v1507_v16 = vsel %vm722_vm4, %v9984_v3, %v10036_v30  ;;  %v1794_v48 = vshrl.u32 %v1641_v23, 16  ;;  %v1797_v58 = vshll.u32 %v1641_v23, 16  ;;  %8148 = vmatprep.subr.bf16.mxu1 %v8722_v39 }
 0x251   : > { %vm1380_vm13 = vcmp.ge.f32.partialorder %v1372_v38, 0.0  ;;  %v1388_v36 = vmul.f32 0.2, %v1372_v38  ;;  %v10059_v33 = vld [vmem:[#allocation2 + $0x18] sm:$0xff]  ;;  %v10062_v42 = vsel %vm1379_vm9, %v1371_v21, %v1387_v35  ;;  %8149 = vmatpush3.bf16.msra.mxu1 %v8723_v19 }
 0x252   : > { %1624 = vrot.lane.b32.xlu0 %v1612_v63, %s9132_s17  ;;  %v1473_v4 = vshll.u32 %v10059_v33, 16  ;;  %v1432_v26 = vmul.bf16 %v10059_v33, %v9688_v61  ;;  %v1446_v22 = vmul.bf16 %v10059_v33, %v9596_v41  ;;  %v1439_v3 = vmul.bf16 %v10059_v33, %v9731_v31  ;;  %8150 = vmatprep.subr.bf16.mxu1 %v8724_v27 }
 0x253   : > { %v10069_v51 = vsel %vm1380_vm13, %v1372_v38, %v1388_v36  ;;  %v1477_v35 = vshrl.u32 %v10059_v33, 16  ;;  %v1531_v38 = vsel %vm747_vm10, %v10002_v14, %v10057_v17  ;;  %v1796_v13 = vrot.slane %v1794_v48, 3  ;;  %v8725_v36 = vld [vmem:[#allocation6 + $0xc8] sm:$0xff]  }
 0x254   : > { %12470 = vst [vmem:[#allocation24_spill] sm:$0xff] %v10069_v51  ;;  %v1400_v55 = vpack.c.bf16 %v10069_v51, %v10062_v42  ;;  %1514 = vrot.lane.b32.xlu1 %v1507_v16, %s9130_s24  ;;  %v10076_v21 = vrot.slane %v1432_v26, 5  ;;  %v1642_v7 = vrot.slane %v1446_v22, 1  ;;  %v1554_v40 = vrot.slane %v1473_v4, 5 }
 0x255   : > { %v1475_v63 = vrot.slane %v1473_v4, 1  ;;  %v1799_v50 = vrot.slane %v1797_v58, 4  ;;  %v1471_v14 = vor.u32 %v1469_v60, %v10022_v45  ;;  %v1420_v48 = vmul.bf16 %v10059_v33, %v9695_v43  ;;  %8151 = vmatpush3.bf16.msra.mxu1 %v8725_v36 }
 0x256   : > { %1599 = vrot.lane.b32.xlu0 %v1439_v3, %s9130_s24  ;;  %1404 = vst.msk [vmem:[#allocation2 + $0x20] sm:$0xff] %vm300_vm0, %v1400_v55  ;;  %v1643_v23 = vsel %vm722_vm4, %v1640_v18, %v1642_v7  ;;  %v1575_v16 = vsel %vm792_vm5, %v10007_v15, %v10076_v21  ;;  %v1553_v3 = vrot.slane %v1477_v35, 4  ;;  %v1443_v55 = vld [vmem:[#allocation2 + $0x28] sm:$0x1f] }
 0x257   : > { %v1802_v26 = vshrl.u32 %v1643_v23, 16  ;;  %v1805_v22 = vshll.u32 %v1643_v23, 16  ;;  %v1476_v39 = vsel %vm609_vm8, %v1471_v14, %v1475_v63  ;;  %v1448_v15 = vmul.bf16 %v1443_v55, %v9665_v56 }
 0x258   : > { %1538 = vrot.lane.b32.xlu1 %v1531_v38, %s9132_s17  ;;  %v1555_v58 = vor.u32 %v1554_v40, %v1553_v3  ;;  %v1800_v19 = vor.u32 %v1799_v50, %v1796_v13  ;;  %v1427_v38 = vmul.bf16 %v10059_v33, %v9735_v57  ;;  %v1479_v55 = vor.u32 %v1477_v35, %v1475_v63  ;;  %v1436_v57 = vld [vmem:[#allocation2 + $0x28] sm:$0xf] }
 0x259   : > { %v1804_v18 = vrot.slane %v1802_v26, 3  ;;  %v1807_v4 = vrot.slane %v1805_v22, 4  ;;  %v1646_v50 = vrot.slane %v1448_v15, 1  ;;  %v1429_v22 = vld [vmem:[#allocation2 + $0x28] sm:$0x1] }
 0x25a   : > { %1584 = vrot.lane.b32.xlu0 %v1575_v16, %s9131_s26  ;;  %v10100_v60 = vsel %vm513_vm2, %v10040_v47, %v1555_v58  ;;  %v10109_v16 = vrot.slane %v1420_v48, 1 }
 0x25b   : > { %v1808_v27 = vor.u32 %v1807_v4, %v1804_v18  ;;  %v1532_v18 = vrot.slane %v1427_v38, 4 }
 0x25c   : > { %1626 = vrot.lane.b32.xlu1 %v1476_v39, %s9132_s17  ;;  %v1509_v48 = vsel %vm722_vm4, %v10036_v30, %v10109_v16 }
 0x25d   : > { %v10102_v45 = vld [vmem:[#allocation2 + $0x20] sm:$0xff]  ;;  %v1809_v40 = vsel %vm561_vm15, %v1800_v19, %v1808_v27 }
 0x25e   : > { %v1440_v23 = vmul.bf16 %v10102_v45, %v9812_v46  ;;  %v1561_v36 = vshll.u32 %v10102_v45, 16  ;;  %8474 = vmatprep.mubr.msk.bf16.mxu0 %vm300_vm0, %v1809_v40  ;;  %v1433_v47 = vmul.bf16 %v10102_v45, %v9764_v34  ;;  %v1447_v13 = vmul.bf16 %v10102_v45, %v9695_v43  ;;  %v10117_v26 = vld [vmem:[#allocation2 + $0x20] sm:$0xf] }
 0x25f   : > { %v1558_v3 = vshrl.u32 %v10102_v45, 16  ;;  %v1481_v15 = vshll.u32 %v10117_v26, 16  ;;  %v1434_v40 = vmul.bf16 %v1429_v22, %v9726_v25  ;;  %v1533_v34 = vsel %vm747_vm10, %v10057_v17, %v1532_v18 }
 0x260   : > { %1492 = vrot.lane.b32.xlu1 %v1476_v39, %s9131_s26  ;;  %1601 = vrot.lane.b32.xlu0 %v1440_v23, %s9130_s24  ;;  %v1613_v14 = vrot.slane %v1561_v36, 1  ;;  %v1644_v4 = vrot.slane %v1447_v13, 1  ;;  %v1576_v2 = vrot.slane %v1433_v47, 5  ;;  %v1416_v13 = vld [vmem:[#allocation2 + $0x20] sm:$0x1f]  ;;  %v1877_v22 = vshrl.u32 %v1646_v50, 16 }
 0x261   : > { %v1560_v23 = vrot.slane %v1558_v3, 4  ;;  %v1880_v47 = vshll.u32 %v1646_v50, 16  ;;  %v1563_v25 = vrot.slane %v1561_v36, 5  ;;  %v1617_v36 = vshll.u32 %v1436_v57, 16 }
 0x262   : > { %v1614_v19 = vsel %vm609_vm8, %v1479_v55, %v1613_v14  ;;  %v1645_v1 = vsel %vm722_vm4, %v1642_v7, %v1644_v4  ;;  %v1647_v39 = vsel %vm722_vm4, %v1644_v4, %v1646_v50  ;;  %v1578_v50 = vrot.slane %v1434_v40, 5 }
 0x263   : > { %v1827_v35 = vshrl.u32 %v1645_v1, 16  ;;  %v1830_v63 = vshll.u32 %v1645_v1, 16  ;;  %v1852_v38 = vshrl.u32 %v1647_v39, 16  ;;  %v1855_v30 = vshll.u32 %v1647_v39, 16 }
 0x264   : > { %1516 = vrot.lane.b32.xlu1 %v1509_v48, %s9130_s24  ;;  %1628 = vrot.lane.b32.xlu0 %v1614_v19, %s9132_s17  ;;  %v1577_v48 = vsel %vm792_vm5, %v10076_v21, %v1576_v2  ;;  %v1483_v19 = vrot.slane %v1481_v15, 1  ;;  %v1421_v1 = vmul.bf16 %v1416_v13, %v9665_v56  ;;  %v10137_v51 = vor.u32 %v1563_v25, %v1560_v23 }
 0x265   : > { %v1829_v7 = vrot.slane %v1827_v35, 3  ;;  %v1832_v43 = vrot.slane %v1830_v63, 4  ;;  %v1854_v4 = vrot.slane %v1852_v38, 3  ;;  %v1857_v61 = vrot.slane %v1855_v30, 4 }
 0x266   : > { %v10143_v35 = vsel %vm513_vm2, %v1555_v58, %v10137_v51  ;;  %v1879_v15 = vrot.slane %v1877_v22, 3  ;;  %v1882_v38 = vrot.slane %v1880_v47, 4  ;;  %v1484_v25 = vsel %vm609_vm8, %v1479_v55, %v1483_v19 }
 0x267   : > { %v1833_v17 = vor.u32 %v1832_v43, %v1829_v7  ;;  %v1858_v39 = vor.u32 %v1857_v61, %v1854_v4  ;;  %v1428_v61 = vmul.bf16 %v10102_v45, %v9757_v29  ;;  %v1579_v43 = vsel %vm792_vm5, %v1576_v2, %v1578_v50 }
 0x268   : > { %1540 = vrot.lane.b32.xlu1 %v1533_v34, %s9132_s17  ;;  %1586 = vrot.lane.b32.xlu0 %v1577_v48, %s9131_s26  ;;  %v1510_v34 = vrot.slane %v1421_v1, 1  ;;  %v1615_v58 = vor.u32 %v1613_v14, %v1558_v3  ;;  %v1883_v40 = vor.u32 %v1882_v38, %v1879_v15  ;;  %v1441_v45 = vmul.bf16 %v1436_v57, %v9772_v59 }
 0x269   : > { %v1834_v63 = vsel %vm561_vm15, %v1808_v27, %v1833_v17  ;;  %v1859_v21 = vsel %vm561_vm15, %v1833_v17, %v1858_v39  ;;  %v1619_v27 = vrot.slane %v1617_v36, 1  ;;  %v1534_v30 = vrot.slane %v1428_v61, 4  ;;  %v1405_v17 = vld [vmem:[#allocation2] sm:$0xf8] }
 0x26a   : > { %8475 = vmatmul.mubr.msk.bf16.vlgmr.msra.gmra.mrb[8].mxu0 %vm300_vm0, %v1834_v63  ;;  %v1511_v23 = vsel %vm722_vm4, %v10109_v16, %v1510_v34  ;;  %v1621_v13 = vshrl.u32 %v1436_v57, 16  ;;  %v1884_v2 = vsel %vm561_vm15, %v1858_v39, %v1883_v40  ;;  %v1485_v16 = vshrl.u32 %v10117_v26, 16 }
 0x26b   : > { %8478 = vmatprep.mubr.msk.bf16.mxu0 %vm300_vm0, %v1859_v21  ;;  %v1620_v55 = vsel %vm609_vm8, %v1615_v58, %v1619_v27  ;;  %v1535_v3 = vsel %vm747_vm10, %v1532_v18, %v1534_v30  ;;  %v1411_v21 = vmul.bf16 %v9953_v49, %v9495_v0 }
 0x26c   : > { %1494 = vrot.lane.b32.xlu1 %v1484_v25, %s9131_s26  ;;  %1588 = vrot.lane.b32.xlu0 %v1579_v43, %s9131_s26  ;;  %v1623_v14 = vor.u32 %v1621_v13, %v1619_v27  ;;  %v1487_v22 = vor.u32 %v1485_v16, %v1483_v19  ;;  %v1410_v19 = vmul.bf16 %v1405_v17, %v9469_v53 }
 0x270   : > { %1518 = vrot.lane.b32.xlu1 %v1511_v23, %s9130_s24  ;;  %1630 = vrot.lane.b32.xlu0 %v1620_v55, %s9132_s17 }
 0x272   : > { %8479 = vmatmul.mubr.msk.bf16.gmra.mrb[12].mxu0 %vm300_vm0, %v1884_v2 }
 0x274   : > { %1542 = vrot.lane.b32.xlu1 %v1535_v3, %s9132_s17  ;;  %1603 = vrot.lane.b32.xlu0 %v1441_v45, %s9130_s24 }
 0x278   : > { %1496 = vrot.lane.b32.xlu1 %v1487_v22, %s9131_s26  ;;  %1632 = vrot.lane.b32.xlu0 %v1623_v14, %s9132_s17 }
 0x27c   : > { %1520 = vrot.lane.b32.xlu1 %v1510_v34, %s9130_s24 }
 0x280   : > { %1544 = vrot.lane.b32.xlu1 %v1534_v30, %s9132_s17 }
 0x2b0   : > { %v1596_v57 = vpop.permute.xlu0 %1595 }
 0x2b4   : > { %v1581_v47 = vpop.permute.xlu0 %1580 }
 0x2b5   : > { %v1685_v36 = vsel %vm300_vm0, %v9986_v20, %v1581_v47 }
 0x2b6   : > { %v1699_v25 = vsel %vm885_vm12, %v1685_v36, %v1596_v57 }
 0x2b8   : > { %v1489_v7 = vpop.permute.xlu0 %1488 }
 0x2b9   : > { %v1650_v38 = vsel %vm300_vm0, %v1410_v19, %v1489_v7 }
 0x2ba   : > { %v1598_v18 = vpop.permute.xlu1 %1597 }
 0x2bc   : > { %v1513_v4 = vpop.permute.xlu0 %1512 }
 0x2bd   : > { %v1664_v34 = vsel %vm885_vm12, %v1650_v38, %v1513_v4 }
 0x2be   : > { %v1583_v48 = vpop.permute.xlu1 %1582 }
 0x2bf   : > { %v1688_v40 = vsel %vm300_vm0, %v10051_v9, %v1583_v48 }
 0x2c0   : > { %v1537_v1 = vpop.permute.xlu0 %1536  ;;  %v1701_v16 = vsel %vm885_vm12, %v1688_v40, %v1598_v18 }
 0x2c1   : > { %v1674_v58 = vsel %vm896_vm11, %v1664_v34, %v1537_v1 }
 0x2c2   : > { %v1491_v39 = vpop.permute.xlu1 %1490  ;;  %v1763_v2 = vshrl.u32 %v1674_v58, 16  ;;  %v1766_v3 = vshll.u32 %v1674_v58, 16 }
 0x2c3   : > { %v1653_v61 = vsel %vm300_vm0, %v1411_v21, %v1491_v39 }
 0x2c4   : > { %v1625_v50 = vpop.permute.xlu0 %1624  ;;  %v1765_v48 = vrot.slane %v1763_v2, 3  ;;  %v1768_v17 = vrot.slane %v1766_v3, 4 }
 0x2c5   : > { %v1709_v43 = vsel %vm896_vm11, %v1699_v25, %v1625_v50 }
 0x2c6   : > { %v1515_v63 = vpop.permute.xlu1 %1514  ;;  %v1778_v23 = vshrl.u32 %v1709_v43, 16  ;;  %v1781_v30 = vshll.u32 %v1709_v43, 16  ;;  %v1769_v25 = vor.u32 %v1768_v17, %v1765_v48  ;;  %v1413_v17 = vmul.bf16 %v10059_v33, %v9812_v46 }
 0x2c7   : > { %v1666_v27 = vsel %vm885_vm12, %v1653_v61, %v1515_v63 }
 0x2c8   : > { %v1600_v15 = vpop.permute.xlu0 %1599  ;;  %v1780_v7 = vrot.slane %v1778_v23, 3  ;;  %v1783_v4 = vrot.slane %v1781_v30, 4 }
 0x2ca   : > { %v1539_v20 = vpop.permute.xlu1 %1538  ;;  %v1784_v18 = vor.u32 %v1783_v4, %v1780_v7 }
 0x2cb   : > { %v1676_v49 = vsel %vm896_vm11, %v1666_v27, %v1539_v20  ;;  %v1412_v27 = vmul.bf16 %v9989_v37, %v9731_v31 }
 0x2cc   : > { %v1770_v55 = vshrl.u32 %v1676_v49, 16  ;;  %v1773_v45 = vshll.u32 %v1676_v49, 16  ;;  %v1585_v13 = vpop.permute.xlu0 %1584 }
 0x2cd   : > { %v1691_v21 = vsel %vm300_vm0, %v10100_v60, %v1585_v13 }
 0x2ce   : > { %v1627_v14 = vpop.permute.xlu1 %1626  ;;  %v1772_v22 = vrot.slane %v1770_v55, 3  ;;  %v1775_v57 = vrot.slane %v1773_v45, 4  ;;  %v1703_v61 = vsel %vm885_vm12, %v1691_v21, %v1600_v15 }
 0x2cf   : > { %v1711_v47 = vsel %vm896_vm11, %v1701_v16, %v1627_v14 }
 0x2d0   : > { %v1785_v1 = vshrl.u32 %v1711_v47, 16  ;;  %v1788_v9 = vshll.u32 %v1711_v47, 16  ;;  %v1776_v63 = vor.u32 %v1775_v57, %v1772_v22 }
 0x2d2   : > { %v1787_v39 = vrot.slane %v1785_v1, 3  ;;  %v1790_v50 = vrot.slane %v1788_v9, 4  ;;  %v1493_v19 = vpop.permute.xlu1 %1492  ;;  %v1602_v36 = vpop.permute.xlu0 %1601  ;;  %v1777_v40 = vsel %vm561_vm15, %v1769_v25, %v1776_v63 }
 0x2d3   : > { %v1656_v60 = vsel %vm300_vm0, %v1412_v27, %v1493_v19 }
 0x2d4   : > { %v1791_v38 = vor.u32 %v1790_v50, %v1787_v39 }
 0x2d6   : > { %v1517_v34 = vpop.permute.xlu1 %1516  ;;  %v1629_v43 = vpop.permute.xlu0 %1628  ;;  %v1792_v58 = vsel %vm561_vm15, %v1784_v18, %v1791_v38 }
 0x2d7   : > { %v1713_v20 = vsel %vm896_vm11, %v1703_v61, %v1629_v43  ;;  %2045 = vmatprep.mubr.bf16.mxu1 %v1792_v58  ;;  %v1668_v30 = vsel %vm885_vm12, %v1656_v60, %v1517_v34 }
 0x2d8   : > { %v1818_v49 = vshrl.u32 %v1713_v20, 16  ;;  %v1821_v23 = vshll.u32 %v1713_v20, 16  ;;  %2046 = vmatmul.mubr.bf16.vlgmr.msra.gmra.mrb[16].mxu1 %v1777_v40 }
 0x2da   : > { %v1820_v55 = vrot.slane %v1818_v49, 3  ;;  %v1823_v15 = vrot.slane %v1821_v23, 4  ;;  %v1541_v45 = vpop.permute.xlu1 %1540  ;;  %v1587_v13 = vpop.permute.xlu0 %1586 }
 0x2db   : > { %v1678_v2 = vsel %vm896_vm11, %v1668_v30, %v1541_v45  ;;  %v1694_v1 = vsel %vm300_vm0, %v10143_v35, %v1587_v13 }
 0x2dc   : > { %v1824_v3 = vor.u32 %v1823_v15, %v1820_v55  ;;  %v1810_v37 = vshrl.u32 %v1678_v2, 16  ;;  %v1813_v16 = vshll.u32 %v1678_v2, 16  ;;  %v1705_v39 = vsel %vm885_vm12, %v1694_v1, %v1602_v36 }
 0x2de   : > { %v1812_v14 = vrot.slane %v1810_v37, 3  ;;  %v1815_v22 = vrot.slane %v1813_v16, 4  ;;  %v1495_v57 = vpop.permute.xlu1 %1494  ;;  %v1825_v47 = vsel %vm561_vm15, %v1791_v38, %v1824_v3  ;;  %v1589_v7 = vpop.permute.xlu0 %1588 }
 0x2df   : > { %2053 = vmatprep.mubr.bf16.mxu1 %v1825_v47  ;;  %v1659_v21 = vsel %vm300_vm0, %v1413_v17, %v1495_v57  ;;  %v1697_v36 = vsel %vm300_vm0, %v10137_v51, %v1589_v7  ;;  %v1414_v51 = vmul.bf16 %v10117_v26, %v9772_v59 }
 0x2e0   : > { %v1816_v4 = vor.u32 %v1815_v22, %v1812_v14 }
 0x2e2   : > { %v1519_v9 = vpop.permute.xlu1 %1518  ;;  %v1817_v48 = vsel %vm561_vm15, %v1776_v63, %v1816_v4  ;;  %v1631_v50 = vpop.permute.xlu0 %1630 }
 0x2e3   : > { %2054 = vmatmul.mubr.bf16.gmra.mrb[20].mxu1 %v1817_v48  ;;  %v1715_v19 = vsel %vm896_vm11, %v1705_v39, %v1631_v50  ;;  %v1670_v25 = vsel %vm885_vm12, %v1659_v21, %v1519_v9 }
 0x2e4   : > { %v1843_v18 = vshrl.u32 %v1715_v19, 16  ;;  %v1846_v38 = vshll.u32 %v1715_v19, 16 }
 0x2e6   : > { %v1543_v34 = vpop.permute.xlu1 %1542  ;;  %v1845_v35 = vrot.slane %v1843_v18, 3  ;;  %v1848_v61 = vrot.slane %v1846_v38, 4  ;;  %v1604_v43 = vpop.permute.xlu0 %1603 }
 0x2e7   : > { %v1680_v63 = vsel %vm896_vm11, %v1670_v25, %v1543_v34  ;;  %v1707_v23 = vsel %vm885_vm12, %v1697_v36, %v1604_v43 }
 0x2e8   : > { %v1835_v58 = vshrl.u32 %v1680_v63, 16  ;;  %v1838_v33 = vshll.u32 %v1680_v63, 16  ;;  %v1849_v27 = vor.u32 %v1848_v61, %v1845_v35  ;;  %v8726_v61 = vld [vmem:[#allocation6 + $0x1a0] sm:$0xff]   ;;  %v8727_v63 = vld [vmem:[#allocation6 + $0x1a8] sm:$0xff]  }
 0x2e9   : > { %8482 = vmatprep.subr.bf16.mxu0 %v8726_v61 }
 0x2ea   : > { %v1837_v20 = vrot.slane %v1835_v58, 3  ;;  %v1840_v40 = vrot.slane %v1838_v33, 4  ;;  %v1497_v49 = vpop.permute.xlu1 %1496  ;;  %v1633_v60 = vpop.permute.xlu0 %1632  ;;  %v1850_v30 = vsel %vm561_vm15, %v1824_v3, %v1849_v27  ;;  %8483 = vmatpush3.bf16.msra.mxu0 %v8726_v61  ;;  %v10231_v58 = vld [vmem:[#allocation8 + $0x1] ss:$0 sm:$0xff] }
 0x2eb   : > { %v1717_v15 = vsel %vm896_vm11, %v1707_v23, %v1633_v60  ;;  %2061 = vmatprep.mubr.bf16.mxu1 %v1850_v30  ;;  %v1662_v22 = vsel %vm300_vm0, %v1414_v51, %v1497_v49  ;;  %8484 = vmatprep.subr.bf16.mxu0 %v8727_v63 }
 0x2ec   : > { %v1841_v55 = vor.u32 %v1840_v40, %v1837_v20  ;;  %v1868_v45 = vshrl.u32 %v1717_v15, 16  ;;  %v1871_v13 = vshll.u32 %v1717_v15, 16 }
 0x2ee   : > { %v1521_v2 = vpop.permute.xlu1 %1520  ;;  %v1842_v37 = vsel %vm561_vm15, %v1816_v4, %v1841_v55  ;;  %v1870_v16 = vrot.slane %v1868_v45, 3  ;;  %v1873_v14 = vrot.slane %v1871_v13, 4  ;;  %8485 = vmatpush3.bf16.msra.mxu0 %v8727_v63 }
 0x2ef   : > { %2062 = vmatmul.mubr.bf16.gmra.mrb[24].mxu1 %v1842_v37  ;;  %v1672_v3 = vsel %vm885_vm12, %v1662_v22, %v1521_v2 }
 0x2f0   : > { %v1874_v57 = vor.u32 %v1873_v14, %v1870_v16 }
 0x2f2   : > { %v1545_v47 = vpop.permute.xlu1 %1544  ;;  %v1875_v1 = vsel %vm561_vm15, %v1849_v27, %v1874_v57 }
 0x2f3   : > { %v1682_v7 = vsel %vm896_vm11, %v1672_v3, %v1545_v47  ;;  %2069 = vmatprep.mubr.bf16.mxu1 %v1875_v1 }
 0x2f4   : > { %v1860_v9 = vshrl.u32 %v1682_v7, 16  ;;  %v1863_v48 = vshll.u32 %v1682_v7, 16 }
 0x2f6   : > { %v1862_v4 = vrot.slane %v1860_v9, 3  ;;  %v1865_v17 = vrot.slane %v1863_v48, 4  ;;  %v2193_v48 = vld [vmem:[#allocation2] sm:$0xf0] }
 0x2f8   : > { %v1866_v39 = vor.u32 %v1865_v17, %v1862_v4 }
 0x2fa   : > { %v1867_v26 = vsel %vm561_vm15, %v1841_v55, %v1866_v39  ;;  %v2230_v39 = vshll.u32 %v2193_v48, 16 }
 0x2fb   : > { %2070 = vmatmul.mubr.bf16.gmra.mrb[28].mxu1 %v1867_v26  ;;  %v8728_v26 = vld [vmem:[#allocation6 + $0x160] sm:$0xff]  }
 0x2fc   : > { %8182 = vmatprep.subr.bf16.mxu1 %v8728_v26 }
 0x33d   : > { %v8476_v50 = vpop.f32.mrb[8].mxu0 }
 0x33e   : > { %v2112_v19 = vpop.f32.mrb[9].mxu0 }
 0x33f   : > { %v8477_v21 = vpop.f32.mrb[10].mxu0 }
 0x340   : > { %v2115_v18 = vpop.f32.mrb[11].mxu0 }
 0x345   : > { %v10223_v38 = vpop.f32.mrb[12].mxu0 }
 0x346   : > { %v10225_v25 = vpop.f32.mrb[13].mxu0 }
 0x347   : > { %v10227_v34 = vpop.f32.mrb[14].mxu0 }
 0x348   : > { %v10229_v35 = vpop.f32.mrb[15].mxu0 }
 0x3ab   : > { %v8152_v43 = vpop.f32.mrb[16].mxu1 }
 0x3ac   : > { %v8153_v33 = vpop.f32.mrb[17].mxu1 }
 0x3ad   : > { %v8154_v27 = vadd.f32 %v8153_v33, %v8152_v43  ;;  %v8155_v36 = vpop.f32.mrb[18].mxu1 }
 0x3ae   : > { %v8156_v20 = vpop.f32.mrb[19].mxu1 }
 0x3af   : > { %v2048_v40 = vadd.f32 %v8154_v27, %v10231_v58  ;;  %v8157_v49 = vadd.f32 %v8156_v20, %v8155_v36  ;;  %v2200_v20 = vld [vmem:[#allocation2] sm:$0x80] }
 0x3b1   : > { %v2113_v23 = vadd.f32 %v2112_v19, %v2048_v40  ;;  %v2051_v60 = vadd.f32 %v8157_v49, %v10231_v58  ;;  %v8729_v19 = vld [vmem:[#allocation6 + $0x120] sm:$0xff]  }
 0x3b2   : > { %8183 = vmatpush3.bf16.msra.mxu1 %v8729_v19 }
 0x3b3   : > { %v2143_v30 = vadd.f32 %v2113_v23, %v9941_v12  ;;  %v2116_v55 = vadd.f32 %v2115_v18, %v2051_v60  ;;  %v2228_v23 = vshrl.u32 %v2193_v48, 16  ;;  %v2232_v60 = vrot.slane %v2230_v39, 1 }
 0x3b5   : > { %v2159_v15 = vmul.f32 0.2, %v2143_v30  ;;  %v2144_v45 = vadd.f32 %v2116_v55, %v9943_v32  ;;  %vm2151_vm14 = vcmp.ge.f32.partialorder %v2143_v30, 0.0  ;;  %v8730_v55 = vld [vmem:[#allocation6 + $0x168] sm:$0xff]  }
 0x3b6   : > { %v8158_v13 = vpop.f32.mrb[20].mxu1  ;;  %8184 = vmatprep.subr.bf16.mxu1 %v8730_v55 }
 0x3b7   : > { %vm2152_vm1 = vcmp.ge.f32.partialorder %v2144_v45, 0.0  ;;  %v2160_v2 = vmul.f32 0.2, %v2144_v45  ;;  %v8159_v37 = vpop.f32.mrb[21].mxu1  ;;  %v10237_v14 = vsel %vm2151_vm14, %v2143_v30, %v2159_v15  ;;  %v8731_v15 = vld [vmem:[#allocation6 + $0x128] sm:$0xff]  }
 0x3b8   : > { %v8160_v51 = vadd.f32 %v8159_v37, %v8158_v13  ;;  %v8161_v16 = vpop.f32.mrb[22].mxu1  ;;  %8185 = vmatpush3.bf16.msra.mxu1 %v8731_v15 }
 0x3b9   : > { %v10239_v22 = vsel %vm2152_vm1, %v2144_v45, %v2160_v2  ;;  %v8162_v57 = vpop.f32.mrb[23].mxu1  ;;  %v2195_v2 = vmul.bf16 %v2193_v48, %v9506_v6 }
 0x3ba   : > { %v2175_v3 = vpack.c.bf16 %v10239_v22, %v10237_v14  ;;  %v2056_v12 = vadd.f32 %v8160_v51, %v10231_v58  ;;  %v8163_v47 = vadd.f32 %v8162_v57, %v8161_v16 }
 0x3bc   : > { %2179 = vst.msk [vmem:[#allocation2 + $0x8] sm:$0xff] %vm300_vm0, %v2175_v3  ;;  %v2121_v32 = vadd.f32 %v8476_v50, %v2056_v12  ;;  %v2059_v7 = vadd.f32 %v8163_v47, %v10231_v58  ;;  %v2202_v3 = vmul.bf16 %v2200_v20, %v9622_v24  ;;  %v2233_v12 = vor.u32 %v2232_v60, %v2228_v23 }
 0x3be   : > { %v2145_v1 = vadd.f32 %v2121_v32, %v9951_v5  ;;  %v2124_v9 = vadd.f32 %v8477_v21, %v2059_v7  ;;  %v2305_v26 = vrot.slane %v2202_v3, 4 }
 0x3c0   : > { %vm2153_vm3 = vcmp.ge.f32.partialorder %v2145_v1, 0.0  ;;  %v2161_v4 = vmul.f32 0.2, %v2145_v1  ;;  %v2146_v17 = vadd.f32 %v2124_v9, %v9955_v54  ;;  %v2281_v9 = vrot.slane %v2195_v2, 1 }
 0x3c2   : > { %vm2154_vm6 = vcmp.ge.f32.partialorder %v2146_v17, 0.0  ;;  %v2162_v18 = vmul.f32 0.2, %v2146_v17  ;;  %v8164_v61 = vpop.f32.mrb[24].mxu1  ;;  %v10248_v63 = vsel %vm2153_vm3, %v2145_v1, %v2161_v4 }
 0x3c3   : > { %v8165_v43 = vpop.f32.mrb[25].mxu1  ;;  %v2213_v50 = vld [vmem:[#allocation2 + $0x8] sm:$0xf8] }
 0x3c4   : > { %v10250_v33 = vld [vmem:[#allocation2 + $0x8] sm:$0xff]  ;;  %v10252_v5 = vsel %vm2154_vm6, %v2146_v17, %v2162_v18  ;;  %v8166_v21 = vadd.f32 %v8165_v43, %v8164_v61  ;;  %v8167_v27 = vpop.f32.mrb[26].mxu1  ;;  %v2215_v36 = vmul.bf16 %v2213_v50, %v9469_v53 }
 0x3c5   : > { %v2208_v54 = vmul.bf16 %v10250_v33, %v9509_v11  ;;  %v2176_v40 = vpack.c.bf16 %v10252_v5, %v10248_v63  ;;  %v8168_v49 = vpop.f32.mrb[27].mxu1  ;;  %v2235_v30 = vshll.u32 %v10250_v33, 16  ;;  %v2239_v37 = vshrl.u32 %v10250_v33, 16  ;;  %v2220_v19 = vld [vmem:[#allocation2 + $0x8] sm:$0xf0] }
 0x3c6   : > { %v2064_v45 = vadd.f32 %v8166_v21, %v10231_v58  ;;  %v8169_v13 = vadd.f32 %v8168_v49, %v8167_v27  ;;  %2373 = vrot.lane.b32.xlu0 %v2215_v36, %s9130_s24  ;;  %v2196_v32 = vmul.bf16 %v10250_v33, %v9592_v10  ;;  %v2203_v39 = vmul.bf16 %v10250_v33, %v9657_v52 }
 0x3c7   : > { %2180 = vst.msk [vmem:[#allocation2 + $0x10] sm:$0xff] %vm300_vm0, %v2176_v40  ;;  %v2349_v57 = vrot.slane %v2208_v54, 5  ;;  %v2237_v47 = vrot.slane %v2235_v30, 1  ;;  %v2325_v48 = vrot.slane %v2235_v30, 5  ;;  %v2386_v20 = vshll.u32 %v2220_v19, 16  ;;  %v8733_v40 = vld [vmem:[#allocation6 + $0x130] sm:$0xff]  }
 0x3c8   : > { %v2129_v51 = vadd.f32 %v10225_v25, %v2064_v45  ;;  %v2067_v16 = vadd.f32 %v8169_v13, %v10231_v58  ;;  %v2324_v25 = vrot.slane %v2239_v37, 4  ;;  %v10279_v18 = vrot.slane %v2196_v32, 1  ;;  %v8734_v32 = vld [vmem:[#allocation6 + $0x178] sm:$0xff]  }
 0x3c9   : > { %v10296_v55 = vrot.slane %v2203_v39, 4 }
 0x3ca   : > { %v2147_v7 = vadd.f32 %v2129_v51, %v9998_v8  ;;  %v2132_v1 = vadd.f32 %v10229_v35, %v2067_v16  ;;  %2358 = vrot.lane.b32.xlu0 %v2349_v57, %s9131_s26  ;;  %v2238_v8 = vsel %vm609_vm8, %v2233_v12, %v2237_v47  ;;  %v10281_v35 = vor.u32 %v2325_v48, %v2324_v25 }
 0x3cb   : > { %v2283_v13 = vsel %vm722_vm4, %v2281_v9, %v10279_v18  ;;  %v2388_v48 = vrot.slane %v2386_v20, 1 }
 0x3cc   : > { %v2163_v4 = vmul.f32 0.2, %v2147_v7  ;;  %v2148_v17 = vadd.f32 %v2132_v1, %v10000_v44  ;;  %vm2155_vm7 = vcmp.ge.f32.partialorder %v2147_v7, 0.0  ;;  %v8732_v44 = vld [vmem:[#allocation6 + $0x170] sm:$0xff]   ;;  %v8736_v1 = vld [vmem:[#allocation6 + $0x180] sm:$0xff]  }
 0x3cd   : > { %8186 = vmatprep.subr.bf16.mxu1 %v8732_v44 }
 0x3ce   : > { %vm2156_vm9 = vcmp.ge.f32.partialorder %v2148_v17, 0.0  ;;  %v2164_v61 = vmul.f32 0.2, %v2148_v17  ;;  %v8170_v43 = vpop.f32.mrb[28].mxu1  ;;  %2266 = vrot.lane.b32.xlu0 %v2238_v8, %s9131_s26  ;;  %v10284_v50 = vld [vmem:[#allocation2 + $0x10] sm:$0xff]  ;;  %v10292_v49 = vsel %vm2155_vm7, %v2147_v7, %v2163_v4  ;;  %8187 = vmatpush3.bf16.msra.mxu1 %v8733_v40  ;;  %v8735_v7 = vld [vmem:[#allocation6 + $0x138] sm:$0xff]   ;;  %v2222_v4 = vmul.bf16 %v2220_v19, %v9506_v6 }
 0x3cf   : > { %v8171_v21 = vpop.f32.mrb[29].mxu1  ;;  %v2216_v27 = vmul.bf16 %v10284_v50, %v9495_v0  ;;  %v2209_v36 = vmul.bf16 %v10284_v50, %v9606_v62  ;;  %v2243_v54 = vshll.u32 %v10284_v50, 16  ;;  %v2247_v51 = vshrl.u32 %v10284_v50, 16  ;;  %8188 = vmatprep.subr.bf16.mxu1 %v8734_v32  ;;  %v12471_v40 = vld [vmem:[#allocation24_spill] sm:$0xff] }
 0x3d0   : > { %v10294_v23 = vsel %vm2156_vm9, %v2148_v17, %v2164_v61  ;;  %v8172_v60 = vadd.f32 %v8171_v21, %v8170_v43  ;;  %v8173_v30 = vpop.f32.mrb[30].mxu1  ;;  %v2197_v12 = vmul.bf16 %v10284_v50, %v9596_v41  ;;  %v2384_v61 = vshrl.u32 %v2220_v19, 16 }
 0x3d1   : > { %v2177_v15 = vpack.c.bf16 %v10294_v23, %v10292_v49  ;;  %v8174_v45 = vpop.f32.mrb[31].mxu1  ;;  %2375 = vrot.lane.b32.xlu1 %v2216_v27, %s9130_s24  ;;  %v10303_v2 = vrot.slane %v2209_v36, 5  ;;  %v2328_v25 = vrot.slane %v2243_v54, 5  ;;  %v10316_v8 = vrot.slane %v2243_v54, 1 }
 0x3d2   : > { %v2072_v16 = vadd.f32 %v8172_v60, %v10231_v58  ;;  %v8175_v3 = vadd.f32 %v8174_v45, %v8173_v30  ;;  %2290 = vrot.lane.b32.xlu0 %v2283_v13, %s9130_s24  ;;  %v2307_v43 = vsel %vm747_vm10, %v2305_v26, %v10296_v55  ;;  %v2327_v44 = vrot.slane %v2247_v51, 4  ;;  %8189 = vmatpush3.bf16.msra.mxu1 %v8735_v7  ;;  %v8738_v45 = vld [vmem:[#allocation6 + $0x188] sm:$0xff]  }
 0x3d3   : > { %2181 = vst.msk [vmem:[#allocation2 + $0x18] sm:$0xff] %vm300_vm0, %v2177_v15  ;;  %v2351_v9 = vsel %vm792_vm5, %v2349_v57, %v10303_v2  ;;  %v2241_v57 = vor.u32 %v2239_v37, %v2237_v47  ;;  %v10330_v27 = vrot.slane %v2197_v12, 1  ;;  %v2204_v26 = vmul.bf16 %v10284_v50, %v9673_v28  ;;  %8190 = vmatprep.subr.bf16.mxu1 %v8736_v1  ;;  %v8739_v13 = vld [vmem:[#allocation6 + $0x148] sm:$0xff]   ;;  %v12472_v1 = vld [vmem:[#allocation19_spill] sm:$0xff] }
 0x3d4   : > { %v2137_v17 = vadd.f32 %v10223_v38, %v2072_v16  ;;  %v2075_v39 = vadd.f32 %v8175_v3, %v10231_v58  ;;  %v2223_v38 = vmul.bf16 %v10284_v50, %v9592_v10  ;;  %v8737_v58 = vld [vmem:[#allocation6 + $0x140] sm:$0xff]   ;;  %v2389_v37 = vor.u32 %v2388_v48, %v2384_v61 }
 0x3d5   : > { %2360 = vrot.lane.b32.xlu1 %v2351_v9, %s9131_s26  ;;  %v2417_v47 = vrot.slane %v2222_v4, 1  ;;  %v10334_v54 = vor.u32 %v2328_v25, %v2327_v44  ;;  %v2285_v3 = vsel %vm722_vm4, %v10279_v18, %v10330_v27  ;;  %v10354_v32 = vrot.slane %v2204_v26, 4  ;;  %v8741_v44 = vld [vmem:[#allocation6 + $0x150] sm:$0xff]  }
 0x3d6   : > { %v2149_v21 = vadd.f32 %v2137_v17, %v10062_v42  ;;  %v2140_v19 = vadd.f32 %v10227_v34, %v2075_v39  ;;  %2314 = vrot.lane.b32.xlu0 %v2307_v43, %s9132_s17  ;;  %v2418_v36 = vrot.slane %v2223_v38, 1  ;;  %v2246_v42 = vsel %vm609_vm8, %v2241_v57, %v10316_v8  ;;  %8191 = vmatpush3.bf16.msra.mxu1 %v8737_v58  ;;  %v8740_v57 = vld [vmem:[#allocation6 + $0x190] sm:$0xff]  }
 0x3d7   : > { %v2390_v34 = vsel %vm609_vm8, %v2389_v37, %v10316_v8  ;;  %v10346_v15 = vsel %vm513_vm2, %v10281_v35, %v10334_v54  ;;  %8192 = vmatprep.subr.bf16.mxu1 %v8738_v45  ;;  %v2221_v45 = vld [vmem:[#allocation2 + $0x28] sm:$0x1f] }
 0x3d8   : > { %v2165_v20 = vmul.f32 0.2, %v2149_v21  ;;  %v2150_v60 = vadd.f32 %v2140_v19, %v12471_v40  ;;  %vm2157_vm13 = vcmp.ge.f32.partialorder %v2149_v21, 0.0  ;;  %v2419_v30 = vsel %vm722_vm4, %v2417_v47, %v2418_v36 }
 0x3d9   : > { %2268 = vrot.lane.b32.xlu1 %v2246_v42, %s9131_s26  ;;  %v2572_v17 = vshrl.u32 %v2419_v30, 16  ;;  %v2575_v39 = vshll.u32 %v2419_v30, 16  ;;  %v2309_v19 = vsel %vm747_vm10, %v10296_v55, %v10354_v32  ;;  %v2249_v55 = vor.u32 %v2247_v51, %v10316_v8  ;;  %v12475_v8 = vld [vmem:[#allocation22_spill] sm:$0xff] }
 0x3da   : > { %vm2158_vm14 = vcmp.ge.f32.partialorder %v2150_v60, 0.0  ;;  %v2166_v16 = vmul.f32 0.2, %v2150_v60  ;;  %2402 = vrot.lane.b32.xlu0 %v2390_v34, %s9132_s17  ;;  %v10352_v12 = vld [vmem:[#allocation2 + $0x18] sm:$0xff]  ;;  %v10364_v4 = vsel %vm2157_vm13, %v2149_v21, %v2165_v20  ;;  %8193 = vmatpush3.bf16.msra.mxu1 %v8739_v13  ;;  %v8742_v21 = vld [vmem:[#allocation6 + $0x198] sm:$0xff]  }
 0x3db   : > { %v2217_v7 = vmul.bf16 %v10352_v12, %v9731_v31  ;;  %v2210_v9 = vmul.bf16 %v10352_v12, %v12472_v1  ;;  %v2251_v25 = vshll.u32 %v10352_v12, 16  ;;  %v2224_v48 = vmul.bf16 %v10352_v12, %v9596_v41  ;;  %8194 = vmatprep.subr.bf16.mxu1 %v8740_v57  ;;  %v8743_v13 = vld [vmem:[#allocation6 + $0x158] sm:$0xff]  }
 0x3dc   : > { %v10366_v18 = vsel %vm2158_vm14, %v2150_v60, %v2166_v16  ;;  %v2255_v58 = vshrl.u32 %v10352_v12, 16  ;;  %v2574_v20 = vrot.slane %v2572_v17, 3  ;;  %v2577_v40 = vrot.slane %v2575_v39, 4 }
 0x3dd   : > { %12473 = vst [vmem:[#allocation24_spill] sm:$0xff] %v10366_v18  ;;  %v2178_v61 = vpack.c.bf16 %v10366_v18, %v10364_v4  ;;  %2292 = vrot.lane.b32.xlu1 %v2285_v3, %s9130_s24  ;;  %v10371_v43 = vrot.slane %v2210_v9, 5  ;;  %v2420_v38 = vrot.slane %v2224_v48, 1  ;;  %v2332_v26 = vrot.slane %v2251_v25, 5  ;;  %v12474_v3 = vld [vmem:[#allocation20_spill] sm:$0xff] }
 0x3de   : > { %2377 = vrot.lane.b32.xlu0 %v2217_v7, %s9130_s24  ;;  %v2253_v37 = vrot.slane %v2251_v25, 1  ;;  %v2331_v30 = vrot.slane %v2255_v58, 4  ;;  %8195 = vmatpush3.bf16.msra.mxu1 %v8741_v44  ;;  %v2198_v7 = vmul.bf16 %v10352_v12, %v12474_v3  ;;  %v2226_v25 = vmul.bf16 %v2221_v45, %v9665_v56 }
 0x3df   : > { %2182 = vst.msk [vmem:[#allocation2 + $0x20] sm:$0xff] %vm300_vm0, %v2178_v61  ;;  %v2421_v47 = vsel %vm722_vm4, %v2418_v36, %v2420_v38  ;;  %v2353_v60 = vsel %vm792_vm5, %v10303_v2, %v10371_v43  ;;  %8196 = vmatprep.subr.bf16.mxu1 %v8742_v21  ;;  %v2578_v48 = vor.u32 %v2577_v40, %v2574_v20 }
 0x3e0   : > { %v2580_v42 = vshrl.u32 %v2421_v47, 16  ;;  %v2583_v34 = vshll.u32 %v2421_v47, 16  ;;  %v2333_v9 = vor.u32 %v2332_v26, %v2331_v30  ;;  %v2254_v2 = vsel %vm609_vm8, %v2249_v55, %v2253_v37  ;;  %v12476_v26 = vld [vmem:[#allocation23_spill] sm:$0xff] }
 0x3e1   : > { %2316 = vrot.lane.b32.xlu1 %v2309_v19, %s9132_s17  ;;  %v2205_v61 = vmul.bf16 %v10352_v12, %v12475_v8  ;;  %v10404_v21 = vrot.slane %v2198_v7, 1  ;;  %v2424_v20 = vrot.slane %v2226_v25, 1  ;;  %v12477_v7 = vld [vmem:[#allocation21_spill] sm:$0xff]  ;;  %v2214_v8 = vld [vmem:[#allocation2 + $0x28] sm:$0xf] }
 0x3e2   : > { %2362 = vrot.lane.b32.xlu0 %v2353_v60, %s9131_s26  ;;  %v2582_v36 = vrot.slane %v2580_v42, 3  ;;  %v2585_v16 = vrot.slane %v2583_v34, 4  ;;  %v10395_v39 = vsel %vm513_vm2, %v10334_v54, %v2333_v9  ;;  %8197 = vmatpush3.bf16.msra.mxu1 %v8743_v13  ;;  %v2207_v60 = vld [vmem:[#allocation2 + $0x28] sm:$0x1]  ;;  %v2257_v34 = vor.u32 %v2255_v58, %v2253_v37 }
 0x3e3   : > { %v2310_v45 = vrot.slane %v2205_v61, 4  ;;  %v2287_v55 = vsel %vm722_vm4, %v10330_v27, %v10404_v21  ;;  %v2212_v25 = vmul.bf16 %v2207_v60, %v12477_v7  ;;  %v2655_v60 = vshrl.u32 %v2424_v20, 16 }
 0x3e4   : > { %v2586_v17 = vor.u32 %v2585_v16, %v2582_v36 }
 0x3e5   : > { %2404 = vrot.lane.b32.xlu1 %v2254_v2, %s9132_s17 }
 0x3e6   : > { %v10397_v51 = vld [vmem:[#allocation2 + $0x20] sm:$0xff]  ;;  %v2587_v57 = vsel %vm561_vm15, %v2578_v48, %v2586_v17 }
 0x3e7   : > { %v2218_v44 = vmul.bf16 %v10397_v51, %v9812_v46  ;;  %v2339_v19 = vshll.u32 %v10397_v51, 16  ;;  %8486 = vmatprep.mubr.msk.bf16.mxu0 %vm300_vm0, %v2587_v57  ;;  %v2211_v54 = vmul.bf16 %v10397_v51, %v12476_v26  ;;  %v2225_v47 = vmul.bf16 %v10397_v51, %v12474_v3  ;;  %v10412_v40 = vld [vmem:[#allocation2 + $0x20] sm:$0xf] }
 0x3e8   : > { %v2336_v42 = vshrl.u32 %v10397_v51, 16  ;;  %v2259_v16 = vshll.u32 %v10412_v40, 16  ;;  %v2311_v26 = vsel %vm747_vm10, %v10354_v32, %v2310_v45 }
 0x3e9   : > { %2270 = vrot.lane.b32.xlu1 %v2254_v2, %s9131_s26  ;;  %2379 = vrot.lane.b32.xlu0 %v2218_v44, %s9130_s24  ;;  %v2391_v30 = vrot.slane %v2339_v19, 1  ;;  %v2422_v13 = vrot.slane %v2225_v47, 1  ;;  %v2354_v48 = vrot.slane %v2211_v54, 5  ;;  %v2194_v47 = vld [vmem:[#allocation2 + $0x20] sm:$0x1f]  ;;  %v2658_v54 = vshll.u32 %v2424_v20, 16 }
 0x3ea   : > { %v2338_v44 = vrot.slane %v2336_v42, 4  ;;  %v2341_v7 = vrot.slane %v2339_v19, 5  ;;  %v2395_v19 = vshll.u32 %v2214_v8, 16 }
 0x3eb   : > { %v2392_v36 = vsel %vm609_vm8, %v2257_v34, %v2391_v30  ;;  %v2423_v57 = vsel %vm722_vm4, %v2420_v38, %v2422_v13  ;;  %v2425_v2 = vsel %vm722_vm4, %v2422_v13, %v2424_v20  ;;  %v2356_v20 = vrot.slane %v2212_v25, 5 }
 0x3ec   : > { %v2605_v58 = vshrl.u32 %v2423_v57, 16  ;;  %v2608_v37 = vshll.u32 %v2423_v57, 16  ;;  %v2630_v61 = vshrl.u32 %v2425_v2, 16  ;;  %v2633_v27 = vshll.u32 %v2425_v2, 16 }
 0x3ed   : > { %2294 = vrot.lane.b32.xlu1 %v2287_v55, %s9130_s24  ;;  %2406 = vrot.lane.b32.xlu0 %v2392_v36, %s9132_s17  ;;  %v2355_v55 = vsel %vm792_vm5, %v10371_v43, %v2354_v48  ;;  %v2261_v36 = vrot.slane %v2259_v16, 1  ;;  %v2199_v57 = vmul.bf16 %v2194_v47, %v9665_v56  ;;  %v10432_v18 = vor.u32 %v2341_v7, %v2338_v44 }
 0x3ee   : > { %v2607_v38 = vrot.slane %v2605_v58, 3  ;;  %v2610_v3 = vrot.slane %v2608_v37, 4  ;;  %v2632_v13 = vrot.slane %v2630_v61, 3  ;;  %v2635_v1 = vrot.slane %v2633_v27, 4 }
 0x3ef   : > { %v10438_v58 = vsel %vm513_vm2, %v2333_v9, %v10432_v18  ;;  %v2657_v16 = vrot.slane %v2655_v60, 3  ;;  %v2660_v61 = vrot.slane %v2658_v54, 4  ;;  %v2288_v7 = vrot.slane %v2199_v57, 1 }
 0x3f0   : > { %v2611_v32 = vor.u32 %v2610_v3, %v2607_v38  ;;  %v2636_v2 = vor.u32 %v2635_v1, %v2632_v13  ;;  %v2206_v1 = vmul.bf16 %v10397_v51, %v9757_v29  ;;  %v2357_v3 = vsel %vm792_vm5, %v2354_v48, %v2356_v20 }
 0x3f1   : > { %2318 = vrot.lane.b32.xlu1 %v2311_v26, %s9132_s17  ;;  %2364 = vrot.lane.b32.xlu0 %v2355_v55, %s9131_s26  ;;  %v2262_v26 = vsel %vm609_vm8, %v2257_v34, %v2261_v36  ;;  %v2393_v9 = vor.u32 %v2391_v30, %v2336_v42  ;;  %v2661_v25 = vor.u32 %v2660_v61, %v2657_v16  ;;  %v2399_v47 = vshrl.u32 %v2214_v8, 16 }
 0x3f2   : > { %v2612_v37 = vsel %vm561_vm15, %v2586_v17, %v2611_v32  ;;  %v2637_v43 = vsel %vm561_vm15, %v2611_v32, %v2636_v2  ;;  %v2397_v17 = vrot.slane %v2395_v19, 1  ;;  %v2289_v44 = vsel %vm722_vm4, %v10404_v21, %v2288_v7  ;;  %v2183_v32 = vld [vmem:[#allocation2] sm:$0xf8] }
 0x3f3   : > { %8487 = vmatmul.mubr.msk.bf16.vlgmr.msra.gmra.mrb[16].mxu0 %vm300_vm0, %v2612_v37  ;;  %v2312_v27 = vrot.slane %v2206_v1, 4  ;;  %v2219_v51 = vmul.bf16 %v2214_v8, %v9772_v59  ;;  %v2662_v48 = vsel %vm561_vm15, %v2636_v2, %v2661_v25  ;;  %v2263_v21 = vshrl.u32 %v10412_v40, 16 }
 0x3f4   : > { %8490 = vmatprep.mubr.msk.bf16.mxu0 %vm300_vm0, %v2637_v43  ;;  %v2398_v34 = vsel %vm609_vm8, %v2393_v9, %v2397_v17  ;;  %v2401_v30 = vor.u32 %v2399_v47, %v2397_v17  ;;  %v2189_v43 = vmul.bf16 %v10250_v33, %v9495_v0 }
 0x3f5   : > { %2272 = vrot.lane.b32.xlu1 %v2262_v26, %s9131_s26  ;;  %2366 = vrot.lane.b32.xlu0 %v2357_v3, %s9131_s26  ;;  %v2313_v42 = vsel %vm747_vm10, %v2310_v45, %v2312_v27  ;;  %v2265_v60 = vor.u32 %v2263_v21, %v2261_v36  ;;  %v2188_v36 = vmul.bf16 %v2183_v32, %v9469_v53 }
 0x3f9   : > { %2296 = vrot.lane.b32.xlu1 %v2289_v44, %s9130_s24  ;;  %2408 = vrot.lane.b32.xlu0 %v2398_v34, %s9132_s17 }
 0x3fb   : > { %8491 = vmatmul.mubr.msk.bf16.gmra.mrb[20].mxu0 %vm300_vm0, %v2662_v48 }
 0x3fd   : > { %2320 = vrot.lane.b32.xlu1 %v2313_v42, %s9132_s17  ;;  %2381 = vrot.lane.b32.xlu0 %v2219_v51, %s9130_s24 }
 0x401   : > { %2274 = vrot.lane.b32.xlu1 %v2265_v60, %s9131_s26  ;;  %2410 = vrot.lane.b32.xlu0 %v2401_v30, %s9132_s17 }
 0x405   : > { %2298 = vrot.lane.b32.xlu1 %v2288_v7, %s9130_s24 }
 0x409   : > { %2322 = vrot.lane.b32.xlu1 %v2312_v27, %s9132_s17 }
 0x438   : > { %v2374_v8 = vpop.permute.xlu0 %2373 }
 0x43c   : > { %v2359_v54 = vpop.permute.xlu0 %2358 }
 0x43d   : > { %v2463_v19 = vsel %vm300_vm0, %v10281_v35, %v2359_v54 }
 0x43e   : > { %v2477_v61 = vsel %vm885_vm12, %v2463_v19, %v2374_v8 }
 0x440   : > { %v2267_v38 = vpop.permute.xlu0 %2266 }
 0x441   : > { %v2428_v16 = vsel %vm300_vm0, %v2188_v36, %v2267_v38 }
 0x443   : > { %v2376_v45 = vpop.permute.xlu1 %2375 }
 0x444   : > { %v2291_v13 = vpop.permute.xlu0 %2290 }
 0x445   : > { %v2442_v7 = vsel %vm885_vm12, %v2428_v16, %v2291_v13 }
 0x447   : > { %v2361_v55 = vpop.permute.xlu1 %2360 }
 0x448   : > { %v2315_v57 = vpop.permute.xlu0 %2314  ;;  %v2466_v25 = vsel %vm300_vm0, %v10346_v15, %v2361_v55 }
 0x449   : > { %v2452_v9 = vsel %vm896_vm11, %v2442_v7, %v2315_v57  ;;  %v2479_v21 = vsel %vm885_vm12, %v2466_v25, %v2376_v45 }
 0x44a   : > { %v2541_v47 = vshrl.u32 %v2452_v9, 16  ;;  %v2544_v48 = vshll.u32 %v2452_v9, 16 }
 0x44b   : > { %v2269_v2 = vpop.permute.xlu1 %2268 }
 0x44c   : > { %v2403_v20 = vpop.permute.xlu0 %2402  ;;  %v2431_v1 = vsel %vm300_vm0, %v2189_v43, %v2269_v2  ;;  %v2543_v55 = vrot.slane %v2541_v47, 3  ;;  %v2546_v32 = vrot.slane %v2544_v48, 4 }
 0x44d   : > { %v2487_v3 = vsel %vm896_vm11, %v2477_v61, %v2403_v20 }
 0x44e   : > { %v2556_v44 = vshrl.u32 %v2487_v3, 16  ;;  %v2559_v27 = vshll.u32 %v2487_v3, 16  ;;  %v2547_v61 = vor.u32 %v2546_v32, %v2543_v55  ;;  %v2191_v32 = vmul.bf16 %v10352_v12, %v9812_v46 }
 0x44f   : > { %v2293_v37 = vpop.permute.xlu1 %2292 }
 0x450   : > { %v2378_v26 = vpop.permute.xlu0 %2377  ;;  %v2444_v17 = vsel %vm885_vm12, %v2431_v1, %v2293_v37  ;;  %v2558_v38 = vrot.slane %v2556_v44, 3  ;;  %v2561_v13 = vrot.slane %v2559_v27, 4 }
 0x452   : > { %v2562_v45 = vor.u32 %v2561_v13, %v2558_v38 }
 0x453   : > { %v2317_v35 = vpop.permute.xlu1 %2316 }
 0x454   : > { %v2454_v33 = vsel %vm896_vm11, %v2444_v17, %v2317_v35  ;;  %v2363_v42 = vpop.permute.xlu0 %2362  ;;  %v2190_v17 = vmul.bf16 %v10284_v50, %v9731_v31 }
 0x455   : > { %v2548_v34 = vshrl.u32 %v2454_v33, 16  ;;  %v2551_v51 = vshll.u32 %v2454_v33, 16  ;;  %v2469_v43 = vsel %vm300_vm0, %v10395_v39, %v2363_v42 }
 0x456   : > { %v2481_v1 = vsel %vm885_vm12, %v2469_v43, %v2378_v26 }
 0x457   : > { %v2405_v30 = vpop.permute.xlu1 %2404  ;;  %v2550_v60 = vrot.slane %v2548_v34, 3  ;;  %v2553_v8 = vrot.slane %v2551_v51, 4 }
 0x458   : > { %v2489_v54 = vsel %vm896_vm11, %v2479_v21, %v2405_v30 }
 0x459   : > { %v2563_v57 = vshrl.u32 %v2489_v54, 16  ;;  %v2566_v15 = vshll.u32 %v2489_v54, 16  ;;  %v2554_v37 = vor.u32 %v2553_v8, %v2550_v60 }
 0x45b   : > { %v2565_v2 = vrot.slane %v2563_v57, 3  ;;  %v2568_v20 = vrot.slane %v2566_v15, 4  ;;  %v2271_v36 = vpop.permute.xlu1 %2270  ;;  %v2380_v19 = vpop.permute.xlu0 %2379  ;;  %v2555_v25 = vsel %vm561_vm15, %v2547_v61, %v2554_v37 }
 0x45c   : > { %v2434_v39 = vsel %vm300_vm0, %v2190_v17, %v2271_v36 }
 0x45d   : > { %v2569_v16 = vor.u32 %v2568_v20, %v2565_v2 }
 0x45f   : > { %v2295_v7 = vpop.permute.xlu1 %2294  ;;  %v2407_v3 = vpop.permute.xlu0 %2406  ;;  %v2570_v9 = vsel %vm561_vm15, %v2562_v45, %v2569_v16 }
 0x460   : > { %v2491_v35 = vsel %vm896_vm11, %v2481_v1, %v2407_v3  ;;  %2823 = vmatprep.mubr.bf16.mxu1 %v2570_v9  ;;  %v2446_v27 = vsel %vm885_vm12, %v2434_v39, %v2295_v7 }
 0x461   : > { %v2596_v33 = vshrl.u32 %v2491_v35, 16  ;;  %v2599_v44 = vshll.u32 %v2491_v35, 16  ;;  %2824 = vmatmul.mubr.bf16.vlgmr.msra.gmra.mrb[32].mxu1 %v2555_v25 }
 0x463   : > { %v2598_v34 = vrot.slane %v2596_v33, 3  ;;  %v2601_v26 = vrot.slane %v2599_v44, 4  ;;  %v2319_v51 = vpop.permute.xlu1 %2318  ;;  %v2365_v47 = vpop.permute.xlu0 %2364 }
 0x464   : > { %v2456_v48 = vsel %vm896_vm11, %v2446_v27, %v2319_v51  ;;  %v2472_v57 = vsel %vm300_vm0, %v10438_v58, %v2365_v47 }
 0x465   : > { %v2602_v42 = vor.u32 %v2601_v26, %v2598_v34  ;;  %v2588_v50 = vshrl.u32 %v2456_v48, 16  ;;  %v2591_v21 = vshll.u32 %v2456_v48, 16  ;;  %v2483_v2 = vsel %vm885_vm12, %v2472_v57, %v2380_v19 }
 0x467   : > { %v2590_v30 = vrot.slane %v2588_v50, 3  ;;  %v2593_v60 = vrot.slane %v2591_v21, 4  ;;  %v2273_v8 = vpop.permute.xlu1 %2272  ;;  %v2603_v54 = vsel %vm561_vm15, %v2569_v16, %v2602_v42  ;;  %v2367_v38 = vpop.permute.xlu0 %2366 }
 0x468   : > { %2831 = vmatprep.mubr.bf16.mxu1 %v2603_v54  ;;  %v2437_v43 = vsel %vm300_vm0, %v2191_v32, %v2273_v8  ;;  %v2475_v19 = vsel %vm300_vm0, %v10432_v18, %v2367_v38  ;;  %v2192_v18 = vmul.bf16 %v10412_v40, %v9772_v59 }
 0x469   : > { %v2594_v13 = vor.u32 %v2593_v60, %v2590_v30 }
 0x46b   : > { %v2297_v15 = vpop.permute.xlu1 %2296  ;;  %v2595_v55 = vsel %vm561_vm15, %v2554_v37, %v2594_v13  ;;  %v2409_v20 = vpop.permute.xlu0 %2408 }
 0x46c   : > { %2832 = vmatmul.mubr.bf16.gmra.mrb[36].mxu1 %v2595_v55  ;;  %v2493_v36 = vsel %vm896_vm11, %v2483_v2, %v2409_v20  ;;  %v2448_v61 = vsel %vm885_vm12, %v2437_v43, %v2297_v15 }
 0x46d   : > { %v2621_v45 = vshrl.u32 %v2493_v36, 16  ;;  %v2624_v16 = vshll.u32 %v2493_v36, 16 }
 0x46f   : > { %v2321_v7 = vpop.permute.xlu1 %2320  ;;  %v2623_v58 = vrot.slane %v2621_v45, 3  ;;  %v2626_v1 = vrot.slane %v2624_v16, 4  ;;  %v2382_v3 = vpop.permute.xlu0 %2381 }
 0x470   : > { %v2458_v37 = vsel %vm896_vm11, %v2448_v61, %v2321_v7  ;;  %v2485_v44 = vsel %vm885_vm12, %v2475_v19, %v2382_v3 }
 0x471   : > { %v2613_v9 = vshrl.u32 %v2458_v37, 16  ;;  %v2616_v12 = vshll.u32 %v2458_v37, 16  ;;  %v2627_v17 = vor.u32 %v2626_v1, %v2623_v58  ;;  %v10526_v37 = vld [vmem:[#allocation8 + $0x2] ss:$0 sm:$0xff] }
 0x473   : > { %v2615_v35 = vrot.slane %v2613_v9, 3  ;;  %v2618_v25 = vrot.slane %v2616_v12, 4  ;;  %v2275_v33 = vpop.permute.xlu1 %2274  ;;  %v2411_v39 = vpop.permute.xlu0 %2410  ;;  %v2628_v27 = vsel %vm561_vm15, %v2602_v42, %v2627_v17 }
 0x474   : > { %v2495_v26 = vsel %vm896_vm11, %v2485_v44, %v2411_v39  ;;  %2839 = vmatprep.mubr.bf16.mxu1 %v2628_v27  ;;  %v2440_v60 = vsel %vm300_vm0, %v2192_v18, %v2275_v33 }
 0x475   : > { %v2619_v34 = vor.u32 %v2618_v25, %v2615_v35  ;;  %v2646_v51 = vshrl.u32 %v2495_v26, 16  ;;  %v2649_v47 = vshll.u32 %v2495_v26, 16 }
 0x477   : > { %v2299_v48 = vpop.permute.xlu1 %2298  ;;  %v2620_v50 = vsel %vm561_vm15, %v2594_v13, %v2619_v34  ;;  %v2648_v21 = vrot.slane %v2646_v51, 3  ;;  %v2651_v30 = vrot.slane %v2649_v47, 4 }
 0x478   : > { %2840 = vmatmul.mubr.bf16.gmra.mrb[40].mxu1 %v2620_v50  ;;  %v2450_v42 = vsel %vm885_vm12, %v2440_v60, %v2299_v48 }
 0x479   : > { %v2652_v8 = vor.u32 %v2651_v30, %v2648_v21 }
 0x47b   : > { %v2323_v54 = vpop.permute.xlu1 %2322  ;;  %v2653_v57 = vsel %vm561_vm15, %v2627_v17, %v2652_v8 }
 0x47c   : > { %v2460_v38 = vsel %vm896_vm11, %v2450_v42, %v2323_v54  ;;  %2847 = vmatprep.mubr.bf16.mxu1 %v2653_v57  ;;  %v2971_v57 = vld [vmem:[#allocation2] sm:$0xf0] }
 0x47d   : > { %v2638_v15 = vshrl.u32 %v2460_v38, 16  ;;  %v2641_v55 = vshll.u32 %v2460_v38, 16 }
 0x47f   : > { %v2640_v13 = vrot.slane %v2638_v15, 3  ;;  %v2643_v32 = vrot.slane %v2641_v55, 4 }
 0x481   : > { %v2644_v2 = vor.u32 %v2643_v32, %v2640_v13  ;;  %v3008_v13 = vshll.u32 %v2971_v57, 16  ;;  %v8744_v32 = vld [vmem:[#allocation6 + $0x1f0] sm:$0xff]  }
 0x482   : > { %8228 = vmatprep.subr.bf16.mxu1 %v8744_v32 }
 0x483   : > { %v2645_v40 = vsel %vm561_vm15, %v2619_v34, %v2644_v2  ;;  %v8745_v2 = vld [vmem:[#allocation6 + $0x1b0] sm:$0xff]  }
 0x484   : > { %2848 = vmatmul.mubr.bf16.gmra.mrb[44].mxu1 %v2645_v40 }
 0x485   : > { %8229 = vmatpush3.bf16.msra.mxu1 %v8745_v2 }
 0x4c6   : > { %v8488_v20 = vpop.f32.mrb[16].mxu0 }
 0x4c7   : > { %v2890_v36 = vpop.f32.mrb[17].mxu0 }
 0x4c8   : > { %v8489_v43 = vpop.f32.mrb[18].mxu0 }
 0x4c9   : > { %v2893_v45 = vpop.f32.mrb[19].mxu0 }
 0x4ce   : > { %v10518_v16 = vpop.f32.mrb[20].mxu0 }
 0x4cf   : > { %v10520_v61 = vpop.f32.mrb[21].mxu0 }
 0x4d0   : > { %v10522_v7 = vpop.f32.mrb[22].mxu0 }
 0x4d1   : > { %v10524_v58 = vpop.f32.mrb[23].mxu0 }
 0x534   : > { %v8198_v1 = vpop.f32.mrb[32].mxu1 }
 0x535   : > { %v8199_v3 = vpop.f32.mrb[33].mxu1 }
 0x536   : > { %v8200_v9 = vadd.f32 %v8199_v3, %v8198_v1  ;;  %v8201_v12 = vpop.f32.mrb[34].mxu1 }
 0x537   : > { %v8202_v17 = vpop.f32.mrb[35].mxu1 }
 0x538   : > { %v2826_v19 = vadd.f32 %v8200_v9, %v10526_v37  ;;  %v8203_v35 = vadd.f32 %v8202_v17, %v8201_v12  ;;  %v2978_v17 = vld [vmem:[#allocation2] sm:$0x80] }
 0x53a   : > { %v2891_v25 = vadd.f32 %v2890_v36, %v2826_v19  ;;  %v2829_v33 = vadd.f32 %v8203_v35, %v10526_v37 }
 0x53c   : > { %v2921_v44 = vadd.f32 %v2891_v25, %v10237_v14  ;;  %v2894_v39 = vadd.f32 %v2893_v45, %v2829_v33  ;;  %v3006_v25 = vshrl.u32 %v2971_v57, 16  ;;  %v3010_v33 = vrot.slane %v3008_v13, 1 }
 0x53e   : > { %v2937_v27 = vmul.f32 0.2, %v2921_v44  ;;  %v2922_v34 = vadd.f32 %v2894_v39, %v10239_v22  ;;  %vm2929_vm1 = vcmp.ge.f32.partialorder %v2921_v44, 0.0  ;;  %v8746_v39 = vld [vmem:[#allocation6 + $0x1f8] sm:$0xff]  }
 0x53f   : > { %v8204_v26 = vpop.f32.mrb[36].mxu1  ;;  %8230 = vmatprep.subr.bf16.mxu1 %v8746_v39 }
 0x540   : > { %vm2930_vm3 = vcmp.ge.f32.partialorder %v2922_v34, 0.0  ;;  %v2938_v51 = vmul.f32 0.2, %v2922_v34  ;;  %v8205_v47 = vpop.f32.mrb[37].mxu1  ;;  %v10532_v18 = vsel %vm2929_vm1, %v2921_v44, %v2937_v27  ;;  %v8747_v27 = vld [vmem:[#allocation6 + $0x1b8] sm:$0xff]  }
 0x541   : > { %v8206_v48 = vadd.f32 %v8205_v47, %v8204_v26  ;;  %v8207_v50 = vpop.f32.mrb[38].mxu1  ;;  %v2973_v47 = vmul.bf16 %v2971_v57, %v9506_v6  ;;  %8231 = vmatpush3.bf16.msra.mxu1 %v8747_v27 }
 0x542   : > { %v10534_v21 = vsel %vm2930_vm3, %v2922_v34, %v2938_v51  ;;  %v8208_v30 = vpop.f32.mrb[39].mxu1 }
 0x543   : > { %v2953_v60 = vpack.c.bf16 %v10534_v21, %v10532_v18  ;;  %v2834_v14 = vadd.f32 %v8206_v48, %v10526_v37  ;;  %v8209_v8 = vadd.f32 %v8208_v30, %v8207_v50  ;;  %v3059_v57 = vrot.slane %v2973_v47, 1 }
 0x545   : > { %2957 = vst.msk [vmem:[#allocation2 + $0x8] sm:$0xff] %vm300_vm0, %v2953_v60  ;;  %v2899_v22 = vadd.f32 %v8488_v20, %v2834_v14  ;;  %v2837_v42 = vadd.f32 %v8209_v8, %v10526_v37  ;;  %v2980_v60 = vmul.bf16 %v2978_v17, %v9622_v24  ;;  %v3011_v14 = vor.u32 %v3010_v33, %v3006_v25 }
 0x547   : > { %v2923_v54 = vadd.f32 %v2899_v22, %v10248_v63  ;;  %v2902_v38 = vadd.f32 %v8489_v43, %v2837_v42  ;;  %v3083_v32 = vrot.slane %v2980_v60, 4 }
 0x549   : > { %vm2931_vm6 = vcmp.ge.f32.partialorder %v2923_v54, 0.0  ;;  %v2939_v15 = vmul.f32 0.2, %v2923_v54  ;;  %v2924_v55 = vadd.f32 %v2902_v38, %v10252_v5 }
 0x54b   : > { %vm2932_vm7 = vcmp.ge.f32.partialorder %v2924_v55, 0.0  ;;  %v2940_v40 = vmul.f32 0.2, %v2924_v55  ;;  %v8210_v36 = vpop.f32.mrb[40].mxu1  ;;  %v10543_v45 = vsel %vm2931_vm6, %v2923_v54, %v2939_v15 }
 0x54c   : > { %v8211_v1 = vpop.f32.mrb[41].mxu1  ;;  %v2991_v20 = vld [vmem:[#allocation2 + $0x8] sm:$0xf8] }
 0x54d   : > { %v10545_v3 = vld [vmem:[#allocation2 + $0x8] sm:$0xff]  ;;  %v10547_v63 = vsel %vm2932_vm7, %v2924_v55, %v2940_v40  ;;  %v8212_v43 = vadd.f32 %v8211_v1, %v8210_v36  ;;  %v8213_v9 = vpop.f32.mrb[42].mxu1  ;;  %v2993_v12 = vmul.bf16 %v2991_v20, %v9469_v53  ;;  %v8748_v20 = vld [vmem:[#allocation6 + $0x200] sm:$0xff]  }
 0x54e   : > { %v2986_v5 = vmul.bf16 %v10545_v3, %v9509_v11  ;;  %v2954_v19 = vpack.c.bf16 %v10547_v63, %v10543_v45  ;;  %v8214_v35 = vpop.f32.mrb[43].mxu1  ;;  %v3013_v44 = vshll.u32 %v10545_v3, 16  ;;  %v3017_v51 = vshrl.u32 %v10545_v3, 16  ;;  %v10575_v2 = vld [vmem:[#allocation2 + $0x8] sm:$0xf0]  ;;  %8232 = vmatprep.subr.bf16.mxu1 %v8748_v20 }
 0x54f   : > { %v2842_v34 = vadd.f32 %v8212_v43, %v10526_v37  ;;  %v8215_v26 = vadd.f32 %v8214_v35, %v8213_v9  ;;  %3151 = vrot.lane.b32.xlu0 %v2993_v12, %s9130_s24  ;;  %v2974_v22 = vmul.bf16 %v10545_v3, %v9592_v10  ;;  %v2981_v13 = vmul.bf16 %v10545_v3, %v9657_v52 }
 0x550   : > { %2958 = vst.msk [vmem:[#allocation2 + $0x10] sm:$0xff] %vm300_vm0, %v2954_v19  ;;  %v3127_v30 = vrot.slane %v2986_v5, 5  ;;  %v10563_v8 = vrot.slane %v3013_v44, 1  ;;  %v3102_v42 = vrot.slane %v3017_v51, 4  ;;  %v3164_v17 = vshll.u32 %v10575_v2, 16  ;;  %v8749_v19 = vld [vmem:[#allocation6 + $0x1c0] sm:$0xff]  }
 0x551   : > { %v2907_v48 = vadd.f32 %v10520_v61, %v2842_v34  ;;  %v2845_v50 = vadd.f32 %v8215_v26, %v10526_v37  ;;  %v3103_v61 = vrot.slane %v3013_v44, 5  ;;  %v10597_v39 = vrot.slane %v2981_v13, 4  ;;  %8233 = vmatpush3.bf16.msra.mxu1 %v8749_v19 }
 0x552   : > { %v3016_v40 = vsel %vm609_vm8, %v3011_v14, %v10563_v8  ;;  %v8750_v14 = vld [vmem:[#allocation6 + $0x208] sm:$0xff]   ;;  %v3019_v20 = vor.u32 %v3017_v51, %v10563_v8  ;;  %v8754_v8 = vld [vmem:[#allocation6 + $0x218] sm:$0xff]  }
 0x553   : > { %v2925_v54 = vadd.f32 %v2907_v48, %v10292_v49  ;;  %v2910_v38 = vadd.f32 %v10524_v58, %v2845_v50  ;;  %3136 = vrot.lane.b32.xlu0 %v3127_v30, %s9131_s26  ;;  %v10579_v49 = vrot.slane %v2974_v22, 1  ;;  %v10581_v58 = vor.u32 %v3103_v61, %v3102_v42  ;;  %v8751_v22 = vld [vmem:[#allocation6 + $0x1c8] sm:$0xff]   ;;  %v8752_v42 = vld [vmem:[#allocation6 + $0x210] sm:$0xff]   ;;  %8234 = vmatprep.subr.bf16.mxu1 %v8750_v14 }
 0x554   : > { %v3166_v61 = vrot.slane %v3164_v17, 1 }
 0x555   : > { %v2941_v15 = vmul.f32 0.2, %v2925_v54  ;;  %v2926_v55 = vadd.f32 %v2910_v38, %v10294_v23  ;;  %vm2933_vm9 = vcmp.ge.f32.partialorder %v2925_v54, 0.0  ;;  %v3061_v26 = vsel %vm722_vm4, %v3059_v57, %v10579_v49  ;;  %8235 = vmatpush3.bf16.msra.mxu1 %v8751_v22 }
 0x556   : > { %8236 = vmatprep.subr.bf16.mxu1 %v8752_v42 }
 0x557   : > { %vm2934_vm13 = vcmp.ge.f32.partialorder %v2926_v55, 0.0  ;;  %v2942_v36 = vmul.f32 0.2, %v2926_v55  ;;  %v8216_v1 = vpop.f32.mrb[44].mxu1  ;;  %3044 = vrot.lane.b32.xlu0 %v3016_v40, %s9131_s26  ;;  %v10584_v23 = vld [vmem:[#allocation2 + $0x10] sm:$0xff]  ;;  %v10593_v35 = vsel %vm2933_vm9, %v2925_v54, %v2941_v15  ;;  %v3085_v40 = vsel %vm747_vm10, %v3083_v32, %v10597_v39 }
 0x558   : > { %v8217_v43 = vpop.f32.mrb[45].mxu1  ;;  %v2994_v9 = vmul.bf16 %v10584_v23, %v9495_v0  ;;  %v2987_v12 = vmul.bf16 %v10584_v23, %v9606_v62  ;;  %v3021_v5 = vshll.u32 %v10584_v23, 16  ;;  %v3025_v48 = vshrl.u32 %v10584_v23, 16 }
 0x559   : > { %v10595_v25 = vsel %vm2934_vm13, %v2926_v55, %v2942_v36  ;;  %v8218_v33 = vadd.f32 %v8217_v43, %v8216_v1  ;;  %v8219_v44 = vpop.f32.mrb[46].mxu1  ;;  %v2975_v13 = vmul.bf16 %v10584_v23, %v9596_v41  ;;  %v3162_v36 = vshrl.u32 %v10575_v2, 16  ;;  %v8753_v1 = vld [vmem:[#allocation6 + $0x1d0] sm:$0xff]  }
 0x55a   : > { %v2955_v27 = vpack.c.bf16 %v10595_v25, %v10593_v35  ;;  %v8220_v34 = vpop.f32.mrb[47].mxu1  ;;  %3153 = vrot.lane.b32.xlu1 %v2994_v9, %s9130_s24  ;;  %v10604_v47 = vrot.slane %v2987_v12, 5  ;;  %v3106_v38 = vrot.slane %v3021_v5, 5  ;;  %v3023_v55 = vrot.slane %v3021_v5, 1  ;;  %v12478_v5 = vld [vmem:[#allocation24_spill] sm:$0xff]  ;;  %8237 = vmatpush3.bf16.msra.mxu1 %v8753_v1 }
 0x55b   : > { %v2850_v50 = vadd.f32 %v8218_v33, %v10526_v37  ;;  %v8221_v60 = vadd.f32 %v8220_v34, %v8219_v44  ;;  %3068 = vrot.lane.b32.xlu0 %v3061_v26, %s9130_s24  ;;  %v3167_v43 = vor.u32 %v3166_v61, %v3162_v36  ;;  %v2982_v32 = vmul.bf16 %v10584_v23, %v9673_v28  ;;  %v8755_v33 = vld [vmem:[#allocation6 + $0x1d8] sm:$0xff]  }
 0x55c   : > { %2959 = vst.msk [vmem:[#allocation2 + $0x18] sm:$0xff] %vm300_vm0, %v2955_v27  ;;  %v3129_v54 = vsel %vm792_vm5, %v3127_v30, %v10604_v47  ;;  %v3105_v30 = vrot.slane %v3025_v48, 4  ;;  %v3024_v19 = vsel %vm609_vm8, %v3019_v20, %v3023_v55  ;;  %8238 = vmatprep.subr.bf16.mxu1 %v8754_v8  ;;  %v8759_v20 = vld [vmem:[#allocation6 + $0x1e8] sm:$0xff]  }
 0x55d   : > { %v2915_v57 = vadd.f32 %v10518_v16, %v2850_v50  ;;  %v2853_v15 = vadd.f32 %v8221_v60, %v10526_v37  ;;  %v10645_v26 = vrot.slane %v2982_v32, 4  ;;  %v12479_v50 = vld [vmem:[#allocation19_spill] sm:$0xff] }
 0x55e   : > { %3138 = vrot.lane.b32.xlu1 %v3129_v54, %s9131_s26  ;;  %v3107_v9 = vor.u32 %v3106_v38, %v3105_v30  ;;  %8239 = vmatpush3.bf16.msra.mxu1 %v8755_v33  ;;  %v8758_v30 = vld [vmem:[#allocation6 + $0x228] sm:$0xff]   ;;  %v2985_v33 = vld [vmem:[#allocation2 + $0x28] sm:$0x1] }
 0x55f   : > { %v2927_v16 = vadd.f32 %v2915_v57, %v10364_v4  ;;  %v2918_v37 = vadd.f32 %v10522_v7, %v2853_v15  ;;  %3092 = vrot.lane.b32.xlu0 %v3085_v40, %s9132_s17  ;;  %v10632_v4 = vrot.slane %v2975_v13, 1  ;;  %v3168_v7 = vsel %vm609_vm8, %v3167_v43, %v3023_v55  ;;  %v8756_v15 = vld [vmem:[#allocation6 + $0x220] sm:$0xff]  }
 0x560   : > { %v10638_v51 = vsel %vm513_vm2, %v10581_v58, %v3107_v9  ;;  %v8757_v13 = vld [vmem:[#allocation6 + $0x1e0] sm:$0xff]   ;;  %8240 = vmatprep.subr.bf16.mxu1 %v8756_v15  ;;  %v3027_v43 = vor.u32 %v3025_v48, %v3023_v55  ;;  %v12481_v55 = vld [vmem:[#allocation22_spill] sm:$0xff] }
 0x561   : > { %v2943_v12 = vmul.f32 0.2, %v2927_v16  ;;  %v2928_v17 = vadd.f32 %v2918_v37, %v12478_v5  ;;  %vm2935_vm14 = vcmp.ge.f32.partialorder %v2927_v16, 0.0  ;;  %v3063_v54 = vsel %vm722_vm4, %v10579_v49, %v10632_v4 }
 0x562   : > { %3046 = vrot.lane.b32.xlu1 %v3024_v19, %s9131_s26  ;;  %v3087_v49 = vsel %vm747_vm10, %v10597_v39, %v10645_v26  ;;  %8241 = vmatpush3.bf16.msra.mxu1 %v8757_v13 }
 0x563   : > { %vm2936_vm1 = vcmp.ge.f32.partialorder %v2928_v17, 0.0  ;;  %v2944_v44 = vmul.f32 0.2, %v2928_v17  ;;  %3180 = vrot.lane.b32.xlu0 %v3168_v7, %s9132_s17  ;;  %v10641_v27 = vld [vmem:[#allocation2 + $0x18] sm:$0xff]  ;;  %v10651_v22 = vsel %vm2935_vm14, %v2927_v16, %v2943_v12  ;;  %8242 = vmatprep.subr.bf16.mxu1 %v8758_v30  ;;  %v12482_v7 = vld [vmem:[#allocation23_spill] sm:$0xff] }
 0x564   : > { %v2995_v34 = vmul.bf16 %v10641_v27, %v9731_v31  ;;  %v2988_v60 = vmul.bf16 %v10641_v27, %v12479_v50  ;;  %v3029_v14 = vshll.u32 %v10641_v27, 16  ;;  %v3033_v38 = vshrl.u32 %v10641_v27, 16  ;;  %v12480_v12 = vld [vmem:[#allocation20_spill] sm:$0xff] }
 0x565   : > { %v10653_v42 = vsel %vm2936_vm1, %v2928_v17, %v2944_v44  ;;  %v2976_v5 = vmul.bf16 %v10641_v27, %v12480_v12 }
 0x566   : > { %v2956_v61 = vpack.c.bf16 %v10653_v42, %v10651_v22  ;;  %3070 = vrot.lane.b32.xlu1 %v3063_v54, %s9130_s24  ;;  %v3130_v57 = vrot.slane %v2988_v60, 5  ;;  %v3109_v40 = vrot.slane %v3033_v38, 4  ;;  %v3110_v36 = vrot.slane %v3029_v14, 5  ;;  %8243 = vmatpush3.bf16.msra.mxu1 %v8759_v20 }
 0x567   : > { %3155 = vrot.lane.b32.xlu0 %v2995_v34, %s9130_s24  ;;  %v3031_v1 = vrot.slane %v3029_v14, 1  ;;  %v3064_v48 = vrot.slane %v2976_v5, 1 }
 0x568   : > { %2960 = vst.msk [vmem:[#allocation2 + $0x20] sm:$0xff] %vm300_vm0, %v2956_v61  ;;  %v3111_v16 = vor.u32 %v3110_v36, %v3109_v40  ;;  %v3131_v37 = vsel %vm792_vm5, %v10604_v47, %v3130_v57  ;;  %v10694_v61 = vld [vmem:[#allocation6 + $0x230] sm:$0xff]  }
 0x569   : > { %v3032_v39 = vsel %vm609_vm8, %v3027_v43, %v3031_v1  ;;  %v3035_v34 = vor.u32 %v3033_v38, %v3031_v1  ;;  %v12483_v40 = vld [vmem:[#allocation21_spill] sm:$0xff]  ;;  %8494 = vmatprep.subr.bf16.mxu1 %v10694_v61  ;;  %v3065_v30 = vsel %vm722_vm4, %v10632_v4, %v3064_v48  ;;  %v2992_v1 = vld [vmem:[#allocation2 + $0x28] sm:$0xf] }
 0x56a   : > { %3094 = vrot.lane.b32.xlu1 %v3087_v49, %s9132_s17  ;;  %v10674_v32 = vsel %vm513_vm2, %v3107_v9, %v3111_v16  ;;  %v2983_v9 = vmul.bf16 %v10641_v27, %v12481_v55  ;;  %v2990_v36 = vmul.bf16 %v2985_v33, %v12483_v40  ;;  %v3173_v5 = vshll.u32 %v2992_v1, 16 }
 0x56b   : > { %3140 = vrot.lane.b32.xlu0 %v3131_v37, %s9131_s26 }
 0x56c   : > { %v3088_v49 = vrot.slane %v2983_v9, 4  ;;  %v3175_v33 = vrot.slane %v3173_v5, 1 }
 0x56e   : > { %3182 = vrot.lane.b32.xlu1 %v3032_v39, %s9132_s17  ;;  %v3089_v4 = vsel %vm747_vm10, %v10645_v26, %v3088_v49 }
 0x56f   : > { %v10680_v47 = vld [vmem:[#allocation2 + $0x20] sm:$0xff] }
 0x570   : > { %v2996_v17 = vmul.bf16 %v10680_v47, %v9812_v46  ;;  %v3117_v19 = vshll.u32 %v10680_v47, 16  ;;  %v2989_v8 = vmul.bf16 %v10680_v47, %v12482_v7  ;;  %v3114_v44 = vshrl.u32 %v10680_v47, 16  ;;  %v10692_v14 = vld [vmem:[#allocation2 + $0x20] sm:$0xf] }
 0x571   : > { %v3037_v38 = vshll.u32 %v10692_v14, 16  ;;  %v2972_v20 = vld [vmem:[#allocation2 + $0x20] sm:$0x1f] }
 0x572   : > { %3048 = vrot.lane.b32.xlu1 %v3032_v39, %s9131_s26  ;;  %3157 = vrot.lane.b32.xlu0 %v2996_v17, %s9130_s24  ;;  %v3169_v60 = vrot.slane %v3117_v19, 1  ;;  %v3119_v54 = vrot.slane %v3117_v19, 5  ;;  %v3116_v15 = vrot.slane %v3114_v44, 4  ;;  %v3132_v37 = vrot.slane %v2989_v8, 5 }
 0x573   : > { %v3134_v39 = vrot.slane %v2990_v36, 5  ;;  %v3039_v9 = vrot.slane %v3037_v38, 1  ;;  %v2977_v8 = vmul.bf16 %v2972_v20, %v9665_v56  ;;  %v2997_v38 = vmul.bf16 %v2992_v1, %v9772_v59 }
 0x574   : > { %v3170_v13 = vsel %vm609_vm8, %v3035_v34, %v3169_v60  ;;  %v10704_v43 = vor.u32 %v3119_v54, %v3116_v15  ;;  %v3133_v19 = vsel %vm792_vm5, %v3130_v57, %v3132_v37  ;;  %v2984_v54 = vmul.bf16 %v10680_v47, %v9757_v29 }
 0x575   : > { %v3040_v15 = vsel %vm609_vm8, %v3035_v34, %v3039_v9  ;;  %v3171_v36 = vor.u32 %v3169_v60, %v3114_v44  ;;  %v3177_v34 = vshrl.u32 %v2992_v1, 16  ;;  %v3041_v44 = vshrl.u32 %v10692_v14, 16 }
 0x576   : > { %3072 = vrot.lane.b32.xlu1 %v3065_v30, %s9130_s24  ;;  %3184 = vrot.lane.b32.xlu0 %v3170_v13, %s9132_s17  ;;  %v10708_v17 = vsel %vm513_vm2, %v3111_v16, %v10704_v43  ;;  %v3135_v16 = vsel %vm792_vm5, %v3132_v37, %v3134_v39  ;;  %v3066_v13 = vrot.slane %v2977_v8, 1  ;;  %v3090_v30 = vrot.slane %v2984_v54, 4  ;;  %v2961_v8 = vld [vmem:[#allocation2] sm:$0xf8] }
 0x577   : > { %v3176_v57 = vsel %vm609_vm8, %v3171_v36, %v3175_v33  ;;  %v3179_v60 = vor.u32 %v3177_v34, %v3175_v33 }
 0x578   : > { %v3067_v26 = vsel %vm722_vm4, %v3064_v48, %v3066_v13  ;;  %v3091_v37 = vsel %vm747_vm10, %v3088_v49, %v3090_v30  ;;  %v3043_v48 = vor.u32 %v3041_v44, %v3039_v9  ;;  %v2966_v9 = vmul.bf16 %v2961_v8, %v9469_v53 }
 0x57a   : > { %3096 = vrot.lane.b32.xlu1 %v3089_v4, %s9132_s17  ;;  %3142 = vrot.lane.b32.xlu0 %v3133_v19, %s9131_s26 }
 0x57e   : > { %3050 = vrot.lane.b32.xlu1 %v3040_v15, %s9131_s26  ;;  %3144 = vrot.lane.b32.xlu0 %v3135_v16, %s9131_s26 }
 0x582   : > { %3074 = vrot.lane.b32.xlu1 %v3067_v26, %s9130_s24  ;;  %3186 = vrot.lane.b32.xlu0 %v3176_v57, %s9132_s17 }
 0x586   : > { %3098 = vrot.lane.b32.xlu1 %v3091_v37, %s9132_s17  ;;  %3159 = vrot.lane.b32.xlu0 %v2997_v38, %s9130_s24 }
 0x58a   : > { %3052 = vrot.lane.b32.xlu1 %v3043_v48, %s9131_s26  ;;  %3188 = vrot.lane.b32.xlu0 %v3179_v60, %s9132_s17 }
 0x58e   : > { %3076 = vrot.lane.b32.xlu1 %v3066_v13, %s9130_s24  ;;  %v2967_v13 = vmul.bf16 %v10545_v3, %v9495_v0 }
 0x592   : > { %3100 = vrot.lane.b32.xlu1 %v3090_v30, %s9132_s17 }
 0x5c1   : > { %v3152_v20 = vpop.permute.xlu0 %3151 }
 0x5c5   : > { %v3137_v1 = vpop.permute.xlu0 %3136 }
 0x5c6   : > { %v3241_v33 = vsel %vm300_vm0, %v10581_v58, %v3137_v1 }
 0x5c7   : > { %v3255_v26 = vsel %vm885_vm12, %v3241_v33, %v3152_v20 }
 0x5c9   : > { %v3045_v39 = vpop.permute.xlu0 %3044 }
 0x5ca   : > { %v3206_v36 = vsel %vm300_vm0, %v2966_v9, %v3045_v39 }
 0x5cc   : > { %v3154_v49 = vpop.permute.xlu1 %3153 }
 0x5cd   : > { %v3069_v5 = vpop.permute.xlu0 %3068 }
 0x5ce   : > { %v3220_v30 = vsel %vm885_vm12, %v3206_v36, %v3069_v5 }
 0x5d0   : > { %v3139_v4 = vpop.permute.xlu1 %3138 }
 0x5d1   : > { %v3093_v19 = vpop.permute.xlu0 %3092  ;;  %v3244_v60 = vsel %vm300_vm0, %v10638_v51, %v3139_v4 }
 0x5d2   : > { %v3230_v37 = vsel %vm896_vm11, %v3220_v30, %v3093_v19 }
 0x5d3   : > { %v3319_v8 = vshrl.u32 %v3230_v37, 16  ;;  %v3322_v5 = vshll.u32 %v3230_v37, 16 }
 0x5d4   : > { %v3047_v54 = vpop.permute.xlu1 %3046 }
 0x5d5   : > { %v3181_v15 = vpop.permute.xlu0 %3180  ;;  %v3209_v38 = vsel %vm300_vm0, %v2967_v13, %v3047_v54  ;;  %v3257_v54 = vsel %vm885_vm12, %v3244_v60, %v3154_v49  ;;  %v3321_v4 = vrot.slane %v3319_v8, 3  ;;  %v3324_v30 = vrot.slane %v3322_v5, 4 }
 0x5d6   : > { %v3265_v34 = vsel %vm896_vm11, %v3255_v26, %v3181_v15  ;;  %v2968_v8 = vmul.bf16 %v10584_v23, %v9731_v31 }
 0x5d7   : > { %v3334_v48 = vshrl.u32 %v3265_v34, 16  ;;  %v3337_v1 = vshll.u32 %v3265_v34, 16 }
 0x5d8   : > { %v3071_v16 = vpop.permute.xlu1 %3070 }
 0x5d9   : > { %v3156_v57 = vpop.permute.xlu0 %3155  ;;  %v3222_v44 = vsel %vm885_vm12, %v3209_v38, %v3071_v16  ;;  %v3336_v13 = vrot.slane %v3334_v48, 3  ;;  %v3339_v36 = vrot.slane %v3337_v1, 4 }
 0x5db   : > { %v3340_v49 = vor.u32 %v3339_v36, %v3336_v13 }
 0x5dc   : > { %v3095_v58 = vpop.permute.xlu1 %3094 }
 0x5dd   : > { %v3232_v3 = vsel %vm896_vm11, %v3222_v44, %v3095_v58  ;;  %v3141_v9 = vpop.permute.xlu0 %3140 }
 0x5de   : > { %v3326_v20 = vshrl.u32 %v3232_v3, 16  ;;  %v3329_v39 = vshll.u32 %v3232_v3, 16  ;;  %v3247_v37 = vsel %vm300_vm0, %v10674_v32, %v3141_v9 }
 0x5e0   : > { %v3183_v15 = vpop.permute.xlu1 %3182  ;;  %v3328_v33 = vrot.slane %v3326_v20, 3  ;;  %v3331_v19 = vrot.slane %v3329_v39, 4  ;;  %v3325_v20 = vor.u32 %v3324_v30, %v3321_v4 }
 0x5e1   : > { %v3267_v16 = vsel %vm896_vm11, %v3257_v54, %v3183_v15  ;;  %v3259_v54 = vsel %vm885_vm12, %v3247_v37, %v3156_v57  ;;  %v8761_v15 = vld [vmem:[#allocation6 + $0x238] sm:$0xff]  }
 0x5e2   : > { %v3341_v26 = vshrl.u32 %v3267_v16, 16  ;;  %v3344_v51 = vshll.u32 %v3267_v16, 16  ;;  %v3332_v3 = vor.u32 %v3331_v19, %v3328_v33 }
 0x5e4   : > { %v3343_v38 = vrot.slane %v3341_v26, 3  ;;  %v3346_v34 = vrot.slane %v3344_v51, 4  ;;  %v3049_v44 = vpop.permute.xlu1 %3048  ;;  %v3158_v58 = vpop.permute.xlu0 %3157  ;;  %v3333_v33 = vsel %vm561_vm15, %v3325_v20, %v3332_v3 }
 0x5e5   : > { %v3212_v9 = vsel %vm300_vm0, %v2968_v8, %v3049_v44 }
 0x5e6   : > { %v3347_v60 = vor.u32 %v3346_v34, %v3343_v38 }
 0x5e8   : > { %v3073_v39 = vpop.permute.xlu1 %3072  ;;  %v3185_v48 = vpop.permute.xlu0 %3184  ;;  %v3348_v1 = vsel %vm561_vm15, %v3340_v49, %v3347_v60 }
 0x5e9   : > { %v3269_v5 = vsel %vm896_vm11, %v3259_v54, %v3185_v48  ;;  %3601 = vmatprep.mubr.bf16.mxu1 %v3348_v1  ;;  %v3224_v57 = vsel %vm885_vm12, %v3212_v9, %v3073_v39 }
 0x5ea   : > { %v3374_v19 = vshrl.u32 %v3269_v5, 16  ;;  %v3377_v32 = vshll.u32 %v3269_v5, 16  ;;  %3602 = vmatmul.mubr.bf16.vlgmr.msra.gmra.mrb[48].mxu1 %v3333_v33 }
 0x5eb   : > { %8495 = vmatpush3.bf16.msra.mxu1 %v10694_v61 }
 0x5ec   : > { %v3376_v16 = vrot.slane %v3374_v19, 3  ;;  %v3379_v13 = vrot.slane %v3377_v32, 4  ;;  %v3097_v36 = vpop.permute.xlu1 %3096  ;;  %v3143_v26 = vpop.permute.xlu0 %3142  ;;  %8496 = vmatprep.subr.bf16.mxu1 %v8761_v15  ;;  %v3001_v32 = vmul.bf16 %v10584_v23, %v9592_v10 }
 0x5ed   : > { %v3234_v51 = vsel %vm896_vm11, %v3224_v57, %v3097_v36  ;;  %v3250_v61 = vsel %vm300_vm0, %v10708_v17, %v3143_v26  ;;  %v3000_v36 = vmul.bf16 %v10575_v2, %v9506_v6 }
 0x5ee   : > { %v3380_v4 = vor.u32 %v3379_v13, %v3376_v16  ;;  %v3366_v30 = vshrl.u32 %v3234_v51, 16  ;;  %v3369_v38 = vshll.u32 %v3234_v51, 16  ;;  %v3261_v48 = vsel %vm885_vm12, %v3250_v61, %v3158_v58 }
 0x5ef   : > { %8497 = vmatpush3.bf16.msra.mxu1 %v8761_v15  ;;  %v2969_v15 = vmul.bf16 %v10641_v27, %v9812_v46  ;;  %v3196_v23 = vrot.slane %v3001_v32, 1  ;;  %v3195_v2 = vrot.slane %v3000_v36, 1 }
 0x5f0   : > { %v3368_v34 = vrot.slane %v3366_v30, 3  ;;  %v3371_v37 = vrot.slane %v3369_v38, 4  ;;  %v3051_v49 = vpop.permute.xlu1 %3050  ;;  %v3145_v20 = vpop.permute.xlu0 %3144  ;;  %v3381_v44 = vsel %vm561_vm15, %v3347_v60, %v3380_v4  ;;  %v3002_v60 = vmul.bf16 %v10641_v27, %v9596_v41  ;;  %v2999_v38 = vld [vmem:[#allocation2 + $0x28] sm:$0x1f] }
 0x5f1   : > { %3609 = vmatprep.mubr.bf16.mxu1 %v3381_v44  ;;  %v3215_v17 = vsel %vm300_vm0, %v2969_v15, %v3051_v49  ;;  %v3004_v15 = vmul.bf16 %v2999_v38, %v9665_v56 }
 0x5f2   : > { %v3372_v39 = vor.u32 %v3371_v37, %v3368_v34  ;;  %v3198_v27 = vrot.slane %v3002_v60, 1  ;;  %v3253_v34 = vsel %vm300_vm0, %v10704_v43, %v3145_v20 }
 0x5f4   : > { %v3075_v54 = vpop.permute.xlu1 %3074  ;;  %v3187_v1 = vpop.permute.xlu0 %3186  ;;  %v3373_v8 = vsel %vm561_vm15, %v3332_v3, %v3372_v39 }
 0x5f5   : > { %v3271_v5 = vsel %vm896_vm11, %v3261_v48, %v3187_v1  ;;  %3610 = vmatmul.mubr.bf16.gmra.mrb[52].mxu1 %v3373_v8  ;;  %v3226_v58 = vsel %vm885_vm12, %v3215_v17, %v3075_v54  ;;  %v3003_v8 = vmul.bf16 %v10680_v47, %v12480_v12 }
 0x5f6   : > { %v3399_v33 = vshrl.u32 %v3271_v5, 16  ;;  %v3402_v19 = vshll.u32 %v3271_v5, 16 }
 0x5f8   : > { %v3401_v9 = vrot.slane %v3399_v33, 3  ;;  %v3404_v3 = vrot.slane %v3402_v19, 4  ;;  %v3099_v57 = vpop.permute.xlu1 %3098  ;;  %v3160_v16 = vpop.permute.xlu0 %3159  ;;  %v3199_v33 = vsel %vm722_vm4, %v3196_v23, %v3198_v27 }
 0x5f9   : > { %v3236_v13 = vsel %vm896_vm11, %v3226_v58, %v3099_v57  ;;  %v3263_v44 = vsel %vm885_vm12, %v3253_v34, %v3160_v16  ;;  %v2970_v58 = vmul.bf16 %v10692_v14, %v9772_v59  ;;  %v3361_v47 = vshll.u32 %v3199_v33, 16 }
 0x5fa   : > { %v3405_v26 = vor.u32 %v3404_v3, %v3401_v9  ;;  %v3391_v51 = vshrl.u32 %v3236_v13, 16  ;;  %v3394_v30 = vshll.u32 %v3236_v13, 16  ;;  %v3358_v9 = vshrl.u32 %v3199_v33, 16 }
 0x5fb   : > { %v3200_v3 = vrot.slane %v3003_v8, 1  ;;  %v3202_v16 = vrot.slane %v3004_v15, 1  ;;  %v3363_v14 = vrot.slane %v3361_v47, 4 }
 0x5fc   : > { %v3393_v37 = vrot.slane %v3391_v51, 3  ;;  %v3396_v49 = vrot.slane %v3394_v30, 4  ;;  %v3053_v61 = vpop.permute.xlu1 %3052  ;;  %v3189_v54 = vpop.permute.xlu0 %3188  ;;  %v3406_v48 = vsel %vm561_vm15, %v3380_v4, %v3405_v26  ;;  %v3197_v4 = vsel %vm722_vm4, %v3195_v2, %v3196_v23 }
 0x5fd   : > { %v3273_v1 = vsel %vm896_vm11, %v3263_v44, %v3189_v54  ;;  %3617 = vmatprep.mubr.bf16.mxu1 %v3406_v48  ;;  %v3218_v13 = vsel %vm300_vm0, %v2970_v58, %v3053_v61  ;;  %v3350_v36 = vshrl.u32 %v3197_v4, 16  ;;  %v3353_v51 = vshll.u32 %v3197_v4, 16 }
 0x5fe   : > { %v3397_v5 = vor.u32 %v3396_v49, %v3393_v37  ;;  %v3424_v43 = vshrl.u32 %v3273_v1, 16  ;;  %v3427_v20 = vshll.u32 %v3273_v1, 16  ;;  %v3360_v23 = vrot.slane %v3358_v9, 3 }
 0x5ff   : > { %v3201_v37 = vsel %vm722_vm4, %v3198_v27, %v3200_v3  ;;  %v3203_v54 = vsel %vm722_vm4, %v3200_v3, %v3202_v16  ;;  %v3352_v48 = vrot.slane %v3350_v36, 3  ;;  %v3355_v61 = vrot.slane %v3353_v51, 4 }
 0x600   : > { %v3426_v19 = vrot.slane %v3424_v43, 3  ;;  %v3429_v60 = vrot.slane %v3427_v20, 4  ;;  %v3077_v17 = vpop.permute.xlu1 %3076  ;;  %v3398_v32 = vsel %vm561_vm15, %v3372_v39, %v3397_v5  ;;  %v3383_v8 = vshrl.u32 %v3201_v37, 16 }
 0x601   : > { %3618 = vmatmul.mubr.bf16.gmra.mrb[56].mxu1 %v3398_v32  ;;  %v3228_v30 = vsel %vm885_vm12, %v3218_v13, %v3077_v17  ;;  %v3386_v15 = vshll.u32 %v3201_v37, 16  ;;  %v3364_v43 = vor.u32 %v3363_v14, %v3360_v23  ;;  %v3408_v20 = vshrl.u32 %v3203_v54, 16  ;;  %v8765_v23 = vld [vmem:[#allocation6 + $0x240] sm:$0xff]  }
 0x602   : > { %v3430_v57 = vor.u32 %v3429_v60, %v3426_v19  ;;  %v3356_v19 = vor.u32 %v3355_v61, %v3352_v48  ;;  %v3385_v17 = vrot.slane %v3383_v8, 3  ;;  %v3433_v47 = vshrl.u32 %v3202_v16, 16 }
 0x603   : > { %v3388_v32 = vrot.slane %v3386_v15, 4  ;;  %v3410_v4 = vrot.slane %v3408_v20, 3  ;;  %v3436_v3 = vshll.u32 %v3202_v16, 16  ;;  %v8763_v16 = vld [vmem:[#allocation6 + $0x2c8] sm:$0xff]  }
 0x604   : > { %v3101_v38 = vpop.permute.xlu1 %3100  ;;  %v3431_v39 = vsel %vm561_vm15, %v3405_v26, %v3430_v57  ;;  %v3411_v26 = vshll.u32 %v3203_v54, 16  ;;  %v3365_v27 = vsel %vm561_vm15, %v3356_v19, %v3364_v43  ;;  %v3435_v36 = vrot.slane %v3433_v47, 3 }
 0x605   : > { %v3238_v34 = vsel %vm896_vm11, %v3228_v30, %v3101_v38  ;;  %3625 = vmatprep.mubr.bf16.mxu1 %v3431_v39  ;;  %v3389_v9 = vor.u32 %v3388_v32, %v3385_v17  ;;  %v3438_v51 = vrot.slane %v3436_v3, 4  ;;  %v8762_v39 = vld [vmem:[#allocation6 + $0x2c0] sm:$0xff]  }
 0x606   : > { %v3416_v49 = vshrl.u32 %v3238_v34, 16  ;;  %v3419_v44 = vshll.u32 %v3238_v34, 16  ;;  %v3413_v58 = vrot.slane %v3411_v26, 4  ;;  %8506 = vmatprep.subr.bf16.mxu1 %v8762_v39  ;;  %v8764_v34 = vld [vmem:[#allocation6 + $0x280] sm:$0xff]  }
 0x607   : > { %v3390_v13 = vsel %vm561_vm15, %v3364_v43, %v3389_v9  ;;  %v3439_v30 = vor.u32 %v3438_v51, %v3435_v36  ;;  %8274 = vmatprep.subr.bf16.mxu0 %v8764_v34  ;;  %v7928_v3 = vld [vmem:[#allocation8 + $0x3] ss:$0 sm:$0xff] }
 0x608   : > { %v3418_v1 = vrot.slane %v3416_v49, 3  ;;  %v3421_v2 = vrot.slane %v3419_v44, 4  ;;  %v3414_v57 = vor.u32 %v3413_v58, %v3410_v4  ;;  %8275 = vmatpush3.bf16.msra.mxu0 %v8765_v23 }
 0x60a   : > { %v3422_v33 = vor.u32 %v3421_v2, %v3418_v1  ;;  %v3440_v38 = vsel %vm561_vm15, %v3414_v57, %v3439_v30 }
 0x60c   : > { %v3423_v60 = vsel %vm561_vm15, %v3397_v5, %v3422_v33  ;;  %v3415_v5 = vsel %vm561_vm15, %v3389_v9, %v3414_v57 }
 0x60d   : > { %3626 = vmatmul.mubr.bf16.gmra.mrb[60].mxu1 %v3423_v60 }
 0x60e   : > { %8498 = vmatprep.mubr.msk.bf16.mxu1 %vm300_vm0, %v3365_v27 }
 0x615   : > { %8499 = vmatmul.mubr.msk.bf16.vlgmr.msra.gmra.mrb[64].mxu1 %vm300_vm0, %v3390_v13 }
 0x616   : > { %8502 = vmatprep.mubr.msk.bf16.mxu1 %vm300_vm0, %v3415_v5  ;;  %8507 = vmatpush3.bf16.msra.mxu1 %v8762_v39 }
 0x617   : > { %8508 = vmatprep.subr.bf16.mxu1 %v8763_v16 }
 0x61a   : > { %8509 = vmatpush3.bf16.msra.mxu1 %v8763_v16 }
 0x61d   : > { %8503 = vmatmul.mubr.msk.bf16.gmra.mrb[68].mxu1 %vm300_vm0, %v3440_v38 }
 0x6bd   : > { %v8244_v14 = vpop.f32.mrb[48].mxu1 }
 0x6be   : > { %v8245_v37 = vpop.f32.mrb[49].mxu1 }
 0x6bf   : > { %v8246_v49 = vadd.f32 %v8245_v37, %v8244_v14  ;;  %v8247_v44 = vpop.f32.mrb[50].mxu1 }
 0x6c0   : > { %v8248_v54 = vpop.f32.mrb[51].mxu1 }
 0x6c1   : > { %v8249_v48 = vadd.f32 %v8248_v54, %v8247_v44  ;;  %v3604_v36 = vadd.f32 %v8246_v49, %v7928_v3 }
 0x6c3   : > { %v3607_v16 = vadd.f32 %v8249_v48, %v7928_v3 }
 0x6c8   : > { %v8250_v61 = vpop.f32.mrb[52].mxu1 }
 0x6c9   : > { %v8251_v1 = vpop.f32.mrb[53].mxu1 }
 0x6ca   : > { %v8252_v2 = vadd.f32 %v8251_v1, %v8250_v61  ;;  %v8253_v8 = vpop.f32.mrb[54].mxu1 }
 0x6cb   : > { %v8254_v15 = vpop.f32.mrb[55].mxu1 }
 0x6cc   : > { %v8255_v43 = vadd.f32 %v8254_v15, %v8253_v8  ;;  %v3612_v57 = vadd.f32 %v8252_v2, %v7928_v3 }
 0x6ce   : > { %v3615_v30 = vadd.f32 %v8255_v43, %v7928_v3 }
 0x6d4   : > { %v8256_v20 = vpop.f32.mrb[56].mxu1 }
 0x6d5   : > { %v8257_v26 = vpop.f32.mrb[57].mxu1 }
 0x6d6   : > { %v8258_v33 = vadd.f32 %v8257_v26, %v8256_v20  ;;  %v8259_v19 = vpop.f32.mrb[58].mxu1 }
 0x6d7   : > { %v8260_v60 = vpop.f32.mrb[59].mxu1 }
 0x6d8   : > { %v8261_v17 = vadd.f32 %v8260_v60, %v8259_v19  ;;  %v8766_v60 = vld [vmem:[#allocation6 + $0x288] sm:$0xff]  }
 0x6d9   : > { %8276 = vmatprep.subr.bf16.mxu0 %v8766_v60 }
 0x6da   : > { %v3623_v43 = vadd.f32 %v8261_v17, %v7928_v3 }
 0x6e0   : > { %v8262_v32 = vpop.f32.mrb[60].mxu1 }
 0x6e1   : > { %v8263_v27 = vpop.f32.mrb[61].mxu1 }
 0x6e2   : > { %v8264_v4 = vadd.f32 %v8263_v27, %v8262_v32  ;;  %v8265_v58 = vpop.f32.mrb[62].mxu1  ;;  %v8767_v32 = vld [vmem:[#allocation6 + $0x248] sm:$0xff]  }
 0x6e3   : > { %v8266_v9 = vpop.f32.mrb[63].mxu1  ;;  %8277 = vmatpush3.bf16.msra.mxu0 %v8767_v32 }
 0x6e4   : > { %v8267_v47 = vadd.f32 %v8266_v9, %v8265_v58  ;;  %v3628_v8 = vadd.f32 %v8264_v4, %v7928_v3 }
 0x6e8   : > { %v8500_v13 = vpop.f32.mrb[64].mxu1 }
 0x6e9   : > { %v3677_v51 = vadd.f32 %v8500_v13, %v3612_v57  ;;  %v3668_v5 = vpop.f32.mrb[65].mxu1 }
 0x6ea   : > { %v3669_v38 = vadd.f32 %v3668_v5, %v3604_v36  ;;  %v8501_v39 = vpop.f32.mrb[66].mxu1 }
 0x6eb   : > { %v3701_v34 = vadd.f32 %v3677_v51, %v10543_v45  ;;  %v3680_v23 = vadd.f32 %v8501_v39, %v3615_v30  ;;  %v3671_v14 = vpop.f32.mrb[67].mxu1  ;;  %v3620_v45 = vadd.f32 %v8258_v33, %v7928_v3  ;;  %v8768_v39 = vld [vmem:[#allocation6 + $0x290] sm:$0xff]  }
 0x6ec   : > { %v3699_v37 = vadd.f32 %v3669_v38, %v10532_v18  ;;  %v3672_v44 = vadd.f32 %v3671_v14, %v3607_v16  ;;  %v8769_v16 = vld [vmem:[#allocation6 + $0x250] sm:$0xff]   ;;  %8278 = vmatprep.subr.bf16.mxu0 %v8768_v39 }
 0x6ed   : > { %v3717_v54 = vmul.f32 0.2, %v3701_v34  ;;  %v3702_v61 = vadd.f32 %v3680_v23, %v10547_v63  ;;  %vm3709_vm3 = vcmp.ge.f32.partialorder %v3701_v34, 0.0  ;;  %v3631_v63 = vadd.f32 %v8267_v47, %v7928_v3  ;;  %v10827_v47 = vld [vmem:[#allocation2] sm:$0xf0]  ;;  %8279 = vmatpush3.bf16.msra.mxu0 %v8769_v16 }
 0x6ee   : > { %v3715_v1 = vmul.f32 0.2, %v3699_v37  ;;  %v3700_v49 = vadd.f32 %v3672_v44, %v10534_v21  ;;  %vm3707_vm6 = vcmp.ge.f32.partialorder %v3699_v37, 0.0  ;;  %v3786_v38 = vshll.u32 %v10827_v47, 16  ;;  %v3777_v23 = vld [vmem:[#allocation2 + $0x28] sm:$0x1f] }
 0x6ef   : > { %vm3710_vm7 = vcmp.ge.f32.partialorder %v3702_v61, 0.0  ;;  %v3718_v2 = vmul.f32 0.2, %v3702_v61  ;;  %v10813_v20 = vsel %vm3709_vm3, %v3701_v34, %v3717_v54  ;;  %v3782_v54 = vmul.bf16 %v3777_v23, %v9665_v56 }
 0x6f0   : > { %vm3708_vm9 = vcmp.ge.f32.partialorder %v3700_v49, 0.0  ;;  %v3716_v48 = vmul.f32 0.2, %v3700_v49  ;;  %v8504_v15 = vpop.f32.mrb[68].mxu1  ;;  %v10818_v21 = vsel %vm3707_vm6, %v3699_v37, %v3715_v1  ;;  %v8771_v1 = vld [vmem:[#allocation6 + $0x258] sm:$0xff]   ;;  %v3751_v60 = vmul.bf16 %v10827_v47, %v9506_v6 }
 0x6f1   : > { %v10815_v18 = vsel %vm3710_vm7, %v3702_v61, %v3718_v2  ;;  %v3693_v26 = vadd.f32 %v8504_v15, %v3628_v8  ;;  %v3684_v19 = vpop.f32.mrb[69].mxu1  ;;  %v8770_v61 = vld [vmem:[#allocation6 + $0x298] sm:$0xff]   ;;  %v3784_v8 = vshrl.u32 %v10827_v47, 16  ;;  %v3756_v15 = vld [vmem:[#allocation2] sm:$0x80]  ;;  %v10877_v47 = vrot.slane %v3782_v54, 1 }
 0x6f2   : > { %v3732_v27 = vpack.c.bf16 %v10815_v18, %v10813_v20  ;;  %v10822_v4 = vsel %vm3708_vm9, %v3700_v49, %v3716_v48  ;;  %v3685_v58 = vadd.f32 %v3684_v19, %v3620_v45  ;;  %v8505_v33 = vpop.f32.mrb[70].mxu1  ;;  %v3788_v48 = vrot.slane %v3786_v38, 1  ;;  %8280 = vmatprep.subr.bf16.mxu0 %v8770_v61 }
 0x6f3   : > { %v3731_v17 = vpack.c.bf16 %v10822_v4, %v10818_v21  ;;  %v3705_v9 = vadd.f32 %v3693_v26, %v10651_v22  ;;  %v3696_v57 = vadd.f32 %v8505_v33, %v3631_v63  ;;  %v3687_v13 = vpop.f32.mrb[71].mxu1  ;;  %8281 = vmatpush3.bf16.msra.mxu0 %v8771_v1 }
 0x6f4   : > { %3736 = vst.msk [vmem:[#allocation2 + $0x10] sm:$0xff] %vm300_vm0, %v3732_v27  ;;  %v3703_v3 = vadd.f32 %v3685_v58, %v10593_v35  ;;  %v3688_v36 = vadd.f32 %v3687_v13, %v3623_v43  ;;  %v3758_v13 = vmul.bf16 %v3756_v15, %v9622_v24 }
 0x6f5   : > { %3735 = vst.msk [vmem:[#allocation2 + $0x8] sm:$0xff] %vm300_vm0, %v3731_v17  ;;  %v3721_v51 = vmul.f32 0.2, %v3705_v9  ;;  %v3706_v5 = vadd.f32 %v3696_v57, %v10653_v42  ;;  %vm3713_vm13 = vcmp.ge.f32.partialorder %v3705_v9, 0.0 }
 0x6f6   : > { %v3719_v30 = vmul.f32 0.2, %v3703_v3  ;;  %v3704_v22 = vadd.f32 %v3688_v36, %v10595_v25  ;;  %vm3711_vm14 = vcmp.ge.f32.partialorder %v3703_v3, 0.0  ;;  %v8773_v36 = vld [vmem:[#allocation6 + $0x260] sm:$0xff]   ;;  %v3861_v54 = vrot.slane %v3758_v13, 4 }
 0x6f7   : > { %vm3714_vm1 = vcmp.ge.f32.partialorder %v3706_v5, 0.0  ;;  %v3722_v34 = vmul.f32 0.2, %v3706_v5  ;;  %v10835_v14 = vsel %vm3713_vm13, %v3705_v9, %v3721_v51 }
 0x6f8   : > { %vm3712_vm3 = vcmp.ge.f32.partialorder %v3704_v22, 0.0  ;;  %v3720_v35 = vmul.f32 0.2, %v3704_v22  ;;  %v10839_v42 = vsel %vm3711_vm14, %v3703_v3, %v3719_v30  ;;  %v8772_v3 = vld [vmem:[#allocation6 + $0x2a0] sm:$0xff]   ;;  %v3789_v30 = vor.u32 %v3788_v48, %v3784_v8 }
 0x6f9   : > { %v10837_v37 = vsel %vm3714_vm1, %v3706_v5, %v3722_v34  ;;  %8282 = vmatprep.subr.bf16.mxu0 %v8772_v3 }
 0x6fa   : > { %v3734_v25 = vpack.c.bf16 %v10837_v37, %v10835_v14  ;;  %v10843_v44 = vsel %vm3712_vm3, %v3704_v22, %v3720_v35  ;;  %8283 = vmatpush3.bf16.msra.mxu0 %v8773_v36 }
 0x6fb   : > { %v3733_v49 = vpack.c.bf16 %v10843_v44, %v10839_v42  ;;  %v10848_v2 = vld [vmem:[#allocation2 + $0x10] sm:$0xff] }
 0x6fc   : > { %3738 = vst.msk [vmem:[#allocation2 + $0x20] sm:$0xff] %vm300_vm0, %v3734_v25  ;;  %v3772_v45 = vmul.bf16 %v10848_v2, %v9495_v0  ;;  %v3769_v43 = vld [vmem:[#allocation2 + $0x8] sm:$0xf8]  ;;  %v3765_v19 = vmul.bf16 %v10848_v2, %v9606_v62  ;;  %v3753_v63 = vmul.bf16 %v10848_v2, %v9596_v41  ;;  %v3760_v57 = vmul.bf16 %v10848_v2, %v9673_v28 }
 0x6fd   : > { %v10854_v26 = vld [vmem:[#allocation2 + $0x8] sm:$0xff]  ;;  %3737 = vst.msk [vmem:[#allocation2 + $0x18] sm:$0xff] %vm300_vm0, %v3733_v49  ;;  %v3771_v32 = vmul.bf16 %v3769_v43, %v9469_v53  ;;  %v3779_v38 = vmul.bf16 %v10848_v2, %v9592_v10  ;;  %v3837_v25 = vrot.slane %v3751_v60, 1  ;;  %v12414_v49 = vshll.u32 %v10848_v2, 16 }
 0x6fe   : > { %v3764_v27 = vmul.bf16 %v10854_v26, %v9509_v11  ;;  %v3752_v58 = vmul.bf16 %v10854_v26, %v9592_v10  ;;  %v12413_v33 = vshll.u32 %v10854_v26, 16  ;;  %v10869_v17 = vld [vmem:[#allocation2 + $0x8] sm:$0xf0]  ;;  %3931 = vrot.lane.b32.xlu1 %v3772_v45, %s9130_s24  ;;  %v10872_v9 = vrot.slane %v3765_v19, 5 }
 0x6ff   : > { %3929 = vrot.lane.b32.xlu0 %v3771_v32, %s9130_s24  ;;  %v3759_v5 = vmul.bf16 %v10854_v26, %v9657_v52  ;;  %v3778_v22 = vmul.bf16 %v10869_v17, %v9506_v6  ;;  %v10888_v34 = vrot.slane %v3753_v63, 1  ;;  %v10893_v35 = vrot.slane %v3760_v57, 4 }
 0x700   : > { %v3905_v51 = vrot.slane %v3764_v27, 5  ;;  %v3838_v16 = vrot.slane %v3752_v58, 1  ;;  %v3793_v23 = vrot.slane %v12413_v33, 1  ;;  %v3974_v48 = vrot.slane %v3779_v38, 1 }
 0x701   : > { %v3862_v1 = vrot.slane %v3759_v5, 4  ;;  %v3973_v8 = vrot.slane %v3778_v22, 1  ;;  %v12415_v45 = vshrl.u32 %v10854_v26, 16  ;;  %v3942_v63 = vshll.u32 %v10869_v17, 16 }
 0x702   : > { %v3907_v39 = vsel %vm792_vm5, %v3905_v51, %v10872_v9  ;;  %v4214_v60 = vshll.u32 %v10877_v47, 16  ;;  %v3841_v32 = vsel %vm722_vm4, %v3838_v16, %v10888_v34  ;;  %v3794_v27 = vsel %vm609_vm8, %v3789_v30, %v3793_v23 }
 0x703   : > { %3916 = vrot.lane.b32.xlu1 %v3907_v39, %s9131_s26  ;;  %3914 = vrot.lane.b32.xlu0 %v3905_v51, %s9131_s26  ;;  %v10898_v15 = vld [vmem:[#allocation2 + $0x20] sm:$0xff]  ;;  %v3975_v57 = vsel %vm722_vm4, %v3973_v8, %v3974_v48  ;;  %v3839_v13 = vsel %vm722_vm4, %v3837_v25, %v3838_v16  ;;  %v3865_v5 = vsel %vm747_vm10, %v3862_v1, %v10893_v35  ;;  %v3801_v22 = vrot.slane %v12414_v49, 1 }
 0x704   : > { %v10901_v43 = vld [vmem:[#allocation2 + $0x18] sm:$0xff]  ;;  %v3781_v19 = vmul.bf16 %v10898_v15, %v12480_v12  ;;  %v4128_v3 = vshrl.u32 %v3975_v57, 16  ;;  %v4131_v36 = vshll.u32 %v3975_v57, 16  ;;  %v3797_v30 = vor.u32 %v12415_v45, %v3793_v23 }
 0x705   : > { %v3780_v58 = vmul.bf16 %v10901_v43, %v9596_v41  ;;  %v3863_v39 = vsel %vm747_vm10, %v3861_v54, %v3862_v1  ;;  %v3944_v25 = vrot.slane %v3942_v63, 1  ;;  %v3803_v63 = vshrl.u32 %v10848_v2, 16 }
 0x706   : > { %v3978_v51 = vrot.slane %v3781_v19, 1  ;;  %v8774_v19 = vld [vmem:[#allocation6 + $0x2a8] sm:$0xff]   ;;  %v4130_v57 = vrot.slane %v4128_v3, 3  ;;  %v4133_v49 = vrot.slane %v4131_v36, 4 }
 0x707   : > { %3848 = vrot.lane.b32.xlu1 %v3841_v32, %s9130_s24  ;;  %3822 = vrot.lane.b32.xlu0 %v3794_v27, %s9131_s26  ;;  %v3976_v38 = vrot.slane %v3780_v58, 1  ;;  %v8775_v32 = vld [vmem:[#allocation6 + $0x268] sm:$0xff]  }
 0x708   : > { %v3981_v16 = vsel %vm722_vm4, %v3978_v51, %v10877_v47  ;;  %8284 = vmatprep.subr.bf16.mxu0 %v8774_v19 }
 0x709   : > { %v3977_v27 = vsel %vm722_vm4, %v3974_v48, %v3976_v38  ;;  %v3979_v33 = vsel %vm722_vm4, %v3976_v38, %v3978_v51  ;;  %v4186_v23 = vshrl.u32 %v3981_v16, 16  ;;  %v4189_v8 = vshll.u32 %v3981_v16, 16  ;;  %8285 = vmatpush3.bf16.msra.mxu0 %v8775_v32 }
 0x70a   : > { %v4136_v58 = vshrl.u32 %v3977_v27, 16  ;;  %v4139_v45 = vshll.u32 %v3977_v27, 16  ;;  %v4161_v54 = vshrl.u32 %v3979_v33, 16  ;;  %v4164_v1 = vshll.u32 %v3979_v33, 16  ;;  %v8777_v33 = vld [vmem:[#allocation6 + $0x270] sm:$0xff]  }
 0x70b   : > { %3872 = vrot.lane.b32.xlu1 %v3865_v5, %s9132_s17  ;;  %3846 = vrot.lane.b32.xlu0 %v3839_v13, %s9130_s24  ;;  %v4188_v61 = vrot.slane %v4186_v23, 3  ;;  %v3940_v51 = vshrl.u32 %v10869_v17, 16  ;;  %v3802_v5 = vsel %vm609_vm8, %v3797_v30, %v3801_v22  ;;  %v12484_v38 = vshll.u32 %v10901_v43, 16  ;;  %v8776_v13 = vld [vmem:[#allocation6 + $0x2b0] sm:$0xff]  }
 0x70c   : > { %v4138_v48 = vrot.slane %v4136_v58, 3  ;;  %v4141_v3 = vrot.slane %v4139_v45, 4  ;;  %v4163_v28 = vrot.slane %v4161_v54, 3  ;;  %v4166_v36 = vrot.slane %v4164_v1, 4  ;;  %8286 = vmatprep.subr.bf16.mxu0 %v8776_v13 }
 0x70d   : > { %v10935_v27 = vrot.slane %v12484_v38, 1  ;;  %v4191_v19 = vrot.slane %v4189_v8, 4  ;;  %v4134_v23 = vor.u32 %v4133_v49, %v4130_v57  ;;  %v3805_v32 = vor.u32 %v3803_v63, %v3801_v22  ;;  %8287 = vmatpush3.bf16.msra.mxu0 %v8777_v33 }
 0x70e   : > { %v4142_v16 = vor.u32 %v4141_v3, %v4138_v48  ;;  %v3945_v58 = vor.u32 %v3944_v25, %v3940_v51  ;;  %v4167_v45 = vor.u32 %v4166_v36, %v4163_v28  ;;  %v3754_v30 = vmul.bf16 %v10901_v43, %v12480_v12  ;;  %v3750_v48 = vld [vmem:[#allocation2 + $0x20] sm:$0x1f] }
 0x70f   : > { %3824 = vrot.lane.b32.xlu1 %v3802_v5, %s9131_s26  ;;  %3870 = vrot.lane.b32.xlu0 %v3863_v39, %s9132_s17  ;;  %v4192_v17 = vor.u32 %v4191_v19, %v4188_v61  ;;  %v12485_v8 = vshrl.u32 %v10877_v47, 16  ;;  %v4216_v38 = vrot.slane %v4214_v60, 4  ;;  %v8778_v5 = vld [vmem:[#allocation6 + $0x2b8] sm:$0xff]   ;;  %v3810_v28 = vsel %vm609_vm8, %v3805_v32, %v10935_v27 }
 0x710   : > { %v4143_v54 = vsel %vm561_vm15, %v4134_v23, %v4142_v16  ;;  %v4168_v49 = vsel %vm561_vm15, %v4142_v16, %v4167_v45  ;;  %v8779_v61 = vld [vmem:[#allocation6 + $0x278] sm:$0xff]   ;;  %v3946_v47 = vsel %vm609_vm8, %v3945_v58, %v3801_v22  ;;  %v3842_v60 = vrot.slane %v3754_v30, 1  ;;  %8288 = vmatprep.subr.bf16.mxu0 %v8778_v5 }
 0x711   : > { %v4213_v1 = vrot.slane %v12485_v8, 3  ;;  %8510 = vmatprep.mubr.msk.bf16.mxu1 %vm300_vm0, %v4143_v54  ;;  %v4193_v39 = vsel %vm561_vm15, %v4167_v45, %v4192_v17  ;;  %v3774_v25 = vmul.bf16 %v10898_v15, %v9812_v46  ;;  %v3811_v3 = vshrl.u32 %v10901_v43, 16  ;;  %8289 = vmatpush3.bf16.msra.mxu0 %v8779_v61 }
 0x712   : > { %8511 = vmatmul.mubr.msk.bf16.vlgmr.msra.gmra.mrb[72].mxu1 %vm300_vm0, %v4168_v49  ;;  %v12486_v51 = vshrl.u32 %v10854_v26, 16  ;;  %v3761_v19 = vmul.bf16 %v10901_v43, %v12481_v55  ;;  %v3895_v22 = vshll.u32 %v10898_v15, 16  ;;  %v3892_v13 = vshrl.u32 %v10898_v15, 16 }
 0x713   : > { %3960 = vrot.lane.b32.xlu1 %v3810_v28, %s9132_s17  ;;  %8514 = vmatprep.mubr.msk.bf16.mxu1 %vm300_vm0, %v4193_v39  ;;  %v4217_v57 = vor.u32 %v4216_v38, %v4213_v1  ;;  %v12487_v33 = vshll.u32 %v10854_v26, 16  ;;  %v3766_v16 = vmul.bf16 %v10901_v43, %v12479_v50  ;;  %v3883_v32 = vrot.slane %v3803_v63, 4 }
 0x714   : > { %3958 = vrot.lane.b32.xlu0 %v3946_v47, %s9132_s17  ;;  %v3880_v36 = vrot.slane %v12486_v51, 4  ;;  %v12488_v58 = vshll.u32 %v10848_v2, 16  ;;  %v3843_v30 = vsel %vm722_vm4, %v10888_v34, %v3842_v60  ;;  %v3773_v54 = vmul.bf16 %v10901_v43, %v9731_v31 }
 0x715   : > { %v3881_v23 = vrot.slane %v12487_v33, 5  ;;  %v3755_v8 = vmul.bf16 %v3750_v48, %v9665_v56  ;;  %v3887_v5 = vrot.slane %v3811_v3, 4  ;;  %v12489_v49 = vshll.u32 %v10901_v43, 16 }
 0x716   : > { %v3884_v45 = vrot.slane %v12488_v58, 5  ;;  %v3866_v61 = vrot.slane %v3761_v19, 4  ;;  %v3894_v39 = vrot.slane %v3892_v13, 4  ;;  %v3897_v47 = vrot.slane %v3895_v22, 5  ;;  %v3770_v58 = vld [vmem:[#allocation2 + $0x28] sm:$0xf] }
 0x717   : > { %3826 = vrot.lane.b32.xlu1 %v3810_v28, %s9131_s26  ;;  %v10976_v1 = vor.u32 %v3881_v23, %v3880_v36  ;;  %v3888_v63 = vrot.slane %v12489_v49, 5  ;;  %v4218_v28 = vsel %vm561_vm15, %v4192_v17, %v4217_v57  ;;  %v3908_v34 = vrot.slane %v3766_v16, 5 }
 0x718   : > { %3935 = vrot.lane.b32.xlu0 %v3774_v25, %s9130_s24  ;;  %v3885_v38 = vor.u32 %v3884_v45, %v3883_v32  ;;  %v3767_v25 = vmul.bf16 %v10898_v15, %v12482_v7  ;;  %v10990_v36 = vor.u32 %v3897_v47, %v3894_v39  ;;  %v3867_v57 = vsel %vm747_vm10, %v10893_v35, %v3866_v61  ;;  %v11007_v45 = vld [vmem:[#allocation2 + $0x20] sm:$0xf] }
 0x719   : > { %v3889_v51 = vor.u32 %v3888_v63, %v3887_v5  ;;  %v3844_v19 = vrot.slane %v3755_v8, 1  ;;  %v3762_v33 = vmul.bf16 %v10898_v15, %v9757_v29  ;;  %v3909_v16 = vsel %vm792_vm5, %v10872_v9, %v3908_v34  ;;  %v3763_v5 = vld [vmem:[#allocation2 + $0x28] sm:$0x1] }
 0x71a   : > { %8515 = vmatmul.mubr.msk.bf16.gmra.mrb[76].mxu1 %vm300_vm0, %v4218_v28  ;;  %v10987_v48 = vsel %vm513_vm2, %v10976_v1, %v3885_v38  ;;  %v3910_v32 = vrot.slane %v3767_v25, 5  ;;  %v3947_v8 = vrot.slane %v3895_v22, 1  ;;  %v3815_v9 = vshll.u32 %v11007_v45, 16 }
 0x71b   : > { %3850 = vrot.lane.b32.xlu1 %v3843_v30, %s9130_s24  ;;  %v10993_v17 = vsel %vm513_vm2, %v3885_v38, %v3889_v51  ;;  %v11001_v23 = vsel %vm513_vm2, %v3889_v51, %v10990_v36  ;;  %v3845_v35 = vsel %vm722_vm4, %v3842_v60, %v3844_v19  ;;  %v3868_v30 = vrot.slane %v3762_v33, 4 }
 0x71c   : > { %3933 = vrot.lane.b32.xlu0 %v3773_v54, %s9130_s24  ;;  %v3911_v15 = vsel %vm792_vm5, %v3908_v34, %v3910_v32  ;;  %v3813_v54 = vor.u32 %v3811_v3, %v10935_v27  ;;  %v3951_v38 = vshll.u32 %v3770_v58, 16  ;;  %v3949_v63 = vor.u32 %v3947_v8, %v3892_v13 }
 0x71d   : > { %v3869_v49 = vsel %vm747_vm10, %v3866_v61, %v3868_v30  ;;  %v3768_v39 = vmul.bf16 %v3763_v5, %v12483_v40  ;;  %v3817_v27 = vrot.slane %v3815_v9, 1  ;;  %v3819_v47 = vshrl.u32 %v11007_v45, 16 }
 0x71e   : > { %v3948_v60 = vsel %vm609_vm8, %v3813_v54, %v3947_v8  ;;  %v3953_v28 = vrot.slane %v3951_v38, 1  ;;  %v3775_v25 = vmul.bf16 %v3770_v58, %v9772_v59  ;;  %v3955_v51 = vshrl.u32 %v3770_v58, 16 }
 0x71f   : > { %3874 = vrot.lane.b32.xlu1 %v3867_v57, %s9132_s17  ;;  %v3818_v3 = vsel %vm609_vm8, %v3813_v54, %v3817_v27  ;;  %v3912_v61 = vrot.slane %v3768_v39, 5  ;;  %v3821_v34 = vor.u32 %v3819_v47, %v3817_v27 }
 0x720   : > { %3918 = vrot.lane.b32.xlu0 %v3909_v16, %s9131_s26  ;;  %v3954_v22 = vsel %vm609_vm8, %v3949_v63, %v3953_v28  ;;  %v3957_v57 = vor.u32 %v3955_v51, %v3953_v28 }
 0x721   : > { %v3913_v13 = vsel %vm792_vm5, %v3910_v32, %v3912_v61  ;;  %v3739_v32 = vld [vmem:[#allocation2] sm:$0xf8] }
 0x722   : > { %v3744_v38 = vmul.bf16 %v3739_v32, %v9469_v53 }
 0x723   : > { %3852 = vrot.lane.b32.xlu1 %v3845_v35, %s9130_s24 }
 0x724   : > { %3920 = vrot.lane.b32.xlu0 %v3911_v15, %s9131_s26 }
 0x727   : > { %3876 = vrot.lane.b32.xlu1 %v3869_v49, %s9132_s17 }
 0x728   : > { %3962 = vrot.lane.b32.xlu0 %v3948_v60, %s9132_s17 }
 0x72b   : > { %3828 = vrot.lane.b32.xlu1 %v3818_v3, %s9131_s26 }
 0x72c   : > { %3964 = vrot.lane.b32.xlu0 %v3954_v22, %s9132_s17 }
 0x72f   : > { %3830 = vrot.lane.b32.xlu1 %v3821_v34, %s9131_s26 }
 0x730   : > { %3922 = vrot.lane.b32.xlu0 %v3913_v13, %s9131_s26 }
 0x733   : > { %3854 = vrot.lane.b32.xlu1 %v3844_v19, %s9130_s24  ;;  %v3745_v19 = vmul.bf16 %v10854_v26, %v9495_v0 }
 0x734   : > { %3937 = vrot.lane.b32.xlu0 %v3775_v25, %s9130_s24 }
 0x737   : > { %3878 = vrot.lane.b32.xlu1 %v3868_v30, %s9132_s17 }
 0x738   : > { %3966 = vrot.lane.b32.xlu0 %v3957_v57, %s9132_s17 }
 0x770   : > { %v3932_v33 = vpop.permute.xlu1 %3931 }
 0x771   : > { %v3930_v16 = vpop.permute.xlu0 %3929 }
 0x775   : > { %v3917_v35 = vpop.permute.xlu1 %3916  ;;  %v3915_v15 = vpop.permute.xlu0 %3914 }
 0x776   : > { %v4022_v30 = vsel %vm300_vm0, %v10987_v48, %v3917_v35  ;;  %v4019_v3 = vsel %vm300_vm0, %v10976_v1, %v3915_v15 }
 0x777   : > { %v4035_v48 = vsel %vm885_vm12, %v4022_v30, %v3932_v33 }
 0x779   : > { %v3849_v54 = vpop.permute.xlu1 %3848  ;;  %v3823_v8 = vpop.permute.xlu0 %3822 }
 0x77a   : > { %v3984_v5 = vsel %vm300_vm0, %v3744_v38, %v3823_v8 }
 0x77d   : > { %v3873_v9 = vpop.permute.xlu1 %3872  ;;  %v3847_v58 = vpop.permute.xlu0 %3846 }
 0x77e   : > { %v3998_v60 = vsel %vm885_vm12, %v3984_v5, %v3847_v58 }
 0x781   : > { %v3825_v49 = vpop.permute.xlu1 %3824  ;;  %v3871_v28 = vpop.permute.xlu0 %3870 }
 0x782   : > { %v3987_v63 = vsel %vm300_vm0, %v3745_v19, %v3825_v49  ;;  %v4008_v27 = vsel %vm896_vm11, %v3998_v60, %v3871_v28 }
 0x783   : > { %v4000_v39 = vsel %vm885_vm12, %v3987_v63, %v3849_v54  ;;  %v4097_v22 = vshrl.u32 %v4008_v27, 16  ;;  %v4100_v47 = vshll.u32 %v4008_v27, 16  ;;  %v4033_v54 = vsel %vm885_vm12, %v4019_v3, %v3930_v16 }
 0x784   : > { %v4010_v26 = vsel %vm896_vm11, %v4000_v39, %v3873_v9  ;;  %v3746_v3 = vmul.bf16 %v10848_v2, %v9731_v31 }
 0x785   : > { %v4104_v61 = vshrl.u32 %v4010_v26, 16  ;;  %v4107_v34 = vshll.u32 %v4010_v26, 16  ;;  %v3961_v13 = vpop.permute.xlu1 %3960  ;;  %v4099_v8 = vrot.slane %v4097_v22, 3  ;;  %v4102_v38 = vrot.slane %v4100_v47, 4 }
 0x786   : > { %v4045_v25 = vsel %vm896_vm11, %v4035_v48, %v3961_v13  ;;  %v3959_v51 = vpop.permute.xlu0 %3958 }
 0x787   : > { %v4119_v57 = vshrl.u32 %v4045_v25, 16  ;;  %v4122_v35 = vshll.u32 %v4045_v25, 16  ;;  %v4106_v32 = vrot.slane %v4104_v61, 3  ;;  %v4043_v1 = vsel %vm896_vm11, %v4033_v54, %v3959_v51 }
 0x788   : > { %v4109_v15 = vrot.slane %v4107_v34, 4  ;;  %v4112_v19 = vshrl.u32 %v4043_v1, 16  ;;  %v4115_v49 = vshll.u32 %v4043_v1, 16  ;;  %v4103_v39 = vor.u32 %v4102_v38, %v4099_v8 }
 0x789   : > { %v4121_v9 = vrot.slane %v4119_v57, 3  ;;  %v4124_v58 = vrot.slane %v4122_v35, 4  ;;  %v3827_v5 = vpop.permute.xlu1 %3826 }
 0x78a   : > { %v3936_v33 = vpop.permute.xlu0 %3935  ;;  %v4114_v30 = vrot.slane %v4112_v19, 3  ;;  %v4117_v63 = vrot.slane %v4115_v49, 4  ;;  %v4110_v28 = vor.u32 %v4109_v15, %v4106_v32  ;;  %v3990_v34 = vsel %vm300_vm0, %v3746_v3, %v3827_v5 }
 0x78b   : > { %v4125_v60 = vor.u32 %v4124_v58, %v4121_v9  ;;  %v3747_v49 = vmul.bf16 %v10901_v43, %v9812_v46 }
 0x78c   : > { %v4118_v26 = vor.u32 %v4117_v63, %v4114_v30  ;;  %v4111_v47 = vsel %vm561_vm15, %v4103_v39, %v4110_v28 }
 0x78d   : > { %v3851_v27 = vpop.permute.xlu1 %3850 }
 0x78e   : > { %v3934_v16 = vpop.permute.xlu0 %3933  ;;  %v4126_v22 = vsel %vm561_vm15, %v4118_v26, %v4125_v60  ;;  %v4002_v13 = vsel %vm885_vm12, %v3990_v34, %v3851_v27 }
 0x78f   : > { %4379 = vmatprep.mubr.bf16.mxu0 %v4126_v22 }
 0x790   : > { %4380 = vmatmul.mubr.bf16.vlgmr.msra.gmra.mrb[24].mxu0 %v4111_v47 }
 0x791   : > { %v3875_v61 = vpop.permute.xlu1 %3874 }
 0x792   : > { %v3919_v48 = vpop.permute.xlu0 %3918  ;;  %v4012_v25 = vsel %vm896_vm11, %v4002_v13, %v3875_v61 }
 0x793   : > { %v4144_v35 = vshrl.u32 %v4012_v25, 16  ;;  %v4147_v54 = vshll.u32 %v4012_v25, 16  ;;  %v4025_v2 = vsel %vm300_vm0, %v10993_v17, %v3919_v48 }
 0x794   : > { %v4037_v8 = vsel %vm885_vm12, %v4025_v2, %v3934_v16 }
 0x795   : > { %v3853_v51 = vpop.permute.xlu1 %3852  ;;  %v4146_v1 = vrot.slane %v4144_v35, 3  ;;  %v4149_v15 = vrot.slane %v4147_v54, 4 }
 0x796   : > { %v3921_v57 = vpop.permute.xlu0 %3920 }
 0x797   : > { %v4028_v9 = vsel %vm300_vm0, %v11001_v23, %v3921_v57  ;;  %v4150_v16 = vor.u32 %v4149_v15, %v4146_v1 }
 0x798   : > { %v4039_v27 = vsel %vm885_vm12, %v4028_v9, %v3936_v33 }
 0x799   : > { %v3877_v32 = vpop.permute.xlu1 %3876 }
 0x79a   : > { %v3963_v38 = vpop.permute.xlu0 %3962 }
 0x79b   : > { %v4047_v58 = vsel %vm896_vm11, %v4037_v8, %v3963_v38 }
 0x79c   : > { %v4152_v19 = vshrl.u32 %v4047_v58, 16  ;;  %v4155_v5 = vshll.u32 %v4047_v58, 16 }
 0x79d   : > { %v3829_v30 = vpop.permute.xlu1 %3828 }
 0x79e   : > { %v4154_v63 = vrot.slane %v4152_v19, 3  ;;  %v4157_v39 = vrot.slane %v4155_v5, 4  ;;  %v3993_v17 = vsel %vm300_vm0, %v3747_v49, %v3829_v30  ;;  %v3965_v26 = vpop.permute.xlu0 %3964 }
 0x79f   : > { %v4004_v3 = vsel %vm885_vm12, %v3993_v17, %v3853_v51  ;;  %v4049_v23 = vsel %vm896_vm11, %v4039_v27, %v3965_v26  ;;  %v4151_v51 = vsel %vm561_vm15, %v4110_v28, %v4150_v16 }
 0x7a0   : > { %v4158_v22 = vor.u32 %v4157_v39, %v4154_v63  ;;  %v4014_v47 = vsel %vm896_vm11, %v4004_v3, %v3877_v32  ;;  %v4177_v61 = vshrl.u32 %v4049_v23, 16  ;;  %v4180_v34 = vshll.u32 %v4049_v23, 16 }
 0x7a1   : > { %v4169_v48 = vshrl.u32 %v4014_v47, 16  ;;  %v4172_v43 = vshll.u32 %v4014_v47, 16  ;;  %v3831_v13 = vpop.permute.xlu1 %3830  ;;  %v3748_v32 = vmul.bf16 %v11007_v45, %v9772_v59 }
 0x7a2   : > { %v4179_v25 = vrot.slane %v4177_v61, 3  ;;  %v4182_v57 = vrot.slane %v4180_v34, 4  ;;  %v3923_v35 = vpop.permute.xlu0 %3922  ;;  %v4159_v54 = vsel %vm561_vm15, %v4125_v60, %v4158_v22 }
 0x7a3   : > { %v4171_v33 = vrot.slane %v4169_v48, 3  ;;  %v4174_v2 = vrot.slane %v4172_v43, 4  ;;  %4387 = vmatprep.mubr.bf16.mxu0 %v4159_v54  ;;  %v3996_v58 = vsel %vm300_vm0, %v3748_v32, %v3831_v13  ;;  %v4031_v60 = vsel %vm300_vm0, %v10990_v36, %v3923_v35 }
 0x7a4   : > { %v4183_v8 = vor.u32 %v4182_v57, %v4179_v25  ;;  %4388 = vmatmul.mubr.bf16.gmra.mrb[28].mxu0 %v4151_v51  ;;  %v8781_v51 = vld [vmem:[#allocation6 + $0x358] sm:$0xff]  }
 0x7a5   : > { %v3855_v38 = vpop.permute.xlu1 %3854  ;;  %v4175_v9 = vor.u32 %v4174_v2, %v4171_v33  ;;  %v8780_v2 = vld [vmem:[#allocation6 + $0x350] sm:$0xff]  }
 0x7a6   : > { %v3938_v1 = vpop.permute.xlu0 %3937  ;;  %v4184_v15 = vsel %vm561_vm15, %v4158_v22, %v4183_v8  ;;  %v4006_v19 = vsel %vm885_vm12, %v3996_v58, %v3855_v38  ;;  %8518 = vmatprep.subr.bf16.mxu1 %v8780_v2  ;;  %v11093_v38 = vld [vmem:[#allocation8 + $0x4] ss:$0 sm:$0xff] }
 0x7a7   : > { %4395 = vmatprep.mubr.bf16.mxu0 %v4184_v15  ;;  %v4041_v28 = vsel %vm885_vm12, %v4031_v60, %v3938_v1  ;;  %v4176_v17 = vsel %vm561_vm15, %v4150_v16, %v4175_v9  ;;  %8519 = vmatpush3.bf16.msra.mxu1 %v8780_v2 }
 0x7a8   : > { %8520 = vmatprep.subr.bf16.mxu1 %v8781_v51 }
 0x7a9   : > { %v3879_v5 = vpop.permute.xlu1 %3878 }
 0x7aa   : > { %v4016_v49 = vsel %vm896_vm11, %v4006_v19, %v3879_v5  ;;  %v3967_v30 = vpop.permute.xlu0 %3966 }
 0x7ab   : > { %v4194_v63 = vshrl.u32 %v4016_v49, 16  ;;  %v4197_v45 = vshll.u32 %v4016_v49, 16  ;;  %v4051_v39 = vsel %vm896_vm11, %v4041_v28, %v3967_v30  ;;  %8521 = vmatpush3.bf16.msra.mxu1 %v8781_v51 }
 0x7ac   : > { %v4202_v27 = vshrl.u32 %v4051_v39, 16  ;;  %v4205_v26 = vshll.u32 %v4051_v39, 16  ;;  %4396 = vmatmul.mubr.bf16.gmra.mrb[32].mxu0 %v4176_v17 }
 0x7ad   : > { %v4196_v3 = vrot.slane %v4194_v63, 3  ;;  %v4199_v23 = vrot.slane %v4197_v45, 4 }
 0x7ae   : > { %v4204_v36 = vrot.slane %v4202_v27, 3  ;;  %v4207_v22 = vrot.slane %v4205_v26, 4 }
 0x7af   : > { %v4200_v47 = vor.u32 %v4199_v23, %v4196_v3  ;;  %v4527_v3 = vld [vmem:[#allocation2] sm:$0xf0] }
 0x7b0   : > { %v4208_v61 = vor.u32 %v4207_v22, %v4204_v36 }
 0x7b1   : > { %v4201_v48 = vsel %vm561_vm15, %v4175_v9, %v4200_v47  ;;  %v4564_v47 = vshll.u32 %v4527_v3, 16 }
 0x7b2   : > { %v4209_v34 = vsel %vm561_vm15, %v4183_v8, %v4208_v61 }
 0x7b3   : > { %4403 = vmatprep.mubr.bf16.mxu0 %v4209_v34 }
 0x7b4   : > { %4404 = vmatmul.mubr.bf16.gmra.mrb[36].mxu0 %v4201_v48 }
 0x7e5   : > { %v8512_v43 = vpop.f32.mrb[72].mxu1 }
 0x7e6   : > { %v4446_v13 = vpop.f32.mrb[73].mxu1 }
 0x7e7   : > { %v8513_v25 = vpop.f32.mrb[74].mxu1 }
 0x7e8   : > { %v4449_v57 = vpop.f32.mrb[75].mxu1 }
 0x7ed   : > { %v11085_v16 = vpop.f32.mrb[76].mxu1 }
 0x7ee   : > { %v11087_v35 = vpop.f32.mrb[77].mxu1 }
 0x7ef   : > { %v11089_v54 = vpop.f32.mrb[78].mxu1 }
 0x7f0   : > { %v11091_v33 = vpop.f32.mrb[79].mxu1 }
 0x863   : > { %v8290_v8 = vpop.f32.mrb[24].mxu0 }
 0x864   : > { %v8291_v32 = vpop.f32.mrb[25].mxu0 }
 0x865   : > { %v8292_v1 = vadd.f32 %v8291_v32, %v8290_v8  ;;  %v8293_v15 = vpop.f32.mrb[26].mxu0  ;;  %v4562_v8 = vshrl.u32 %v4527_v3, 16  ;;  %v4566_v32 = vrot.slane %v4564_v47, 1 }
 0x866   : > { %v8294_v9 = vpop.f32.mrb[27].mxu0 }
 0x867   : > { %v4382_v58 = vadd.f32 %v8292_v1, %v11093_v38  ;;  %v8295_v60 = vadd.f32 %v8294_v9, %v8293_v15 }
 0x869   : > { %v4447_v19 = vadd.f32 %v4446_v13, %v4382_v58  ;;  %v4385_v5 = vadd.f32 %v8295_v60, %v11093_v38  ;;  %v4529_v60 = vmul.bf16 %v4527_v3, %v9506_v6 }
 0x86b   : > { %v4477_v28 = vadd.f32 %v4447_v19, %v10818_v21  ;;  %v4450_v49 = vadd.f32 %v4449_v57, %v4385_v5 }
 0x86d   : > { %v4493_v30 = vmul.f32 0.2, %v4477_v28  ;;  %v4478_v63 = vadd.f32 %v4450_v49, %v10822_v4  ;;  %vm4485_vm6 = vcmp.ge.f32.partialorder %v4477_v28, 0.0 }
 0x86f   : > { %vm4486_vm7 = vcmp.ge.f32.partialorder %v4478_v63, 0.0  ;;  %v4494_v45 = vmul.f32 0.2, %v4478_v63  ;;  %v11099_v39 = vsel %vm4485_vm6, %v4477_v28, %v4493_v30  ;;  %v4534_v30 = vld [vmem:[#allocation2] sm:$0x80] }
 0x871   : > { %v11101_v17 = vsel %vm4486_vm7, %v4478_v63, %v4494_v45 }
 0x872   : > { %v4509_v27 = vpack.c.bf16 %v11101_v17, %v11099_v39 }
 0x874   : > { %4513 = vst.msk [vmem:[#allocation2 + $0x8] sm:$0xff] %vm300_vm0, %v4509_v27 }
 0x877   : > { %v8296_v26 = vpop.f32.mrb[28].mxu0 }
 0x878   : > { %v8297_v23 = vpop.f32.mrb[29].mxu0 }
 0x879   : > { %v8298_v21 = vadd.f32 %v8297_v23, %v8296_v26  ;;  %v8299_v36 = vpop.f32.mrb[30].mxu0 }
 0x87a   : > { %v8300_v22 = vpop.f32.mrb[31].mxu0 }
 0x87b   : > { %v4390_v4 = vadd.f32 %v8298_v21, %v11093_v38  ;;  %v8301_v61 = vadd.f32 %v8300_v22, %v8299_v36  ;;  %v4547_v13 = vld [vmem:[#allocation2 + $0x8] sm:$0xf8]  ;;  %v4536_v21 = vmul.bf16 %v4534_v30, %v9622_v24 }
 0x87c   : > { %v11108_v57 = vld [vmem:[#allocation2 + $0x8] sm:$0xff]  ;;  %v4549_v2 = vmul.bf16 %v4547_v13, %v9469_v53 }
 0x87d   : > { %v4455_v34 = vadd.f32 %v8512_v43, %v4390_v4  ;;  %v4393_v48 = vadd.f32 %v8301_v61, %v11093_v38  ;;  %v4542_v51 = vmul.bf16 %v11108_v57, %v9509_v11  ;;  %v4569_v58 = vshll.u32 %v11108_v57, 16 }
 0x87e   : > { %4707 = vrot.lane.b32.xlu0 %v4549_v2, %s9130_s24  ;;  %v4573_v36 = vshrl.u32 %v11108_v57, 16  ;;  %v11139_v2 = vld [vmem:[#allocation2 + $0x8] sm:$0xf0] }
 0x87f   : > { %v4479_v1 = vadd.f32 %v4455_v34, %v10813_v20  ;;  %v4458_v15 = vadd.f32 %v8513_v25, %v4393_v48  ;;  %v8302_v9 = vpop.f32.mrb[32].mxu0  ;;  %v11118_v45 = vrot.slane %v4542_v51, 5  ;;  %v4567_v20 = vor.u32 %v4566_v32, %v4562_v8 }
 0x880   : > { %v8303_v43 = vpop.f32.mrb[33].mxu0  ;;  %v4530_v25 = vmul.bf16 %v11108_v57, %v9592_v10  ;;  %v11123_v23 = vrot.slane %v4569_v58, 1  ;;  %v4659_v61 = vrot.slane %v4569_v58, 5  ;;  %v4658_v51 = vrot.slane %v4573_v36, 4 }
 0x881   : > { %v4495_v19 = vmul.f32 0.2, %v4479_v1  ;;  %v4480_v5 = vadd.f32 %v4458_v15, %v10815_v18  ;;  %v8304_v28 = vadd.f32 %v8303_v43, %v8302_v9  ;;  %v8305_v49 = vpop.f32.mrb[34].mxu0  ;;  %vm4487_vm9 = vcmp.ge.f32.partialorder %v4479_v1, 0.0  ;;  %v8782_v43 = vld [vmem:[#allocation6 + $0x310] sm:$0xff]  }
 0x882   : > { %v8306_v63 = vpop.f32.mrb[35].mxu0  ;;  %4692 = vrot.lane.b32.xlu0 %v11118_v45, %s9131_s26  ;;  %v4615_v18 = vrot.slane %v4529_v60, 1  ;;  %v11137_v13 = vrot.slane %v4530_v25, 1  ;;  %v4572_v32 = vsel %vm609_vm8, %v4567_v20, %v11123_v23  ;;  %v11151_v58 = vor.u32 %v4659_v61, %v4658_v51  ;;  %v8783_v60 = vld [vmem:[#allocation6 + $0x2d0] sm:$0xff]   ;;  %8320 = vmatprep.subr.bf16.mxu0 %v8782_v43 }
 0x883   : > { %vm4488_vm13 = vcmp.ge.f32.partialorder %v4480_v5, 0.0  ;;  %v4496_v27 = vmul.f32 0.2, %v4480_v5  ;;  %v4398_v26 = vadd.f32 %v8304_v28, %v11093_v38  ;;  %v8307_v3 = vadd.f32 %v8306_v63, %v8305_v49  ;;  %8321 = vmatpush3.bf16.msra.mxu0 %v8783_v60 }
 0x884   : > { %v11129_v22 = vsel %vm4487_vm9, %v4479_v1, %v4495_v19  ;;  %v8784_v19 = vld [vmem:[#allocation6 + $0x318] sm:$0xff]   ;;  %v4720_v28 = vshll.u32 %v11139_v2, 16  ;;  %v4617_v20 = vsel %vm722_vm4, %v4615_v18, %v11137_v13  ;;  %v4718_v51 = vshrl.u32 %v11139_v2, 16 }
 0x885   : > { %v11131_v47 = vsel %vm4488_vm13, %v4480_v5, %v4496_v27  ;;  %v4463_v4 = vadd.f32 %v11087_v35, %v4398_v26  ;;  %v4401_v48 = vadd.f32 %v8307_v3, %v11093_v38  ;;  %v4537_v35 = vmul.bf16 %v11108_v57, %v9657_v52  ;;  %v8785_v3 = vld [vmem:[#allocation6 + $0x2d8] sm:$0xff]   ;;  %8322 = vmatprep.subr.bf16.mxu0 %v8784_v19 }
 0x886   : > { %v4510_v34 = vpack.c.bf16 %v11131_v47, %v11129_v22  ;;  %4600 = vrot.lane.b32.xlu0 %v4572_v32, %s9131_s26  ;;  %v4722_v18 = vrot.slane %v4720_v28, 1 }
 0x887   : > { %v4481_v8 = vadd.f32 %v4463_v4, %v10839_v42  ;;  %v8308_v1 = vpop.f32.mrb[36].mxu0  ;;  %v4466_v15 = vadd.f32 %v11091_v33, %v4401_v48  ;;  %v4639_v33 = vrot.slane %v4536_v21, 4  ;;  %v11158_v26 = vrot.slane %v4537_v35, 4  ;;  %v8786_v21 = vld [vmem:[#allocation6 + $0x320] sm:$0xff]   ;;  %8323 = vmatpush3.bf16.msra.mxu0 %v8785_v3 }
 0x888   : > { %4514 = vst.msk [vmem:[#allocation2 + $0x10] sm:$0xff] %vm300_vm0, %v4510_v34  ;;  %v8309_v9 = vpop.f32.mrb[37].mxu0  ;;  %8324 = vmatprep.subr.bf16.mxu0 %v8786_v21 }
 0x889   : > { %v8310_v42 = vadd.f32 %v8309_v9, %v8308_v1  ;;  %v8311_v5 = vpop.f32.mrb[38].mxu0  ;;  %v4497_v49 = vmul.f32 0.2, %v4481_v8  ;;  %v4482_v30 = vadd.f32 %v4466_v15, %v10843_v44  ;;  %vm4489_vm14 = vcmp.ge.f32.partialorder %v4481_v8, 0.0 }
 0x88a   : > { %v8312_v63 = vpop.f32.mrb[39].mxu0  ;;  %4624 = vrot.lane.b32.xlu0 %v4617_v20, %s9130_s24 }
 0x88b   : > { %v4406_v25 = vadd.f32 %v8310_v42, %v11093_v38  ;;  %v8313_v27 = vadd.f32 %v8312_v63, %v8311_v5  ;;  %vm4490_vm1 = vcmp.ge.f32.partialorder %v4482_v30, 0.0  ;;  %v4498_v4 = vmul.f32 0.2, %v4482_v30 }
 0x88c   : > { %v11163_v34 = vsel %vm4489_vm14, %v4481_v8, %v4497_v49  ;;  %v4723_v42 = vor.u32 %v4722_v18, %v4718_v51  ;;  %v12492_v18 = vld [vmem:[#allocation18_spill] sm:$0xff] }
 0x88d   : > { %v4471_v44 = vadd.f32 %v11085_v16, %v4406_v25  ;;  %v4409_v61 = vadd.f32 %v8313_v27, %v11093_v38  ;;  %v11165_v48 = vsel %vm4490_vm1, %v4482_v30, %v4498_v4  ;;  %v4641_v16 = vsel %vm747_vm10, %v4639_v33, %v11158_v26  ;;  %v8787_v38 = vld [vmem:[#allocation6 + $0x2e0] sm:$0xff]   ;;  %v8790_v25 = vld [vmem:[#allocation6 + $0x330] sm:$0xff]  }
 0x88e   : > { %v4511_v32 = vpack.c.bf16 %v11165_v48, %v11163_v34  ;;  %4648 = vrot.lane.b32.xlu0 %v4641_v16, %s9132_s17  ;;  %8325 = vmatpush3.bf16.msra.mxu0 %v8787_v38  ;;  %v4555_v38 = vld [vmem:[#allocation2 + $0x28] sm:$0x1f] }
 0x88f   : > { %v4483_v1 = vadd.f32 %v4471_v44, %v10835_v14  ;;  %v4474_v35 = vadd.f32 %v11089_v54, %v4409_v61  ;;  %v11174_v15 = vld [vmem:[#allocation2 + $0x10] sm:$0xff]  ;;  %v4556_v14 = vmul.bf16 %v11139_v2, %v9506_v6  ;;  %v8788_v54 = vld [vmem:[#allocation6 + $0x328] sm:$0xff]  }
 0x890   : > { %v4550_v8 = vmul.bf16 %v11174_v15, %v9495_v0  ;;  %v4577_v9 = vshll.u32 %v11174_v15, 16  ;;  %v4543_v43 = vmul.bf16 %v11174_v15, %v9606_v62  ;;  %4515 = vst.msk [vmem:[#allocation2 + $0x18] sm:$0xff] %vm300_vm0, %v4511_v32  ;;  %v4557_v49 = vmul.bf16 %v11174_v15, %v9592_v10  ;;  %v8789_v2 = vld [vmem:[#allocation6 + $0x2e8] sm:$0xff]   ;;  %8326 = vmatprep.subr.bf16.mxu0 %v8788_v54  ;;  %v8791_v32 = vld [vmem:[#allocation6 + $0x2f0] sm:$0xff]  }
 0x891   : > { %v4499_v60 = vmul.f32 0.2, %v4483_v1  ;;  %v4484_v19 = vadd.f32 %v4474_v35, %v10837_v37  ;;  %vm4491_vm3 = vcmp.ge.f32.partialorder %v4483_v1, 0.0  ;;  %v4531_v20 = vmul.bf16 %v11174_v15, %v9596_v41 }
 0x892   : > { %4709 = vrot.lane.b32.xlu1 %v4550_v8, %s9130_s24  ;;  %v11187_v5 = vrot.slane %v4577_v9, 1  ;;  %v4684_v28 = vrot.slane %v4543_v43, 5  ;;  %v4751_v33 = vrot.slane %v4556_v14, 1  ;;  %v4752_v4 = vrot.slane %v4557_v49, 1  ;;  %8327 = vmatpush3.bf16.msra.mxu0 %v8789_v2  ;;  %v8793_v2 = vld [vmem:[#allocation6 + $0x2f8] sm:$0xff]  }
 0x893   : > { %vm4492_vm6 = vcmp.ge.f32.partialorder %v4484_v19, 0.0  ;;  %v4500_v30 = vmul.f32 0.2, %v4484_v19  ;;  %v11197_v27 = vsel %vm4491_vm3, %v4483_v1, %v4499_v60  ;;  %v4581_v44 = vshrl.u32 %v11174_v15, 16  ;;  %8328 = vmatprep.subr.bf16.mxu0 %v8790_v25 }
 0x894   : > { %v4724_v63 = vsel %vm609_vm8, %v4723_v42, %v11187_v5  ;;  %v4685_v37 = vsel %vm792_vm5, %v11118_v45, %v4684_v28  ;;  %12490 = vst [vmem:[#allocation24_spill] sm:$0xff] %v11197_v27  ;;  %v4575_v45 = vor.u32 %v4573_v36, %v11123_v23  ;;  %v4538_v21 = vmul.bf16 %v11174_v15, %v12492_v18  ;;  %v8792_v42 = vld [vmem:[#allocation6 + $0x338] sm:$0xff]  }
 0x895   : > { %v11199_v3 = vsel %vm4492_vm6, %v4484_v19, %v4500_v30  ;;  %4736 = vrot.lane.b32.xlu0 %v4724_v63, %s9132_s17  ;;  %v4753_v51 = vsel %vm722_vm4, %v4751_v33, %v4752_v4  ;;  %v11217_v16 = vrot.slane %v4531_v20, 1  ;;  %v4661_v8 = vrot.slane %v4581_v44, 4 }
 0x896   : > { %12491 = vst [vmem:[#allocation25_spill] sm:$0xff] %v11199_v3  ;;  %v4512_v61 = vpack.c.bf16 %v11199_v3, %v11197_v27  ;;  %4694 = vrot.lane.b32.xlu1 %v4685_v37, %s9131_s26  ;;  %v4580_v1 = vsel %vm609_vm8, %v4575_v45, %v11187_v5  ;;  %v4662_v43 = vrot.slane %v4577_v9, 5  ;;  %v4906_v54 = vshrl.u32 %v4753_v51, 16  ;;  %8329 = vmatpush3.bf16.msra.mxu0 %v8791_v32 }
 0x897   : > { %v11215_v35 = vld [vmem:[#allocation2 + $0x18] sm:$0xff]  ;;  %v4909_v60 = vshll.u32 %v4753_v51, 16  ;;  %v4560_v30 = vmul.bf16 %v4555_v38, %v9665_v56  ;;  %v11231_v63 = vrot.slane %v4538_v21, 4  ;;  %8330 = vmatprep.subr.bf16.mxu0 %v8792_v42  ;;  %v4619_v20 = vsel %vm722_vm4, %v11137_v13, %v11217_v16  ;;  %v4541_v13 = vld [vmem:[#allocation2 + $0x28] sm:$0x1] }
 0x898   : > { %4516 = vst.msk [vmem:[#allocation2 + $0x20] sm:$0xff] %vm300_vm0, %v4512_v61  ;;  %v4551_v23 = vmul.bf16 %v11215_v35, %v9731_v31  ;;  %v4544_v36 = vmul.bf16 %v11215_v35, %v12479_v50  ;;  %v4558_v14 = vmul.bf16 %v11215_v35, %v9596_v41  ;;  %v4585_v19 = vshll.u32 %v11215_v35, 16 }
 0x899   : > { %v11233_v37 = vor.u32 %v4662_v43, %v4661_v8  ;;  %v4908_v61 = vrot.slane %v4906_v54, 3  ;;  %v4911_v45 = vrot.slane %v4909_v60, 4  ;;  %v4589_v38 = vshrl.u32 %v11215_v35, 16  ;;  %v8795_v54 = vld [vmem:[#allocation6 + $0x300] sm:$0xff]   ;;  %v8796_v60 = vld [vmem:[#allocation6 + $0x348] sm:$0xff]  }
 0x89a   : > { %4602 = vrot.lane.b32.xlu1 %v4580_v1, %s9131_s26  ;;  %4711 = vrot.lane.b32.xlu0 %v4551_v23, %s9130_s24  ;;  %v11228_v9 = vrot.slane %v4544_v36, 5  ;;  %v4754_v49 = vrot.slane %v4558_v14, 1  ;;  %v4587_v21 = vrot.slane %v4585_v19, 1  ;;  %v11246_v8 = vrot.slane %v4560_v30, 1  ;;  %v8794_v14 = vld [vmem:[#allocation6 + $0x340] sm:$0xff]  }
 0x89b   : > { %8331 = vmatpush3.bf16.msra.mxu0 %v8793_v2  ;;  %v4643_v42 = vsel %vm747_vm10, %v11158_v26, %v11231_v63  ;;  %v4583_v30 = vor.u32 %v4581_v44, %v11187_v5  ;;  %v4532_v26 = vmul.bf16 %v11215_v35, %v12480_v12  ;;  %v4546_v5 = vmul.bf16 %v4541_v13, %v12483_v40 }
 0x89c   : > { %v4687_v33 = vsel %vm792_vm5, %v4684_v28, %v11228_v9  ;;  %v4755_v25 = vsel %vm722_vm4, %v4752_v4, %v4754_v49  ;;  %v11251_v28 = vsel %vm513_vm2, %v11151_v58, %v11233_v37  ;;  %8332 = vmatprep.subr.bf16.mxu0 %v8794_v14  ;;  %v4665_v44 = vrot.slane %v4589_v38, 4 }
 0x89d   : > { %v4914_v51 = vshrl.u32 %v4755_v25, 16  ;;  %v4917_v32 = vshll.u32 %v4755_v25, 16 }
 0x89e   : > { %4626 = vrot.lane.b32.xlu1 %v4619_v20, %s9130_s24  ;;  %4696 = vrot.lane.b32.xlu0 %v4687_v33, %s9131_s26  ;;  %v4912_v33 = vor.u32 %v4911_v45, %v4908_v61  ;;  %v4588_v61 = vsel %vm609_vm8, %v4583_v30, %v4587_v21 }
 0x89f   : > { %v11243_v1 = vld [vmem:[#allocation2 + $0x20] sm:$0xff]  ;;  %v4916_v43 = vrot.slane %v4914_v51, 3  ;;  %v4919_v23 = vrot.slane %v4917_v32, 4  ;;  %v11265_v51 = vor.u32 %v4589_v38, %v4587_v21  ;;  %8333 = vmatpush3.bf16.msra.mxu0 %v8795_v54 }
 0x8a0   : > { %v4552_v4 = vmul.bf16 %v11243_v1, %v9812_v46  ;;  %v4673_v36 = vshll.u32 %v11243_v1, 16  ;;  %v4545_v20 = vmul.bf16 %v11243_v1, %v12482_v7  ;;  %v4559_v2 = vmul.bf16 %v11243_v1, %v12480_v12  ;;  %v8797_v7 = vld [vmem:[#allocation6 + $0x308] sm:$0xff]   ;;  %8334 = vmatprep.subr.bf16.mxu0 %v8796_v60  ;;  %v11292_v27 = vld [vmem:[#allocation2 + $0x20] sm:$0xf] }
 0x8a1   : > { %v4920_v25 = vor.u32 %v4919_v23, %v4916_v43  ;;  %v11275_v43 = vld [vmem:[#allocation2 + $0x28] sm:$0xf]  ;;  %v4666_v23 = vrot.slane %v4585_v19, 5  ;;  %v4670_v13 = vshrl.u32 %v11243_v1, 16  ;;  %v4690_v19 = vrot.slane %v4546_v5, 5 }
 0x8a2   : > { %4650 = vrot.lane.b32.xlu1 %v4643_v42, %s9132_s17  ;;  %v4725_v32 = vrot.slane %v4673_v36, 1  ;;  %4713 = vrot.lane.b32.xlu0 %v4552_v4, %s9130_s24  ;;  %v4756_v50 = vrot.slane %v4559_v2, 1  ;;  %v4688_v4 = vrot.slane %v4545_v20, 5  ;;  %v4729_v60 = vshll.u32 %v11275_v43, 16 }
 0x8a3   : > { %v4921_v3 = vsel %vm561_vm15, %v4912_v33, %v4920_v25  ;;  %8335 = vmatpush3.bf16.msra.mxu0 %v8797_v7  ;;  %v4675_v7 = vrot.slane %v4673_v36, 5 }
 0x8a4   : > { %v4726_v45 = vsel %vm609_vm8, %v11265_v51, %v4725_v32  ;;  %8522 = vmatprep.mubr.msk.bf16.mxu1 %vm300_vm0, %v4921_v3  ;;  %v4757_v14 = vsel %vm722_vm4, %v4754_v49, %v4756_v50  ;;  %v4759_v38 = vsel %vm722_vm4, %v4756_v50, %v11246_v8  ;;  %v4989_v3 = vshrl.u32 %v11246_v8, 16 }
 0x8a5   : > { %v4939_v21 = vshrl.u32 %v4757_v14, 16  ;;  %v4942_v54 = vshll.u32 %v4757_v14, 16  ;;  %v4964_v42 = vshrl.u32 %v4759_v38, 16  ;;  %v4967_v30 = vshll.u32 %v4759_v38, 16 }
 0x8a6   : > { %4738 = vrot.lane.b32.xlu1 %v4588_v61, %s9132_s17  ;;  %4740 = vrot.lane.b32.xlu0 %v4726_v45, %s9132_s17  ;;  %v4992_v49 = vshll.u32 %v11246_v8, 16  ;;  %v4689_v40 = vsel %vm792_vm5, %v11228_v9, %v4688_v4  ;;  %v4620_v14 = vrot.slane %v4532_v26, 1  ;;  %v4539_v38 = vmul.bf16 %v11215_v35, %v12481_v55 }
 0x8a7   : > { %v4941_v20 = vrot.slane %v4939_v21, 3  ;;  %v4944_v50 = vrot.slane %v4942_v54, 4  ;;  %v4966_v2 = vrot.slane %v4964_v42, 3  ;;  %v4969_v33 = vrot.slane %v4967_v30, 4  ;;  %v4528_v30 = vld [vmem:[#allocation2 + $0x20] sm:$0x1f] }
 0x8a8   : > { %v4667_v45 = vor.u32 %v4666_v23, %v4665_v44  ;;  %v4672_v8 = vrot.slane %v4670_v13, 4  ;;  %v4991_v21 = vrot.slane %v4989_v3, 3  ;;  %v4994_v44 = vrot.slane %v4992_v49, 4 }
 0x8a9   : > { %v4945_v5 = vor.u32 %v4944_v50, %v4941_v20  ;;  %v4970_v12 = vor.u32 %v4969_v33, %v4966_v2  ;;  %v4644_v36 = vrot.slane %v4539_v38, 4  ;;  %v4731_v42 = vrot.slane %v4729_v60, 1 }
 0x8aa   : > { %4604 = vrot.lane.b32.xlu1 %v4588_v61, %s9131_s26  ;;  %4698 = vrot.lane.b32.xlu0 %v4689_v40, %s9131_s26  ;;  %v11297_v54 = vsel %vm513_vm2, %v11233_v37, %v4667_v45  ;;  %v11301_v23 = vor.u32 %v4675_v7, %v4672_v8  ;;  %v4621_v61 = vsel %vm722_vm4, %v11217_v16, %v4620_v14  ;;  %v4593_v40 = vshll.u32 %v11292_v27, 16 }
 0x8ab   : > { %v4946_v9 = vsel %vm561_vm15, %v4920_v25, %v4945_v5  ;;  %v4971_v26 = vsel %vm561_vm15, %v4945_v5, %v4970_v12  ;;  %v4691_v37 = vsel %vm792_vm5, %v4688_v4, %v4690_v19  ;;  %v4727_v25 = vor.u32 %v4725_v32, %v4670_v13 }
 0x8ac   : > { %8523 = vmatmul.mubr.msk.bf16.vlgmr.msra.gmra.mrb[80].mxu1 %vm300_vm0, %v4946_v9  ;;  %v11312_v3 = vsel %vm513_vm2, %v4667_v45, %v11301_v23  ;;  %v4995_v49 = vor.u32 %v4994_v44, %v4991_v21  ;;  %v4645_v16 = vsel %vm747_vm10, %v11231_v63, %v4644_v36  ;;  %v4595_v20 = vrot.slane %v4593_v40, 1  ;;  %v4517_v44 = vld [vmem:[#allocation2] sm:$0xf8] }
 0x8ad   : > { %8526 = vmatprep.mubr.msk.bf16.mxu1 %vm300_vm0, %v4971_v26  ;;  %v4533_v50 = vmul.bf16 %v4528_v30, %v9665_v56  ;;  %v4732_v4 = vsel %vm609_vm8, %v4727_v25, %v4731_v42  ;;  %v4553_v32 = vmul.bf16 %v11275_v43, %v9772_v59  ;;  %v4733_v13 = vshrl.u32 %v11275_v43, 16 }
 0x8ae   : > { %4628 = vrot.lane.b32.xlu1 %v4621_v61, %s9130_s24  ;;  %4700 = vrot.lane.b32.xlu0 %v4691_v37, %s9131_s26  ;;  %v4996_v19 = vsel %vm561_vm15, %v4970_v12, %v4995_v49  ;;  %v4596_v63 = vsel %vm609_vm8, %v11265_v51, %v4595_v20  ;;  %v4540_v2 = vmul.bf16 %v11243_v1, %v9757_v29  ;;  %v4597_v51 = vshrl.u32 %v11292_v27, 16 }
 0x8af   : > { %v4622_v60 = vrot.slane %v4533_v50, 1  ;;  %v4735_v33 = vor.u32 %v4733_v13, %v4731_v42  ;;  %v4522_v37 = vmul.bf16 %v4517_v44, %v9469_v53  ;;  %v4523_v49 = vmul.bf16 %v11108_v57, %v9495_v0 }
 0x8b0   : > { %v4646_v45 = vrot.slane %v4540_v2, 4  ;;  %v4599_v43 = vor.u32 %v4597_v51, %v4595_v20 }
 0x8b1   : > { %v4623_v38 = vsel %vm722_vm4, %v4620_v14, %v4622_v60 }
 0x8b2   : > { %4652 = vrot.lane.b32.xlu1 %v4645_v16, %s9132_s17  ;;  %4742 = vrot.lane.b32.xlu0 %v4732_v4, %s9132_s17  ;;  %v4647_v12 = vsel %vm747_vm10, %v4644_v36, %v4646_v45 }
 0x8b4   : > { %8527 = vmatmul.mubr.msk.bf16.gmra.mrb[84].mxu1 %vm300_vm0, %v4996_v19 }
 0x8b6   : > { %4606 = vrot.lane.b32.xlu1 %v4596_v63, %s9131_s26  ;;  %4715 = vrot.lane.b32.xlu0 %v4553_v32, %s9130_s24 }
 0x8ba   : > { %4630 = vrot.lane.b32.xlu1 %v4623_v38, %s9130_s24  ;;  %4744 = vrot.lane.b32.xlu0 %v4735_v33, %s9132_s17 }
 0x8be   : > { %4654 = vrot.lane.b32.xlu1 %v4647_v12, %s9132_s17 }
 0x8c2   : > { %4608 = vrot.lane.b32.xlu1 %v4599_v43, %s9131_s26 }
 0x8c6   : > { %4632 = vrot.lane.b32.xlu1 %v4622_v60, %s9130_s24 }
 0x8ca   : > { %4656 = vrot.lane.b32.xlu1 %v4646_v45, %s9132_s17 }
 0x8f0   : > { %v4708_v1 = vpop.permute.xlu0 %4707 }
 0x8f4   : > { %v4693_v14 = vpop.permute.xlu0 %4692 }
 0x8f5   : > { %v4797_v36 = vsel %vm300_vm0, %v11151_v58, %v4693_v14 }
 0x8f6   : > { %v4811_v25 = vsel %vm885_vm12, %v4797_v36, %v4708_v1 }
 0x8f8   : > { %v4601_v5 = vpop.permute.xlu0 %4600 }
 0x8f9   : > { %v4762_v20 = vsel %vm300_vm0, %v4522_v37, %v4601_v5 }
 0x8fc   : > { %v4625_v8 = vpop.permute.xlu0 %4624 }
 0x8fd   : > { %v4776_v50 = vsel %vm885_vm12, %v4762_v20, %v4625_v8 }
 0x900   : > { %v4649_v7 = vpop.permute.xlu0 %4648 }
 0x901   : > { %v4786_v58 = vsel %vm896_vm11, %v4776_v50, %v4649_v7 }
 0x902   : > { %v4875_v12 = vshrl.u32 %v4786_v58, 16  ;;  %v4878_v51 = vshll.u32 %v4786_v58, 16 }
 0x904   : > { %v4710_v21 = vpop.permute.xlu1 %4709  ;;  %v4877_v36 = vrot.slane %v4875_v12, 3  ;;  %v4880_v37 = vrot.slane %v4878_v51, 4 }
 0x907   : > { %v4737_v9 = vpop.permute.xlu0 %4736 }
 0x908   : > { %v4695_v26 = vpop.permute.xlu1 %4694  ;;  %v4821_v30 = vsel %vm896_vm11, %v4811_v25, %v4737_v9 }
 0x909   : > { %v4890_v32 = vshrl.u32 %v4821_v30, 16  ;;  %v4800_v63 = vsel %vm300_vm0, %v11251_v28, %v4695_v26  ;;  %v4893_v57 = vshll.u32 %v4821_v30, 16 }
 0x90a   : > { %v4813_v1 = vsel %vm885_vm12, %v4800_v63, %v4710_v21 }
 0x90b   : > { %v4892_v43 = vrot.slane %v4890_v32, 3  ;;  %v4895_v26 = vrot.slane %v4893_v57, 4 }
 0x90c   : > { %v4603_v61 = vpop.permute.xlu1 %4602  ;;  %v4712_v40 = vpop.permute.xlu0 %4711 }
 0x90d   : > { %v4765_v4 = vsel %vm300_vm0, %v4523_v49, %v4603_v61  ;;  %v4896_v58 = vor.u32 %v4895_v26, %v4892_v43 }
 0x910   : > { %v4627_v42 = vpop.permute.xlu1 %4626  ;;  %v4697_v16 = vpop.permute.xlu0 %4696 }
 0x911   : > { %v4778_v13 = vsel %vm885_vm12, %v4765_v4, %v4627_v42  ;;  %v4803_v33 = vsel %vm300_vm0, %v11297_v54, %v4697_v16 }
 0x912   : > { %v4815_v28 = vsel %vm885_vm12, %v4803_v33, %v4712_v40  ;;  %v4881_v40 = vor.u32 %v4880_v37, %v4877_v36 }
 0x914   : > { %v4651_v19 = vpop.permute.xlu1 %4650  ;;  %v4714_v2 = vpop.permute.xlu0 %4713 }
 0x915   : > { %v4788_v60 = vsel %vm896_vm11, %v4778_v13, %v4651_v19 }
 0x916   : > { %v4882_v38 = vshrl.u32 %v4788_v60, 16  ;;  %v4885_v45 = vshll.u32 %v4788_v60, 16  ;;  %v4524_v60 = vmul.bf16 %v11174_v15, %v9731_v31 }
 0x918   : > { %v4739_v14 = vpop.permute.xlu1 %4738  ;;  %v4884_v5 = vrot.slane %v4882_v38, 3  ;;  %v4887_v8 = vrot.slane %v4885_v45, 4  ;;  %v4741_v9 = vpop.permute.xlu0 %4740 }
 0x919   : > { %v4823_v7 = vsel %vm896_vm11, %v4813_v1, %v4739_v14  ;;  %v4825_v54 = vsel %vm896_vm11, %v4815_v28, %v4741_v9 }
 0x91a   : > { %v4897_v44 = vshrl.u32 %v4823_v7, 16  ;;  %v4900_v61 = vshll.u32 %v4823_v7, 16  ;;  %v4930_v25 = vshrl.u32 %v4825_v54, 16  ;;  %v4933_v42 = vshll.u32 %v4825_v54, 16 }
 0x91b   : > { %v4888_v16 = vor.u32 %v4887_v8, %v4884_v5 }
 0x91c   : > { %v4899_v30 = vrot.slane %v4897_v44, 3  ;;  %v4902_v49 = vrot.slane %v4900_v61, 4  ;;  %v4605_v21 = vpop.permute.xlu1 %4604  ;;  %v4932_v20 = vrot.slane %v4930_v25, 3  ;;  %v4935_v50 = vrot.slane %v4933_v42, 4  ;;  %v4699_v4 = vpop.permute.xlu0 %4698 }
 0x91d   : > { %v4889_v33 = vsel %vm561_vm15, %v4881_v40, %v4888_v16  ;;  %v4806_v45 = vsel %vm300_vm0, %v11312_v3, %v4699_v4  ;;  %v4768_v12 = vsel %vm300_vm0, %v4524_v60, %v4605_v21 }
 0x91e   : > { %v4903_v32 = vor.u32 %v4902_v49, %v4899_v30  ;;  %v4936_v13 = vor.u32 %v4935_v50, %v4932_v20  ;;  %v4817_v15 = vsel %vm885_vm12, %v4806_v45, %v4714_v2  ;;  %v4525_v49 = vmul.bf16 %v11215_v35, %v9812_v46 }
 0x920   : > { %v4629_v19 = vpop.permute.xlu1 %4628  ;;  %v4904_v63 = vsel %vm561_vm15, %v4896_v58, %v4903_v32  ;;  %v4701_v57 = vpop.permute.xlu0 %4700  ;;  %v4937_v38 = vsel %vm561_vm15, %v4903_v32, %v4936_v13 }
 0x921   : > { %5157 = vmatprep.mubr.bf16.mxu0 %v4904_v63  ;;  %v4780_v51 = vsel %vm885_vm12, %v4768_v12, %v4629_v19  ;;  %v4809_v42 = vsel %vm300_vm0, %v11301_v23, %v4701_v57 }
 0x922   : > { %5158 = vmatmul.mubr.bf16.vlgmr.msra.gmra.mrb[40].mxu0 %v4889_v33 }
 0x923   : > { %5165 = vmatprep.mubr.bf16.mxu0 %v4937_v38 }
 0x924   : > { %v4653_v43 = vpop.permute.xlu1 %4652  ;;  %v4743_v14 = vpop.permute.xlu0 %4742 }
 0x925   : > { %v4790_v1 = vsel %vm896_vm11, %v4780_v51, %v4653_v43  ;;  %v4827_v7 = vsel %vm896_vm11, %v4817_v15, %v4743_v14  ;;  %v4526_v15 = vmul.bf16 %v11292_v27, %v9772_v59 }
 0x926   : > { %v4922_v5 = vshrl.u32 %v4790_v1, 16  ;;  %v4925_v8 = vshll.u32 %v4790_v1, 16  ;;  %v4955_v28 = vshrl.u32 %v4827_v7, 16  ;;  %v4958_v9 = vshll.u32 %v4827_v7, 16 }
 0x928   : > { %v4924_v26 = vrot.slane %v4922_v5, 3  ;;  %v4927_v3 = vrot.slane %v4925_v8, 4  ;;  %v4607_v44 = vpop.permute.xlu1 %4606  ;;  %v4957_v61 = vrot.slane %v4955_v28, 3  ;;  %v4960_v54 = vrot.slane %v4958_v9, 4  ;;  %v4716_v36 = vpop.permute.xlu0 %4715 }
 0x929   : > { %v4819_v21 = vsel %vm885_vm12, %v4809_v42, %v4716_v36  ;;  %v4771_v58 = vsel %vm300_vm0, %v4525_v49, %v4607_v44  ;;  %v8798_v49 = vld [vmem:[#allocation6 + $0x3e0] sm:$0xff]  }
 0x92a   : > { %v4928_v37 = vor.u32 %v4927_v3, %v4924_v26  ;;  %v4961_v25 = vor.u32 %v4960_v54, %v4957_v61  ;;  %8530 = vmatprep.subr.bf16.mxu0 %v8798_v49 }
 0x92b   : > { %8531 = vmatpush3.bf16.msra.mxu0 %v8798_v49 }
 0x92c   : > { %v4631_v30 = vpop.permute.xlu1 %4630  ;;  %v4929_v2 = vsel %vm561_vm15, %v4888_v16, %v4928_v37  ;;  %v4745_v20 = vpop.permute.xlu0 %4744  ;;  %v4962_v50 = vsel %vm561_vm15, %v4936_v13, %v4961_v25 }
 0x92d   : > { %5166 = vmatmul.mubr.bf16.gmra.mrb[44].mxu0 %v4929_v2  ;;  %v4829_v4 = vsel %vm896_vm11, %v4819_v21, %v4745_v20  ;;  %v4782_v23 = vsel %vm885_vm12, %v4771_v58, %v4631_v30  ;;  %v8799_v21 = vld [vmem:[#allocation6 + $0x3e8] sm:$0xff]  }
 0x92e   : > { %5173 = vmatprep.mubr.bf16.mxu0 %v4962_v50  ;;  %v4980_v32 = vshrl.u32 %v4829_v4, 16  ;;  %v4983_v40 = vshll.u32 %v4829_v4, 16  ;;  %8532 = vmatprep.subr.bf16.mxu0 %v8799_v21  ;;  %v11401_v50 = vld [vmem:[#allocation8 + $0x5] ss:$0 sm:$0xff] }
 0x92f   : > { %8533 = vmatpush3.bf16.msra.mxu0 %v8799_v21 }
 0x930   : > { %v4655_v19 = vpop.permute.xlu1 %4654  ;;  %v4982_v16 = vrot.slane %v4980_v32, 3  ;;  %v4985_v63 = vrot.slane %v4983_v40, 4 }
 0x931   : > { %v4792_v35 = vsel %vm896_vm11, %v4782_v23, %v4655_v19 }
 0x932   : > { %v4947_v60 = vshrl.u32 %v4792_v35, 16  ;;  %v4950_v57 = vshll.u32 %v4792_v35, 16  ;;  %v4986_v33 = vor.u32 %v4985_v63, %v4982_v16 }
 0x934   : > { %v4949_v38 = vrot.slane %v4947_v60, 3  ;;  %v4952_v45 = vrot.slane %v4950_v57, 4  ;;  %v4609_v13 = vpop.permute.xlu1 %4608  ;;  %v4987_v12 = vsel %vm561_vm15, %v4961_v25, %v4986_v33 }
 0x935   : > { %v4774_v14 = vsel %vm300_vm0, %v4526_v15, %v4609_v13 }
 0x936   : > { %v4953_v51 = vor.u32 %v4952_v45, %v4949_v38 }
 0x938   : > { %v4633_v43 = vpop.permute.xlu1 %4632  ;;  %v4954_v1 = vsel %vm561_vm15, %v4928_v37, %v4953_v51 }
 0x939   : > { %5174 = vmatmul.mubr.bf16.gmra.mrb[48].mxu0 %v4954_v1  ;;  %v4784_v5 = vsel %vm885_vm12, %v4774_v14, %v4633_v43 }
 0x93a   : > { %5181 = vmatprep.mubr.bf16.mxu0 %v4987_v12 }
 0x93c   : > { %v4657_v8 = vpop.permute.xlu1 %4656 }
 0x93d   : > { %v4794_v7 = vsel %vm896_vm11, %v4784_v5, %v4657_v8 }
 0x93e   : > { %v4972_v28 = vshrl.u32 %v4794_v7, 16  ;;  %v4975_v9 = vshll.u32 %v4794_v7, 16 }
 0x940   : > { %v4974_v26 = vrot.slane %v4972_v28, 3  ;;  %v4977_v3 = vrot.slane %v4975_v9, 4  ;;  %v5305_v9 = vld [vmem:[#allocation2] sm:$0xf0] }
 0x942   : > { %v4978_v44 = vor.u32 %v4977_v3, %v4974_v26 }
 0x944   : > { %v4979_v61 = vsel %vm561_vm15, %v4953_v51, %v4978_v44  ;;  %v5342_v44 = vshll.u32 %v5305_v9, 16 }
 0x945   : > { %5182 = vmatmul.mubr.bf16.gmra.mrb[52].mxu0 %v4979_v61  ;;  %v8800_v61 = vld [vmem:[#allocation6 + $0x3a0] sm:$0xff]  }
 0x946   : > { %8366 = vmatprep.subr.bf16.mxu1 %v8800_v61 }
 0x97f   : > { %v8524_v54 = vpop.f32.mrb[80].mxu1 }
 0x980   : > { %v5224_v36 = vpop.f32.mrb[81].mxu1 }
 0x981   : > { %v8525_v27 = vpop.f32.mrb[82].mxu1 }
 0x982   : > { %v5227_v37 = vpop.f32.mrb[83].mxu1 }
 0x987   : > { %v11393_v25 = vpop.f32.mrb[84].mxu1 }
 0x988   : > { %v11395_v42 = vpop.f32.mrb[85].mxu1 }
 0x989   : > { %v11397_v30 = vpop.f32.mrb[86].mxu1 }
 0x98a   : > { %v11399_v2 = vpop.f32.mrb[87].mxu1 }
 0x9f5   : > { %v8336_v20 = vpop.f32.mrb[40].mxu0 }
 0x9f6   : > { %v8337_v4 = vpop.f32.mrb[41].mxu0 }
 0x9f7   : > { %v8338_v58 = vadd.f32 %v8337_v4, %v8336_v20  ;;  %v8339_v32 = vpop.f32.mrb[42].mxu0 }
 0x9f8   : > { %v8340_v40 = vpop.f32.mrb[43].mxu0 }
 0x9f9   : > { %v5160_v23 = vadd.f32 %v8338_v58, %v11401_v50  ;;  %v8341_v19 = vadd.f32 %v8340_v40, %v8339_v32  ;;  %v5312_v40 = vld [vmem:[#allocation2] sm:$0x80] }
 0x9fb   : > { %v5225_v16 = vadd.f32 %v5224_v36, %v5160_v23  ;;  %v5163_v63 = vadd.f32 %v8341_v19, %v11401_v50  ;;  %v8801_v36 = vld [vmem:[#allocation6 + $0x360] sm:$0xff]  }
 0x9fc   : > { %8367 = vmatpush3.bf16.msra.mxu1 %v8801_v36 }
 0x9fd   : > { %v5255_v35 = vadd.f32 %v5225_v16, %v11099_v39  ;;  %v5228_v60 = vadd.f32 %v5227_v37, %v5163_v63  ;;  %v5340_v16 = vshrl.u32 %v5305_v9, 16  ;;  %v5344_v63 = vrot.slane %v5342_v44, 1 }
 0x9ff   : > { %v5271_v57 = vmul.f32 0.2, %v5255_v35  ;;  %v5256_v33 = vadd.f32 %v5228_v60, %v11101_v17  ;;  %vm5263_vm7 = vcmp.ge.f32.partialorder %v5255_v35, 0.0  ;;  %v8802_v60 = vld [vmem:[#allocation6 + $0x3a8] sm:$0xff]  }
 0xa00   : > { %v8342_v38 = vpop.f32.mrb[44].mxu0  ;;  %8368 = vmatprep.subr.bf16.mxu1 %v8802_v60 }
 0xa01   : > { %vm5264_vm9 = vcmp.ge.f32.partialorder %v5256_v33, 0.0  ;;  %v5272_v45 = vmul.f32 0.2, %v5256_v33  ;;  %v8343_v13 = vpop.f32.mrb[45].mxu0  ;;  %v11407_v43 = vsel %vm5263_vm7, %v5255_v35, %v5271_v57  ;;  %v8803_v57 = vld [vmem:[#allocation6 + $0x368] sm:$0xff]  }
 0xa02   : > { %v8344_v12 = vadd.f32 %v8343_v13, %v8342_v38  ;;  %v8345_v51 = vpop.f32.mrb[46].mxu0  ;;  %v5314_v13 = vmul.bf16 %v5312_v40, %v9622_v24  ;;  %8369 = vmatpush3.bf16.msra.mxu1 %v8803_v57 }
 0xa03   : > { %v11409_v1 = vsel %vm5264_vm9, %v5256_v33, %v5272_v45  ;;  %v8346_v15 = vpop.f32.mrb[47].mxu0  ;;  %v5307_v45 = vmul.bf16 %v5305_v9, %v9506_v6 }
 0xa04   : > { %v5287_v14 = vpack.c.bf16 %v11409_v1, %v11407_v43  ;;  %v5168_v39 = vadd.f32 %v8344_v12, %v11401_v50  ;;  %v8347_v5 = vadd.f32 %v8346_v15, %v8345_v51  ;;  %v5417_v36 = vrot.slane %v5314_v13, 4 }
 0xa06   : > { %5291 = vst.msk [vmem:[#allocation2 + $0x8] sm:$0xff] %vm300_vm0, %v5287_v14  ;;  %v5233_v17 = vadd.f32 %v8524_v54, %v5168_v39  ;;  %v5171_v8 = vadd.f32 %v8347_v5, %v11401_v50  ;;  %v5345_v5 = vor.u32 %v5344_v63, %v5340_v16 }
 0xa08   : > { %v5257_v7 = vadd.f32 %v5233_v17, %v11129_v22  ;;  %v5236_v28 = vadd.f32 %v8525_v27, %v5171_v8 }
 0xa0a   : > { %vm5265_vm13 = vcmp.ge.f32.partialorder %v5257_v7, 0.0  ;;  %v5273_v26 = vmul.f32 0.2, %v5257_v7  ;;  %v5258_v3 = vadd.f32 %v5236_v28, %v11131_v47 }
 0xa0c   : > { %vm5266_vm14 = vcmp.ge.f32.partialorder %v5258_v3, 0.0  ;;  %v5274_v37 = vmul.f32 0.2, %v5258_v3  ;;  %v8348_v49 = vpop.f32.mrb[48].mxu0  ;;  %v11418_v21 = vsel %vm5265_vm13, %v5257_v7, %v5273_v26 }
 0xa0d   : > { %v8349_v20 = vpop.f32.mrb[49].mxu0  ;;  %v5325_v54 = vld [vmem:[#allocation2 + $0x8] sm:$0xf8] }
 0xa0e   : > { %v11420_v4 = vld [vmem:[#allocation2 + $0x8] sm:$0xff]  ;;  %v11422_v22 = vsel %vm5266_vm14, %v5258_v3, %v5274_v37  ;;  %v8350_v27 = vadd.f32 %v8349_v20, %v8348_v49  ;;  %v8351_v58 = vpop.f32.mrb[50].mxu0  ;;  %v5327_v32 = vmul.bf16 %v5325_v54, %v9469_v53 }
 0xa0f   : > { %v5320_v47 = vmul.bf16 %v11420_v4, %v9509_v11  ;;  %v5288_v23 = vpack.c.bf16 %v11422_v22, %v11418_v21  ;;  %v8352_v19 = vpop.f32.mrb[51].mxu0  ;;  %v5347_v35 = vshll.u32 %v11420_v4, 16  ;;  %v5351_v12 = vshrl.u32 %v11420_v4, 16  ;;  %v5332_v37 = vld [vmem:[#allocation2 + $0x8] sm:$0xf0] }
 0xa10   : > { %v5176_v33 = vadd.f32 %v8350_v27, %v11401_v50  ;;  %v8353_v38 = vadd.f32 %v8352_v19, %v8351_v58  ;;  %5485 = vrot.lane.b32.xlu0 %v5327_v32, %s9130_s24  ;;  %v5308_v39 = vmul.bf16 %v11420_v4, %v9592_v10  ;;  %v5315_v8 = vmul.bf16 %v11420_v4, %v9657_v52  ;;  %v8805_v19 = vld [vmem:[#allocation6 + $0x370] sm:$0xff]  }
 0xa11   : > { %5292 = vst.msk [vmem:[#allocation2 + $0x10] sm:$0xff] %vm300_vm0, %v5288_v23  ;;  %v5461_v14 = vrot.slane %v5320_v47, 5  ;;  %v11440_v17 = vrot.slane %v5347_v35, 1  ;;  %v5436_v9 = vrot.slane %v5351_v12, 4  ;;  %v5437_v26 = vrot.slane %v5347_v35, 5 }
 0xa12   : > { %v5241_v51 = vadd.f32 %v11395_v42, %v5176_v33  ;;  %v5179_v15 = vadd.f32 %v8353_v38, %v11401_v50  ;;  %v5393_v42 = vrot.slane %v5307_v45, 1  ;;  %v11450_v61 = vrot.slane %v5308_v39, 1 }
 0xa13   : > { %v11454_v49 = vrot.slane %v5315_v8, 4  ;;  %v5498_v40 = vshll.u32 %v5332_v37, 16  ;;  %v5334_v23 = vmul.bf16 %v5332_v37, %v9506_v6 }
 0xa14   : > { %v5259_v7 = vadd.f32 %v5241_v51, %v11163_v34  ;;  %v5244_v28 = vadd.f32 %v11399_v2, %v5179_v15  ;;  %5470 = vrot.lane.b32.xlu0 %v5461_v14, %s9131_s26  ;;  %v5350_v34 = vsel %vm609_vm8, %v5345_v5, %v11440_v17  ;;  %v11456_v2 = vor.u32 %v5437_v26, %v5436_v9  ;;  %v8808_v9 = vld [vmem:[#allocation6 + $0x3c0] sm:$0xff]  }
 0xa15   : > { %v5395_v45 = vsel %vm722_vm4, %v5393_v42, %v11450_v61  ;;  %v5419_v26 = vsel %vm747_vm10, %v5417_v36, %v11454_v49 }
 0xa16   : > { %v5275_v3 = vmul.f32 0.2, %v5259_v7  ;;  %v5260_v44 = vadd.f32 %v5244_v28, %v11165_v48  ;;  %vm5267_vm1 = vcmp.ge.f32.partialorder %v5259_v7, 0.0  ;;  %v8804_v48 = vld [vmem:[#allocation6 + $0x3b0] sm:$0xff]   ;;  %v8807_v28 = vld [vmem:[#allocation6 + $0x378] sm:$0xff]  }
 0xa17   : > { %8370 = vmatprep.subr.bf16.mxu1 %v8804_v48  ;;  %v5529_v48 = vrot.slane %v5334_v23, 1 }
 0xa18   : > { %vm5268_vm3 = vcmp.ge.f32.partialorder %v5260_v44, 0.0  ;;  %v5276_v20 = vmul.f32 0.2, %v5260_v44  ;;  %v8354_v54 = vpop.f32.mrb[52].mxu0  ;;  %5378 = vrot.lane.b32.xlu0 %v5350_v34, %s9131_s26  ;;  %v11459_v27 = vld [vmem:[#allocation2 + $0x10] sm:$0xff]  ;;  %v11467_v16 = vsel %vm5267_vm1, %v5259_v7, %v5275_v3  ;;  %8371 = vmatpush3.bf16.msra.mxu1 %v8805_v19  ;;  %v8806_v7 = vld [vmem:[#allocation6 + $0x3b8] sm:$0xff]  }
 0xa19   : > { %v8355_v58 = vpop.f32.mrb[53].mxu0  ;;  %v5328_v32 = vmul.bf16 %v11459_v27, %v9495_v0  ;;  %v5321_v47 = vmul.bf16 %v11459_v27, %v9606_v62  ;;  %v5355_v57 = vshll.u32 %v11459_v27, 16  ;;  %v5359_v51 = vshrl.u32 %v11459_v27, 16  ;;  %8372 = vmatprep.subr.bf16.mxu1 %v8806_v7 }
 0xa1a   : > { %v11469_v63 = vsel %vm5268_vm3, %v5260_v44, %v5276_v20  ;;  %v8356_v35 = vadd.f32 %v8355_v58, %v8354_v54  ;;  %v8357_v60 = vpop.f32.mrb[54].mxu0  ;;  %v5309_v5 = vmul.bf16 %v11459_v27, %v9596_v41  ;;  %v5335_v8 = vmul.bf16 %v11459_v27, %v9592_v10 }
 0xa1b   : > { %v5289_v33 = vpack.c.bf16 %v11469_v63, %v11467_v16  ;;  %v8358_v38 = vpop.f32.mrb[55].mxu0  ;;  %5487 = vrot.lane.b32.xlu1 %v5328_v32, %s9130_s24  ;;  %v11477_v13 = vrot.slane %v5321_v47, 5  ;;  %v5496_v3 = vshrl.u32 %v5332_v37, 16  ;;  %v5500_v44 = vrot.slane %v5498_v40, 1  ;;  %v8809_v37 = vld [vmem:[#allocation6 + $0x380] sm:$0xff]  }
 0xa1c   : > { %v5184_v15 = vadd.f32 %v8356_v35, %v11401_v50  ;;  %v8359_v39 = vadd.f32 %v8358_v38, %v8357_v60  ;;  %5402 = vrot.lane.b32.xlu0 %v5395_v45, %s9130_s24  ;;  %v11493_v54 = vrot.slane %v5355_v57, 1  ;;  %v5316_v58 = vmul.bf16 %v11459_v27, %v12492_v18  ;;  %8373 = vmatpush3.bf16.msra.mxu1 %v8807_v28  ;;  %v12493_v47 = vld [vmem:[#allocation24_spill] sm:$0xff] }
 0xa1d   : > { %5293 = vst.msk [vmem:[#allocation2 + $0x18] sm:$0xff] %vm300_vm0, %v5289_v33  ;;  %v5463_v42 = vsel %vm792_vm5, %v5461_v14, %v11477_v13  ;;  %v5530_v32 = vrot.slane %v5335_v8, 1  ;;  %v5439_v14 = vrot.slane %v5359_v51, 4  ;;  %v5440_v36 = vrot.slane %v5355_v57, 5  ;;  %8374 = vmatprep.subr.bf16.mxu1 %v8808_v9  ;;  %v12494_v33 = vld [vmem:[#allocation25_spill] sm:$0xff] }
 0xa1e   : > { %v5249_v34 = vadd.f32 %v11393_v25, %v5184_v15  ;;  %v5187_v20 = vadd.f32 %v8359_v39, %v11401_v50  ;;  %v5353_v40 = vor.u32 %v5351_v12, %v11440_v17  ;;  %v11506_v23 = vrot.slane %v5309_v5, 1  ;;  %v8810_v15 = vld [vmem:[#allocation6 + $0x3c8] sm:$0xff]  }
 0xa1f   : > { %5472 = vrot.lane.b32.xlu1 %v5463_v42, %s9131_s26  ;;  %v5501_v19 = vor.u32 %v5500_v44, %v5496_v3  ;;  %v5531_v35 = vsel %vm722_vm4, %v5529_v48, %v5530_v32  ;;  %v11509_v60 = vor.u32 %v5440_v36, %v5439_v14  ;;  %v11517_v17 = vrot.slane %v5316_v58, 4  ;;  %v8811_v39 = vld [vmem:[#allocation6 + $0x388] sm:$0xff]   ;;  %v12495_v42 = vld [vmem:[#allocation19_spill] sm:$0xff] }
 0xa20   : > { %v5261_v25 = vadd.f32 %v5249_v34, %v12493_v47  ;;  %v5252_v50 = vadd.f32 %v11397_v30, %v5187_v20  ;;  %5426 = vrot.lane.b32.xlu0 %v5419_v26, %s9132_s17  ;;  %v5358_v30 = vsel %vm609_vm8, %v5353_v40, %v11493_v54  ;;  %8375 = vmatpush3.bf16.msra.mxu1 %v8809_v37  ;;  %v5684_v28 = vshrl.u32 %v5531_v35, 16  ;;  %v8812_v37 = vld [vmem:[#allocation6 + $0x3d0] sm:$0xff]  }
 0xa21   : > { %v5502_v12 = vsel %vm609_vm8, %v5501_v19, %v11493_v54  ;;  %v11522_v45 = vsel %vm513_vm2, %v11456_v2, %v11509_v60  ;;  %v5397_v8 = vsel %vm722_vm4, %v11450_v61, %v11506_v23  ;;  %v5687_v44 = vshll.u32 %v5531_v35, 16  ;;  %8376 = vmatprep.subr.bf16.mxu1 %v8810_v15  ;;  %v8813_v47 = vld [vmem:[#allocation6 + $0x390] sm:$0xff]  }
 0xa22   : > { %v5277_v57 = vmul.f32 0.2, %v5261_v25  ;;  %v5262_v38 = vadd.f32 %v5252_v50, %v12494_v33  ;;  %vm5269_vm6 = vcmp.ge.f32.partialorder %v5261_v25, 0.0  ;;  %v8814_v50 = vld [vmem:[#allocation6 + $0x3d8] sm:$0xff]   ;;  %v5421_v40 = vsel %vm747_vm10, %v11454_v49, %v11517_v17 }
 0xa23   : > { %5380 = vrot.lane.b32.xlu1 %v5358_v30, %s9131_s26  ;;  %v5686_v35 = vrot.slane %v5684_v28, 3  ;;  %v8815_v49 = vld [vmem:[#allocation6 + $0x398] sm:$0xff]  }
 0xa24   : > { %vm5270_vm7 = vcmp.ge.f32.partialorder %v5262_v38, 0.0  ;;  %v5278_v5 = vmul.f32 0.2, %v5262_v38  ;;  %5514 = vrot.lane.b32.xlu0 %v5502_v12, %s9132_s17  ;;  %v11528_v7 = vld [vmem:[#allocation2 + $0x18] sm:$0xff]  ;;  %v11537_v34 = vsel %vm5269_vm6, %v5261_v25, %v5277_v57  ;;  %8377 = vmatpush3.bf16.msra.mxu1 %v8811_v39  ;;  %v5333_v25 = vld [vmem:[#allocation2 + $0x28] sm:$0x1f] }
 0xa25   : > { %v5329_v9 = vmul.bf16 %v11528_v7, %v9731_v31  ;;  %v5322_v26 = vmul.bf16 %v11528_v7, %v12495_v42  ;;  %v5336_v3 = vmul.bf16 %v11528_v7, %v9596_v41  ;;  %12496 = vst [vmem:[#allocation24_spill] sm:$0xff] %v11537_v34  ;;  %v5363_v61 = vshll.u32 %v11528_v7, 16  ;;  %8378 = vmatprep.subr.bf16.mxu1 %v8812_v37 }
 0xa26   : > { %v11539_v20 = vsel %vm5270_vm7, %v5262_v38, %v5278_v5  ;;  %v5367_v48 = vshrl.u32 %v11528_v7, 16  ;;  %v5689_v38 = vrot.slane %v5687_v44, 4  ;;  %v5338_v39 = vmul.bf16 %v5333_v25, %v9665_v56 }
 0xa27   : > { %12497 = vst [vmem:[#allocation25_spill] sm:$0xff] %v11539_v20  ;;  %v5290_v58 = vpack.c.bf16 %v11539_v20, %v11537_v34  ;;  %5404 = vrot.lane.b32.xlu1 %v5397_v8, %s9130_s24  ;;  %v11546_v14 = vrot.slane %v5322_v26, 5  ;;  %v5532_v36 = vrot.slane %v5336_v3, 1  ;;  %v5365_v33 = vrot.slane %v5363_v61, 1 }
 0xa28   : > { %5489 = vrot.lane.b32.xlu0 %v5329_v9, %s9130_s24  ;;  %v5443_v57 = vrot.slane %v5367_v48, 4  ;;  %v5444_v5 = vrot.slane %v5363_v61, 5  ;;  %8379 = vmatpush3.bf16.msra.mxu1 %v8813_v47  ;;  %v12498_v9 = vld [vmem:[#allocation20_spill] sm:$0xff]  ;;  %v5690_v44 = vor.u32 %v5689_v38, %v5686_v35  ;;  %v5317_v47 = vmul.bf16 %v11528_v7, %v12481_v55 }
 0xa29   : > { %5294 = vst.msk [vmem:[#allocation2 + $0x20] sm:$0xff] %vm300_vm0, %v5290_v58  ;;  %v5533_v19 = vsel %vm722_vm4, %v5530_v32, %v5532_v36  ;;  %v5465_v15 = vsel %vm792_vm5, %v11477_v13, %v11546_v14  ;;  %v5361_v32 = vor.u32 %v5359_v51, %v11493_v54  ;;  %v5310_v26 = vmul.bf16 %v11528_v7, %v12498_v9 }
 0xa2a   : > { %v5692_v30 = vshrl.u32 %v5533_v19, 16  ;;  %v5695_v12 = vshll.u32 %v5533_v19, 16  ;;  %8380 = vmatprep.subr.bf16.mxu1 %v8814_v50  ;;  %v5445_v3 = vor.u32 %v5444_v5, %v5443_v57  ;;  %v5536_v25 = vrot.slane %v5338_v39, 1  ;;  %v5319_v50 = vld [vmem:[#allocation2 + $0x28] sm:$0x1]  ;;  %v12499_v19 = vld [vmem:[#allocation23_spill] sm:$0xff] }
 0xa2b   : > { %5428 = vrot.lane.b32.xlu1 %v5421_v40, %s9132_s17  ;;  %v5366_v13 = vsel %vm609_vm8, %v5361_v32, %v5365_v33  ;;  %v11574_v37 = vrot.slane %v5310_v26, 1  ;;  %v12500_v5 = vld [vmem:[#allocation21_spill] sm:$0xff] }
 0xa2c   : > { %5474 = vrot.lane.b32.xlu0 %v5465_v15, %s9131_s26  ;;  %v5694_v8 = vrot.slane %v5692_v30, 3  ;;  %v5697_v28 = vrot.slane %v5695_v12, 4  ;;  %v11569_v61 = vsel %vm513_vm2, %v11509_v60, %v5445_v3  ;;  %8381 = vmatpush3.bf16.msra.mxu1 %v8815_v49  ;;  %v5369_v12 = vor.u32 %v5367_v48, %v5365_v33 }
 0xa2d   : > { %v5324_v49 = vmul.bf16 %v5319_v50, %v12500_v5  ;;  %v5399_v32 = vsel %vm722_vm4, %v11506_v23, %v11574_v37 }
 0xa2e   : > { %v5698_v58 = vor.u32 %v5697_v28, %v5694_v8  ;;  %v5422_v8 = vrot.slane %v5317_v47, 4  ;;  %v5767_v47 = vshrl.u32 %v5536_v25, 16 }
 0xa2f   : > { %5516 = vrot.lane.b32.xlu1 %v5366_v13, %s9132_s17  ;;  %v5468_v23 = vrot.slane %v5324_v49, 5 }
 0xa30   : > { %v5699_v51 = vsel %vm561_vm15, %v5690_v44, %v5698_v58  ;;  %v11572_v54 = vld [vmem:[#allocation2 + $0x20] sm:$0xff] }
 0xa31   : > { %8534 = vmatprep.mubr.msk.bf16.mxu0 %vm300_vm0, %v5699_v51  ;;  %v5330_v40 = vmul.bf16 %v11572_v54, %v9812_v46  ;;  %v5451_v60 = vshll.u32 %v11572_v54, 16  ;;  %v5323_v35 = vmul.bf16 %v11572_v54, %v12499_v19  ;;  %v5337_v57 = vmul.bf16 %v11572_v54, %v12498_v9  ;;  %v11586_v38 = vld [vmem:[#allocation2 + $0x20] sm:$0xf] }
 0xa32   : > { %v5448_v30 = vshrl.u32 %v11572_v54, 16  ;;  %v5371_v26 = vshll.u32 %v11586_v38, 16  ;;  %v5306_v5 = vld [vmem:[#allocation2 + $0x20] sm:$0x1f] }
 0xa33   : > { %5382 = vrot.lane.b32.xlu1 %v5366_v13, %s9131_s26  ;;  %5491 = vrot.lane.b32.xlu0 %v5330_v40, %s9130_s24  ;;  %v5503_v15 = vrot.slane %v5451_v60, 1  ;;  %v5534_v39 = vrot.slane %v5337_v57, 1  ;;  %v5466_v28 = vrot.slane %v5323_v35, 5  ;;  %v5326_v40 = vld [vmem:[#allocation2 + $0x28] sm:$0xf]  ;;  %v5770_v35 = vshll.u32 %v5536_v25, 16 }
 0xa34   : > { %v5450_v48 = vrot.slane %v5448_v30, 4  ;;  %v5453_v55 = vrot.slane %v5451_v60, 5  ;;  %v5507_v34 = vshll.u32 %v5326_v40, 16  ;;  %v5373_v18 = vrot.slane %v5371_v26, 1 }
 0xa35   : > { %v5504_v44 = vsel %vm609_vm8, %v5369_v12, %v5503_v15  ;;  %v5535_v51 = vsel %vm722_vm4, %v5532_v36, %v5534_v39  ;;  %v5537_v13 = vsel %vm722_vm4, %v5534_v39, %v5536_v25  ;;  %v5423_v39 = vsel %vm747_vm10, %v11517_v17, %v5422_v8 }
 0xa36   : > { %v5717_v33 = vshrl.u32 %v5535_v51, 16  ;;  %v5720_v57 = vshll.u32 %v5535_v51, 16  ;;  %v5742_v19 = vshrl.u32 %v5537_v13, 16  ;;  %v5745_v50 = vshll.u32 %v5537_v13, 16 }
 0xa37   : > { %5406 = vrot.lane.b32.xlu1 %v5399_v32, %s9130_s24  ;;  %5518 = vrot.lane.b32.xlu0 %v5504_v44, %s9132_s17  ;;  %v5311_v51 = vmul.bf16 %v5306_v5, %v9665_v56  ;;  %v11604_v13 = vor.u32 %v5453_v55, %v5450_v48  ;;  %v5467_v32 = vsel %vm792_vm5, %v11546_v14, %v5466_v28  ;;  %v5769_v55 = vrot.slane %v5767_v47, 3 }
 0xa38   : > { %v5719_v9 = vrot.slane %v5717_v33, 3  ;;  %v5722_v42 = vrot.slane %v5720_v57, 4  ;;  %v5744_v36 = vrot.slane %v5742_v19, 3  ;;  %v5747_v20 = vrot.slane %v5745_v50, 4 }
 0xa39   : > { %v11612_v25 = vsel %vm513_vm2, %v5445_v3, %v11604_v13  ;;  %v5772_v19 = vrot.slane %v5770_v35, 4  ;;  %v5509_v14 = vrot.slane %v5507_v34, 1  ;;  %v5400_v3 = vrot.slane %v5311_v51, 1 }
 0xa3a   : > { %v5723_v44 = vor.u32 %v5722_v42, %v5719_v9  ;;  %v5748_v49 = vor.u32 %v5747_v20, %v5744_v36  ;;  %v5318_v42 = vmul.bf16 %v11572_v54, %v9757_v29  ;;  %v5374_v20 = vsel %vm609_vm8, %v5369_v12, %v5373_v18  ;;  %v5295_v36 = vld [vmem:[#allocation2] sm:$0xf8] }
 0xa3b   : > { %5430 = vrot.lane.b32.xlu1 %v5423_v39, %s9132_s17  ;;  %5476 = vrot.lane.b32.xlu0 %v5467_v32, %s9131_s26  ;;  %v5469_v9 = vsel %vm792_vm5, %v5466_v28, %v5468_v23  ;;  %v5505_v5 = vor.u32 %v5503_v15, %v5448_v30  ;;  %v5401_v26 = vsel %vm722_vm4, %v11574_v37, %v5400_v3  ;;  %v5511_v12 = vshrl.u32 %v5326_v40, 16 }
 0xa3c   : > { %v5724_v17 = vsel %vm561_vm15, %v5698_v58, %v5723_v44  ;;  %v5749_v60 = vsel %vm561_vm15, %v5723_v44, %v5748_v49  ;;  %v5773_v58 = vor.u32 %v5772_v19, %v5769_v55  ;;  %v5424_v48 = vrot.slane %v5318_v42, 4 }
 0xa3d   : > { %8535 = vmatmul.mubr.msk.bf16.vlgmr.msra.gmra.mrb[56].mxu0 %vm300_vm0, %v5724_v17  ;;  %v5510_v34 = vsel %vm609_vm8, %v5505_v5, %v5509_v14  ;;  %v5331_v54 = vmul.bf16 %v5326_v40, %v9772_v59  ;;  %v5375_v37 = vshrl.u32 %v11586_v38, 16  ;;  %v5513_v28 = vor.u32 %v5511_v12, %v5509_v14 }
 0xa3e   : > { %8538 = vmatprep.mubr.msk.bf16.mxu0 %vm300_vm0, %v5749_v60  ;;  %v5774_v30 = vsel %vm561_vm15, %v5748_v49, %v5773_v58  ;;  %v5425_v15 = vsel %vm747_vm10, %v5422_v8, %v5424_v48  ;;  %v5301_v49 = vmul.bf16 %v11420_v4, %v9495_v0 }
 0xa3f   : > { %5384 = vrot.lane.b32.xlu1 %v5374_v20, %s9131_s26  ;;  %5478 = vrot.lane.b32.xlu0 %v5469_v9, %s9131_s26  ;;  %v5377_v33 = vor.u32 %v5375_v37, %v5373_v18  ;;  %v5300_v18 = vmul.bf16 %v5295_v36, %v9469_v53 }
 0xa43   : > { %5408 = vrot.lane.b32.xlu1 %v5401_v26, %s9130_s24  ;;  %5520 = vrot.lane.b32.xlu0 %v5510_v34, %s9132_s17 }
 0xa45   : > { %8539 = vmatmul.mubr.msk.bf16.gmra.mrb[60].mxu0 %vm300_vm0, %v5774_v30 }
 0xa47   : > { %5432 = vrot.lane.b32.xlu1 %v5425_v15, %s9132_s17  ;;  %5493 = vrot.lane.b32.xlu0 %v5331_v54, %s9130_s24 }
 0xa4b   : > { %5386 = vrot.lane.b32.xlu1 %v5377_v33, %s9131_s26  ;;  %5522 = vrot.lane.b32.xlu0 %v5513_v28, %s9132_s17 }
 0xa4f   : > { %5410 = vrot.lane.b32.xlu1 %v5400_v3, %s9130_s24 }
 0xa53   : > { %5434 = vrot.lane.b32.xlu1 %v5424_v48, %s9132_s17 }
 0xa82   : > { %v5486_v40 = vpop.permute.xlu0 %5485 }
 0xa86   : > { %v5471_v57 = vpop.permute.xlu0 %5470 }
 0xa87   : > { %v5575_v32 = vsel %vm300_vm0, %v11456_v2, %v5471_v57 }
 0xa88   : > { %v5589_v60 = vsel %vm885_vm12, %v5575_v32, %v5486_v40 }
 0xa8a   : > { %v5379_v50 = vpop.permute.xlu0 %5378 }
 0xa8b   : > { %v5540_v17 = vsel %vm300_vm0, %v5300_v18, %v5379_v50 }
 0xa8d   : > { %v5488_v8 = vpop.permute.xlu1 %5487 }
 0xa8e   : > { %v5403_v23 = vpop.permute.xlu0 %5402 }
 0xa8f   : > { %v5554_v19 = vsel %vm885_vm12, %v5540_v17, %v5403_v23 }
 0xa91   : > { %v5473_v47 = vpop.permute.xlu1 %5472 }
 0xa92   : > { %v5427_v35 = vpop.permute.xlu0 %5426  ;;  %v5578_v3 = vsel %vm300_vm0, %v11522_v45, %v5473_v47 }
 0xa93   : > { %v5564_v20 = vsel %vm896_vm11, %v5554_v19, %v5427_v35  ;;  %v5591_v30 = vsel %vm885_vm12, %v5578_v3, %v5488_v8 }
 0xa94   : > { %v5653_v48 = vshrl.u32 %v5564_v20, 16  ;;  %v5656_v54 = vshll.u32 %v5564_v20, 16 }
 0xa95   : > { %v5381_v39 = vpop.permute.xlu1 %5380 }
 0xa96   : > { %v5515_v51 = vpop.permute.xlu0 %5514  ;;  %v5543_v14 = vsel %vm300_vm0, %v5301_v49, %v5381_v39  ;;  %v5655_v23 = vrot.slane %v5653_v48, 3  ;;  %v5658_v47 = vrot.slane %v5656_v54, 4 }
 0xa97   : > { %v5599_v42 = vsel %vm896_vm11, %v5589_v60, %v5515_v51 }
 0xa98   : > { %v5668_v5 = vshrl.u32 %v5599_v42, 16  ;;  %v5671_v58 = vshll.u32 %v5599_v42, 16  ;;  %v5659_v49 = vor.u32 %v5658_v47, %v5655_v23  ;;  %v5302_v42 = vmul.bf16 %v11459_v27, %v9731_v31 }
 0xa99   : > { %v5405_v44 = vpop.permute.xlu1 %5404  ;;  %v5303_v47 = vmul.bf16 %v11528_v7, %v9812_v46 }
 0xa9a   : > { %v5490_v55 = vpop.permute.xlu0 %5489  ;;  %v5556_v9 = vsel %vm885_vm12, %v5543_v14, %v5405_v44  ;;  %v5670_v40 = vrot.slane %v5668_v5, 3  ;;  %v5673_v57 = vrot.slane %v5671_v58, 4 }
 0xa9c   : > { %v5674_v8 = vor.u32 %v5673_v57, %v5670_v40 }
 0xa9d   : > { %v5429_v2 = vpop.permute.xlu1 %5428 }
 0xa9e   : > { %v5566_v4 = vsel %vm896_vm11, %v5556_v9, %v5429_v2  ;;  %v5475_v12 = vpop.permute.xlu0 %5474 }
 0xa9f   : > { %v5660_v26 = vshrl.u32 %v5566_v4, 16  ;;  %v5663_v34 = vshll.u32 %v5566_v4, 16  ;;  %v5581_v32 = vsel %vm300_vm0, %v11569_v61, %v5475_v12 }
 0xaa0   : > { %v5593_v60 = vsel %vm885_vm12, %v5581_v32, %v5490_v55 }
 0xaa1   : > { %v5517_v15 = vpop.permute.xlu1 %5516  ;;  %v5662_v37 = vrot.slane %v5660_v26, 3  ;;  %v5665_v28 = vrot.slane %v5663_v34, 4 }
 0xaa2   : > { %v5601_v33 = vsel %vm896_vm11, %v5591_v30, %v5517_v15 }
 0xaa3   : > { %v5675_v50 = vshrl.u32 %v5601_v33, 16  ;;  %v5678_v45 = vshll.u32 %v5601_v33, 16  ;;  %v5666_v18 = vor.u32 %v5665_v28, %v5662_v37 }
 0xaa5   : > { %v5677_v35 = vrot.slane %v5675_v50, 3  ;;  %v5680_v36 = vrot.slane %v5678_v45, 4  ;;  %v5383_v39 = vpop.permute.xlu1 %5382  ;;  %v5492_v51 = vpop.permute.xlu0 %5491  ;;  %v5667_v9 = vsel %vm561_vm15, %v5659_v49, %v5666_v18 }
 0xaa6   : > { %v5546_v61 = vsel %vm300_vm0, %v5302_v42, %v5383_v39 }
 0xaa7   : > { %v5681_v44 = vor.u32 %v5680_v36, %v5677_v35 }
 0xaa9   : > { %v5407_v17 = vpop.permute.xlu1 %5406  ;;  %v5519_v19 = vpop.permute.xlu0 %5518  ;;  %v5682_v14 = vsel %vm561_vm15, %v5674_v8, %v5681_v44 }
 0xaaa   : > { %v5603_v20 = vsel %vm896_vm11, %v5593_v60, %v5519_v19  ;;  %5935 = vmatprep.mubr.bf16.mxu1 %v5682_v14  ;;  %v5558_v4 = vsel %vm885_vm12, %v5546_v61, %v5407_v17 }
 0xaab   : > { %v5708_v2 = vshrl.u32 %v5603_v20, 16  ;;  %v5711_v3 = vshll.u32 %v5603_v20, 16  ;;  %5936 = vmatmul.mubr.bf16.vlgmr.msra.gmra.mrb[88].mxu1 %v5667_v9 }
 0xaad   : > { %v5710_v5 = vrot.slane %v5708_v2, 3  ;;  %v5713_v55 = vrot.slane %v5711_v3, 4  ;;  %v5431_v58 = vpop.permute.xlu1 %5430  ;;  %v5477_v26 = vpop.permute.xlu0 %5476 }
 0xaae   : > { %v5568_v34 = vsel %vm896_vm11, %v5558_v4, %v5431_v58  ;;  %v5584_v33 = vsel %vm300_vm0, %v11612_v25, %v5477_v26 }
 0xaaf   : > { %v5714_v48 = vor.u32 %v5713_v55, %v5710_v5  ;;  %v5700_v27 = vshrl.u32 %v5568_v34, 16  ;;  %v5703_v54 = vshll.u32 %v5568_v34, 16  ;;  %v5595_v50 = vsel %vm885_vm12, %v5584_v33, %v5492_v51 }
 0xab1   : > { %v5702_v12 = vrot.slane %v5700_v27, 3  ;;  %v5705_v30 = vrot.slane %v5703_v54, 4  ;;  %v5385_v15 = vpop.permute.xlu1 %5384  ;;  %v5479_v37 = vpop.permute.xlu0 %5478  ;;  %v5715_v28 = vsel %vm561_vm15, %v5681_v44, %v5714_v48 }
 0xab2   : > { %5943 = vmatprep.mubr.bf16.mxu1 %v5715_v28  ;;  %v5549_v32 = vsel %vm300_vm0, %v5303_v47, %v5385_v15  ;;  %v5587_v7 = vsel %vm300_vm0, %v11604_v13, %v5479_v37  ;;  %v5304_v13 = vmul.bf16 %v11586_v38, %v9772_v59 }
 0xab3   : > { %v5706_v40 = vor.u32 %v5705_v30, %v5702_v12 }
 0xab5   : > { %v5409_v57 = vpop.permute.xlu1 %5408  ;;  %v5521_v45 = vpop.permute.xlu0 %5520  ;;  %v5707_v23 = vsel %vm561_vm15, %v5666_v18, %v5706_v40 }
 0xab6   : > { %v5605_v35 = vsel %vm896_vm11, %v5595_v50, %v5521_v45  ;;  %5944 = vmatmul.mubr.bf16.gmra.mrb[92].mxu1 %v5707_v23  ;;  %v5560_v25 = vsel %vm885_vm12, %v5549_v32, %v5409_v57 }
 0xab7   : > { %v5733_v36 = vshrl.u32 %v5605_v35, 16  ;;  %v5736_v39 = vshll.u32 %v5605_v35, 16 }
 0xab9   : > { %v5735_v8 = vrot.slane %v5733_v36, 3  ;;  %v5738_v44 = vrot.slane %v5736_v39, 4  ;;  %v5433_v49 = vpop.permute.xlu1 %5432  ;;  %v5494_v17 = vpop.permute.xlu0 %5493 }
 0xaba   : > { %v5570_v51 = vsel %vm896_vm11, %v5560_v25, %v5433_v49  ;;  %v5597_v20 = vsel %vm885_vm12, %v5587_v7, %v5494_v17  ;;  %v11700_v17 = vld [vmem:[#allocation8 + $0x6] ss:$0 sm:$0xff] }
 0xabb   : > { %v5739_v60 = vor.u32 %v5738_v44, %v5735_v8  ;;  %v5725_v18 = vshrl.u32 %v5570_v51, 16  ;;  %v5728_v19 = vshll.u32 %v5570_v51, 16  ;;  %v8816_v8 = vld [vmem:[#allocation6 + $0x470] sm:$0xff]   ;;  %v8817_v44 = vld [vmem:[#allocation6 + $0x478] sm:$0xff]  }
 0xabc   : > { %8542 = vmatprep.subr.bf16.mxu0 %v8816_v8 }
 0xabd   : > { %v5727_v14 = vrot.slane %v5725_v18, 3  ;;  %v5730_v42 = vrot.slane %v5728_v19, 4  ;;  %v5387_v9 = vpop.permute.xlu1 %5386  ;;  %v5523_v2 = vpop.permute.xlu0 %5522  ;;  %v5740_v3 = vsel %vm561_vm15, %v5714_v48, %v5739_v60  ;;  %8543 = vmatpush3.bf16.msra.mxu0 %v8816_v8 }
 0xabe   : > { %v5607_v61 = vsel %vm896_vm11, %v5597_v20, %v5523_v2  ;;  %5951 = vmatprep.mubr.bf16.mxu1 %v5740_v3  ;;  %v5552_v12 = vsel %vm300_vm0, %v5304_v13, %v5387_v9  ;;  %8544 = vmatprep.subr.bf16.mxu0 %v8817_v44 }
 0xabf   : > { %v5731_v4 = vor.u32 %v5730_v42, %v5727_v14  ;;  %v5758_v5 = vshrl.u32 %v5607_v61, 16  ;;  %v5761_v55 = vshll.u32 %v5607_v61, 16 }
 0xac1   : > { %v5760_v58 = vrot.slane %v5758_v5, 3  ;;  %v5763_v26 = vrot.slane %v5761_v55, 4  ;;  %v5411_v34 = vpop.permute.xlu1 %5410  ;;  %v5732_v27 = vsel %vm561_vm15, %v5706_v40, %v5731_v4  ;;  %8545 = vmatpush3.bf16.msra.mxu0 %v8817_v44 }
 0xac2   : > { %5952 = vmatmul.mubr.bf16.gmra.mrb[96].mxu1 %v5732_v27  ;;  %v5562_v48 = vsel %vm885_vm12, %v5552_v12, %v5411_v34 }
 0xac3   : > { %v5764_v54 = vor.u32 %v5763_v26, %v5760_v58 }
 0xac5   : > { %v5435_v30 = vpop.permute.xlu1 %5434  ;;  %v5765_v15 = vsel %vm561_vm15, %v5739_v60, %v5764_v54 }
 0xac6   : > { %v5572_v37 = vsel %vm896_vm11, %v5562_v48, %v5435_v30  ;;  %5959 = vmatprep.mubr.bf16.mxu1 %v5765_v15 }
 0xac7   : > { %v5750_v28 = vshrl.u32 %v5572_v37, 16  ;;  %v5753_v33 = vshll.u32 %v5572_v37, 16  ;;  %v6083_v37 = vld [vmem:[#allocation2] sm:$0xf0] }
 0xac9   : > { %v5752_v57 = vrot.slane %v5750_v28, 3  ;;  %v5755_v50 = vrot.slane %v5753_v33, 4 }
 0xacb   : > { %v5756_v40 = vor.u32 %v5755_v50, %v5752_v57  ;;  %v6120_v57 = vshll.u32 %v6083_v37, 16  ;;  %v8818_v50 = vld [vmem:[#allocation6 + $0x430] sm:$0xff]  }
 0xacc   : > { %8412 = vmatprep.subr.bf16.mxu1 %v8818_v50 }
 0xacd   : > { %v5757_v45 = vsel %vm561_vm15, %v5731_v4, %v5756_v40  ;;  %v8819_v40 = vld [vmem:[#allocation6 + $0x3f0] sm:$0xff]  }
 0xace   : > { %5960 = vmatmul.mubr.bf16.gmra.mrb[100].mxu1 %v5757_v45 }
 0xacf   : > { %8413 = vmatpush3.bf16.msra.mxu1 %v8819_v40 }
 0xb10   : > { %v8536_v38 = vpop.f32.mrb[56].mxu0 }
 0xb11   : > { %v6002_v23 = vpop.f32.mrb[57].mxu0 }
 0xb12   : > { %v8537_v47 = vpop.f32.mrb[58].mxu0 }
 0xb13   : > { %v6005_v35 = vpop.f32.mrb[59].mxu0 }
 0xb18   : > { %v11692_v36 = vpop.f32.mrb[60].mxu0 }
 0xb19   : > { %v11694_v39 = vpop.f32.mrb[61].mxu0 }
 0xb1a   : > { %v11696_v32 = vpop.f32.mrb[62].mxu0 }
 0xb1b   : > { %v11698_v25 = vpop.f32.mrb[63].mxu0 }
 0xb7e   : > { %v8382_v49 = vpop.f32.mrb[88].mxu1 }
 0xb7f   : > { %v8383_v51 = vpop.f32.mrb[89].mxu1 }
 0xb80   : > { %v8384_v60 = vadd.f32 %v8383_v51, %v8382_v49  ;;  %v8385_v18 = vpop.f32.mrb[90].mxu1 }
 0xb81   : > { %v8386_v19 = vpop.f32.mrb[91].mxu1 }
 0xb82   : > { %v5938_v7 = vadd.f32 %v8384_v60, %v11700_v17  ;;  %v8387_v14 = vadd.f32 %v8386_v19, %v8385_v18  ;;  %v6090_v60 = vld [vmem:[#allocation2] sm:$0x80] }
 0xb84   : > { %v6003_v42 = vadd.f32 %v6002_v23, %v5938_v7  ;;  %v5941_v20 = vadd.f32 %v8387_v14, %v11700_v17  ;;  %v6118_v7 = vshrl.u32 %v6083_v37, 16  ;;  %v6122_v14 = vrot.slane %v6120_v57, 1 }
 0xb86   : > { %v6033_v9 = vadd.f32 %v6003_v42, %v11407_v43  ;;  %v6006_v2 = vadd.f32 %v6005_v35, %v5941_v20  ;;  %v8820_v20 = vld [vmem:[#allocation6 + $0x438] sm:$0xff]  }
 0xb87   : > { %8414 = vmatprep.subr.bf16.mxu1 %v8820_v20 }
 0xb88   : > { %v6049_v3 = vmul.f32 0.2, %v6033_v9  ;;  %v6034_v61 = vadd.f32 %v6006_v2, %v11409_v1  ;;  %vm6041_vm9 = vcmp.ge.f32.partialorder %v6033_v9, 0.0 }
 0xb89   : > { %v8388_v4 = vpop.f32.mrb[92].mxu1 }
 0xb8a   : > { %vm6042_vm13 = vcmp.ge.f32.partialorder %v6034_v61, 0.0  ;;  %v6050_v5 = vmul.f32 0.2, %v6034_v61  ;;  %v8389_v55 = vpop.f32.mrb[93].mxu1  ;;  %v11706_v34 = vsel %vm6041_vm9, %v6033_v9, %v6049_v3  ;;  %v8821_v9 = vld [vmem:[#allocation6 + $0x3f8] sm:$0xff]  }
 0xb8b   : > { %v8390_v58 = vadd.f32 %v8389_v55, %v8388_v4  ;;  %v8391_v26 = vpop.f32.mrb[94].mxu1  ;;  %v6092_v4 = vmul.bf16 %v6090_v60, %v9622_v24  ;;  %8415 = vmatpush3.bf16.msra.mxu1 %v8821_v9  ;;  %v8823_v60 = vld [vmem:[#allocation6 + $0x400] sm:$0xff]  }
 0xb8c   : > { %v11708_v27 = vsel %vm6042_vm13, %v6034_v61, %v6050_v5  ;;  %v8392_v13 = vpop.f32.mrb[95].mxu1  ;;  %v6085_v61 = vmul.bf16 %v6083_v37, %v9506_v6 }
 0xb8d   : > { %v6065_v54 = vpack.c.bf16 %v11708_v27, %v11706_v34  ;;  %v5946_v43 = vadd.f32 %v8390_v58, %v11700_v17  ;;  %v8393_v12 = vadd.f32 %v8392_v13, %v8391_v26  ;;  %v6195_v57 = vrot.slane %v6092_v4, 4 }
 0xb8f   : > { %6069 = vst.msk [vmem:[#allocation2 + $0x8] sm:$0xff] %vm300_vm0, %v6065_v54  ;;  %v6011_v1 = vadd.f32 %v8536_v38, %v5946_v43  ;;  %v5949_v48 = vadd.f32 %v8393_v12, %v11700_v17  ;;  %v6123_v54 = vor.u32 %v6122_v14, %v6118_v7 }
 0xb91   : > { %v6035_v30 = vadd.f32 %v6011_v1, %v11418_v21  ;;  %v6014_v15 = vadd.f32 %v8537_v47, %v5949_v48 }
 0xb93   : > { %vm6043_vm14 = vcmp.ge.f32.partialorder %v6035_v30, 0.0  ;;  %v6051_v28 = vmul.f32 0.2, %v6035_v30  ;;  %v6036_v33 = vadd.f32 %v6014_v15, %v11422_v22 }
 0xb95   : > { %vm6044_vm1 = vcmp.ge.f32.partialorder %v6036_v33, 0.0  ;;  %v6052_v45 = vmul.f32 0.2, %v6036_v33  ;;  %v8394_v23 = vpop.f32.mrb[96].mxu1  ;;  %v11717_v35 = vsel %vm6043_vm14, %v6035_v30, %v6051_v28 }
 0xb96   : > { %v8395_v8 = vpop.f32.mrb[97].mxu1  ;;  %v6103_v38 = vld [vmem:[#allocation2 + $0x8] sm:$0xf8] }
 0xb97   : > { %v11719_v44 = vld [vmem:[#allocation2 + $0x8] sm:$0xff]  ;;  %v11721_v21 = vsel %vm6044_vm1, %v6036_v33, %v6052_v45  ;;  %v8396_v47 = vadd.f32 %v8395_v8, %v8394_v23  ;;  %v8397_v49 = vpop.f32.mrb[98].mxu1  ;;  %v6105_v51 = vmul.bf16 %v6103_v38, %v9469_v53 }
 0xb98   : > { %v6098_v22 = vmul.bf16 %v11719_v44, %v9509_v11  ;;  %v6066_v18 = vpack.c.bf16 %v11721_v21, %v11717_v35  ;;  %v8398_v19 = vpop.f32.mrb[99].mxu1  ;;  %v6125_v42 = vshll.u32 %v11719_v44, 16  ;;  %v6129_v5 = vshrl.u32 %v11719_v44, 16  ;;  %v6110_v50 = vld [vmem:[#allocation2 + $0x8] sm:$0xf0] }
 0xb99   : > { %v5954_v2 = vadd.f32 %v8396_v47, %v11700_v17  ;;  %v8399_v3 = vadd.f32 %v8398_v19, %v8397_v49  ;;  %6263 = vrot.lane.b32.xlu0 %v6105_v51, %s9130_s24  ;;  %v6086_v13 = vmul.bf16 %v11719_v44, %v9592_v10  ;;  %v6093_v12 = vmul.bf16 %v11719_v44, %v9657_v52 }
 0xb9a   : > { %6070 = vst.msk [vmem:[#allocation2 + $0x10] sm:$0xff] %vm300_vm0, %v6066_v18  ;;  %v6239_v26 = vrot.slane %v6098_v22, 5  ;;  %v11739_v43 = vrot.slane %v6125_v42, 1  ;;  %v6214_v30 = vrot.slane %v6129_v5, 4  ;;  %v6215_v15 = vrot.slane %v6125_v42, 5 }
 0xb9b   : > { %v6019_v55 = vadd.f32 %v11694_v39, %v5954_v2  ;;  %v5957_v58 = vadd.f32 %v8399_v3, %v11700_v17  ;;  %v6171_v39 = vrot.slane %v6085_v61, 1  ;;  %v11749_v33 = vrot.slane %v6086_v13, 1 }
 0xb9c   : > { %v11753_v40 = vrot.slane %v6093_v12, 4  ;;  %v6276_v51 = vshll.u32 %v6110_v50, 16  ;;  %v6112_v22 = vmul.bf16 %v6110_v50, %v9506_v6  ;;  %v8825_v12 = vld [vmem:[#allocation6 + $0x408] sm:$0xff]  }
 0xb9d   : > { %v6037_v1 = vadd.f32 %v6019_v55, %v11467_v16  ;;  %v6022_v48 = vadd.f32 %v11698_v25, %v5957_v58  ;;  %6248 = vrot.lane.b32.xlu0 %v6239_v26, %s9131_s26  ;;  %v6128_v16 = vsel %vm609_vm8, %v6123_v54, %v11739_v43  ;;  %v11755_v25 = vor.u32 %v6215_v15, %v6214_v30  ;;  %v8824_v54 = vld [vmem:[#allocation6 + $0x448] sm:$0xff]  }
 0xb9e   : > { %v6173_v2 = vsel %vm722_vm4, %v6171_v39, %v11749_v33  ;;  %v6197_v39 = vsel %vm747_vm10, %v6195_v57, %v11753_v40  ;;  %v6274_v30 = vshrl.u32 %v6110_v50, 16  ;;  %v6278_v15 = vrot.slane %v6276_v51, 1  ;;  %v8827_v50 = vld [vmem:[#allocation6 + $0x410] sm:$0xff]  }
 0xb9f   : > { %v6053_v37 = vmul.f32 0.2, %v6037_v1  ;;  %v6038_v28 = vadd.f32 %v6022_v48, %v11469_v63  ;;  %vm6045_vm3 = vcmp.ge.f32.partialorder %v6037_v1, 0.0  ;;  %v8822_v63 = vld [vmem:[#allocation6 + $0x440] sm:$0xff]  }
 0xba0   : > { %8416 = vmatprep.subr.bf16.mxu1 %v8822_v63 }
 0xba1   : > { %vm6046_vm6 = vcmp.ge.f32.partialorder %v6038_v28, 0.0  ;;  %v6054_v45 = vmul.f32 0.2, %v6038_v28  ;;  %v8400_v23 = vpop.f32.mrb[100].mxu1  ;;  %6156 = vrot.lane.b32.xlu0 %v6128_v16, %s9131_s26  ;;  %v11758_v8 = vld [vmem:[#allocation2 + $0x10] sm:$0xff]  ;;  %v11766_v18 = vsel %vm6045_vm3, %v6037_v1, %v6053_v37  ;;  %8417 = vmatpush3.bf16.msra.mxu1 %v8823_v60  ;;  %v8826_v1 = vld [vmem:[#allocation6 + $0x450] sm:$0xff]  }
 0xba2   : > { %v8401_v38 = vpop.f32.mrb[101].mxu1  ;;  %v6106_v47 = vmul.bf16 %v11758_v8, %v9495_v0  ;;  %v6099_v49 = vmul.bf16 %v11758_v8, %v9606_v62  ;;  %v6133_v42 = vshll.u32 %v11758_v8, 16  ;;  %v6137_v61 = vshrl.u32 %v11758_v8, 16  ;;  %8418 = vmatprep.subr.bf16.mxu1 %v8824_v54 }
 0xba3   : > { %v11768_v19 = vsel %vm6046_vm6, %v6038_v28, %v6054_v45  ;;  %v8402_v7 = vadd.f32 %v8401_v38, %v8400_v23  ;;  %v8403_v14 = vpop.f32.mrb[102].mxu1  ;;  %v6087_v58 = vmul.bf16 %v11758_v8, %v9596_v41  ;;  %v6113_v13 = vmul.bf16 %v11758_v8, %v9592_v10  ;;  %v12501_v23 = vld [vmem:[#allocation18_spill] sm:$0xff] }
 0xba4   : > { %v6067_v20 = vpack.c.bf16 %v11768_v19, %v11766_v18  ;;  %v8404_v9 = vpop.f32.mrb[103].mxu1  ;;  %6265 = vrot.lane.b32.xlu1 %v6106_v47, %s9130_s24  ;;  %v11776_v3 = vrot.slane %v6099_v49, 5  ;;  %v11792_v16 = vrot.slane %v6133_v42, 1  ;;  %v6307_v45 = vrot.slane %v6112_v22, 1  ;;  %v12502_v47 = vld [vmem:[#allocation24_spill] sm:$0xff] }
 0xba5   : > { %v5962_v4 = vadd.f32 %v8402_v7, %v11700_v17  ;;  %v8405_v55 = vadd.f32 %v8404_v9, %v8403_v14  ;;  %6180 = vrot.lane.b32.xlu0 %v6173_v2, %s9130_s24  ;;  %v6094_v63 = vmul.bf16 %v11758_v8, %v12501_v23  ;;  %v6308_v38 = vrot.slane %v6113_v13, 1  ;;  %8419 = vmatpush3.bf16.msra.mxu1 %v8825_v12  ;;  %v8828_v2 = vld [vmem:[#allocation6 + $0x458] sm:$0xff]  }
 0xba6   : > { %6071 = vst.msk [vmem:[#allocation2 + $0x18] sm:$0xff] %vm300_vm0, %v6067_v20  ;;  %v6241_v48 = vsel %vm792_vm5, %v6239_v26, %v11776_v3  ;;  %v6217_v26 = vrot.slane %v6137_v61, 4  ;;  %v6218_v57 = vrot.slane %v6133_v42, 5  ;;  %v6131_v49 = vor.u32 %v6129_v5, %v11739_v43  ;;  %8420 = vmatprep.subr.bf16.mxu1 %v8826_v1  ;;  %v12503_v42 = vld [vmem:[#allocation25_spill] sm:$0xff]  ;;  %v12504_v1 = vld [vmem:[#allocation19_spill] sm:$0xff] }
 0xba7   : > { %v6027_v37 = vadd.f32 %v11692_v36, %v5962_v4  ;;  %v5965_v28 = vadd.f32 %v8405_v55, %v11700_v17  ;;  %v11805_v51 = vrot.slane %v6087_v58, 1  ;;  %v6279_v22 = vor.u32 %v6278_v15, %v6274_v30  ;;  %v8829_v4 = vld [vmem:[#allocation6 + $0x418] sm:$0xff]  }
 0xba8   : > { %6250 = vrot.lane.b32.xlu1 %v6241_v48, %s9131_s26  ;;  %v6309_v60 = vsel %vm722_vm4, %v6307_v45, %v6308_v38  ;;  %v11808_v7 = vor.u32 %v6218_v57, %v6217_v26  ;;  %v11816_v43 = vrot.slane %v6094_v63, 4  ;;  %v8830_v57 = vld [vmem:[#allocation6 + $0x460] sm:$0xff]  }
 0xba9   : > { %v6039_v36 = vadd.f32 %v6027_v37, %v12502_v47  ;;  %v6030_v17 = vadd.f32 %v11696_v32, %v5965_v28  ;;  %6204 = vrot.lane.b32.xlu0 %v6197_v39, %s9132_s17  ;;  %v6136_v32 = vsel %vm609_vm8, %v6131_v49, %v11792_v16  ;;  %v6280_v5 = vsel %vm609_vm8, %v6279_v22, %v11792_v16  ;;  %v6111_v47 = vld [vmem:[#allocation2 + $0x28] sm:$0x1f] }
 0xbaa   : > { %v11821_v9 = vsel %vm513_vm2, %v11755_v25, %v11808_v7  ;;  %8421 = vmatpush3.bf16.msra.mxu1 %v8827_v50  ;;  %v6175_v58 = vsel %vm722_vm4, %v11749_v33, %v11805_v51  ;;  %v6462_v54 = vshrl.u32 %v6309_v60, 16  ;;  %v6465_v30 = vshll.u32 %v6309_v60, 16  ;;  %v8831_v50 = vld [vmem:[#allocation6 + $0x420] sm:$0xff]  }
 0xbab   : > { %v6055_v14 = vmul.f32 0.2, %v6039_v36  ;;  %v6040_v20 = vadd.f32 %v6030_v17, %v12503_v42  ;;  %vm6047_vm7 = vcmp.ge.f32.partialorder %v6039_v36, 0.0  ;;  %8422 = vmatprep.subr.bf16.mxu1 %v8828_v2  ;;  %v6199_v17 = vsel %vm747_vm10, %v11753_v40, %v11816_v43  ;;  %v8833_v40 = vld [vmem:[#allocation6 + $0x428] sm:$0xff]  }
 0xbac   : > { %6158 = vrot.lane.b32.xlu1 %v6136_v32, %s9131_s26  ;;  %v6464_v22 = vrot.slane %v6462_v54, 3  ;;  %v6467_v42 = vrot.slane %v6465_v30, 4  ;;  %v6116_v2 = vmul.bf16 %v6111_v47, %v9665_v56  ;;  %v12507_v54 = vld [vmem:[#allocation20_spill] sm:$0xff] }
 0xbad   : > { %vm6048_vm9 = vcmp.ge.f32.partialorder %v6040_v20, 0.0  ;;  %v6056_v55 = vmul.f32 0.2, %v6040_v20  ;;  %6292 = vrot.lane.b32.xlu0 %v6280_v5, %s9132_s17  ;;  %v11827_v13 = vld [vmem:[#allocation2 + $0x18] sm:$0xff]  ;;  %v11836_v15 = vsel %vm6047_vm7, %v6039_v36, %v6055_v14 }
 0xbae   : > { %v6107_v12 = vmul.bf16 %v11827_v13, %v9731_v31  ;;  %v6100_v48 = vmul.bf16 %v11827_v13, %v12504_v1  ;;  %v6114_v39 = vmul.bf16 %v11827_v13, %v9596_v41  ;;  %12505 = vst [vmem:[#allocation24_spill] sm:$0xff] %v11836_v15  ;;  %v6141_v33 = vshll.u32 %v11827_v13, 16  ;;  %8423 = vmatpush3.bf16.msra.mxu1 %v8829_v4  ;;  %v8832_v36 = vld [vmem:[#allocation6 + $0x468] sm:$0xff]  }
 0xbaf   : > { %v11838_v37 = vsel %vm6048_vm9, %v6040_v20, %v6056_v55  ;;  %v6145_v28 = vshrl.u32 %v11827_v13, 16  ;;  %8424 = vmatprep.subr.bf16.mxu1 %v8830_v57  ;;  %v12508_v57 = vld [vmem:[#allocation22_spill] sm:$0xff]  ;;  %v6314_v47 = vrot.slane %v6116_v2, 1 }
 0xbb0   : > { %12506 = vst [vmem:[#allocation25_spill] sm:$0xff] %v11838_v37  ;;  %v6068_v45 = vpack.c.bf16 %v11838_v37, %v11836_v15  ;;  %6182 = vrot.lane.b32.xlu1 %v6175_v58, %s9130_s24  ;;  %v11845_v63 = vrot.slane %v6100_v48, 5  ;;  %v6310_v26 = vrot.slane %v6114_v39, 1  ;;  %v6143_v14 = vrot.slane %v6141_v33, 1 }
 0xbb1   : > { %6267 = vrot.lane.b32.xlu0 %v6107_v12, %s9130_s24  ;;  %v6221_v60 = vrot.slane %v6145_v28, 4  ;;  %v6222_v4 = vrot.slane %v6141_v33, 5  ;;  %v6088_v12 = vmul.bf16 %v11827_v13, %v12507_v54  ;;  %v6468_v39 = vor.u32 %v6467_v42, %v6464_v22 }
 0xbb2   : > { %6072 = vst.msk [vmem:[#allocation2 + $0x20] sm:$0xff] %vm300_vm0, %v6068_v45  ;;  %v6311_v49 = vsel %vm722_vm4, %v6308_v38, %v6310_v26  ;;  %v6243_v5 = vsel %vm792_vm5, %v11776_v3, %v11845_v63  ;;  %8425 = vmatpush3.bf16.msra.mxu1 %v8831_v50  ;;  %v6139_v38 = vor.u32 %v6137_v61, %v11792_v16 }
 0xbb3   : > { %v6470_v20 = vshrl.u32 %v6311_v49, 16  ;;  %v6473_v32 = vshll.u32 %v6311_v49, 16  ;;  %8426 = vmatprep.subr.bf16.mxu1 %v8832_v36  ;;  %v6223_v48 = vor.u32 %v6222_v4, %v6221_v60  ;;  %v11873_v45 = vrot.slane %v6088_v12, 1  ;;  %v6097_v36 = vld [vmem:[#allocation2 + $0x28] sm:$0x1]  ;;  %v12509_v49 = vld [vmem:[#allocation23_spill] sm:$0xff] }
 0xbb4   : > { %6206 = vrot.lane.b32.xlu1 %v6199_v17, %s9132_s17  ;;  %v6144_v3 = vsel %vm609_vm8, %v6139_v38, %v6143_v14  ;;  %v6095_v50 = vmul.bf16 %v11827_v13, %v12508_v57  ;;  %v12510_v4 = vld [vmem:[#allocation21_spill] sm:$0xff] }
 0xbb5   : > { %6252 = vrot.lane.b32.xlu0 %v6243_v5, %s9131_s26  ;;  %v6472_v55 = vrot.slane %v6470_v20, 3  ;;  %v6475_v58 = vrot.slane %v6473_v32, 4  ;;  %v11868_v33 = vsel %vm513_vm2, %v11808_v7, %v6223_v48  ;;  %v6147_v32 = vor.u32 %v6145_v28, %v6143_v14 }
 0xbb6   : > { %8427 = vmatpush3.bf16.msra.mxu1 %v8833_v40  ;;  %v6102_v40 = vmul.bf16 %v6097_v36, %v12510_v4  ;;  %v6177_v38 = vsel %vm722_vm4, %v11805_v51, %v11873_v45 }
 0xbb7   : > { %v6476_v30 = vor.u32 %v6475_v58, %v6472_v55  ;;  %v6200_v55 = vrot.slane %v6095_v50, 4  ;;  %v6545_v50 = vshrl.u32 %v6314_v47, 16 }
 0xbb8   : > { %6294 = vrot.lane.b32.xlu1 %v6144_v3, %s9132_s17  ;;  %v6246_v51 = vrot.slane %v6102_v40, 5 }
 0xbb9   : > { %v6477_v61 = vsel %vm561_vm15, %v6468_v39, %v6476_v30  ;;  %v11871_v16 = vld [vmem:[#allocation2 + $0x20] sm:$0xff] }
 0xbba   : > { %8546 = vmatprep.mubr.msk.bf16.mxu0 %vm300_vm0, %v6477_v61  ;;  %v6108_v17 = vmul.bf16 %v11871_v16, %v9812_v46  ;;  %v6229_v7 = vshll.u32 %v11871_v16, 16  ;;  %v6101_v22 = vmul.bf16 %v11871_v16, %v12509_v49  ;;  %v6115_v60 = vmul.bf16 %v11871_v16, %v12507_v54  ;;  %v11885_v42 = vld [vmem:[#allocation2 + $0x20] sm:$0xf] }
 0xbbb   : > { %v6226_v20 = vshrl.u32 %v11871_v16, 16  ;;  %v6149_v12 = vshll.u32 %v11885_v42, 16  ;;  %v6084_v4 = vld [vmem:[#allocation2 + $0x20] sm:$0x1f] }
 0xbbc   : > { %6160 = vrot.lane.b32.xlu1 %v6144_v3, %s9131_s26  ;;  %6269 = vrot.lane.b32.xlu0 %v6108_v17, %s9130_s24  ;;  %v6281_v5 = vrot.slane %v6229_v7, 1  ;;  %v6312_v2 = vrot.slane %v6115_v60, 1  ;;  %v6244_v58 = vrot.slane %v6101_v22, 5  ;;  %v6104_v17 = vld [vmem:[#allocation2 + $0x28] sm:$0xf]  ;;  %v6548_v22 = vshll.u32 %v6314_v47, 16 }
 0xbbd   : > { %v6228_v28 = vrot.slane %v6226_v20, 4  ;;  %v6231_v57 = vrot.slane %v6229_v7, 5  ;;  %v6285_v23 = vshll.u32 %v6104_v17, 16  ;;  %v6151_v15 = vrot.slane %v6149_v12, 1 }
 0xbbe   : > { %v6282_v39 = vsel %vm609_vm8, %v6147_v32, %v6281_v5  ;;  %v6313_v61 = vsel %vm722_vm4, %v6310_v26, %v6312_v2  ;;  %v6315_v3 = vsel %vm722_vm4, %v6312_v2, %v6314_v47  ;;  %v6201_v2 = vsel %vm747_vm10, %v11816_v43, %v6200_v55 }
 0xbbf   : > { %v6495_v14 = vshrl.u32 %v6313_v61, 16  ;;  %v6498_v60 = vshll.u32 %v6313_v61, 16  ;;  %v6520_v49 = vshrl.u32 %v6315_v3, 16  ;;  %v6523_v36 = vshll.u32 %v6315_v3, 16 }
 0xbc0   : > { %6184 = vrot.lane.b32.xlu1 %v6177_v38, %s9130_s24  ;;  %6296 = vrot.lane.b32.xlu0 %v6282_v39, %s9132_s17  ;;  %v6089_v61 = vmul.bf16 %v6084_v4, %v9665_v56  ;;  %v11903_v3 = vor.u32 %v6231_v57, %v6228_v28  ;;  %v6245_v38 = vsel %vm792_vm5, %v11845_v63, %v6244_v58  ;;  %v6547_v57 = vrot.slane %v6545_v50, 3 }
 0xbc1   : > { %v6497_v54 = vrot.slane %v6495_v14, 3  ;;  %v6500_v1 = vrot.slane %v6498_v60, 4  ;;  %v6522_v26 = vrot.slane %v6520_v49, 3  ;;  %v6525_v37 = vrot.slane %v6523_v36, 4 }
 0xbc2   : > { %v11911_v47 = vsel %vm513_vm2, %v6223_v48, %v11903_v3  ;;  %v6550_v49 = vrot.slane %v6548_v22, 4  ;;  %v6287_v63 = vrot.slane %v6285_v23, 1  ;;  %v6178_v48 = vrot.slane %v6089_v61, 1 }
 0xbc3   : > { %v6501_v39 = vor.u32 %v6500_v1, %v6497_v54  ;;  %v6526_v40 = vor.u32 %v6525_v37, %v6522_v26  ;;  %v6096_v1 = vmul.bf16 %v11871_v16, %v9757_v29  ;;  %v6152_v37 = vsel %vm609_vm8, %v6147_v32, %v6151_v15  ;;  %v6073_v26 = vld [vmem:[#allocation2] sm:$0xf8] }
 0xbc4   : > { %6208 = vrot.lane.b32.xlu1 %v6201_v2, %s9132_s17  ;;  %6254 = vrot.lane.b32.xlu0 %v6245_v38, %s9131_s26  ;;  %v6247_v54 = vsel %vm792_vm5, %v6244_v58, %v6246_v51  ;;  %v6283_v4 = vor.u32 %v6281_v5, %v6226_v20  ;;  %v6179_v12 = vsel %vm722_vm4, %v11873_v45, %v6178_v48  ;;  %v6289_v32 = vshrl.u32 %v6104_v17, 16 }
 0xbc5   : > { %v6502_v43 = vsel %vm561_vm15, %v6476_v30, %v6501_v39  ;;  %v6527_v7 = vsel %vm561_vm15, %v6501_v39, %v6526_v40  ;;  %v6551_v30 = vor.u32 %v6550_v49, %v6547_v57  ;;  %v6202_v28 = vrot.slane %v6096_v1, 4 }
 0xbc6   : > { %8547 = vmatmul.mubr.msk.bf16.vlgmr.msra.gmra.mrb[64].mxu0 %vm300_vm0, %v6502_v43  ;;  %v6288_v23 = vsel %vm609_vm8, %v6283_v4, %v6287_v63  ;;  %v6109_v16 = vmul.bf16 %v6104_v17, %v9772_v59  ;;  %v6153_v45 = vshrl.u32 %v11885_v42, 16  ;;  %v6291_v58 = vor.u32 %v6289_v32, %v6287_v63 }
 0xbc7   : > { %8550 = vmatprep.mubr.msk.bf16.mxu0 %vm300_vm0, %v6527_v7  ;;  %v6552_v20 = vsel %vm561_vm15, %v6526_v40, %v6551_v30  ;;  %v6203_v5 = vsel %vm747_vm10, %v6200_v55, %v6202_v28  ;;  %v6079_v40 = vmul.bf16 %v11719_v44, %v9495_v0 }
 0xbc8   : > { %6162 = vrot.lane.b32.xlu1 %v6152_v37, %s9131_s26  ;;  %6256 = vrot.lane.b32.xlu0 %v6247_v54, %s9131_s26  ;;  %v6155_v14 = vor.u32 %v6153_v45, %v6151_v15  ;;  %v6078_v15 = vmul.bf16 %v6073_v26, %v9469_v53 }
 0xbcc   : > { %6186 = vrot.lane.b32.xlu1 %v6179_v12, %s9130_s24  ;;  %6298 = vrot.lane.b32.xlu0 %v6288_v23, %s9132_s17 }
 0xbce   : > { %8551 = vmatmul.mubr.msk.bf16.gmra.mrb[68].mxu0 %vm300_vm0, %v6552_v20 }
 0xbd0   : > { %6210 = vrot.lane.b32.xlu1 %v6203_v5, %s9132_s17  ;;  %6271 = vrot.lane.b32.xlu0 %v6109_v16, %s9130_s24 }
 0xbd4   : > { %6164 = vrot.lane.b32.xlu1 %v6155_v14, %s9131_s26  ;;  %6300 = vrot.lane.b32.xlu0 %v6291_v58, %s9132_s17 }
 0xbd8   : > { %6188 = vrot.lane.b32.xlu1 %v6178_v48, %s9130_s24 }
 0xbdc   : > { %6212 = vrot.lane.b32.xlu1 %v6202_v28, %s9132_s17 }
 0xc0b   : > { %v6264_v17 = vpop.permute.xlu0 %6263 }
 0xc0f   : > { %v6249_v60 = vpop.permute.xlu0 %6248 }
 0xc10   : > { %v6353_v38 = vsel %vm300_vm0, %v11755_v25, %v6249_v60 }
 0xc11   : > { %v6367_v7 = vsel %vm885_vm12, %v6353_v38, %v6264_v17 }
 0xc13   : > { %v6157_v36 = vpop.permute.xlu0 %6156 }
 0xc14   : > { %v6318_v43 = vsel %vm300_vm0, %v6078_v15, %v6157_v36 }
 0xc16   : > { %v6266_v55 = vpop.permute.xlu1 %6265 }
 0xc17   : > { %v6181_v51 = vpop.permute.xlu0 %6180 }
 0xc18   : > { %v6332_v49 = vsel %vm885_vm12, %v6318_v43, %v6181_v51 }
 0xc1a   : > { %v6251_v50 = vpop.permute.xlu1 %6250 }
 0xc1b   : > { %v6205_v22 = vpop.permute.xlu0 %6204  ;;  %v6356_v48 = vsel %vm300_vm0, %v11821_v9, %v6251_v50 }
 0xc1c   : > { %v6342_v37 = vsel %vm896_vm11, %v6332_v49, %v6205_v22  ;;  %v6369_v20 = vsel %vm885_vm12, %v6356_v48, %v6266_v55 }
 0xc1d   : > { %v6431_v28 = vshrl.u32 %v6342_v37, 16  ;;  %v6434_v16 = vshll.u32 %v6342_v37, 16 }
 0xc1e   : > { %v6159_v2 = vpop.permute.xlu1 %6158 }
 0xc1f   : > { %v6293_v61 = vpop.permute.xlu0 %6292  ;;  %v6321_v63 = vsel %vm300_vm0, %v6079_v40, %v6159_v2  ;;  %v6433_v51 = vrot.slane %v6431_v28, 3  ;;  %v6436_v50 = vrot.slane %v6434_v16, 4 }
 0xc20   : > { %v6377_v1 = vsel %vm896_vm11, %v6367_v7, %v6293_v61 }
 0xc21   : > { %v6446_v4 = vshrl.u32 %v6377_v1, 16  ;;  %v6449_v30 = vshll.u32 %v6377_v1, 16  ;;  %v6437_v40 = vor.u32 %v6436_v50, %v6433_v51  ;;  %v6080_v1 = vmul.bf16 %v11758_v8, %v9731_v31 }
 0xc22   : > { %v6183_v39 = vpop.permute.xlu1 %6182  ;;  %v6081_v50 = vmul.bf16 %v11827_v13, %v9812_v46 }
 0xc23   : > { %v6268_v57 = vpop.permute.xlu0 %6267  ;;  %v6334_v54 = vsel %vm885_vm12, %v6321_v63, %v6183_v39  ;;  %v6448_v17 = vrot.slane %v6446_v4, 3  ;;  %v6451_v60 = vrot.slane %v6449_v30, 4 }
 0xc25   : > { %v6452_v55 = vor.u32 %v6451_v60, %v6448_v17 }
 0xc26   : > { %v6207_v25 = vpop.permute.xlu1 %6206 }
 0xc27   : > { %v6344_v44 = vsel %vm896_vm11, %v6334_v54, %v6207_v25  ;;  %v6253_v32 = vpop.permute.xlu0 %6252 }
 0xc28   : > { %v6438_v12 = vshrl.u32 %v6344_v44, 16  ;;  %v6441_v23 = vshll.u32 %v6344_v44, 16  ;;  %v6359_v38 = vsel %vm300_vm0, %v11868_v33, %v6253_v32 }
 0xc29   : > { %v6371_v7 = vsel %vm885_vm12, %v6359_v38, %v6268_v57 }
 0xc2a   : > { %v6295_v5 = vpop.permute.xlu1 %6294  ;;  %v6440_v45 = vrot.slane %v6438_v12, 3  ;;  %v6443_v58 = vrot.slane %v6441_v23, 4 }
 0xc2b   : > { %v6379_v14 = vsel %vm896_vm11, %v6369_v20, %v6295_v5 }
 0xc2c   : > { %v6453_v36 = vshrl.u32 %v6379_v14, 16  ;;  %v6456_v9 = vshll.u32 %v6379_v14, 16  ;;  %v6444_v15 = vor.u32 %v6443_v58, %v6440_v45 }
 0xc2e   : > { %v6455_v22 = vrot.slane %v6453_v36, 3  ;;  %v6458_v26 = vrot.slane %v6456_v9, 4  ;;  %v6161_v2 = vpop.permute.xlu1 %6160  ;;  %v6270_v61 = vpop.permute.xlu0 %6269  ;;  %v6445_v54 = vsel %vm561_vm15, %v6437_v40, %v6444_v15 }
 0xc2f   : > { %v6324_v33 = vsel %vm300_vm0, %v6080_v1, %v6161_v2 }
 0xc30   : > { %v6459_v39 = vor.u32 %v6458_v26, %v6455_v22 }
 0xc32   : > { %v6185_v43 = vpop.permute.xlu1 %6184  ;;  %v6297_v49 = vpop.permute.xlu0 %6296  ;;  %v6460_v63 = vsel %vm561_vm15, %v6452_v55, %v6459_v39 }
 0xc33   : > { %v6381_v37 = vsel %vm896_vm11, %v6371_v7, %v6297_v49  ;;  %6713 = vmatprep.mubr.bf16.mxu1 %v6460_v63  ;;  %v6336_v44 = vsel %vm885_vm12, %v6324_v33, %v6185_v43 }
 0xc34   : > { %v6486_v25 = vshrl.u32 %v6381_v37, 16  ;;  %v6489_v48 = vshll.u32 %v6381_v37, 16  ;;  %6714 = vmatmul.mubr.bf16.vlgmr.msra.gmra.mrb[104].mxu1 %v6445_v54 }
 0xc36   : > { %v6488_v4 = vrot.slane %v6486_v25, 3  ;;  %v6491_v57 = vrot.slane %v6489_v48, 4  ;;  %v6209_v30 = vpop.permute.xlu1 %6208  ;;  %v6255_v12 = vpop.permute.xlu0 %6254 }
 0xc37   : > { %v6346_v23 = vsel %vm896_vm11, %v6336_v44, %v6209_v30  ;;  %v6362_v14 = vsel %vm300_vm0, %v11911_v47, %v6255_v12 }
 0xc38   : > { %v6492_v28 = vor.u32 %v6491_v57, %v6488_v4  ;;  %v6478_v8 = vshrl.u32 %v6346_v23, 16  ;;  %v6481_v16 = vshll.u32 %v6346_v23, 16  ;;  %v6373_v36 = vsel %vm885_vm12, %v6362_v14, %v6270_v61 }
 0xc3a   : > { %v6480_v32 = vrot.slane %v6478_v8, 3  ;;  %v6483_v20 = vrot.slane %v6481_v16, 4  ;;  %v6163_v5 = vpop.permute.xlu1 %6162  ;;  %v6257_v45 = vpop.permute.xlu0 %6256  ;;  %v6493_v58 = vsel %vm561_vm15, %v6459_v39, %v6492_v28 }
 0xc3b   : > { %6721 = vmatprep.mubr.bf16.mxu1 %v6493_v58  ;;  %v6327_v38 = vsel %vm300_vm0, %v6081_v50, %v6163_v5  ;;  %v6365_v13 = vsel %vm300_vm0, %v11903_v3, %v6257_v45  ;;  %v6082_v3 = vmul.bf16 %v11885_v42, %v9772_v59 }
 0xc3c   : > { %v6484_v17 = vor.u32 %v6483_v20, %v6480_v32 }
 0xc3e   : > { %v6187_v60 = vpop.permute.xlu1 %6186  ;;  %v6299_v9 = vpop.permute.xlu0 %6298  ;;  %v6485_v51 = vsel %vm561_vm15, %v6444_v15, %v6484_v17 }
 0xc3f   : > { %v6383_v22 = vsel %vm896_vm11, %v6373_v36, %v6299_v9  ;;  %6722 = vmatmul.mubr.bf16.gmra.mrb[108].mxu1 %v6485_v51  ;;  %v6338_v47 = vsel %vm885_vm12, %v6327_v38, %v6187_v60 }
 0xc40   : > { %v6511_v26 = vshrl.u32 %v6383_v22, 16  ;;  %v6514_v2 = vshll.u32 %v6383_v22, 16 }
 0xc42   : > { %v6513_v55 = vrot.slane %v6511_v26, 3  ;;  %v6516_v39 = vrot.slane %v6514_v2, 4  ;;  %v6211_v40 = vpop.permute.xlu1 %6210  ;;  %v6272_v43 = vpop.permute.xlu0 %6271 }
 0xc43   : > { %v6348_v61 = vsel %vm896_vm11, %v6338_v47, %v6211_v40  ;;  %v6375_v37 = vsel %vm885_vm12, %v6365_v13, %v6272_v43  ;;  %v8839_v40 = vld [vmem:[#allocation9 + $0x14] ss:$8 sps:$4 sm:$0xff]   ;;  %v8837_v43 = vld [vmem:[#allocation9 + $0x10] ss:$8 sps:$4 sm:$0xff]   ;;  %v8848_v13 = vld [vmem:[#allocation9 + $0x44] ss:$8 sps:$4 sm:$0xff]  }
 0xc44   : > { %v6517_v7 = vor.u32 %v6516_v39, %v6513_v55  ;;  %v6503_v15 = vshrl.u32 %v6348_v61, 16  ;;  %v6506_v49 = vshll.u32 %v6348_v61, 16  ;;  %v8834_v55 = vld [vmem:[#allocation9] ss:$8 sps:$4 sm:$0xff]   ;;  %v8836_v39 = vld [vmem:[#allocation9 + $0x4] ss:$8 sps:$4 sm:$0xff]  }
 0xc45   : > { %7534 = vmatprep.subr.bf16.mxu0 %v8836_v39  ;;  %v8842_v61 = vld [vmem:[#allocation9 + $0x24] ss:$8 sps:$4 sm:$0xff]  }
 0xc46   : > { %v6505_v63 = vrot.slane %v6503_v15, 3  ;;  %v6508_v1 = vrot.slane %v6506_v49, 4  ;;  %v6165_v54 = vpop.permute.xlu1 %6164  ;;  %v6301_v25 = vpop.permute.xlu0 %6300  ;;  %v6518_v48 = vsel %vm561_vm15, %v6492_v28, %v6517_v7  ;;  %7535 = vmatpush1.bf16.msra.mxu0 %v8834_v55  ;;  %v8845_v15 = vld [vmem:[#allocation9 + $0x34] ss:$8 sps:$4 sm:$0xff]   ;;  %v8843_v49 = vld [vmem:[#allocation9 + $0x30] ss:$8 sps:$4 sm:$0xff]  }
 0xc47   : > { %v6385_v33 = vsel %vm896_vm11, %v6375_v37, %v6301_v25  ;;  %6729 = vmatprep.mubr.bf16.mxu1 %v6518_v48  ;;  %v6330_v32 = vsel %vm300_vm0, %v6082_v3, %v6165_v54  ;;  %7536 = vmatprep.subr.bf16.mxu0 %v8839_v40  ;;  %v8849_v37 = vld [vmem:[#allocation9 + $0x50] ss:$8 sps:$4 sm:$0xff]   ;;  %v12003_v25 = vld [vmem:[#allocation8 + $0x7] ss:$0 sm:$0xff]  ;;  %v6861_v39 = vld [vmem:[#allocation2] sm:$0xf0] }
 0xc48   : > { %v6509_v44 = vor.u32 %v6508_v1, %v6505_v63  ;;  %v6536_v4 = vshrl.u32 %v6385_v33, 16  ;;  %v6539_v57 = vshll.u32 %v6385_v33, 16  ;;  %v8846_v63 = vld [vmem:[#allocation9 + $0x40] ss:$8 sps:$4 sm:$0xff]   ;;  %v8851_v1 = vld [vmem:[#allocation9 + $0x54] ss:$8 sps:$4 sm:$0xff]  }
 0xc49   : > { %v8855_v40 = vld [vmem:[#allocation9 + $0x70] ss:$8 sps:$4 sm:$0xff]  }
 0xc4a   : > { %v6538_v30 = vrot.slane %v6536_v4, 3  ;;  %v6541_v12 = vrot.slane %v6539_v57, 4  ;;  %v6189_v23 = vpop.permute.xlu1 %6188  ;;  %v6510_v8 = vsel %vm561_vm15, %v6484_v17, %v6509_v44  ;;  %7537 = vmatpush1.bf16.msra.mxu0 %v8837_v43  ;;  %v8857_v43 = vld [vmem:[#allocation9 + $0x74] ss:$8 sps:$4 sm:$0xff]  }
 0xc4b   : > { %6730 = vmatmul.mubr.bf16.gmra.mrb[112].mxu1 %v6510_v8  ;;  %v6340_v28 = vsel %vm885_vm12, %v6330_v32, %v6189_v23  ;;  %7538 = vmatprep.subr.bf16.mxu0 %v8842_v61 }
 0xc4c   : > { %v6542_v16 = vor.u32 %v6541_v12, %v6538_v30 }
 0xc4e   : > { %v6213_v20 = vpop.permute.xlu1 %6212  ;;  %v6543_v5 = vsel %vm561_vm15, %v6517_v7, %v6542_v16  ;;  %v8840_v7 = vld [vmem:[#allocation9 + $0x20] ss:$8 sps:$4 sm:$0xff]  }
 0xc4f   : > { %v6350_v45 = vsel %vm896_vm11, %v6340_v28, %v6213_v20  ;;  %6737 = vmatprep.mubr.bf16.mxu1 %v6543_v5  ;;  %7539 = vmatpush1.bf16.msra.mxu0 %v8840_v7 }
 0xc50   : > { %v6528_v58 = vshrl.u32 %v6350_v45, 16  ;;  %v6531_v14 = vshll.u32 %v6350_v45, 16  ;;  %7540 = vmatprep.subr.bf16.mxu0 %v8845_v15  ;;  %v6898_v15 = vshll.u32 %v6861_v39, 16 }
 0xc52   : > { %v6530_v60 = vrot.slane %v6528_v58, 3  ;;  %v6533_v36 = vrot.slane %v6531_v14, 4  ;;  %v8852_v14 = vld [vmem:[#allocation9 + $0x60] ss:$8 sps:$4 sm:$0xff]  }
 0xc53   : > { %7541 = vmatpush1.bf16.msra.mxu0 %v8843_v49 }
 0xc54   : > { %v6534_v17 = vor.u32 %v6533_v36, %v6530_v60  ;;  %7542 = vmatprep.subr.bf16.mxu0 %v8848_v13  ;;  %v8854_v60 = vld [vmem:[#allocation9 + $0x64] ss:$8 sps:$4 sm:$0xff]  }
 0xc56   : > { %v6535_v9 = vsel %vm561_vm15, %v6509_v44, %v6534_v17 }
 0xc57   : > { %6738 = vmatmul.mubr.bf16.gmra.mrb[116].mxu1 %v6535_v9  ;;  %7543 = vmatpush1.bf16.msra.mxu0 %v8846_v63  ;;  %v8858_v63 = vld [vmem:[#allocation9 + $0x80] ss:$8 sps:$4 sm:$0xff]  }
 0xc58   : > { %7544 = vmatprep.subr.bf16.mxu0 %v8851_v1  ;;  %v8860_v1 = vld [vmem:[#allocation9 + $0x84] ss:$8 sps:$4 sm:$0xff]  }
 0xc5b   : > { %7545 = vmatpush1.bf16.msra.mxu0 %v8849_v37 }
 0xc5c   : > { %7546 = vmatprep.subr.bf16.mxu0 %v8854_v60  ;;  %v6863_v60 = vmul.bf16 %v6861_v39, %v9506_v6 }
 0xc5f   : > { %7547 = vmatpush1.bf16.msra.mxu0 %v8852_v14 }
 0xc60   : > { %7548 = vmatprep.subr.bf16.mxu0 %v8857_v43 }
 0xc63   : > { %7549 = vmatpush1.bf16.msra.mxu0 %v8855_v40  ;;  %v6949_v40 = vrot.slane %v6863_v60, 1 }
 0xc64   : > { %7550 = vmatprep.subr.bf16.mxu0 %v8860_v1 }
 0xc67   : > { %7551 = vmatpush1.bf16.msra.mxu0 %v8858_v63 }
 0xc99   : > { %v11991_v42 = vpop.f32.mrb[64].mxu0 }
 0xc9a   : > { %v6780_v51 = vpop.f32.mrb[65].mxu0 }
 0xc9b   : > { %v11993_v50 = vpop.f32.mrb[66].mxu0 }
 0xc9c   : > { %v6783_v22 = vpop.f32.mrb[67].mxu0 }
 0xca1   : > { %v11995_v26 = vpop.f32.mrb[68].mxu0 }
 0xca2   : > { %v11997_v2 = vpop.f32.mrb[69].mxu0 }
 0xca3   : > { %v11999_v38 = vpop.f32.mrb[70].mxu0 }
 0xca4   : > { %v12001_v47 = vpop.f32.mrb[71].mxu0 }
 0xd07   : > { %v8428_v54 = vpop.f32.mrb[104].mxu1 }
 0xd08   : > { %v8429_v48 = vpop.f32.mrb[105].mxu1 }
 0xd09   : > { %v8430_v33 = vadd.f32 %v8429_v48, %v8428_v54  ;;  %v8431_v44 = vpop.f32.mrb[106].mxu1 }
 0xd0a   : > { %v8432_v4 = vpop.f32.mrb[107].mxu1 }
 0xd0b   : > { %v6716_v57 = vadd.f32 %v8430_v33, %v12003_v25  ;;  %v8433_v30 = vadd.f32 %v8432_v4, %v8431_v44  ;;  %v6900_v4 = vrot.slane %v6898_v15, 1 }
 0xd0d   : > { %v6781_v12 = vadd.f32 %v6780_v51, %v6716_v57  ;;  %v6719_v23 = vadd.f32 %v8433_v30, %v12003_v25 }
 0xd0f   : > { %v6811_v8 = vadd.f32 %v6781_v12, %v11706_v34  ;;  %v6784_v3 = vadd.f32 %v6783_v22, %v6719_v23 }
 0xd11   : > { %v6827_v16 = vmul.f32 0.2, %v6811_v8  ;;  %v6812_v32 = vadd.f32 %v6784_v3, %v11708_v27  ;;  %vm6819_vm13 = vcmp.ge.f32.partialorder %v6811_v8, 0.0 }
 0xd12   : > { %v8434_v28 = vpop.f32.mrb[108].mxu1 }
 0xd13   : > { %vm6820_vm14 = vcmp.ge.f32.partialorder %v6812_v32, 0.0  ;;  %v6828_v20 = vmul.f32 0.2, %v6812_v32  ;;  %v8435_v5 = vpop.f32.mrb[109].mxu1  ;;  %v6835_v36 = vsel %vm6819_vm13, %v6811_v8, %v6827_v16  ;;  %v8861_v16 = vld [vmem:[#allocation9 + $0x90] ss:$8 sps:$4 sm:$0xff]  }
 0xd14   : > { %v8436_v45 = vadd.f32 %v8435_v5, %v8434_v28  ;;  %v8437_v58 = vpop.f32.mrb[110].mxu1  ;;  %v6868_v5 = vld [vmem:[#allocation2] sm:$0x80] }
 0xd15   : > { %v6836_v17 = vsel %vm6820_vm14, %v6812_v32, %v6828_v20  ;;  %v8438_v9 = vpop.f32.mrb[111].mxu1  ;;  %v8863_v32 = vld [vmem:[#allocation9 + $0x94] ss:$8 sps:$4 sm:$0xff]  }
 0xd16   : > { %v6843_v51 = vpack.c.bf16 %v6836_v17, %v6835_v36  ;;  %v6724_v55 = vadd.f32 %v8436_v45, %v12003_v25  ;;  %v8439_v34 = vadd.f32 %v8438_v9, %v8437_v58  ;;  %7552 = vmatprep.subr.bf16.mxu0 %v8863_v32  ;;  %v8869_v32 = vld [vmem:[#allocation9 + $0xb4] ss:$8 sps:$4 sm:$0xff]  }
 0xd17   : > { %7553 = vmatpush1.bf16.msra.mxu0 %v8861_v16  ;;  %v8867_v16 = vld [vmem:[#allocation9 + $0xb0] ss:$8 sps:$4 sm:$0xff]  }
 0xd18   : > { %6847 = vst.msk [vmem:[#allocation2 + $0x8] sm:$0xff] %vm300_vm0, %v6843_v51  ;;  %v6789_v27 = vadd.f32 %v11991_v42, %v6724_v55  ;;  %v6727_v22 = vadd.f32 %v8439_v34, %v12003_v25 }
 0xd1a   : > { %v6813_v61 = vadd.f32 %v6789_v27, %v11717_v35  ;;  %v6792_v7 = vadd.f32 %v11993_v50, %v6727_v22  ;;  %v6896_v35 = vshrl.u32 %v6861_v39, 16 }
 0xd1c   : > { %vm6821_vm1 = vcmp.ge.f32.partialorder %v6813_v61, 0.0  ;;  %v6829_v49 = vmul.f32 0.2, %v6813_v61  ;;  %v6814_v13 = vadd.f32 %v6792_v7, %v11721_v21  ;;  %v6901_v36 = vor.u32 %v6900_v4, %v6896_v35 }
 0xd1e   : > { %vm6822_vm3 = vcmp.ge.f32.partialorder %v6814_v13, 0.0  ;;  %v6830_v42 = vmul.f32 0.2, %v6814_v13  ;;  %v8440_v37 = vpop.f32.mrb[112].mxu1  ;;  %v6837_v54 = vsel %vm6821_vm1, %v6813_v61, %v6829_v49 }
 0xd1f   : > { %v8441_v48 = vpop.f32.mrb[113].mxu1  ;;  %v6881_v33 = vld [vmem:[#allocation2 + $0x8] sm:$0xf8] }
 0xd20   : > { %v12016_v44 = vld [vmem:[#allocation2 + $0x8] sm:$0xff]  ;;  %v6838_v50 = vsel %vm6822_vm3, %v6814_v13, %v6830_v42  ;;  %v8442_v57 = vadd.f32 %v8441_v48, %v8440_v37  ;;  %v8443_v30 = vpop.f32.mrb[114].mxu1  ;;  %v6883_v12 = vmul.bf16 %v6881_v33, %v9469_v53 }
 0xd21   : > { %v6876_v21 = vmul.bf16 %v12016_v44, %v9509_v11  ;;  %v6844_v23 = vpack.c.bf16 %v6838_v50, %v6837_v54  ;;  %v8444_v8 = vpop.f32.mrb[115].mxu1  ;;  %v6903_v3 = vshll.u32 %v12016_v44, 16  ;;  %v6907_v45 = vshrl.u32 %v12016_v44, 16  ;;  %v6888_v43 = vld [vmem:[#allocation2 + $0x8] sm:$0xf0] }
 0xd22   : > { %v6732_v28 = vadd.f32 %v8442_v57, %v12003_v25  ;;  %v8445_v20 = vadd.f32 %v8444_v8, %v8443_v30  ;;  %7041 = vrot.lane.b32.xlu0 %v6883_v12, %s9130_s24  ;;  %v6864_v9 = vmul.bf16 %v12016_v44, %v9592_v10  ;;  %v7054_v37 = vshll.u32 %v6888_v43, 16  ;;  %v8866_v54 = vld [vmem:[#allocation9 + $0xa4] ss:$8 sps:$4 sm:$0xff]  }
 0xd23   : > { %6848 = vst.msk [vmem:[#allocation2 + $0x10] sm:$0xff] %vm300_vm0, %v6844_v23  ;;  %v7017_v14 = vrot.slane %v6876_v21, 5  ;;  %v12029_v17 = vrot.slane %v6903_v3, 1  ;;  %v6992_v34 = vrot.slane %v6907_v45, 4  ;;  %v6993_v27 = vrot.slane %v6903_v3, 5  ;;  %7554 = vmatprep.subr.bf16.mxu0 %v8866_v54 }
 0xd24   : > { %v6797_v11 = vadd.f32 %v11997_v2, %v6732_v28  ;;  %v6735_v58 = vadd.f32 %v8445_v20, %v12003_v25  ;;  %v6870_v2 = vmul.bf16 %v6868_v5, %v9622_v24  ;;  %v6890_v3 = vmul.bf16 %v6888_v43, %v9506_v6 }
 0xd25   : > { %v6906_v61 = vsel %vm609_vm8, %v6901_v36, %v12029_v17  ;;  %v12046_v7 = vor.u32 %v6993_v27, %v6992_v34  ;;  %v7056_v20 = vrot.slane %v7054_v37, 1  ;;  %v6909_v34 = vor.u32 %v6907_v45, %v12029_v17  ;;  %v8873_v37 = vld [vmem:[#allocation9 + $0xd0] ss:$8 sps:$4 sm:$0xff]  }
 0xd26   : > { %v6815_v51 = vadd.f32 %v6797_v11, %v11766_v18  ;;  %v6800_v55 = vadd.f32 %v12001_v47, %v6735_v58  ;;  %7026 = vrot.lane.b32.xlu0 %v7017_v14, %s9131_s26  ;;  %v12042_v18 = vrot.slane %v6864_v9, 1  ;;  %v6871_v47 = vmul.bf16 %v12016_v44, %v9657_v52  ;;  %v8864_v52 = vld [vmem:[#allocation9 + $0xa0] ss:$8 sps:$4 sm:$0xff]   ;;  %v8872_v11 = vld [vmem:[#allocation9 + $0xc4] ss:$8 sps:$4 sm:$0xff]  }
 0xd27   : > { %7555 = vmatpush1.bf16.msra.mxu0 %v8864_v52  ;;  %v7052_v9 = vshrl.u32 %v6888_v43, 16  ;;  %v7085_v27 = vrot.slane %v6890_v3, 1 }
 0xd28   : > { %vm6823_vm6 = vcmp.ge.f32.partialorder %v6815_v51, 0.0  ;;  %v6831_v22 = vmul.f32 0.2, %v6815_v51  ;;  %v6816_v39 = vadd.f32 %v6800_v55, %v11768_v19  ;;  %v6973_v19 = vrot.slane %v6870_v2, 4  ;;  %7556 = vmatprep.subr.bf16.mxu0 %v8869_v32  ;;  %v12511_v2 = vld [vmem:[#allocation24_spill] sm:$0xff] }
 0xd29   : > { %v6951_v12 = vsel %vm722_vm4, %v6949_v40, %v12042_v18  ;;  %v12512_v40 = vld [vmem:[#allocation18_spill] sm:$0xff] }
 0xd2a   : > { %vm6824_vm7 = vcmp.ge.f32.partialorder %v6816_v39, 0.0  ;;  %v6832_v24 = vmul.f32 0.2, %v6816_v39  ;;  %v8446_v15 = vpop.f32.mrb[116].mxu1  ;;  %6934 = vrot.lane.b32.xlu0 %v6906_v61, %s9131_s26  ;;  %v12049_v49 = vld [vmem:[#allocation2 + $0x10] sm:$0xff]  ;;  %v6839_v13 = vsel %vm6823_vm6, %v6815_v51, %v6831_v22 }
 0xd2b   : > { %v8447_v63 = vpop.f32.mrb[117].mxu1  ;;  %v6884_v1 = vmul.bf16 %v12049_v49, %v9495_v0  ;;  %v6877_v42 = vmul.bf16 %v12049_v49, %v9606_v62  ;;  %v6911_v4 = vshll.u32 %v12049_v49, 16  ;;  %v6915_v50 = vshrl.u32 %v12049_v49, 16  ;;  %7557 = vmatpush1.bf16.msra.mxu0 %v8867_v16  ;;  %v8870_v22 = vld [vmem:[#allocation9 + $0xc0] ss:$8 sps:$4 sm:$0xff]  }
 0xd2c   : > { %v6840_v48 = vsel %vm6824_vm7, %v6816_v39, %v6832_v24  ;;  %v8448_v33 = vadd.f32 %v8447_v63, %v8446_v15  ;;  %v8449_v35 = vpop.f32.mrb[118].mxu1  ;;  %v12062_v62 = vrot.slane %v6871_v47, 4  ;;  %v6865_v6 = vmul.bf16 %v12049_v49, %v9596_v41  ;;  %7558 = vmatprep.subr.bf16.mxu0 %v8872_v11  ;;  %v12513_v24 = vld [vmem:[#allocation25_spill] sm:$0xff] }
 0xd2d   : > { %v6845_v57 = vpack.c.bf16 %v6840_v48, %v6839_v13  ;;  %v8450_v30 = vpop.f32.mrb[119].mxu1  ;;  %7043 = vrot.lane.b32.xlu1 %v6884_v1, %s9130_s24  ;;  %v12060_v21 = vrot.slane %v6877_v42, 5  ;;  %v6995_v5 = vrot.slane %v6915_v50, 4  ;;  %v12074_v36 = vrot.slane %v6911_v4, 1  ;;  %v8875_v13 = vld [vmem:[#allocation9 + $0xd4] ss:$8 sps:$4 sm:$0xff]  }
 0xd2e   : > { %v6740_v23 = vadd.f32 %v8448_v33, %v12003_v25  ;;  %v8451_v8 = vadd.f32 %v8450_v30, %v8449_v35  ;;  %6958 = vrot.lane.b32.xlu0 %v6951_v12, %s9130_s24  ;;  %v6996_v51 = vrot.slane %v6911_v4, 5  ;;  %v6891_v55 = vmul.bf16 %v12049_v49, %v9592_v10  ;;  %v12514_v48 = vld [vmem:[#allocation19_spill] sm:$0xff]  ;;  %v8876_v32 = vld [vmem:[#allocation9 + $0xe0] ss:$8 sps:$4 sm:$0xff]  }
 0xd2f   : > { %6849 = vst.msk [vmem:[#allocation2 + $0x18] sm:$0xff] %vm300_vm0, %v6845_v57  ;;  %v7019_v28 = vsel %vm792_vm5, %v7017_v14, %v12060_v21  ;;  %v6975_v14 = vsel %vm747_vm10, %v6973_v19, %v12062_v62  ;;  %v7057_v39 = vor.u32 %v7056_v20, %v7052_v9  ;;  %v6872_v43 = vmul.bf16 %v12049_v49, %v12512_v40 }
 0xd30   : > { %v6805_v58 = vadd.f32 %v11995_v26, %v6740_v23  ;;  %v6743_v60 = vadd.f32 %v8451_v8, %v12003_v25  ;;  %v6997_v61 = vor.u32 %v6996_v51, %v6995_v5  ;;  %v7086_v10 = vrot.slane %v6891_v55, 1  ;;  %7559 = vmatpush1.bf16.msra.mxu0 %v8870_v22  ;;  %v12515_v51 = vld [vmem:[#allocation20_spill] sm:$0xff] }
 0xd31   : > { %7028 = vrot.lane.b32.xlu1 %v7019_v28, %s9131_s26  ;;  %v12094_v19 = vrot.slane %v6865_v6, 1  ;;  %v7058_v45 = vsel %vm609_vm8, %v7057_v39, %v12074_v36  ;;  %v12111_v54 = vrot.slane %v6872_v43, 4  ;;  %7560 = vmatprep.subr.bf16.mxu0 %v8875_v13  ;;  %v8878_v28 = vld [vmem:[#allocation9 + $0xe4] ss:$8 sps:$4 sm:$0xff]  }
 0xd32   : > { %v6817_v26 = vadd.f32 %v6805_v58, %v12511_v2  ;;  %v6808_v25 = vadd.f32 %v11999_v38, %v6743_v60  ;;  %6982 = vrot.lane.b32.xlu0 %v6975_v14, %s9132_s17  ;;  %v6914_v38 = vsel %vm609_vm8, %v6909_v34, %v12074_v36  ;;  %v12101_v17 = vsel %vm513_vm2, %v12046_v7, %v6997_v61  ;;  %v8879_v14 = vld [vmem:[#allocation9 + $0xf0] ss:$8 sps:$4 sm:$0xff]  }
 0xd33   : > { %v12104_v63 = vsel %vm722_vm4, %v7085_v27, %v7086_v10  ;;  %v6953_v30 = vsel %vm722_vm4, %v12042_v18, %v12094_v19  ;;  %v8881_v18 = vld [vmem:[#allocation9 + $0xf4] ss:$8 sps:$4 sm:$0xff]   ;;  %v6977_v5 = vsel %vm747_vm10, %v12062_v62, %v12111_v54  ;;  %v12516_v27 = vld [vmem:[#allocation22_spill] sm:$0xff] }
 0xd34   : > { %v6833_v47 = vmul.f32 0.2, %v6817_v26  ;;  %v6818_v15 = vadd.f32 %v6808_v25, %v12513_v24  ;;  %vm6825_vm9 = vcmp.ge.f32.partialorder %v6817_v26, 0.0  ;;  %7561 = vmatpush1.bf16.msra.mxu0 %v8873_v37  ;;  %v12165_v24 = vld [vmem:[#allocation2 + $0x28] sm:$0xf] }
 0xd35   : > { %6936 = vrot.lane.b32.xlu1 %v6914_v38, %s9131_s26  ;;  %7562 = vmatprep.subr.bf16.mxu0 %v8878_v28 }
 0xd36   : > { %vm6826_vm13 = vcmp.ge.f32.partialorder %v6818_v15, 0.0  ;;  %v6834_v1 = vmul.f32 0.2, %v6818_v15  ;;  %7070 = vrot.lane.b32.xlu0 %v7058_v45, %s9132_s17  ;;  %v12107_v42 = vld [vmem:[#allocation2 + $0x18] sm:$0xff]  ;;  %v6841_v4 = vsel %vm6825_vm9, %v6817_v26, %v6833_v47  ;;  %v7243_v26 = vshrl.u32 %v12104_v63, 16 }
 0xd37   : > { %v6885_v52 = vmul.bf16 %v12107_v42, %v9731_v31  ;;  %v6878_v33 = vmul.bf16 %v12107_v42, %v12514_v48  ;;  %v6919_v35 = vshll.u32 %v12107_v42, 16  ;;  %v6923_v12 = vshrl.u32 %v12107_v42, 16  ;;  %v6875_v47 = vld [vmem:[#allocation2 + $0x28] sm:$0x1] }
 0xd38   : > { %v6842_v57 = vsel %vm6826_vm13, %v6818_v15, %v6834_v1  ;;  %v6892_v20 = vmul.bf16 %v12107_v42, %v9596_v41  ;;  %v6917_v41 = vor.u32 %v6915_v50, %v12074_v36  ;;  %7563 = vmatpush1.bf16.msra.mxu0 %v8876_v32  ;;  %v6866_v55 = vmul.bf16 %v12107_v42, %v12515_v51  ;;  %v12517_v15 = vld [vmem:[#allocation23_spill] sm:$0xff] }
 0xd39   : > { %v6846_v23 = vpack.c.bf16 %v6842_v57, %v6841_v4  ;;  %6960 = vrot.lane.b32.xlu1 %v6953_v30, %s9130_s24  ;;  %v12122_v8 = vrot.slane %v6878_v33, 5  ;;  %v6999_v3 = vrot.slane %v6923_v12, 4  ;;  %v7000_v16 = vrot.slane %v6919_v35, 5  ;;  %7564 = vmatprep.subr.bf16.mxu0 %v8881_v18  ;;  %v8884_v30 = vld [vmem:[#allocation9 + $0x104] ss:$8 sps:$4 sm:$0xff]  }
 0xd3a   : > { %7045 = vrot.lane.b32.xlu0 %v6885_v52, %s9130_s24  ;;  %v6921_v11 = vrot.slane %v6919_v35, 1  ;;  %v12133_v60 = vrot.slane %v6892_v20, 1  ;;  %v7246_v50 = vshll.u32 %v12104_v63, 16  ;;  %v6873_v22 = vmul.bf16 %v12107_v42, %v12516_v27  ;;  %v12518_v35 = vld [vmem:[#allocation21_spill] sm:$0xff] }
 0xd3b   : > { %6850 = vst.msk [vmem:[#allocation2 + $0x20] sm:$0xff] %vm300_vm0, %v6846_v23  ;;  %v12131_v58 = vor.u32 %v7000_v16, %v6999_v3  ;;  %v7021_v6 = vsel %vm792_vm5, %v12060_v21, %v12122_v8  ;;  %v6889_v21 = vld [vmem:[#allocation2 + $0x28] sm:$0x1f]  ;;  %v12162_v43 = vrot.slane %v6866_v55, 1  ;;  %v7245_v63 = vrot.slane %v7243_v26, 3 }
 0xd3c   : > { %v7089_v9 = vsel %vm722_vm4, %v7086_v10, %v12133_v60  ;;  %v6922_v2 = vsel %vm609_vm8, %v6917_v41, %v6921_v11  ;;  %7565 = vmatpush1.bf16.msra.mxu0 %v8879_v14  ;;  %v6894_v39 = vmul.bf16 %v6889_v21, %v9665_v56  ;;  %v7248_v1 = vrot.slane %v7246_v50, 4 }
 0xd3d   : > { %6984 = vrot.lane.b32.xlu1 %v6977_v5, %s9132_s17  ;;  %v12145_v62 = vsel %vm513_vm2, %v6997_v61, %v12131_v58  ;;  %v7251_v36 = vshrl.u32 %v7089_v9, 16  ;;  %v7254_v25 = vshll.u32 %v7089_v9, 16  ;;  %v6925_v61 = vor.u32 %v6923_v12, %v6921_v11  ;;  %7607 = vmatprep.subr.bf16.mxu0 %v8884_v30 }
 0xd3e   : > { %7030 = vrot.lane.b32.xlu0 %v7021_v6, %s9131_s26  ;;  %v6880_v4 = vmul.bf16 %v6875_v47, %v12518_v35  ;;  %v7063_v16 = vshll.u32 %v12165_v24, 16  ;;  %v6955_v32 = vsel %vm722_vm4, %v12094_v19, %v12162_v43  ;;  %v6978_v28 = vrot.slane %v6873_v22, 4 }
 0xd3f   : > { %v7253_v48 = vrot.slane %v7251_v36, 3  ;;  %v7256_v33 = vrot.slane %v7254_v25, 4  ;;  %v7249_v18 = vor.u32 %v7248_v1, %v7245_v63  ;;  %v12187_v41 = vrot.slane %v6894_v39, 1 }
 0xd40   : > { %v7024_v14 = vrot.slane %v6880_v4, 5  ;;  %v6979_v26 = vsel %vm747_vm10, %v12111_v54, %v6978_v28 }
 0xd41   : > { %7072 = vrot.lane.b32.xlu1 %v6922_v2, %s9132_s17  ;;  %v7257_v11 = vor.u32 %v7256_v33, %v7253_v48  ;;  %v7067_v48 = vshrl.u32 %v12165_v24, 16 }
 0xd42   : > { %v12155_v34 = vld [vmem:[#allocation2 + $0x20] sm:$0xff] }
 0xd43   : > { %v6886_v40 = vmul.bf16 %v12155_v34, %v9812_v46  ;;  %v7007_v10 = vshll.u32 %v12155_v34, 16  ;;  %v6879_v38 = vmul.bf16 %v12155_v34, %v12517_v15  ;;  %v12169_v45 = vld [vmem:[#allocation2 + $0x20] sm:$0xf]  ;;  %v7004_v13 = vshrl.u32 %v12155_v34, 16 }
 0xd44   : > { %v6927_v23 = vshll.u32 %v12169_v45, 16  ;;  %v6862_v3 = vld [vmem:[#allocation2 + $0x20] sm:$0x1f]  ;;  %v6893_v6 = vmul.bf16 %v12155_v34, %v12515_v51  ;;  %v12196_v21 = vsel %vm561_vm15, %v7249_v18, %v7257_v11  ;;  %v6874_v50 = vmul.bf16 %v12155_v34, %v9757_v29 }
 0xd45   : > { %6938 = vrot.lane.b32.xlu1 %v6922_v2, %s9131_s26  ;;  %7047 = vrot.lane.b32.xlu0 %v6886_v40, %s9130_s24  ;;  %v7059_v37 = vrot.slane %v7007_v10, 1  ;;  %v7009_v52 = vrot.slane %v7007_v10, 5  ;;  %v7006_v57 = vrot.slane %v7004_v13, 4  ;;  %v7022_v20 = vrot.slane %v6879_v38, 5 }
 0xd46   : > { %v6867_v9 = vmul.bf16 %v6862_v3, %v9665_v56  ;;  %v6929_v19 = vrot.slane %v6927_v23, 1  ;;  %v7090_v2 = vrot.slane %v6893_v6, 1  ;;  %v7065_v56 = vrot.slane %v7063_v16, 1 }
 0xd47   : > { %v7060_v12 = vsel %vm609_vm8, %v6925_v61, %v7059_v37  ;;  %v12183_v5 = vor.u32 %v7009_v52, %v7006_v57  ;;  %v7023_v51 = vsel %vm792_vm5, %v12122_v8, %v7022_v20  ;;  %v7025_v39 = vsel %vm792_vm5, %v7022_v20, %v7024_v14 }
 0xd48   : > { %v7093_v36 = vsel %vm722_vm4, %v7090_v2, %v12187_v41  ;;  %v6930_v8 = vsel %vm609_vm8, %v6925_v61, %v6929_v19  ;;  %v6956_v40 = vrot.slane %v6867_v9, 1  ;;  %v7061_v10 = vor.u32 %v7059_v37, %v7004_v13 }
 0xd49   : > { %6962 = vrot.lane.b32.xlu1 %v6955_v32, %s9130_s24  ;;  %7074 = vrot.lane.b32.xlu0 %v7060_v12, %s9132_s17  ;;  %v12193_v55 = vsel %vm513_vm2, %v12131_v58, %v12183_v5  ;;  %v7091_v58 = vsel %vm722_vm4, %v12133_v60, %v7090_v2  ;;  %v7301_v54 = vshrl.u32 %v7093_v36, 16  ;;  %v7304_v22 = vshll.u32 %v7093_v36, 16  ;;  %v6851_v32 = vld [vmem:[#allocation2] sm:$0xf8] }
 0xd4a   : > { %v7276_v25 = vshrl.u32 %v7091_v58, 16  ;;  %v7279_v27 = vshll.u32 %v7091_v58, 16  ;;  %v6980_v63 = vrot.slane %v6874_v50, 4  ;;  %v6957_v1 = vsel %vm722_vm4, %v12162_v43, %v6956_v40 }
 0xd4b   : > { %v7303_v38 = vrot.slane %v7301_v54, 3  ;;  %v7306_v29 = vrot.slane %v7304_v22, 4  ;;  %v7066_v61 = vsel %vm609_vm8, %v7061_v10, %v7065_v56  ;;  %v6887_v37 = vmul.bf16 %v12165_v24, %v9772_v59 }
 0xd4c   : > { %v7278_v47 = vrot.slane %v7276_v25, 3  ;;  %v7281_v15 = vrot.slane %v7279_v27, 4  ;;  %v6981_v43 = vsel %vm747_vm10, %v6978_v28, %v6980_v63  ;;  %v6931_v33 = vshrl.u32 %v12169_v45, 16 }
 0xd4d   : > { %6986 = vrot.lane.b32.xlu1 %v6979_v26, %s9132_s17  ;;  %7032 = vrot.lane.b32.xlu0 %v7023_v51, %s9131_s26  ;;  %v12214_v34 = vor.u32 %v7306_v29, %v7303_v38  ;;  %v7069_v35 = vor.u32 %v7067_v48, %v7065_v56  ;;  %v6856_v18 = vmul.bf16 %v6851_v32, %v9469_v53  ;;  %v8887_v32 = vld [vmem:[#allocation9 + $0x114] ss:$8 sps:$4 sm:$0xff]   ;;  %vm7681_vm2 = vcmask 654336  }
 0xd4e   : > { %v7282_v60 = vor.u32 %v7281_v15, %v7278_v47  ;;  %v6933_v4 = vor.u32 %v6931_v33, %v6929_v19  ;;  %v6857_v14 = vmul.bf16 %v12016_v44, %v9495_v0 }
 0xd50   : > { %v12220_v52 = vsel %vm561_vm15, %v7257_v11, %v7282_v60  ;;  %v12224_v13 = vsel %vm561_vm15, %v7282_v60, %v12214_v34 }
 0xd51   : > { %6940 = vrot.lane.b32.xlu1 %v6930_v8, %s9131_s26  ;;  %7034 = vrot.lane.b32.xlu0 %v7025_v39, %s9131_s26 }
 0xd55   : > { %6964 = vrot.lane.b32.xlu1 %v6957_v1, %s9130_s24  ;;  %7076 = vrot.lane.b32.xlu0 %v7066_v61, %s9132_s17 }
 0xd59   : > { %6988 = vrot.lane.b32.xlu1 %v6981_v43, %s9132_s17  ;;  %7049 = vrot.lane.b32.xlu0 %v6887_v37, %s9130_s24 }
 0xd5d   : > { %6942 = vrot.lane.b32.xlu1 %v6933_v4, %s9131_s26  ;;  %7078 = vrot.lane.b32.xlu0 %v7069_v35, %s9132_s17 }
 0xd61   : > { %6966 = vrot.lane.b32.xlu1 %v6956_v40, %s9130_s24 }
 0xd65   : > { %6990 = vrot.lane.b32.xlu1 %v6980_v63, %s9132_s17 }
 0xd94   : > { %v7042_v57 = vpop.permute.xlu0 %7041 }
 0xd98   : > { %v7027_v24 = vpop.permute.xlu0 %7026 }
 0xd99   : > { %v7131_v11 = vsel %vm300_vm0, %v12046_v7, %v7027_v24 }
 0xd9a   : > { %v7145_v19 = vsel %vm885_vm12, %v7131_v11, %v7042_v57 }
 0xd9c   : > { %v6935_v30 = vpop.permute.xlu0 %6934 }
 0xd9d   : > { %v7096_v9 = vsel %vm300_vm0, %v6856_v18, %v6935_v30  ;;  %v8882_v30 = vld [vmem:[#allocation9 + $0x100] ss:$8 sps:$4 sm:$0xff]  }
 0xd9f   : > { %v7044_v12 = vpop.permute.xlu1 %7043 }
 0xda0   : > { %v6959_v23 = vpop.permute.xlu0 %6958 }
 0xda1   : > { %v7110_v26 = vsel %vm885_vm12, %v7096_v9, %v6959_v23 }
 0xda3   : > { %v7029_v3 = vpop.permute.xlu1 %7028 }
 0xda4   : > { %v6983_v16 = vpop.permute.xlu0 %6982  ;;  %v7134_v58 = vsel %vm300_vm0, %v12101_v17, %v7029_v3 }
 0xda5   : > { %v7120_v53 = vsel %vm896_vm11, %v7110_v26, %v6983_v16  ;;  %v7147_v39 = vsel %vm885_vm12, %v7134_v58, %v7044_v12 }
 0xda6   : > { %v7212_v54 = vshrl.u32 %v7120_v53, 16  ;;  %v7215_v22 = vshll.u32 %v7120_v53, 16 }
 0xda7   : > { %v6937_v28 = vpop.permute.xlu1 %6936 }
 0xda8   : > { %v7071_v20 = vpop.permute.xlu0 %7070  ;;  %v7099_v51 = vsel %vm300_vm0, %v6857_v14, %v6937_v28  ;;  %v7214_v63 = vrot.slane %v7212_v54, 3  ;;  %v7217_v1 = vrot.slane %v7215_v22, 4  ;;  %v6858_v28 = vmul.bf16 %v12049_v49, %v9731_v31  ;;  %v8885_v14 = vld [vmem:[#allocation9 + $0x110] ss:$8 sps:$4 sm:$0xff]  }
 0xda9   : > { %v7155_v56 = vsel %vm896_vm11, %v7145_v19, %v7071_v20 }
 0xdaa   : > { %v7227_v44 = vshrl.u32 %v7155_v56, 16  ;;  %v7230_v36 = vshll.u32 %v7155_v56, 16  ;;  %v7218_v24 = vor.u32 %v7217_v1, %v7214_v63 }
 0xdab   : > { %v6961_v6 = vpop.permute.xlu1 %6960 }
 0xdac   : > { %v7046_v2 = vpop.permute.xlu0 %7045  ;;  %v7112_v50 = vsel %vm885_vm12, %v7099_v51, %v6961_v6  ;;  %v7229_v38 = vrot.slane %v7227_v44, 3  ;;  %v7232_v29 = vrot.slane %v7230_v36, 4 }
 0xdae   : > { %v7233_v4 = vor.u32 %v7232_v29, %v7229_v38 }
 0xdaf   : > { %v6985_v7 = vpop.permute.xlu1 %6984 }
 0xdb0   : > { %v7122_v0 = vsel %vm896_vm11, %v7112_v50, %v6985_v7  ;;  %v7031_v8 = vpop.permute.xlu0 %7030 }
 0xdb1   : > { %v7219_v25 = vshrl.u32 %v7122_v0, 16  ;;  %v7222_v27 = vshll.u32 %v7122_v0, 16  ;;  %v7137_v35 = vsel %vm300_vm0, %v12145_v62, %v7031_v8 }
 0xdb2   : > { %v7149_v23 = vsel %vm885_vm12, %v7137_v35, %v7046_v2 }
 0xdb3   : > { %v7073_v40 = vpop.permute.xlu1 %7072  ;;  %v7221_v10 = vrot.slane %v7219_v25, 3  ;;  %v7224_v47 = vrot.slane %v7222_v27, 4 }
 0xdb4   : > { %v7157_v15 = vsel %vm896_vm11, %v7147_v39, %v7073_v40  ;;  %v6859_v39 = vmul.bf16 %v12107_v42, %v9812_v46 }
 0xdb5   : > { %v7234_v60 = vshrl.u32 %v7157_v15, 16  ;;  %v7237_v17 = vshll.u32 %v7157_v15, 16  ;;  %v7225_v33 = vor.u32 %v7224_v47, %v7221_v10 }
 0xdb7   : > { %v7236_v61 = vrot.slane %v7234_v60, 3  ;;  %v7239_v37 = vrot.slane %v7237_v17, 4  ;;  %v6939_v48 = vpop.permute.xlu1 %6938  ;;  %v7048_v43 = vpop.permute.xlu0 %7047  ;;  %v7226_v18 = vsel %vm561_vm15, %v7218_v24, %v7225_v33 }
 0xdb8   : > { %v7102_v6 = vsel %vm300_vm0, %v6858_v28, %v6939_v48 }
 0xdb9   : > { %v7240_v57 = vor.u32 %v7239_v37, %v7236_v61 }
 0xdbb   : > { %v6963_v12 = vpop.permute.xlu1 %6962  ;;  %v7075_v3 = vpop.permute.xlu0 %7074  ;;  %v7241_v16 = vsel %vm561_vm15, %v7233_v4, %v7240_v57 }
 0xdbc   : > { %v7159_v20 = vsel %vm896_vm11, %v7149_v23, %v7075_v3  ;;  %7566 = vmatprep.mubr.bf16.mxu0 %v7241_v16  ;;  %v7114_v9 = vsel %vm885_vm12, %v7102_v6, %v6963_v12 }
 0xdbd   : > { %v7267_v62 = vshrl.u32 %v7159_v20, 16  ;;  %v7270_v11 = vshll.u32 %v7159_v20, 16  ;;  %7567 = vmatmul.mubr.bf16.vlgmr.msra.gmra.mrb[72].mxu0 %v7226_v18 }
 0xdbe   : > { %7608 = vmatpush1.bf16.msra.mxu0 %v8882_v30 }
 0xdbf   : > { %v7269_v19 = vrot.slane %v7267_v62, 3  ;;  %v7272_v2 = vrot.slane %v7270_v11, 4  ;;  %v6987_v26 = vpop.permute.xlu1 %6986  ;;  %v7033_v51 = vpop.permute.xlu0 %7032  ;;  %7609 = vmatprep.subr.bf16.mxu0 %v8887_v32 }
 0xdc0   : > { %v7124_v31 = vsel %vm896_vm11, %v7114_v9, %v6987_v26  ;;  %v7140_v36 = vsel %vm300_vm0, %v12193_v55, %v7033_v51 }
 0xdc1   : > { %v7273_v49 = vor.u32 %v7272_v2, %v7269_v19  ;;  %v7259_v56 = vshrl.u32 %v7124_v31, 16  ;;  %v7262_v53 = vshll.u32 %v7124_v31, 16  ;;  %v7151_v54 = vsel %vm885_vm12, %v7140_v36, %v7048_v43 }
 0xdc2   : > { %7610 = vmatpush1.bf16.msra.mxu0 %v8885_v14  ;;  %v7329_v31 = vshll.u32 %v12187_v41, 16 }
 0xdc3   : > { %v7261_v50 = vrot.slane %v7259_v56, 3  ;;  %v7264_v7 = vrot.slane %v7262_v53, 4  ;;  %v6941_v58 = vpop.permute.xlu1 %6940  ;;  %v7035_v0 = vpop.permute.xlu0 %7034  ;;  %v7274_v44 = vsel %vm561_vm15, %v7240_v57, %v7273_v49 }
 0xdc4   : > { %7576 = vmatprep.mubr.bf16.mxu0 %v7274_v44  ;;  %v7105_v15 = vsel %vm300_vm0, %v6859_v39, %v6941_v58  ;;  %v7143_v46 = vsel %vm300_vm0, %v12183_v5, %v7035_v0  ;;  %v6860_v5 = vmul.bf16 %v12169_v45, %v9772_v59  ;;  %v12519_v59 = vmov 0  }
 0xdc5   : > { %v7265_v25 = vor.u32 %v7264_v7, %v7261_v50  ;;  %v7326_v45 = vshrl.u32 %v12187_v41, 16  ;;  %v7331_v56 = vrot.slane %v7329_v31, 4  ;;  %v7200_v7 = vld [vmem:[#allocation11] sm:$0x3] }
 0xdc7   : > { %v6965_v27 = vpop.permute.xlu1 %6964  ;;  %v7077_v22 = vpop.permute.xlu0 %7076  ;;  %v7266_v8 = vsel %vm561_vm15, %v7225_v33, %v7265_v25 }
 0xdc8   : > { %v7161_v40 = vsel %vm896_vm11, %v7151_v54, %v7077_v22  ;;  %7577 = vmatmul.mubr.bf16.gmra.mrb[76].mxu0 %v7266_v8  ;;  %v7116_v55 = vsel %vm885_vm12, %v7105_v15, %v6965_v27 }
 0xdc9   : > { %v7292_v10 = vshrl.u32 %v7161_v40, 16  ;;  %v7295_v47 = vshll.u32 %v7161_v40, 16 }
 0xdcb   : > { %v7294_v38 = vrot.slane %v7292_v10, 3  ;;  %v7297_v29 = vrot.slane %v7295_v47, 4  ;;  %v6989_v60 = vpop.permute.xlu1 %6988  ;;  %v7050_v17 = vpop.permute.xlu0 %7049 }
 0xdcc   : > { %v7126_v63 = vsel %vm896_vm11, %v7116_v55, %v6989_v60  ;;  %v7153_v43 = vsel %vm885_vm12, %v7143_v46, %v7050_v17 }
 0xdcd   : > { %v7298_v1 = vor.u32 %v7297_v29, %v7294_v38  ;;  %v7284_v61 = vshrl.u32 %v7126_v63, 16  ;;  %v7287_v37 = vshll.u32 %v7126_v63, 16 }
 0xdcf   : > { %v7286_v42 = vrot.slane %v7284_v61, 3  ;;  %v7289_v48 = vrot.slane %v7287_v37, 4  ;;  %v6943_v33 = vpop.permute.xlu1 %6942  ;;  %v7079_v35 = vpop.permute.xlu0 %7078  ;;  %v7299_v4 = vsel %vm561_vm15, %v7273_v49, %v7298_v1  ;;  %v7328_v49 = vrot.slane %v7326_v45, 3 }
 0xdd0   : > { %v7163_v57 = vsel %vm896_vm11, %v7153_v43, %v7079_v35  ;;  %7586 = vmatprep.mubr.bf16.mxu0 %v7299_v4  ;;  %v7108_v20 = vsel %vm300_vm0, %v6860_v5, %v6943_v33 }
 0xdd1   : > { %v7290_v24 = vor.u32 %v7289_v48, %v7286_v42  ;;  %v7317_v30 = vshrl.u32 %v7163_v57, 16  ;;  %v7320_v12 = vshll.u32 %v7163_v57, 16 }
 0xdd3   : > { %v7319_v23 = vrot.slane %v7317_v30, 3  ;;  %v7322_v3 = vrot.slane %v7320_v12, 4  ;;  %v6967_v16 = vpop.permute.xlu1 %6966  ;;  %v7291_v32 = vsel %vm561_vm15, %v7265_v25, %v7290_v24 }
 0xdd4   : > { %7587 = vmatmul.mubr.bf16.gmra.mrb[80].mxu0 %v7291_v32  ;;  %v7118_v18 = vsel %vm885_vm12, %v7108_v20, %v6967_v16 }
 0xdd5   : > { %v7323_v28 = vor.u32 %v7322_v3, %v7319_v23 }
 0xdd7   : > { %v6991_v62 = vpop.permute.xlu1 %6990  ;;  %v7324_v11 = vsel %vm561_vm15, %v7298_v1, %v7323_v28 }
 0xdd8   : > { %v7128_v6 = vsel %vm896_vm11, %v7118_v18, %v6991_v62  ;;  %7596 = vmatprep.mubr.bf16.mxu0 %v7324_v11 }
 0xdd9   : > { %v7309_v14 = vshrl.u32 %v7128_v6, 16  ;;  %v7312_v9 = vshll.u32 %v7128_v6, 16 }
 0xddb   : > { %v7311_v19 = vrot.slane %v7309_v14, 3  ;;  %v7314_v2 = vrot.slane %v7312_v9, 4 }
 0xddd   : > { %v7315_v26 = vor.u32 %v7314_v2, %v7311_v19 }
 0xddf   : > { %v7316_v51 = vsel %vm561_vm15, %v7290_v24, %v7315_v26 }
 0xde0   : > { %7597 = vmatmul.mubr.bf16.gmra.mrb[84].mxu0 %v7316_v51 }
 0xde1   : > { %7639 = vmatprep.mubr.bf16.mxu0 %v12519_v59 }
 0xde8   : > { %8079 = vmatmul.mubr.msk.bf16.vlgmr.msra.gmra.mrb[72].mxu0 %vm300_vm0, %v12196_v21  ;;  %v7332_v21 = vor.u32 %v7331_v56, %v7328_v49 }
 0xde9   : > { %7649 = vmatprep.mubr.bf16.mxu0 %v12519_v59 }
 0xdea   : > { %v7333_v53 = vsel %vm561_vm15, %v12214_v34, %v7332_v21 }
 0xdf0   : > { %8080 = vmatmul.mubr.msk.bf16.gmra.mrb[76].mxu0 %vm300_vm0, %v12220_v52  ;;  %v12520_v52 = vld [vmem:[#allocation17_spill] sm:$0xff] }
 0xdf1   : > { %7659 = vmatprep.mubr.bf16.mxu0 %v12519_v59  ;;  %v7204_v50 = vsub.s32 0, %v12520_v52  ;;  %v7208_v58 = vsub.s32 1, %v12520_v52 }
 0xdf3   : > { %v7205_v41 = vrot.slane %v7200_v7, %v7204_v50  ;;  %v7209_v0 = vrot.slane %v7200_v7, %v7208_v58 }
 0xdf8   : > { %8081 = vmatmul.mubr.msk.bf16.gmra.mrb[80].mxu0 %vm300_vm0, %v12224_v13 }
 0xdf9   : > { %7669 = vmatprep.mubr.bf16.mxu0 %v12519_v59 }
 0xe00   : > { %8082 = vmatmul.mubr.msk.bf16.gmra.mrb[84].mxu0 %vm300_vm0, %v7333_v53 }
 0xebb   : > { %v7641_v44 = vpop.f32.mrb[72].mxu0 }
 0xebc   : > { %v8554_v36 = vadd.f32 %v7641_v44, %v7205_v41  ;;  %v7643_v25 = vpop.f32.mrb[73].mxu0 }
 0xebd   : > { %v8555_v13 = vadd.f32 %v7643_v25, %v7209_v0  ;;  %v7645_v27 = vpop.f32.mrb[74].mxu0 }
 0xebe   : > { %7680 = vst [vmem:[%s12309_s6] sm:$0xff] %v8554_v36  ;;  %v8556_v34 = vadd.f32 %v7645_v27, %v7205_v41  ;;  %v7647_v54 = vpop.f32.mrb[75].mxu0 }
 0xebf   : > { %7682 = vst.msk [vmem:[%s12309_s6 + $0x8] sm:$0xff] %vm7681_vm2, %v8555_v13  ;;  %v8557_v22 = vadd.f32 %v7647_v54, %v7209_v0 }
 0xec0   : > { %7683 = vst [vmem:[%s12309_s6 + $0x10] sm:$0xff] %v8556_v34 }
 0xec1   : > { %7684 = vst.msk [vmem:[%s12309_s6 + $0x18] sm:$0xff] %vm7681_vm2, %v8557_v22 }
 0xec3   : > { %v7651_v8 = vpop.f32.mrb[76].mxu0 }
 0xec4   : > { %v8558_v39 = vadd.f32 %v7651_v8, %v7205_v41  ;;  %v7653_v40 = vpop.f32.mrb[77].mxu0 }
 0xec5   : > { %v8559_v10 = vadd.f32 %v7653_v40, %v7209_v0  ;;  %v7655_v47 = vpop.f32.mrb[78].mxu0 }
 0xec6   : > { %7685 = vst [vmem:[%s12309_s6 + $0x20] sm:$0xff] %v8558_v39  ;;  %v8560_v15 = vadd.f32 %v7655_v47, %v7205_v41  ;;  %v7657_v55 = vpop.f32.mrb[79].mxu0 }
 0xec7   : > { %7686 = vst.msk [vmem:[%s12309_s6 + $0x28] sm:$0xff] %vm7681_vm2, %v8559_v10  ;;  %v8561_v38 = vadd.f32 %v7657_v55, %v7209_v0 }
 0xec8   : > { %7687 = vst [vmem:[%s12309_s6 + $0x30] sm:$0xff] %v8560_v15 }
 0xec9   : > { %7688 = vst.msk [vmem:[%s12309_s6 + $0x38] sm:$0xff] %vm7681_vm2, %v8561_v38 }
 0xecb   : > { %v7661_v29 = vpop.f32.mrb[80].mxu0 }
 0xecc   : > { %v8562_v60 = vadd.f32 %v7661_v29, %v7205_v41  ;;  %v7663_v17 = vpop.f32.mrb[81].mxu0 }
 0xecd   : > { %v8563_v63 = vadd.f32 %v7663_v17, %v7209_v0  ;;  %v7665_v1 = vpop.f32.mrb[82].mxu0 }
 0xece   : > { %7689 = vst [vmem:[%s12309_s6 + $0x40] sm:$0xff] %v8562_v60  ;;  %v8564_v61 = vadd.f32 %v7665_v1, %v7205_v41  ;;  %v7667_v37 = vpop.f32.mrb[83].mxu0 }
 0xecf   : > { %7690 = vst.msk [vmem:[%s12309_s6 + $0x48] sm:$0xff] %vm7681_vm2, %v8563_v63  ;;  %v8565_v46 = vadd.f32 %v7667_v37, %v7209_v0 }
 0xed0   : > { %7691 = vst [vmem:[%s12309_s6 + $0x50] sm:$0xff] %v8564_v61 }
 0xed1   : > { %7692 = vst.msk [vmem:[%s12309_s6 + $0x58] sm:$0xff] %vm7681_vm2, %v8565_v46 }
 0xed3   : > { %v7671_v42 = vpop.f32.mrb[84].mxu0 }
 0xed4   : > { %v8566_v48 = vadd.f32 %v7671_v42, %v7205_v41  ;;  %v7673_v43 = vpop.f32.mrb[85].mxu0 }
 0xed5   : > { %v8567_v33 = vadd.f32 %v7673_v43, %v7209_v0  ;;  %v7675_v35 = vpop.f32.mrb[86].mxu0 }
 0xed6   : > { %7693 = vst [vmem:[%s12309_s6 + $0x60] sm:$0xff] %v8566_v48  ;;  %v8568_v4 = vadd.f32 %v7675_v35, %v7205_v41  ;;  %v7677_v57 = vpop.f32.mrb[87].mxu0 }
 0xed7   : > { %7694 = vst.msk [vmem:[%s12309_s6 + $0x68] sm:$0xff] %vm7681_vm2, %v8567_v33  ;;  %v8569_v24 = vadd.f32 %v7677_v57, %v7209_v0 }
 0xed8   : > { %7695 = vst [vmem:[%s12309_s6 + $0x70] sm:$0xff] %v8568_v4 }
 0xed9   : > { %7696 = vst.msk [vmem:[%s12309_s6 + $0x78] sm:$0xff] %vm7681_vm2, %v8569_v24 }
 0xeda   : > { %9054 = shalt.err (!%p9051_p13)
}
 0xedb   : > { %s9055_s10 = scalar_lea.hbm %s12335_s28, 2048  ;;  %s9059_s17 = scalar_lea.hbm %s12391_s5, 4096 }
 0xedc   : > { %p9056_p9 = scmp.ne.s32.totalorder %s12335_s28, %s9055_s10  ;;  %p9060_p4 = scmp.lt.u32.totalorder %s12335_s28, %s12391_s5 }
 0xedd   : > { %p9061_p8 = scmp.lt.u32.totalorder %s9059_s17, %s9055_s10  ;;  %p9063_p3 = scmp.lt.u32.totalorder %s9055_s10, %s12335_s28 }
 0xede   : > { %p9057_p0 = pnand %p9056_p9, %p9325_p10 }
 0xedf   : > { %p9062_p6 = por %p9061_p8, %p9060_p4 }
 0xee0   : > { %p9058_p11 = pneg %p9057_p0 }
 0xee1   : > { %p9064_p5 = por %p9063_p3, %p9062_p6 }
 0xee3   : > { %p9065_p7 = pnand %p9064_p5, %p9058_p11 }
 0xee5   : > { %9068 = shalt.err (!%p9065_p7)
}
 0xee6   : > { %s9134_s7 = smov 256   ;;  %s9135_s8 = smov 16  }
 0xee7   : > { %8604 = dma.vmem_to_hbm [thread:$0]  (%p9325_p10), %s12337_s14, 2048, %s12335_s28, %s7698_s22, %s9134_s7, %s9134_s7, %s9135_s8  }
 0xee8 PF: > { %s7726_s11 = sand.u32 1, %s9103_s18   ;;  %p12521_p12 = scmp.ne.s32.totalorder %s12433_s25, 0 }
 0xee9   : > { %p12522_p1 = scmp.ge.s32.totalorder %s9115_s21, 2  ;;  %s7727_s16 = scalar_lea.sflag [#allocation5], %s7726_s11 }
 0xeeb   : > { %p8624_p2 = pnand %p12522_p1, %p12521_p12 }
 0xeed   : > { %9098 = dma.done.wait (!%p8624_p2), %s7727_s16, 2048  }
 0xeee   : > { %9100 = vsyncadd (!%p8624_p2), %s7727_s16, 4294965248  ;;  %p20_p13 = scmp.ge.s32.totalorder %s9315_s12, 4   ;;  %s12523_s18 = smov %s9107_s19 }
 0xeef   : > { %s12524_s19 = smov %s9111_s20  ;;  %s12525_s20 = smov %s9331_s27 }
 0xef0   : > { %s12526_s21 = smov %s9315_s12  ;;  %22 = sbr.rel (!%p20_p13) target bundleno = 7 (0x7), region = 115 }
 0xef7   :  { %7732 = vsyncpa [#allocation4], 1 }
 0xef8   :  { %7734 = vsyncpa [#allocation4 + $0x1], 1 }
 0xef9   :  { %7735 = vsyncpa [#allocation7], 1 }
 0xefa   :  { %7736 = vsyncpa [#allocation10], 1 }
 0xefb   :  { %7737 = vsyncpa [#allocation5], 1 }
 0xefc   :  { %7739 = vsyncpa [#allocation5 + $0x1], 1 }

</bundles_post_ra>
